<compile_context>
chip_gen: v7x
topology: tpu7x:2x2x1
jax: 0.10.0
libtpu: 0.0.40
codegen_flags: <defaults>
</compile_context>

<pallas_src>
import jax
import jax.numpy as jnp
from jax.experimental import pallas as pl
from jax.experimental.pallas import tpu as pltpu

EPS = 1e-5
K = 7          # GCB kernel size
P = K // 2     # = 3


# --------------------------------------------------------------------------
# fused forward
# --------------------------------------------------------------------------
def global_convolution_block(x, params):
    """x: (N, H, W, Cin) f32 NHWC  ->  (N, H, W, Cout) f32."""
    N, H, W, Cin = x.shape
    Cout = params["w1a"].shape[-1]
    Hm = H - (K - 1)                      # branch2 first-conv output height
    Wp = W + (K - 1)                      # width after W-padding by P each side
    Wpp = ((Wp + 15) // 16) * 16          # bf16 sublane-pack aligned (32 for W=16)
    WPB = ((W + 2 + 15) // 16) * 16       # 3x3 pad-buffer width, bf16 aligned (32)
    HW = H * W
    M2 = Hm * Wpp
    f32, bf16 = jnp.float32, jnp.bfloat16

    # branch2 second-conv taps read columns [d, d+W) of a2pad, d < K; they must stay
    # inside the real Wp columns so the Wpp alignment padding (bias-garbage) is never read.
    assert (K - 1) + W <= Wp <= Wpp
    assert Hm >= 1

    # ------------- wrapper-side im2col for the two FIRST convs (XLA glue) -----------
    xpw = jnp.pad(x, ((0, 0), (0, 0), (P, P), (0, 0)))                  # (N,H,Wp,Cin)
    x1 = jnp.concatenate([xpw[:, :, d:d + W, :] for d in range(K)], axis=-1)
    x1 = x1.reshape(N, HW, K * Cin).astype(bf16)                        # taps along W
    x2 = jnp.concatenate([xpw[:, d:d + Hm, :, :] for d in range(K)], axis=-1)
    x2 = jnp.pad(x2, ((0, 0), (0, 0), (0, Wpp - Wp), (0, 0)))
    x2 = x2.reshape(N, M2, K * Cin).astype(bf16)                        # taps along H

    # ------------- weights -> matmul layouts (bf16 for the MXU) ----------------------
    w1a = params["w1a"].reshape(K * Cin, Cout).astype(bf16)     # from (1,K,Cin,Cout)
    w2a = params["w2a"].reshape(K * Cin, Cout).astype(bf16)     # from (K,1,Cin,Cout)
    # second-conv weights concatenated along the contraction axis -> ONE (14*Cout, Cout)
    wb = jnp.concatenate(
        [params["w1b"].reshape(K * Cout, Cout),                 # taps 0..6: branch1 (K,1)
         params["w2b"].reshape(K * Cout, Cout)],                # taps 7..13: branch2 (1,K)
        axis=0).astype(bf16)
    wr1 = params["wr1"].reshape(3, 3 * Cout, Cout).astype(bf16)
    wr2 = params["wr2"].reshape(3, 3 * Cout, Cout).astype(bf16)
    # per-channel vectors: biases + folded-BN affines, f32 (VPU epilogue, v5e-safe)
    vec = jnp.stack([params["b1a"], params["b2a"],
                     params["b1b"] + params["b2b"],             # folded second-conv bias
                     params["br1"], params["sc1"], params["sh1"],
                     params["br2"], params["sc2"], params["sh2"]], axis=0).astype(f32)

    def kernel(x1_ref, x2_ref, w1a_ref, w2a_ref, wb_ref, wr1_ref, wr2_ref, vec_ref,
               o_ref, a1pad, a2pad, cat_buf, s_buf, pad_buf, xcat_buf):
        b1a = vec_ref[0:1, :]
        b2a = vec_ref[1:2, :]
        b12 = vec_ref[2:3, :]
        br1 = vec_ref[3:4, :]
        sc1 = vec_ref[4:5, :]
        sh1 = vec_ref[5:6, :]
        br2 = vec_ref[6:7, :]
        sc2 = vec_ref[7:8, :]
        sh2 = vec_ref[8:9, :]

        # ---- first conv of each branch: ONE MXU matmul over the wrapper im2col ------
        a1 = jnp.dot(x1_ref[0], w1a_ref[...], preferred_element_type=f32) + b1a
        a2 = jnp.dot(x2_ref[0], w2a_ref[...], preferred_element_type=f32) + b2a

        # H-pad borders (re-zeroed every step: with a "parallel" grid, scratch is
        # per-core and iteration 0 may never run on this core -> pid==0 init is unsafe).
        a1pad[0:P] = jnp.zeros((P, W, Cout), bf16)
        a1pad[P + H:H + 2 * P] = jnp.zeros((P, W, Cout), bf16)
        a1pad[P:P + H] = a1.reshape(H, W, Cout).astype(bf16)
        a2pad[0:P] = jnp.zeros((P, Wpp, Cout), bf16)
        a2pad[P + Hm:Hm + 2 * P] = jnp.zeros((P, Wpp, Cout), bf16)
        a2pad[P:P + Hm] = a2.reshape(Hm, Wpp, Cout).astype(bf16)

        # ---- both SECOND convs as one matmul: tap-im2col (HW, 14*Cout), K = 1792 ----
        for d in range(K):
            # branch1 (K,1): taps along H -> free leading-dim slices, lane-aligned store
            cat_buf[:, d * Cout:(d + 1) * Cout] = a1pad[d:d + H].reshape(HW, Cout)
            # branch2 (1,K): taps along W -> sublane-shifted slices, lane-aligned store
            cat_buf[:, (K + d) * Cout:(K + d + 1) * Cout] = \
                a2pad[:, d:d + W, :].reshape(HW, Cout)
        s = jnp.dot(cat_buf[...], wb_ref[...], preferred_element_type=f32) + b12
        s_buf[...] = s

        # ---- ResidualBlock: two pre-act (ReLU -> BN affine -> 3x3 conv + bias) ------
        # zero only the border strips of the shared pad buffer; interior written below
        pad_buf[0:1] = jnp.zeros((1, WPB, Cout), bf16)
        pad_buf[H + 1:H + 2] = jnp.zeros((1, WPB, Cout), bf16)
        pad_buf[:, 0:1, :] = jnp.zeros((H + 2, 1, Cout), bf16)
        pad_buf[:, W + 1:W + 2, :] = jnp.zeros((H + 2, 1, Cout), bf16)

        def conv3x3(w_ref):
            # dx-im2col: 3 sublane slices, lane-aligned stores, reused across all dy
            for dx in range(3):
                xcat_buf[:, :, dx * Cout:(dx + 1) * Cout] = pad_buf[:, dx:dx + W, :]
            # chained sum of dots (dy taps are free leading-dim slices); first dot
            # initializes the accumulator, v7x MRB accumulates in place.
            return (jnp.dot(xcat_buf[0:H].reshape(HW, 3 * Cout), w_ref[0],
                            preferred_element_type=f32)
                    + jnp.dot(xcat_buf[1:H + 1].reshape(HW, 3 * Cout), w_ref[1],
                              preferred_element_type=f32)
                    + jnp.dot(xcat_buf[2:H + 2].reshape(HW, 3 * Cout), w_ref[2],
                              preferred_element_type=f32))

        # stage 1: ReLU -> BN1 affine -> 3x3 conv + br1
        pad_buf[1:H + 1, 1:W + 1, :] = \
            (jnp.maximum(s, 0.0) * sc1 + sh1).reshape(H, W, Cout).astype(bf16)
        r1 = conv3x3(wr1_ref) + br1
        # stage 2 epilogue fused directly into pad_buf (no f32 t_buf round trip)
        pad_buf[1:H + 1, 1:W + 1, :] = \
            (jnp.maximum(r1, 0.0) * sc2 + sh2).reshape(H, W, Cout).astype(bf16)
        r2 = conv3x3(wr2_ref) + br2

        o_ref[...] = (s_buf[...] + r2).reshape(1, HW, Cout)

    out = pl.pallas_call(
        kernel,
        out_shape=jax.ShapeDtypeStruct((N, HW, Cout), f32),
        grid_spec=pltpu.PrefetchScalarGridSpec(
            num_scalar_prefetch=0,
            grid=(N,),
            in_specs=[
                pl.BlockSpec((1, HW, K * Cin), lambda n: (n, 0, 0)),       # x1 im2col
                pl.BlockSpec((1, M2, K * Cin), lambda n: (n, 0, 0)),       # x2 im2col
                pl.BlockSpec((K * Cin, Cout), lambda n: (0, 0)),           # w1a
                pl.BlockSpec((K * Cin, Cout), lambda n: (0, 0)),           # w2a
                pl.BlockSpec((2 * K * Cout, Cout), lambda n: (0, 0)),      # wb (merged)
                pl.BlockSpec((3, 3 * Cout, Cout), lambda n: (0, 0, 0)),    # wr1
                pl.BlockSpec((3, 3 * Cout, Cout), lambda n: (0, 0, 0)),    # wr2
                pl.BlockSpec((9, Cout), lambda n: (0, 0)),                 # biases/affines
            ],
            out_specs=pl.BlockSpec((1, HW, Cout), lambda n: (n, 0, 0)),
            scratch_shapes=[
                pltpu.VMEM((H + 2 * P, W, Cout), bf16),        # a1 (H-padded)
                pltpu.VMEM((Hm + 2 * P, Wpp, Cout), bf16),     # a2 (H-padded, W aligned)
                pltpu.VMEM((HW, 2 * K * Cout), bf16),          # 14-tap im2col
                pltpu.VMEM((HW, Cout), f32),                   # s (kept for final add)
                pltpu.VMEM((H + 2, WPB, Cout), bf16),          # 3x3 pad buffer
                pltpu.VMEM((H + 2, W, 3 * Cout), bf16),        # 3x3 dx-im2col
            ],
        ),
        compiler_params=pltpu.CompilerParams(
            dimension_semantics=("parallel",)),                # keeps both v7x TCs busy
    )(x1, x2, w1a, w2a, wb, wr1, wr2, vec)
    return out.reshape(N, H, W, Cout)


# --------------------------------------------------------------------------
# pure-JAX reference (exact module semantics) for validation
# --------------------------------------------------------------------------
def gcb_reference(x, p):
    dn = ("NHWC", "HWIO", "NHWC")
    hp = jax.lax.Precision.HIGHEST

    def conv(a, w, b, ph, pw):
        y = jax.lax.conv_general_dilated(a, w, (1, 1), ((ph, ph), (pw, pw)),
                                         dimension_numbers=dn, precision=hp)
        return y + b

    y1 = conv(conv(x, p["w1a"], p["b1a"], 0, P), p["w1b"], p["b1b"], P, 0)
    y2 = conv(conv(x, p["w2a"], p["b2a"], 0, P), p["w2b"], p["b2b"], P, 0)
    s = y1 + y2
    t = jnp.maximum(s, 0.0) * p["sc1"] + p["sh1"]
    t = conv(t, p["wr1"], p["br1"], 1, 1)
    t = jnp.maximum(t, 0.0) * p["sc2"] + p["sh2"]
    t = conv(t, p["wr2"], p["br2"], 1, 1)
    return s + t


# --------------------------------------------------------------------------
# deterministic synthetic parameters (HWIO conv weights, folded inference BN)
# --------------------------------------------------------------------------
def init_params(key, cin, cout, k=K):
    ks = jax.random.split(key, 20)

    def w(kk, shape):
        return 0.05 * jax.random.normal(kk, shape, jnp.float32)

    def bn(k1, k2, k3, k4, c):
        gamma = 1.0 + 0.1 * jax.random.normal(k1, (c,), jnp.float32)
        beta = 0.1 * jax.random.normal(k2, (c,), jnp.float32)
        mean = 0.1 * jax.random.normal(k3, (c,), jnp.float32)
        var = jax.random.uniform(k4, (c,), jnp.float32, minval=0.5, maxval=1.5)
        scale = gamma * jax.lax.rsqrt(var + EPS)
        return scale, beta - mean * scale

    sc1, sh1 = bn(ks[10], ks[11], ks[12], ks[13], cout)
    sc2, sh2 = bn(ks[14], ks[15], ks[16], ks[17], cout)
    return dict(
        w1a=w(ks[0], (1, k, cin, cout)), b1a=w(ks[1], (cout,)),
        w1b=w(ks[2], (k, 1, cout, cout)), b1b=w(ks[3], (cout,)),
        w2a=w(ks[4], (k, 1, cin, cout)), b2a=w(ks[5], (cout,)),
        w2b=w(ks[6], (1, k, cout, cout)), b2b=w(ks[7], (cout,)),
        wr1=w(ks[8], (3, 3, cout, cout)), br1=w(ks[18], (cout,)),
        wr2=w(ks[9], (3, 3, cout, cout)), br2=w(ks[19], (cout,)),
        sc1=sc1, sh1=sh1, sc2=sc2, sh2=sh2)


if __name__ == "__main__":
    key = jax.random.PRNGKey(0)
    kx, kp = jax.random.split(key)

    N, H, W = 2, 16, 16
    CIN, COUT = 32, 128
    x = jax.random.normal(kx, (N, H, W, CIN), jnp.float32)
    params = init_params(kp, CIN, COUT)

    out = jax.jit(global_convolution_block)(x, params)
    out = jax.block_until_ready(out)

    assert out.shape == (N, H, W, COUT), out.shape
    assert bool(jnp.all(jnp.isfinite(out)))

    # validate against a pure-JAX f32 reference (tolerance covers bf16 operands)
    ref = gcb_reference(x, params)
    err = float(jnp.max(jnp.abs(out - ref)))
    scale = float(jnp.max(jnp.abs(ref)))
    assert err <= 0.05 * scale + 1e-3, (err, scale)

    print("KERNEL_OK")
</pallas_src>

<mosaic_0001>
module attributes {stable_mosaic.version = 11 : i64} {
  func.func @kernel(%arg0: i32, %arg1: memref<1x256x224xbf16, #tpu.memory_space<vmem>>, %arg2: memref<1x320x224xbf16, #tpu.memory_space<vmem>>, %arg3: memref<224x128xbf16, #tpu.memory_space<vmem>>, %arg4: memref<224x128xbf16, #tpu.memory_space<vmem>>, %arg5: memref<1792x128xbf16, #tpu.memory_space<vmem>>, %arg6: memref<3x384x128xbf16, #tpu.memory_space<vmem>>, %arg7: memref<3x384x128xbf16, #tpu.memory_space<vmem>>, %arg8: memref<9x128xf32, #tpu.memory_space<vmem>>, %arg9: memref<1x256x128xf32, #tpu.memory_space<vmem>>, %arg10: memref<22x16x128xbf16, #tpu.memory_space<vmem>>, %arg11: memref<16x32x128xbf16, #tpu.memory_space<vmem>>, %arg12: memref<256x1792xbf16, #tpu.memory_space<vmem>>, %arg13: memref<256x128xf32, #tpu.memory_space<vmem>>, %arg14: memref<18x32x128xbf16, #tpu.memory_space<vmem>>, %arg15: memref<18x16x384xbf16, #tpu.memory_space<vmem>>) attributes {dimension_semantics = [#tpu.dimension_semantics<parallel>], iteration_bounds = array<i64: 2>, scalar_prefetch = 0 : i64, scratch_operands = 6 : i64, tpu.core_type = #tpu.core_type<tc>, window_params = [{transform_indices = @transform_0, window_bounds = array<i64: 1, 256, 224>}, {transform_indices = @transform_1, window_bounds = array<i64: 1, 320, 224>}, {pipeline_mode = #tpu.pipeline_mode<synchronous>, transform_indices = @transform_2, window_bounds = array<i64: 224, 128>}, {pipeline_mode = #tpu.pipeline_mode<synchronous>, transform_indices = @transform_3, window_bounds = array<i64: 224, 128>}, {pipeline_mode = #tpu.pipeline_mode<synchronous>, transform_indices = @transform_4, window_bounds = array<i64: 1792, 128>}, {pipeline_mode = #tpu.pipeline_mode<synchronous>, transform_indices = @transform_5, window_bounds = array<i64: 3, 384, 128>}, {pipeline_mode = #tpu.pipeline_mode<synchronous>, transform_indices = @transform_6, window_bounds = array<i64: 3, 384, 128>}, {pipeline_mode = #tpu.pipeline_mode<synchronous>, transform_indices = @transform_7, window_bounds = array<i64: 9, 128>}, {transform_indices = @transform_8, window_bounds = array<i64: 1, 256, 128>}]} {
    %c0 = arith.constant 0 : index
    %c0_0 = arith.constant 0 : index
    %0 = vector.load %arg8[%c0, %c0_0] : memref<9x128xf32, #tpu.memory_space<vmem>>, vector<1x128xf32>
    %c1 = arith.constant 1 : index
    %c0_1 = arith.constant 0 : index
    %1 = vector.load %arg8[%c1, %c0_1] : memref<9x128xf32, #tpu.memory_space<vmem>>, vector<1x128xf32>
    %c2 = arith.constant 2 : index
    %c0_2 = arith.constant 0 : index
    %2 = vector.load %arg8[%c2, %c0_2] : memref<9x128xf32, #tpu.memory_space<vmem>>, vector<1x128xf32>
    %c3 = arith.constant 3 : index
    %c0_3 = arith.constant 0 : index
    %3 = vector.load %arg8[%c3, %c0_3] : memref<9x128xf32, #tpu.memory_space<vmem>>, vector<1x128xf32>
    %c4 = arith.constant 4 : index
    %c0_4 = arith.constant 0 : index
    %4 = vector.load %arg8[%c4, %c0_4] : memref<9x128xf32, #tpu.memory_space<vmem>>, vector<1x128xf32>
    %c5 = arith.constant 5 : index
    %c0_5 = arith.constant 0 : index
    %5 = vector.load %arg8[%c5, %c0_5] : memref<9x128xf32, #tpu.memory_space<vmem>>, vector<1x128xf32>
    %c6 = arith.constant 6 : index
    %c0_6 = arith.constant 0 : index
    %6 = vector.load %arg8[%c6, %c0_6] : memref<9x128xf32, #tpu.memory_space<vmem>>, vector<1x128xf32>
    %c7 = arith.constant 7 : index
    %c0_7 = arith.constant 0 : index
    %7 = vector.load %arg8[%c7, %c0_7] : memref<9x128xf32, #tpu.memory_space<vmem>>, vector<1x128xf32>
    %c8 = arith.constant 8 : index
    %c0_8 = arith.constant 0 : index
    %8 = vector.load %arg8[%c8, %c0_8] : memref<9x128xf32, #tpu.memory_space<vmem>>, vector<1x128xf32>
    %c0_9 = arith.constant 0 : index
    %c0_10 = arith.constant 0 : index
    %c0_11 = arith.constant 0 : index
    %9 = vector.load %arg1[%c0_9, %c0_10, %c0_11] : memref<1x256x224xbf16, #tpu.memory_space<vmem>>, vector<1x256x224xbf16>
    %10 = vector.shape_cast %9 : vector<1x256x224xbf16> to vector<256x224xbf16>
    %c0_12 = arith.constant 0 : index
    %c0_13 = arith.constant 0 : index
    %11 = vector.load %arg3[%c0_12, %c0_13] : memref<224x128xbf16, #tpu.memory_space<vmem>>, vector<224x128xbf16>
    %cst = arith.constant dense<0.000000e+00> : vector<256x128xf32>
    %12 = tpu.matmul %10, %11, %cst {dimension_numbers = #tpu.dot_dimension_numbers<[1], [0], [0], [1], [0, 0, 1, 1], [], []>} : vector<256x224xbf16>, vector<224x128xbf16>, vector<256x128xf32> -> vector<256x128xf32>
    %13 = vector.broadcast %0 : vector<1x128xf32> to vector<256x128xf32>
    %14 = arith.addf %12, %13 : vector<256x128xf32>
    %c0_14 = arith.constant 0 : index
    %c0_15 = arith.constant 0 : index
    %c0_16 = arith.constant 0 : index
    %15 = vector.load %arg2[%c0_14, %c0_15, %c0_16] : memref<1x320x224xbf16, #tpu.memory_space<vmem>>, vector<1x320x224xbf16>
    %16 = vector.shape_cast %15 : vector<1x320x224xbf16> to vector<320x224xbf16>
    %c0_17 = arith.constant 0 : index
    %c0_18 = arith.constant 0 : index
    %17 = vector.load %arg4[%c0_17, %c0_18] : memref<224x128xbf16, #tpu.memory_space<vmem>>, vector<224x128xbf16>
    %cst_19 = arith.constant dense<0.000000e+00> : vector<320x128xf32>
    %18 = tpu.matmul %16, %17, %cst_19 {dimension_numbers = #tpu.dot_dimension_numbers<[1], [0], [0], [1], [0, 0, 1, 1], [], []>} : vector<320x224xbf16>, vector<224x128xbf16>, vector<320x128xf32> -> vector<320x128xf32>
    %19 = vector.broadcast %1 : vector<1x128xf32> to vector<320x128xf32>
    %20 = arith.addf %18, %19 : vector<320x128xf32>
    %cst_20 = arith.constant 0.000000e+00 : bf16
    %21 = vector.broadcast %cst_20 : bf16 to vector<3x16x128xbf16>
    %c0_21 = arith.constant 0 : index
    %c0_22 = arith.constant 0 : index
    %c0_23 = arith.constant 0 : index
    %22 = vector.load %arg10[%c0_21, %c0_22, %c0_23] : memref<22x16x128xbf16, #tpu.memory_space<vmem>>, vector<3x16x128xbf16>
    tpu.vector_store %arg10[%c0_21, %c0_22, %c0_23], %21 {strides = array<i32>} : memref<22x16x128xbf16, #tpu.memory_space<vmem>>, vector<3x16x128xbf16>,
    %cst_24 = arith.constant 0.000000e+00 : bf16
    %23 = vector.broadcast %cst_24 : bf16 to vector<3x16x128xbf16>
    %c19 = arith.constant 19 : index
    %c0_25 = arith.constant 0 : index
    %c0_26 = arith.constant 0 : index
    %24 = vector.load %arg10[%c19, %c0_25, %c0_26] : memref<22x16x128xbf16, #tpu.memory_space<vmem>>, vector<3x16x128xbf16>
    tpu.vector_store %arg10[%c19, %c0_25, %c0_26], %23 {strides = array<i32>} : memref<22x16x128xbf16, #tpu.memory_space<vmem>>, vector<3x16x128xbf16>,
    %25 = vector.shape_cast %14 : vector<256x128xf32> to vector<16x16x128xf32>
    %26 = arith.truncf %25 : vector<16x16x128xf32> to vector<16x16x128xbf16>
    %c3_27 = arith.constant 3 : index
    %c0_28 = arith.constant 0 : index
    %c0_29 = arith.constant 0 : index
    %27 = vector.load %arg10[%c3_27, %c0_28, %c0_29] : memref<22x16x128xbf16, #tpu.memory_space<vmem>>, vector<16x16x128xbf16>
    tpu.vector_store %arg10[%c3_27, %c0_28, %c0_29], %26 {strides = array<i32>} : memref<22x16x128xbf16, #tpu.memory_space<vmem>>, vector<16x16x128xbf16>,
    %cst_30 = arith.constant 0.000000e+00 : bf16
    %28 = vector.broadcast %cst_30 : bf16 to vector<3x32x128xbf16>
    %c0_31 = arith.constant 0 : index
    %c0_32 = arith.constant 0 : index
    %c0_33 = arith.constant 0 : index
    %29 = vector.load %arg11[%c0_31, %c0_32, %c0_33] : memref<16x32x128xbf16, #tpu.memory_space<vmem>>, vector<3x32x128xbf16>
    tpu.vector_store %arg11[%c0_31, %c0_32, %c0_33], %28 {strides = array<i32>} : memref<16x32x128xbf16, #tpu.memory_space<vmem>>, vector<3x32x128xbf16>,
    %cst_34 = arith.constant 0.000000e+00 : bf16
    %30 = vector.broadcast %cst_34 : bf16 to vector<3x32x128xbf16>
    %c13 = arith.constant 13 : index
    %c0_35 = arith.constant 0 : index
    %c0_36 = arith.constant 0 : index
    %31 = vector.load %arg11[%c13, %c0_35, %c0_36] : memref<16x32x128xbf16, #tpu.memory_space<vmem>>, vector<3x32x128xbf16>
    tpu.vector_store %arg11[%c13, %c0_35, %c0_36], %30 {strides = array<i32>} : memref<16x32x128xbf16, #tpu.memory_space<vmem>>, vector<3x32x128xbf16>,
    %32 = vector.shape_cast %20 : vector<320x128xf32> to vector<10x32x128xf32>
    %33 = arith.truncf %32 : vector<10x32x128xf32> to vector<10x32x128xbf16>
    %c3_37 = arith.constant 3 : index
    %c0_38 = arith.constant 0 : index
    %c0_39 = arith.constant 0 : index
    %34 = vector.load %arg11[%c3_37, %c0_38, %c0_39] : memref<16x32x128xbf16, #tpu.memory_space<vmem>>, vector<10x32x128xbf16>
    tpu.vector_store %arg11[%c3_37, %c0_38, %c0_39], %33 {strides = array<i32>} : memref<16x32x128xbf16, #tpu.memory_space<vmem>>, vector<10x32x128xbf16>,
    %c0_40 = arith.constant 0 : index
    %c0_41 = arith.constant 0 : index
    %c0_42 = arith.constant 0 : index
    %35 = vector.load %arg10[%c0_40, %c0_41, %c0_42] : memref<22x16x128xbf16, #tpu.memory_space<vmem>>, vector<16x16x128xbf16>
    %36 = vector.shape_cast %35 : vector<16x16x128xbf16> to vector<256x128xbf16>
    %c0_43 = arith.constant 0 : index
    %c0_44 = arith.constant 0 : index
    %37 = vector.load %arg12[%c0_43, %c0_44] : memref<256x1792xbf16, #tpu.memory_space<vmem>>, vector<256x128xbf16>
    tpu.vector_store %arg12[%c0_43, %c0_44], %36 {strides = array<i32>} : memref<256x1792xbf16, #tpu.memory_space<vmem>>, vector<256x128xbf16>,
    %c0_45 = arith.constant 0 : index
    %c0_46 = arith.constant 0 : index
    %c0_47 = arith.constant 0 : index
    %38 = vector.load %arg11[%c0_45, %c0_46, %c0_47] : memref<16x32x128xbf16, #tpu.memory_space<vmem>>, vector<16x16x128xbf16>
    %39 = vector.shape_cast %38 : vector<16x16x128xbf16> to vector<256x128xbf16>
    %c0_48 = arith.constant 0 : index
    %c896 = arith.constant 896 : index
    %40 = vector.load %arg12[%c0_48, %c896] : memref<256x1792xbf16, #tpu.memory_space<vmem>>, vector<256x128xbf16>
    tpu.vector_store %arg12[%c0_48, %c896], %39 {strides = array<i32>} : memref<256x1792xbf16, #tpu.memory_space<vmem>>, vector<256x128xbf16>,
    %c1_49 = arith.constant 1 : index
    %c0_50 = arith.constant 0 : index
    %c0_51 = arith.constant 0 : index
    %41 = vector.load %arg10[%c1_49, %c0_50, %c0_51] : memref<22x16x128xbf16, #tpu.memory_space<vmem>>, vector<16x16x128xbf16>
    %42 = vector.shape_cast %41 : vector<16x16x128xbf16> to vector<256x128xbf16>
    %c0_52 = arith.constant 0 : index
    %c128 = arith.constant 128 : index
    %43 = vector.load %arg12[%c0_52, %c128] : memref<256x1792xbf16, #tpu.memory_space<vmem>>, vector<256x128xbf16>
    tpu.vector_store %arg12[%c0_52, %c128], %42 {strides = array<i32>} : memref<256x1792xbf16, #tpu.memory_space<vmem>>, vector<256x128xbf16>,
    %c0_53 = arith.constant 0 : index
    %c1_54 = arith.constant 1 : index
    %c0_55 = arith.constant 0 : index
    %44 = vector.load %arg11[%c0_53, %c1_54, %c0_55] : memref<16x32x128xbf16, #tpu.memory_space<vmem>>, vector<16x16x128xbf16>
    %45 = vector.shape_cast %44 : vector<16x16x128xbf16> to vector<256x128xbf16>
    %c0_56 = arith.constant 0 : index
    %c1024 = arith.constant 1024 : index
    %46 = vector.load %arg12[%c0_56, %c1024] : memref<256x1792xbf16, #tpu.memory_space<vmem>>, vector<256x128xbf16>
    tpu.vector_store %arg12[%c0_56, %c1024], %45 {strides = array<i32>} : memref<256x1792xbf16, #tpu.memory_space<vmem>>, vector<256x128xbf16>,
    %c2_57 = arith.constant 2 : index
    %c0_58 = arith.constant 0 : index
    %c0_59 = arith.constant 0 : index
    %47 = vector.load %arg10[%c2_57, %c0_58, %c0_59] : memref<22x16x128xbf16, #tpu.memory_space<vmem>>, vector<16x16x128xbf16>
    %48 = vector.shape_cast %47 : vector<16x16x128xbf16> to vector<256x128xbf16>
    %c0_60 = arith.constant 0 : index
    %c256 = arith.constant 256 : index
    %49 = vector.load %arg12[%c0_60, %c256] : memref<256x1792xbf16, #tpu.memory_space<vmem>>, vector<256x128xbf16>
    tpu.vector_store %arg12[%c0_60, %c256], %48 {strides = array<i32>} : memref<256x1792xbf16, #tpu.memory_space<vmem>>, vector<256x128xbf16>,
    %c0_61 = arith.constant 0 : index
    %c2_62 = arith.constant 2 : index
    %c0_63 = arith.constant 0 : index
    %50 = vector.load %arg11[%c0_61, %c2_62, %c0_63] : memref<16x32x128xbf16, #tpu.memory_space<vmem>>, vector<16x16x128xbf16>
    %51 = vector.shape_cast %50 : vector<16x16x128xbf16> to vector<256x128xbf16>
    %c0_64 = arith.constant 0 : index
    %c1152 = arith.constant 1152 : index
    %52 = vector.load %arg12[%c0_64, %c1152] : memref<256x1792xbf16, #tpu.memory_space<vmem>>, vector<256x128xbf16>
    tpu.vector_store %arg12[%c0_64, %c1152], %51 {strides = array<i32>} : memref<256x1792xbf16, #tpu.memory_space<vmem>>, vector<256x128xbf16>,
    %c3_65 = arith.constant 3 : index
    %c0_66 = arith.constant 0 : index
    %c0_67 = arith.constant 0 : index
    %53 = vector.load %arg10[%c3_65, %c0_66, %c0_67] : memref<22x16x128xbf16, #tpu.memory_space<vmem>>, vector<16x16x128xbf16>
    %54 = vector.shape_cast %53 : vector<16x16x128xbf16> to vector<256x128xbf16>
    %c0_68 = arith.constant 0 : index
    %c384 = arith.constant 384 : index
    %55 = vector.load %arg12[%c0_68, %c384] : memref<256x1792xbf16, #tpu.memory_space<vmem>>, vector<256x128xbf16>
    tpu.vector_store %arg12[%c0_68, %c384], %54 {strides = array<i32>} : memref<256x1792xbf16, #tpu.memory_space<vmem>>, vector<256x128xbf16>,
    %c0_69 = arith.constant 0 : index
    %c3_70 = arith.constant 3 : index
    %c0_71 = arith.constant 0 : index
    %56 = vector.load %arg11[%c0_69, %c3_70, %c0_71] : memref<16x32x128xbf16, #tpu.memory_space<vmem>>, vector<16x16x128xbf16>
    %57 = vector.shape_cast %56 : vector<16x16x128xbf16> to vector<256x128xbf16>
    %c0_72 = arith.constant 0 : index
    %c1280 = arith.constant 1280 : index
    %58 = vector.load %arg12[%c0_72, %c1280] : memref<256x1792xbf16, #tpu.memory_space<vmem>>, vector<256x128xbf16>
    tpu.vector_store %arg12[%c0_72, %c1280], %57 {strides = array<i32>} : memref<256x1792xbf16, #tpu.memory_space<vmem>>, vector<256x128xbf16>,
    %c4_73 = arith.constant 4 : index
    %c0_74 = arith.constant 0 : index
    %c0_75 = arith.constant 0 : index
    %59 = vector.load %arg10[%c4_73, %c0_74, %c0_75] : memref<22x16x128xbf16, #tpu.memory_space<vmem>>, vector<16x16x128xbf16>
    %60 = vector.shape_cast %59 : vector<16x16x128xbf16> to vector<256x128xbf16>
    %c0_76 = arith.constant 0 : index
    %c512 = arith.constant 512 : index
    %61 = vector.load %arg12[%c0_76, %c512] : memref<256x1792xbf16, #tpu.memory_space<vmem>>, vector<256x128xbf16>
    tpu.vector_store %arg12[%c0_76, %c512], %60 {strides = array<i32>} : memref<256x1792xbf16, #tpu.memory_space<vmem>>, vector<256x128xbf16>,
    %c0_77 = arith.constant 0 : index
    %c4_78 = arith.constant 4 : index
    %c0_79 = arith.constant 0 : index
    %62 = vector.load %arg11[%c0_77, %c4_78, %c0_79] : memref<16x32x128xbf16, #tpu.memory_space<vmem>>, vector<16x16x128xbf16>
    %63 = vector.shape_cast %62 : vector<16x16x128xbf16> to vector<256x128xbf16>
    %c0_80 = arith.constant 0 : index
    %c1408 = arith.constant 1408 : index
    %64 = vector.load %arg12[%c0_80, %c1408] : memref<256x1792xbf16, #tpu.memory_space<vmem>>, vector<256x128xbf16>
    tpu.vector_store %arg12[%c0_80, %c1408], %63 {strides = array<i32>} : memref<256x1792xbf16, #tpu.memory_space<vmem>>, vector<256x128xbf16>,
    %c5_81 = arith.constant 5 : index
    %c0_82 = arith.constant 0 : index
    %c0_83 = arith.constant 0 : index
    %65 = vector.load %arg10[%c5_81, %c0_82, %c0_83] : memref<22x16x128xbf16, #tpu.memory_space<vmem>>, vector<16x16x128xbf16>
    %66 = vector.shape_cast %65 : vector<16x16x128xbf16> to vector<256x128xbf16>
    %c0_84 = arith.constant 0 : index
    %c640 = arith.constant 640 : index
    %67 = vector.load %arg12[%c0_84, %c640] : memref<256x1792xbf16, #tpu.memory_space<vmem>>, vector<256x128xbf16>
    tpu.vector_store %arg12[%c0_84, %c640], %66 {strides = array<i32>} : memref<256x1792xbf16, #tpu.memory_space<vmem>>, vector<256x128xbf16>,
    %c0_85 = arith.constant 0 : index
    %c5_86 = arith.constant 5 : index
    %c0_87 = arith.constant 0 : index
    %68 = vector.load %arg11[%c0_85, %c5_86, %c0_87] : memref<16x32x128xbf16, #tpu.memory_space<vmem>>, vector<16x16x128xbf16>
    %69 = vector.shape_cast %68 : vector<16x16x128xbf16> to vector<256x128xbf16>
    %c0_88 = arith.constant 0 : index
    %c1536 = arith.constant 1536 : index
    %70 = vector.load %arg12[%c0_88, %c1536] : memref<256x1792xbf16, #tpu.memory_space<vmem>>, vector<256x128xbf16>
    tpu.vector_store %arg12[%c0_88, %c1536], %69 {strides = array<i32>} : memref<256x1792xbf16, #tpu.memory_space<vmem>>, vector<256x128xbf16>,
    %c6_89 = arith.constant 6 : index
    %c0_90 = arith.constant 0 : index
    %c0_91 = arith.constant 0 : index
    %71 = vector.load %arg10[%c6_89, %c0_90, %c0_91] : memref<22x16x128xbf16, #tpu.memory_space<vmem>>, vector<16x16x128xbf16>
    %72 = vector.shape_cast %71 : vector<16x16x128xbf16> to vector<256x128xbf16>
    %c0_92 = arith.constant 0 : index
    %c768 = arith.constant 768 : index
    %73 = vector.load %arg12[%c0_92, %c768] : memref<256x1792xbf16, #tpu.memory_space<vmem>>, vector<256x128xbf16>
    tpu.vector_store %arg12[%c0_92, %c768], %72 {strides = array<i32>} : memref<256x1792xbf16, #tpu.memory_space<vmem>>, vector<256x128xbf16>,
    %c0_93 = arith.constant 0 : index
    %c6_94 = arith.constant 6 : index
    %c0_95 = arith.constant 0 : index
    %74 = vector.load %arg11[%c0_93, %c6_94, %c0_95] : memref<16x32x128xbf16, #tpu.memory_space<vmem>>, vector<16x16x128xbf16>
    %75 = vector.shape_cast %74 : vector<16x16x128xbf16> to vector<256x128xbf16>
    %c0_96 = arith.constant 0 : index
    %c1664 = arith.constant 1664 : index
    %76 = vector.load %arg12[%c0_96, %c1664] : memref<256x1792xbf16, #tpu.memory_space<vmem>>, vector<256x128xbf16>
    tpu.vector_store %arg12[%c0_96, %c1664], %75 {strides = array<i32>} : memref<256x1792xbf16, #tpu.memory_space<vmem>>, vector<256x128xbf16>,
    %c0_97 = arith.constant 0 : index
    %c0_98 = arith.constant 0 : index
    %77 = vector.load %arg12[%c0_97, %c0_98] : memref<256x1792xbf16, #tpu.memory_space<vmem>>, vector<256x1792xbf16>
    %c0_99 = arith.constant 0 : index
    %c0_100 = arith.constant 0 : index
    %78 = vector.load %arg5[%c0_99, %c0_100] : memref<1792x128xbf16, #tpu.memory_space<vmem>>, vector<1792x128xbf16>
    %cst_101 = arith.constant dense<0.000000e+00> : vector<256x128xf32>
    %79 = tpu.matmul %77, %78, %cst_101 {dimension_numbers = #tpu.dot_dimension_numbers<[1], [0], [0], [1], [0, 0, 1, 1], [], []>} : vector<256x1792xbf16>, vector<1792x128xbf16>, vector<256x128xf32> -> vector<256x128xf32>
    %80 = vector.broadcast %2 : vector<1x128xf32> to vector<256x128xf32>
    %81 = arith.addf %79, %80 : vector<256x128xf32>
    %c0_102 = arith.constant 0 : index
    %c0_103 = arith.constant 0 : index
    %82 = vector.load %arg13[%c0_102, %c0_103] : memref<256x128xf32, #tpu.memory_space<vmem>>, vector<256x128xf32>
    tpu.vector_store %arg13[%c0_102, %c0_103], %81 {strides = array<i32>} : memref<256x128xf32, #tpu.memory_space<vmem>>, vector<256x128xf32>,
    %cst_104 = arith.constant 0.000000e+00 : bf16
    %83 = vector.broadcast %cst_104 : bf16 to vector<1x32x128xbf16>
    %c0_105 = arith.constant 0 : index
    %c0_106 = arith.constant 0 : index
    %c0_107 = arith.constant 0 : index
    %84 = vector.load %arg14[%c0_105, %c0_106, %c0_107] : memref<18x32x128xbf16, #tpu.memory_space<vmem>>, vector<1x32x128xbf16>
    tpu.vector_store %arg14[%c0_105, %c0_106, %c0_107], %83 {strides = array<i32>} : memref<18x32x128xbf16, #tpu.memory_space<vmem>>, vector<1x32x128xbf16>,
    %cst_108 = arith.constant 0.000000e+00 : bf16
    %85 = vector.broadcast %cst_108 : bf16 to vector<1x32x128xbf16>
    %c17 = arith.constant 17 : index
    %c0_109 = arith.constant 0 : index
    %c0_110 = arith.constant 0 : index
    %86 = vector.load %arg14[%c17, %c0_109, %c0_110] : memref<18x32x128xbf16, #tpu.memory_space<vmem>>, vector<1x32x128xbf16>
    tpu.vector_store %arg14[%c17, %c0_109, %c0_110], %85 {strides = array<i32>} : memref<18x32x128xbf16, #tpu.memory_space<vmem>>, vector<1x32x128xbf16>,
    %cst_111 = arith.constant 0.000000e+00 : bf16
    %87 = vector.broadcast %cst_111 : bf16 to vector<18x1x128xbf16>
    %c0_112 = arith.constant 0 : index
    %c0_113 = arith.constant 0 : index
    %c0_114 = arith.constant 0 : index
    %88 = vector.load %arg14[%c0_112, %c0_113, %c0_114] : memref<18x32x128xbf16, #tpu.memory_space<vmem>>, vector<18x1x128xbf16>
    tpu.vector_store %arg14[%c0_112, %c0_113, %c0_114], %87 {strides = array<i32>} : memref<18x32x128xbf16, #tpu.memory_space<vmem>>, vector<18x1x128xbf16>,
    %cst_115 = arith.constant 0.000000e+00 : bf16
    %89 = vector.broadcast %cst_115 : bf16 to vector<18x1x128xbf16>
    %c0_116 = arith.constant 0 : index
    %c17_117 = arith.constant 17 : index
    %c0_118 = arith.constant 0 : index
    %90 = vector.load %arg14[%c0_116, %c17_117, %c0_118] : memref<18x32x128xbf16, #tpu.memory_space<vmem>>, vector<18x1x128xbf16>
    tpu.vector_store %arg14[%c0_116, %c17_117, %c0_118], %89 {strides = array<i32>} : memref<18x32x128xbf16, #tpu.memory_space<vmem>>, vector<18x1x128xbf16>,
    %cst_119 = arith.constant 0.000000e+00 : f32
    %91 = vector.broadcast %cst_119 : f32 to vector<256x128xf32>
    %92 = arith.maximumf %81, %91 : vector<256x128xf32>
    %93 = vector.broadcast %4 : vector<1x128xf32> to vector<256x128xf32>
    %94 = arith.mulf %92, %93 : vector<256x128xf32>
    %95 = vector.broadcast %5 : vector<1x128xf32> to vector<256x128xf32>
    %96 = arith.addf %94, %95 : vector<256x128xf32>
    %97 = vector.shape_cast %96 : vector<256x128xf32> to vector<16x16x128xf32>
    %98 = arith.truncf %97 : vector<16x16x128xf32> to vector<16x16x128xbf16>
    %c1_120 = arith.constant 1 : index
    %c1_121 = arith.constant 1 : index
    %c0_122 = arith.constant 0 : index
    %99 = vector.load %arg14[%c1_120, %c1_121, %c0_122] : memref<18x32x128xbf16, #tpu.memory_space<vmem>>, vector<16x16x128xbf16>
    tpu.vector_store %arg14[%c1_120, %c1_121, %c0_122], %98 {strides = array<i32>} : memref<18x32x128xbf16, #tpu.memory_space<vmem>>, vector<16x16x128xbf16>,
    %c0_123 = arith.constant 0 : index
    %c0_124 = arith.constant 0 : index
    %c0_125 = arith.constant 0 : index
    %100 = vector.load %arg14[%c0_123, %c0_124, %c0_125] : memref<18x32x128xbf16, #tpu.memory_space<vmem>>, vector<18x16x128xbf16>
    %c0_126 = arith.constant 0 : index
    %c0_127 = arith.constant 0 : index
    %c0_128 = arith.constant 0 : index
    %101 = vector.load %arg15[%c0_126, %c0_127, %c0_128] : memref<18x16x384xbf16, #tpu.memory_space<vmem>>, vector<18x16x128xbf16>
    tpu.vector_store %arg15[%c0_126, %c0_127, %c0_128], %100 {strides = array<i32>} : memref<18x16x384xbf16, #tpu.memory_space<vmem>>, vector<18x16x128xbf16>,
    %c0_129 = arith.constant 0 : index
    %c1_130 = arith.constant 1 : index
    %c0_131 = arith.constant 0 : index
    %102 = vector.load %arg14[%c0_129, %c1_130, %c0_131] : memref<18x32x128xbf16, #tpu.memory_space<vmem>>, vector<18x16x128xbf16>
    %c0_132 = arith.constant 0 : index
    %c0_133 = arith.constant 0 : index
    %c128_134 = arith.constant 128 : index
    %103 = vector.load %arg15[%c0_132, %c0_133, %c128_134] : memref<18x16x384xbf16, #tpu.memory_space<vmem>>, vector<18x16x128xbf16>
    tpu.vector_store %arg15[%c0_132, %c0_133, %c128_134], %102 {strides = array<i32>} : memref<18x16x384xbf16, #tpu.memory_space<vmem>>, vector<18x16x128xbf16>,
    %c0_135 = arith.constant 0 : index
    %c2_136 = arith.constant 2 : index
    %c0_137 = arith.constant 0 : index
    %104 = vector.load %arg14[%c0_135, %c2_136, %c0_137] : memref<18x32x128xbf16, #tpu.memory_space<vmem>>, vector<18x16x128xbf16>
    %c0_138 = arith.constant 0 : index
    %c0_139 = arith.constant 0 : index
    %c256_140 = arith.constant 256 : index
    %105 = vector.load %arg15[%c0_138, %c0_139, %c256_140] : memref<18x16x384xbf16, #tpu.memory_space<vmem>>, vector<18x16x128xbf16>
    tpu.vector_store %arg15[%c0_138, %c0_139, %c256_140], %104 {strides = array<i32>} : memref<18x16x384xbf16, #tpu.memory_space<vmem>>, vector<18x16x128xbf16>,
    %c0_141 = arith.constant 0 : index
    %c0_142 = arith.constant 0 : index
    %c0_143 = arith.constant 0 : index
    %106 = vector.load %arg15[%c0_141, %c0_142, %c0_143] : memref<18x16x384xbf16, #tpu.memory_space<vmem>>, vector<16x16x384xbf16>
    %107 = vector.shape_cast %106 : vector<16x16x384xbf16> to vector<256x384xbf16>
    %c0_144 = arith.constant 0 : index
    %c0_145 = arith.constant 0 : index
    %c0_146 = arith.constant 0 : index
    %108 = vector.load %arg6[%c0_144, %c0_145, %c0_146] : memref<3x384x128xbf16, #tpu.memory_space<vmem>>, vector<1x384x128xbf16>
    %109 = vector.shape_cast %108 : vector<1x384x128xbf16> to vector<384x128xbf16>
    %cst_147 = arith.constant dense<0.000000e+00> : vector<256x128xf32>
    %110 = tpu.matmul %107, %109, %cst_147 {dimension_numbers = #tpu.dot_dimension_numbers<[1], [0], [0], [1], [0, 0, 1, 1], [], []>} : vector<256x384xbf16>, vector<384x128xbf16>, vector<256x128xf32> -> vector<256x128xf32>
    %c1_148 = arith.constant 1 : index
    %c0_149 = arith.constant 0 : index
    %c0_150 = arith.constant 0 : index
    %111 = vector.load %arg15[%c1_148, %c0_149, %c0_150] : memref<18x16x384xbf16, #tpu.memory_space<vmem>>, vector<16x16x384xbf16>
    %112 = vector.shape_cast %111 : vector<16x16x384xbf16> to vector<256x384xbf16>
    %c1_151 = arith.constant 1 : index
    %c0_152 = arith.constant 0 : index
    %c0_153 = arith.constant 0 : index
    %113 = vector.load %arg6[%c1_151, %c0_152, %c0_153] : memref<3x384x128xbf16, #tpu.memory_space<vmem>>, vector<1x384x128xbf16>
    %114 = vector.shape_cast %113 : vector<1x384x128xbf16> to vector<384x128xbf16>
    %cst_154 = arith.constant dense<0.000000e+00> : vector<256x128xf32>
    %115 = tpu.matmul %112, %114, %cst_154 {dimension_numbers = #tpu.dot_dimension_numbers<[1], [0], [0], [1], [0, 0, 1, 1], [], []>} : vector<256x384xbf16>, vector<384x128xbf16>, vector<256x128xf32> -> vector<256x128xf32>
    %116 = arith.addf %110, %115 : vector<256x128xf32>
    %c2_155 = arith.constant 2 : index
    %c0_156 = arith.constant 0 : index
    %c0_157 = arith.constant 0 : index
    %117 = vector.load %arg15[%c2_155, %c0_156, %c0_157] : memref<18x16x384xbf16, #tpu.memory_space<vmem>>, vector<16x16x384xbf16>
    %118 = vector.shape_cast %117 : vector<16x16x384xbf16> to vector<256x384xbf16>
    %c2_158 = arith.constant 2 : index
    %c0_159 = arith.constant 0 : index
    %c0_160 = arith.constant 0 : index
    %119 = vector.load %arg6[%c2_158, %c0_159, %c0_160] : memref<3x384x128xbf16, #tpu.memory_space<vmem>>, vector<1x384x128xbf16>
    %120 = vector.shape_cast %119 : vector<1x384x128xbf16> to vector<384x128xbf16>
    %cst_161 = arith.constant dense<0.000000e+00> : vector<256x128xf32>
    %121 = tpu.matmul %118, %120, %cst_161 {dimension_numbers = #tpu.dot_dimension_numbers<[1], [0], [0], [1], [0, 0, 1, 1], [], []>} : vector<256x384xbf16>, vector<384x128xbf16>, vector<256x128xf32> -> vector<256x128xf32>
    %122 = arith.addf %116, %121 : vector<256x128xf32>
    %123 = vector.broadcast %3 : vector<1x128xf32> to vector<256x128xf32>
    %124 = arith.addf %122, %123 : vector<256x128xf32>
    %cst_162 = arith.constant 0.000000e+00 : f32
    %125 = vector.broadcast %cst_162 : f32 to vector<256x128xf32>
    %126 = arith.maximumf %124, %125 : vector<256x128xf32>
    %127 = vector.broadcast %7 : vector<1x128xf32> to vector<256x128xf32>
    %128 = arith.mulf %126, %127 : vector<256x128xf32>
    %129 = vector.broadcast %8 : vector<1x128xf32> to vector<256x128xf32>
    %130 = arith.addf %128, %129 : vector<256x128xf32>
    %131 = vector.shape_cast %130 : vector<256x128xf32> to vector<16x16x128xf32>
    %132 = arith.truncf %131 : vector<16x16x128xf32> to vector<16x16x128xbf16>
    %c1_163 = arith.constant 1 : index
    %c1_164 = arith.constant 1 : index
    %c0_165 = arith.constant 0 : index
    %133 = vector.load %arg14[%c1_163, %c1_164, %c0_165] : memref<18x32x128xbf16, #tpu.memory_space<vmem>>, vector<16x16x128xbf16>
    tpu.vector_store %arg14[%c1_163, %c1_164, %c0_165], %132 {strides = array<i32>} : memref<18x32x128xbf16, #tpu.memory_space<vmem>>, vector<16x16x128xbf16>,
    %c0_166 = arith.constant 0 : index
    %c0_167 = arith.constant 0 : index
    %c0_168 = arith.constant 0 : index
    %134 = vector.load %arg14[%c0_166, %c0_167, %c0_168] : memref<18x32x128xbf16, #tpu.memory_space<vmem>>, vector<18x16x128xbf16>
    %c0_169 = arith.constant 0 : index
    %c0_170 = arith.constant 0 : index
    %c0_171 = arith.constant 0 : index
    %135 = vector.load %arg15[%c0_169, %c0_170, %c0_171] : memref<18x16x384xbf16, #tpu.memory_space<vmem>>, vector<18x16x128xbf16>
    tpu.vector_store %arg15[%c0_169, %c0_170, %c0_171], %134 {strides = array<i32>} : memref<18x16x384xbf16, #tpu.memory_space<vmem>>, vector<18x16x128xbf16>,
    %c0_172 = arith.constant 0 : index
    %c1_173 = arith.constant 1 : index
    %c0_174 = arith.constant 0 : index
    %136 = vector.load %arg14[%c0_172, %c1_173, %c0_174] : memref<18x32x128xbf16, #tpu.memory_space<vmem>>, vector<18x16x128xbf16>
    %c0_175 = arith.constant 0 : index
    %c0_176 = arith.constant 0 : index
    %c128_177 = arith.constant 128 : index
    %137 = vector.load %arg15[%c0_175, %c0_176, %c128_177] : memref<18x16x384xbf16, #tpu.memory_space<vmem>>, vector<18x16x128xbf16>
    tpu.vector_store %arg15[%c0_175, %c0_176, %c128_177], %136 {strides = array<i32>} : memref<18x16x384xbf16, #tpu.memory_space<vmem>>, vector<18x16x128xbf16>,
    %c0_178 = arith.constant 0 : index
    %c2_179 = arith.constant 2 : index
    %c0_180 = arith.constant 0 : index
    %138 = vector.load %arg14[%c0_178, %c2_179, %c0_180] : memref<18x32x128xbf16, #tpu.memory_space<vmem>>, vector<18x16x128xbf16>
    %c0_181 = arith.constant 0 : index
    %c0_182 = arith.constant 0 : index
    %c256_183 = arith.constant 256 : index
    %139 = vector.load %arg15[%c0_181, %c0_182, %c256_183] : memref<18x16x384xbf16, #tpu.memory_space<vmem>>, vector<18x16x128xbf16>
    tpu.vector_store %arg15[%c0_181, %c0_182, %c256_183], %138 {strides = array<i32>} : memref<18x16x384xbf16, #tpu.memory_space<vmem>>, vector<18x16x128xbf16>,
    %c0_184 = arith.constant 0 : index
    %c0_185 = arith.constant 0 : index
    %c0_186 = arith.constant 0 : index
    %140 = vector.load %arg15[%c0_184, %c0_185, %c0_186] : memref<18x16x384xbf16, #tpu.memory_space<vmem>>, vector<16x16x384xbf16>
    %141 = vector.shape_cast %140 : vector<16x16x384xbf16> to vector<256x384xbf16>
    %c0_187 = arith.constant 0 : index
    %c0_188 = arith.constant 0 : index
    %c0_189 = arith.constant 0 : index
    %142 = vector.load %arg7[%c0_187, %c0_188, %c0_189] : memref<3x384x128xbf16, #tpu.memory_space<vmem>>, vector<1x384x128xbf16>
    %143 = vector.shape_cast %142 : vector<1x384x128xbf16> to vector<384x128xbf16>
    %cst_190 = arith.constant dense<0.000000e+00> : vector<256x128xf32>
    %144 = tpu.matmul %141, %143, %cst_190 {dimension_numbers = #tpu.dot_dimension_numbers<[1], [0], [0], [1], [0, 0, 1, 1], [], []>} : vector<256x384xbf16>, vector<384x128xbf16>, vector<256x128xf32> -> vector<256x128xf32>
    %c1_191 = arith.constant 1 : index
    %c0_192 = arith.constant 0 : index
    %c0_193 = arith.constant 0 : index
    %145 = vector.load %arg15[%c1_191, %c0_192, %c0_193] : memref<18x16x384xbf16, #tpu.memory_space<vmem>>, vector<16x16x384xbf16>
    %146 = vector.shape_cast %145 : vector<16x16x384xbf16> to vector<256x384xbf16>
    %c1_194 = arith.constant 1 : index
    %c0_195 = arith.constant 0 : index
    %c0_196 = arith.constant 0 : index
    %147 = vector.load %arg7[%c1_194, %c0_195, %c0_196] : memref<3x384x128xbf16, #tpu.memory_space<vmem>>, vector<1x384x128xbf16>
    %148 = vector.shape_cast %147 : vector<1x384x128xbf16> to vector<384x128xbf16>
    %cst_197 = arith.constant dense<0.000000e+00> : vector<256x128xf32>
    %149 = tpu.matmul %146, %148, %cst_197 {dimension_numbers = #tpu.dot_dimension_numbers<[1], [0], [0], [1], [0, 0, 1, 1], [], []>} : vector<256x384xbf16>, vector<384x128xbf16>, vector<256x128xf32> -> vector<256x128xf32>
    %150 = arith.addf %144, %149 : vector<256x128xf32>
    %c2_198 = arith.constant 2 : index
    %c0_199 = arith.constant 0 : index
    %c0_200 = arith.constant 0 : index
    %151 = vector.load %arg15[%c2_198, %c0_199, %c0_200] : memref<18x16x384xbf16, #tpu.memory_space<vmem>>, vector<16x16x384xbf16>
    %152 = vector.shape_cast %151 : vector<16x16x384xbf16> to vector<256x384xbf16>
    %c2_201 = arith.constant 2 : index
    %c0_202 = arith.constant 0 : index
    %c0_203 = arith.constant 0 : index
    %153 = vector.load %arg7[%c2_201, %c0_202, %c0_203] : memref<3x384x128xbf16, #tpu.memory_space<vmem>>, vector<1x384x128xbf16>
    %154 = vector.shape_cast %153 : vector<1x384x128xbf16> to vector<384x128xbf16>
    %cst_204 = arith.constant dense<0.000000e+00> : vector<256x128xf32>
    %155 = tpu.matmul %152, %154, %cst_204 {dimension_numbers = #tpu.dot_dimension_numbers<[1], [0], [0], [1], [0, 0, 1, 1], [], []>} : vector<256x384xbf16>, vector<384x128xbf16>, vector<256x128xf32> -> vector<256x128xf32>
    %156 = arith.addf %150, %155 : vector<256x128xf32>
    %157 = vector.broadcast %6 : vector<1x128xf32> to vector<256x128xf32>
    %158 = arith.addf %156, %157 : vector<256x128xf32>
    %c0_205 = arith.constant 0 : index
    %c0_206 = arith.constant 0 : index
    %159 = vector.load %arg13[%c0_205, %c0_206] : memref<256x128xf32, #tpu.memory_space<vmem>>, vector<256x128xf32>
    %160 = arith.addf %159, %158 : vector<256x128xf32>
    %161 = vector.shape_cast %160 : vector<256x128xf32> to vector<1x256x128xf32>
    %c0_207 = arith.constant 0 : index
    %c0_208 = arith.constant 0 : index
    %c0_209 = arith.constant 0 : index
    %162 = vector.load %arg9[%c0_207, %c0_208, %c0_209] : memref<1x256x128xf32, #tpu.memory_space<vmem>>, vector<1x256x128xf32>
    tpu.vector_store %arg9[%c0_207, %c0_208, %c0_209], %161 {strides = array<i32>} : memref<1x256x128xf32, #tpu.memory_space<vmem>>, vector<1x256x128xf32>,
    return
  }
  func.func @transform_0(%arg0: i32) -> (i32, i32, i32) {
    %c0_i32 = arith.constant 0 : i32
    %c0_i32_0 = arith.constant 0 : i32
    %c0_i32_1 = arith.constant 0 : i32
    return %arg0, %c0_i32, %c0_i32_0 : i32, i32, i32
  }
  func.func @transform_1(%arg0: i32) -> (i32, i32, i32) {
    %c0_i32 = arith.constant 0 : i32
    %c0_i32_0 = arith.constant 0 : i32
    %c0_i32_1 = arith.constant 0 : i32
    return %arg0, %c0_i32, %c0_i32_0 : i32, i32, i32
  }
  func.func @transform_2(%arg0: i32) -> (i32, i32) {
    %c0_i32 = arith.constant 0 : i32
    %c0_i32_0 = arith.constant 0 : i32
    %c0_i32_1 = arith.constant 0 : i32
    return %c0_i32, %c0_i32_0 : i32, i32
  }
  func.func @transform_3(%arg0: i32) -> (i32, i32) {
    %c0_i32 = arith.constant 0 : i32
    %c0_i32_0 = arith.constant 0 : i32
    %c0_i32_1 = arith.constant 0 : i32
    return %c0_i32, %c0_i32_0 : i32, i32
  }
  func.func @transform_4(%arg0: i32) -> (i32, i32) {
    %c0_i32 = arith.constant 0 : i32
    %c0_i32_0 = arith.constant 0 : i32
    %c0_i32_1 = arith.constant 0 : i32
    return %c0_i32, %c0_i32_0 : i32, i32
  }
  func.func @transform_5(%arg0: i32) -> (i32, i32, i32) {
    %c0_i32 = arith.constant 0 : i32
    %c0_i32_0 = arith.constant 0 : i32
    %c0_i32_1 = arith.constant 0 : i32
    %c0_i32_2 = arith.constant 0 : i32
    return %c0_i32, %c0_i32_0, %c0_i32_1 : i32, i32, i32
  }
  func.func @transform_6(%arg0: i32) -> (i32, i32, i32) {
    %c0_i32 = arith.constant 0 : i32
    %c0_i32_0 = arith.constant 0 : i32
    %c0_i32_1 = arith.constant 0 : i32
    %c0_i32_2 = arith.constant 0 : i32
    return %c0_i32, %c0_i32_0, %c0_i32_1 : i32, i32, i32
  }
  func.func @transform_7(%arg0: i32) -> (i32, i32) {
    %c0_i32 = arith.constant 0 : i32
    %c0_i32_0 = arith.constant 0 : i32
    %c0_i32_1 = arith.constant 0 : i32
    return %c0_i32, %c0_i32_0 : i32, i32
  }
  func.func @transform_8(%arg0: i32) -> (i32, i32, i32) {
    %c0_i32 = arith.constant 0 : i32
    %c0_i32_0 = arith.constant 0 : i32
    %c0_i32_1 = arith.constant 0 : i32
    return %arg0, %c0_i32, %c0_i32_0 : i32, i32, i32
  }
}

</mosaic_0001>

<bundles_post_ra>
// kernel: global_convolution_block.1
= control target key start
LH: loop header
LB: loop body
LE: loop exit
PB: predicated region body
PF: predicated region fallthrough
CT: control target
= control target key end

     0   :  { %13 = vsyncpa [#allocation9], 0  ;;  %s18460_s0 = inlined_call_operand.vmem [shape: bf16[2,256,224], index: 0, kind: input, shape index: {}]   ;;  %s18461_s1 = inlined_call_operand.vmem [shape: bf16[2,320,224], index: 1, kind: input, shape index: {}]   ;;  %s18462_s2 = inlined_call_operand.vmem [shape: bf16[224,128], index: 2, kind: input, shape index: {}]   ;;  %s18463_s3 = inlined_call_operand.vmem [shape: bf16[224,128], index: 3, kind: input, shape index: {}]   ;;  %s18464_s4 = inlined_call_operand.vmem [shape: bf16[1792,128], index: 4, kind: input, shape index: {}]   ;;  %s18465_s5 = inlined_call_operand.vmem [shape: bf16[3,384,128], index: 5, kind: input, shape index: {}]   ;;  %s18466_s6 = inlined_call_operand.vmem [shape: bf16[3,384,128], index: 6, kind: input, shape index: {}]   ;;  %s18467_s7 = inlined_call_operand.vmem [shape: f32[9,128], index: 7, kind: input, shape index: {}]   ;;  %s18468_s8 = inlined_call_operand.hbm [shape: f32[2,256,128], index: 8, kind: output, shape index: {}]  }
   0x1   :  { %15 = vsyncpa [#allocation9 + $0x1], 0  ;;  %s14360_s27 = smov 0   ;;  %s14362_s28 = smov 0  }
   0x2   :  { %s14364_s29 = smov 0   ;;  %s14366_s30 = smov 0  }
   0x3 LB: > { %s14381_s9 = sadd.s32 4294967295, %s14309_s30   ;;  %s10940_s10 = sadd.s32 4294967294, %s14309_s30   ;;  %s14309_s30 = sphi %s14366_s30, %s18621_s30   ;;  %s14305_s29 = sphi %s14364_s29, %s18620_s29   ;;  %s14301_s28 = sphi %s14362_s28, %s18619_s28   ;;  %s14297_s27 = sphi %s14360_s27, %s18618_s27  }
   0x4   : > { %s14385_s11 = sadd.s32 1, %s14309_s30   ;;  %s206_s12 = sadd.s32 1, %s14305_s29 }
   0x5   : > { %s203_s13 = ssub.s32 %s14309_s30, %s14385_s11  ;;  %p216_p0 = scmp.ne.s32.totalorder %s14305_s29, %s14301_s28 }
   0x6   : > { %p204_p1 = scmp.eq.s32.totalorder %s203_s13, 0  ;;  %p217_p2 = scmp.eq.s32.totalorder %s14381_s9, 1 }
   0x7   : > { %p222_p3 = scmp.ne.s32.totalorder %s14301_s28, %s14297_s27  ;;  %p223_p4 = scmp.eq.s32.totalorder %s10940_s10, 1 }
   0x8   : > { %s14396_s14 = scalar_select %p204_p1, %s14305_s29, %s206_s12  }
   0x9   : > { %p14398_p5 = por %p217_p2, %p216_p0  ;;  %p14402_p6 = por %p223_p4, %p222_p3 }
   0xa   : > { %p10943_p7 = scmp.ge.s32.totalorder %s14309_s30, 1  ;;  %p275_p8 = scmp.lt.s32.totalorder %s14309_s30, 3 }
   0xc   : > { %p276_p9 = pnand %p10943_p7, %p275_p8 }
   0xe   : > { %279 = sbr.rel (%p276_p9) target bundleno = 2173 (0x87d), region = 52 }
  0x15   : > { %v13827_v0 = vld [vmem:[%s18462_s2] sm:$0xff]   ;;  %v14311_v1 = vmov 0   ;;  %p314_p10 = scmp.lt.s32.totalorder %s14381_s9, 1  ;;  %v13828_v2 = vld [vmem:[%s18462_s2 + $0x8] sm:$0xff]   ;;  %v13829_v3 = vld [vmem:[%s18462_s2 + $0x10] sm:$0xff]   ;;  %vm626_vm0 = vcmask 785408  }
  0x16   : > { %675 = vmatprep.subr.bf16.mxu0 %v14311_v1  ;;  %1465 = vst [vmem:[#allocation3] sm:$0xff] %v14311_v1  ;;  %1466 = vst [vmem:[#allocation3 + $0x8] sm:$0xff] %v14311_v1  ;;  %13436 = vmatprep.subr.bf16.mxu1 %v14311_v1  ;;  %v13830_v4 = vld [vmem:[%s18462_s2 + $0x18] sm:$0xff]   ;;  %v13831_v5 = vld [vmem:[%s18462_s2 + $0x20] sm:$0xff]   ;;  %vm1970_vm1 = vcmask 1046528   ;;  %vm2517_vm3 = vcmask 1045504  }
  0x17   : > { %1467 = vst [vmem:[#allocation3 + $0x10] sm:$0xff] %v14311_v1  ;;  %1468 = vst [vmem:[#allocation3 + $0x18] sm:$0xff] %v14311_v1  ;;  %676 = vmatpush1.bf16.msra.mxu0 %v13827_v0  ;;  %s14435_s21 = scalar_select %p314_p10, %s14381_s9, 1  ;;  %v14459_v7 = vld [vmem:[%s18463_s3] sm:$0xff]   ;;  %v13832_v8 = vld [vmem:[%s18462_s2 + $0x28] sm:$0xff]   ;;  %vm3065_vm5 = vcmask 1044480  }
  0x18   : > { %1469 = vst [vmem:[#allocation3 + $0x20] sm:$0xff] %v14311_v1  ;;  %1470 = vst [vmem:[#allocation3 + $0x28] sm:$0xff] %v14311_v1  ;;  %677 = vmatprep.subr.bf16.mxu0 %v14311_v1  ;;  %13450 = vmatpush1.bf16.msra.mxu1 %v14459_v7  ;;  %v14471_v9 = vld [vmem:[%s18463_s3 + $0x8] sm:$0xff]   ;;  %v13833_v10 = vld [vmem:[%s18462_s2 + $0x30] sm:$0xff]   ;;  %vm1648_vm2 = vsmask.f32 7424 }
  0x19   : > { %1472 = vst [vmem:[#allocation3 + $0xd0] sm:$0xff] %v14311_v1  ;;  %1473 = vst [vmem:[#allocation3 + $0xd8] sm:$0xff] %v14311_v1  ;;  %s11546_s24 = sshll.u32 %s14435_s21, 8  ;;  %13437 = vmatprep.subr.bf16.mxu1 %v14311_v1  ;;  %v14482_v11 = vld [vmem:[%s18463_s3 + $0x10] sm:$0xff]   ;;  %v13834_v12 = vld [vmem:[%s18462_s2 + $0x38] sm:$0xff]   ;;  %s13784_s26 = smul.u32 320, %s14435_s21 }
  0x1a   : > { %1474 = vst [vmem:[#allocation3 + $0xe0] sm:$0xff] %v14311_v1  ;;  %1475 = vst [vmem:[#allocation3 + $0xe8] sm:$0xff] %v14311_v1  ;;  %s14449_s13 = scalar_lea.vmem %s18460_s0, %s11546_s24  ;;  %v14493_v13 = vld [vmem:[%s18463_s3 + $0x18] sm:$0xff]   ;;  %v13835_v14 = vld [vmem:[%s18462_s2 + $0x40] sm:$0xff]   ;;  %vm2115_vm4 = vsmask.f32 6400 }
  0x1b   : > { %1476 = vst [vmem:[#allocation3 + $0xf0] sm:$0xff] %v14311_v1  ;;  %1477 = vst [vmem:[#allocation3 + $0xf8] sm:$0xff] %v14311_v1  ;;  %678 = vmatpush1.bf16.msra.mxu0 %v13828_v2  ;;  %v13843_v6 = vld [vmem:[%s14449_s13 + $0x4] ss:$8 sps:$4 sm:$0xff]   ;;  %v13837_v18 = vld [vmem:[%s18462_s2 + $0x50] sm:$0xff]   ;;  %s14549_s21 = scalar_lea.vmem %s18461_s1, %s13784_s26  ;;  %vm5434_vm7 = vcmask 1040384  }
  0x1c   : > { %5429 = vst [vmem:[#allocation6] sm:$0xff] %v14311_v1  ;;  %5430 = vst [vmem:[#allocation6 + $0x8] sm:$0xff] %v14311_v1  ;;  %679 = vmatprep.subr.bf16.mxu0 %v14311_v1  ;;  %10995 = vmatprep.mubr.msk.bf16.mxu0 %vm626_vm0, %v13843_v6  ;;  %v14504_v15 = vld [vmem:[%s18463_s3 + $0x20] sm:$0xff]   ;;  %v13836_v16 = vld [vmem:[%s18462_s2 + $0x48] sm:$0xff]   ;;  %vm2663_vm6 = vsmask.f32 5376 }
  0x1d   : > { %5432 = vst [vmem:[#allocation6 + $0x110] sm:$0xff] %v14311_v1  ;;  %5433 = vst [vmem:[#allocation6 + $0x118] sm:$0xff] %v14311_v1  ;;  %13451 = vmatpush1.bf16.msra.mxu1 %v14471_v9  ;;  %v14515_v17 = vld [vmem:[%s18463_s3 + $0x28] sm:$0xff]   ;;  %v14526_v19 = vld [vmem:[%s18463_s3 + $0x30] sm:$0xff]   ;;  %vm5435_vm8 = vsmask.f32 256 }
  0x1e   : > { %13438 = vmatprep.subr.bf16.mxu1 %v14311_v1  ;;  %v13838_v20 = vld [vmem:[%s18462_s2 + $0x58] sm:$0xff]   ;;  %v13839_v22 = vld [vmem:[%s18462_s2 + $0x60] sm:$0xff]   ;;  %v13840_v24 = vld [vmem:[%s18462_s2 + $0x68] sm:$0xff]   ;;  %vm5491_vm10 = vsmask.f32 7938  ;;  %vm5812_vm12 = vcmask 1047552  }
  0x1f   : > { %680 = vmatpush1.bf16.msra.mxu0 %v13829_v3  ;;  %v14538_v21 = vld [vmem:[%s18463_s3 + $0x38] sm:$0xff]   ;;  %v14554_v23 = vld [vmem:[%s18463_s3 + $0x40] sm:$0xff]   ;;  %v14562_v25 = vld [vmem:[%s18463_s3 + $0x48] sm:$0xff]   ;;  %s311_s22 = sand.u32 1, %s14301_s28   ;;  %s11547_s12 = sshll.u32 %s14381_s9, 12 }
  0x20   : > { %681 = vmatprep.subr.bf16.mxu0 %v14311_v1  ;;  %v13841_v26 = vld [vmem:[%s14449_s13] ss:$8 sps:$4 sm:$0xff]   ;;  %v13845_v27 = vld [vmem:[%s14449_s13 + $0x14] ss:$8 sps:$4 sm:$0xff]   ;;  %v13847_v29 = vld [vmem:[%s14449_s13 + $0x10] ss:$8 sps:$4 sm:$0xff]   ;;  %s18409_s18 = scalar_lea.hbm %s18468_s8, %s11547_s12 }
  0x21   : > { %13452 = vmatpush1.bf16.msra.mxu1 %v14482_v11  ;;  %v14575_v28 = vld [vmem:[%s18463_s3 + $0x50] sm:$0xff]   ;;  %v14584_v30 = vld [vmem:[%s18463_s3 + $0x58] sm:$0xff]   ;;  %v13849_v31 = vld [vmem:[%s14449_s13 + $0x24] ss:$8 sps:$4 sm:$0xff]   ;;  %s10944_s25 = sshll.u32 %s311_s22, 8  ;;  %s18419_s9 = scalar_lea.sflag [#allocation9], %s311_s22 }
  0x22   : > { %13439 = vmatprep.subr.bf16.mxu1 %v14311_v1  ;;  %v14596_v32 = vld [vmem:[%s18463_s3 + $0x60] sm:$0xff]   ;;  %v14606_v35 = vld [vmem:[%s18463_s3 + $0x68] sm:$0xff]   ;;  %v13853_v36 = vld [vmem:[%s14449_s13 + $0x34] ss:$8 sps:$4 sm:$0xff]   ;;  %s18288_s10 = scalar_lea.vmem [#allocation8], %s10944_s25 }
  0x23   : > { %682 = vmatpush1.bf16.msra.mxu0 %v13830_v4  ;;  %v13913_v33 = vld [vmem:[%s14549_s21 + $0xa4] ss:$8 sps:$4 sm:$0xff]   ;;  %v13851_v34 = vld [vmem:[%s14449_s13 + $0x20] ss:$8 sps:$4 sm:$0xff]   ;;  %v13919_v38 = vld [vmem:[%s14549_s21 + $0xb4] ss:$8 sps:$4 sm:$0xff]  }
  0x24   : > { %683 = vmatprep.subr.bf16.mxu0 %v14311_v1  ;;  %11076 = vmatprep.mubr.msk.bf16.mxu1 %vm626_vm0, %v13913_v33  ;;  %v13911_v37 = vld [vmem:[%s14549_s21 + $0xa0] ss:$8 sps:$4 sm:$0xff]   ;;  %v13855_v39 = vld [vmem:[%s14449_s13 + $0x30] ss:$8 sps:$4 sm:$0xff]   ;;  %v13857_v40 = vld [vmem:[%s14449_s13 + $0x44] ss:$8 sps:$4 sm:$0xff]  }
  0x25   : > { %13453 = vmatpush1.bf16.msra.mxu1 %v14493_v13  ;;  %v13921_v41 = vld [vmem:[%s14549_s21 + $0xb0] ss:$8 sps:$4 sm:$0xff]   ;;  %v13927_v42 = vld [vmem:[%s14549_s21 + $0xc4] ss:$8 sps:$4 sm:$0xff]   ;;  %v13859_v43 = vld [vmem:[%s14449_s13 + $0x40] ss:$8 sps:$4 sm:$0xff]  }
  0x26   : > { %13440 = vmatprep.subr.bf16.mxu1 %v14311_v1  ;;  %v13861_v44 = vld [vmem:[%s14449_s13 + $0x54] ss:$8 sps:$4 sm:$0xff]   ;;  %v13929_v45 = vld [vmem:[%s14549_s21 + $0xc0] ss:$8 sps:$4 sm:$0xff]   ;;  %v13863_v47 = vld [vmem:[%s14449_s13 + $0x50] ss:$8 sps:$4 sm:$0xff]  }
  0x27   : > { %684 = vmatpush1.bf16.msra.mxu0 %v13831_v5  ;;  %v13935_v46 = vld [vmem:[%s14549_s21 + $0xd4] ss:$8 sps:$4 sm:$0xff]   ;;  %v13864_v48 = vld [vmem:[%s14449_s13 + $0x64] ss:$8 sps:$4 sm:$0xff]   ;;  %v13937_v49 = vld [vmem:[%s14549_s21 + $0xd0] ss:$8 sps:$4 sm:$0xff]  }
  0x28   : > { %685 = vmatprep.subr.bf16.mxu0 %v14311_v1  ;;  %v13943_v50 = vld [vmem:[%s14549_s21 + $0xe4] ss:$8 sps:$4 sm:$0xff]   ;;  %v13867_v51 = vld [vmem:[%s14449_s13 + $0x60] ss:$8 sps:$4 sm:$0xff]   ;;  %v13868_v52 = vld [vmem:[%s14449_s13 + $0x74] ss:$8 sps:$4 sm:$0xff]  }
  0x29   : > { %13454 = vmatpush1.bf16.msra.mxu1 %v14504_v15  ;;  %v13945_v53 = vld [vmem:[%s14549_s21 + $0xe0] ss:$8 sps:$4 sm:$0xff]   ;;  %v13949_v54 = vld [vmem:[%s14549_s21 + $0xf4] ss:$8 sps:$4 sm:$0xff]   ;;  %v13870_v56 = vld [vmem:[%s14449_s13 + $0x70] ss:$8 sps:$4 sm:$0xff]  }
  0x2a   : > { %13441 = vmatprep.subr.bf16.mxu1 %v14311_v1  ;;  %v13906_v55 = vld [vmem:[%s18464_s4 + $0x40] sm:$0xff]   ;;  %v13952_v58 = vld [vmem:[%s14549_s21 + $0xf0] ss:$8 sps:$4 sm:$0xff]   ;;  %v13966_v63 = vld [vmem:[%s18464_s4 + $0xc8] sm:$0xff]   ;;  %s10866_s26 = sshll.u32 %s18288_s10, 4  ;;  %s18411_s26 = int_to_ptr.vmem [resolvable:$true] %s10866_s26 }
  0x2b   : > { %686 = vmatpush1.bf16.msra.mxu0 %v13832_v8  ;;  %v13872_v57 = vld [vmem:[%s14449_s13 + $0x84] ss:$8 sps:$4 sm:$0xff]   ;;  %v13874_v62 = vld [vmem:[%s14449_s13 + $0x80] ss:$8 sps:$4 sm:$0xff]   ;;  %v13876_v0 = vld [vmem:[%s14449_s13 + $0x94] ss:$8 sps:$4 sm:$0xff]  }
  0x2c   : > { %687 = vmatprep.subr.bf16.mxu0 %v14311_v1  ;;  %v13957_v59 = vld [vmem:[%s14549_s21 + $0x104] ss:$8 sps:$4 sm:$0xff]   ;;  %v13969_v3 = vld [vmem:[%s14549_s21 + $0x114] ss:$8 sps:$4 sm:$0xff]   ;;  %v13878_v6 = vld [vmem:[%s14449_s13 + $0x90] ss:$8 sps:$4 sm:$0xff]  }
  0x2d   : > { %13455 = vmatpush1.bf16.msra.mxu1 %v14515_v17  ;;  %v13960_v60 = vld [vmem:[%s18464_s4 + $0xc0] sm:$0xff]   ;;  %v13968_v2 = vld [vmem:[%s18464_s4 + $0x88] sm:$0xff]   ;;  %v13972_v4 = vld [vmem:[%s18464_s4 + $0xd0] sm:$0xff]   ;;  %s14247_s19 = scalar_lea.vmem %s18411_s26, 4096 }
  0x2e   : > { %13442 = vmatprep.subr.bf16.mxu1 %v14311_v1  ;;  %v13962_v61 = vld [vmem:[%s18464_s4 + $0x80] sm:$0xff]   ;;  %v13973_v5 = vld [vmem:[%s18464_s4 + $0x90] sm:$0xff]   ;;  %vm16079_vm9 = vmand %vm5434_vm7, %vm5435_vm8  ;;  %p14248_p11 = scmp.ne.s32.totalorder %s18411_s26, %s14247_s19 }
  0x2f   : > { %688 = vmatpush1.bf16.msra.mxu0 %v13833_v10  ;;  %v13880_v8 = vld [vmem:[%s14449_s13 + $0xa4] ss:$8 sps:$4 sm:$0xff]   ;;  %v13980_v10 = vld [vmem:[%s18464_s4 + $0x98] sm:$0xff]   ;;  %vm16090_vm11 = vmand %vm5434_vm7, %vm5491_vm10 }
  0x30   : > { %689 = vmatprep.subr.bf16.mxu0 %v14311_v1  ;;  %v13901_v33 = vld [vmem:[%s14449_s13 + $0xf0] ss:$8 sps:$4 sm:$0xff]   ;;  %vm16401_vm13 = vmand %vm5812_vm12, %vm5491_vm10  ;;  %p14249_p12 = pnand %p14248_p11, %p14398_p5 }
  0x31   : > { %13456 = vmatpush1.bf16.msra.mxu1 %v14526_v19 }
  0x32   : > { %13443 = vmatprep.subr.bf16.mxu1 %v14311_v1  ;;  %p14250_p13 = pneg %p14249_p12 }
  0x33   : > { %690 = vmatpush1.bf16.msra.mxu0 %v13834_v12  ;;  %v13984_v12 = vld [vmem:[%s18464_s4 + $0xe0] sm:$0xff]  }
  0x34   : > { %691 = vmatprep.subr.bf16.mxu0 %v14311_v1 }
  0x35   : > { %13457 = vmatpush1.bf16.msra.mxu1 %v14538_v21 }
  0x36   : > { %13444 = vmatprep.subr.bf16.mxu1 %v14311_v1 }
  0x37   : > { %692 = vmatpush1.bf16.msra.mxu0 %v13835_v14  ;;  %v13986_v14 = vld [vmem:[%s18464_s4 + $0xe8] sm:$0xff]  }
  0x38   : > { %693 = vmatprep.subr.bf16.mxu0 %v14311_v1 }
  0x39   : > { %13458 = vmatpush1.bf16.msra.mxu1 %v14554_v23 }
  0x3a   : > { %13445 = vmatprep.subr.bf16.mxu1 %v14311_v1 }
  0x3b   : > { %694 = vmatpush1.bf16.msra.mxu0 %v13836_v16  ;;  %v13884_v16 = vld [vmem:[%s14449_s13 + $0xb4] ss:$8 sps:$4 sm:$0xff]  }
  0x3c   : > { %695 = vmatprep.subr.bf16.mxu0 %v14311_v1 }
  0x3d   : > { %13459 = vmatpush1.bf16.msra.mxu1 %v14562_v25 }
  0x3e   : > { %13446 = vmatprep.subr.bf16.mxu1 %v14311_v1 }
  0x3f   : > { %696 = vmatpush1.bf16.msra.mxu0 %v13837_v18  ;;  %v13987_v18 = vld [vmem:[%s18464_s4 + $0xa8] sm:$0xff]  }
  0x40   : > { %697 = vmatprep.subr.bf16.mxu0 %v14311_v1 }
  0x41   : > { %13460 = vmatpush1.bf16.msra.mxu1 %v14575_v28 }
  0x42   : > { %13447 = vmatprep.subr.bf16.mxu1 %v14311_v1 }
  0x43   : > { %698 = vmatpush1.bf16.msra.mxu0 %v13838_v20  ;;  %v13993_v20 = vld [vmem:[%s18464_s4 + $0xf0] sm:$0xff]  }
  0x44   : > { %699 = vmatprep.subr.bf16.mxu0 %v14311_v1 }
  0x45   : > { %13461 = vmatpush1.bf16.msra.mxu1 %v14584_v30 }
  0x46   : > { %13448 = vmatprep.subr.bf16.mxu1 %v14311_v1 }
  0x47   : > { %700 = vmatpush1.bf16.msra.mxu0 %v13839_v22  ;;  %v13994_v22 = vld [vmem:[%s18464_s4 + $0xb0] sm:$0xff]  }
  0x48   : > { %701 = vmatprep.subr.bf16.mxu0 %v14311_v1 }
  0x49   : > { %13462 = vmatpush1.bf16.msra.mxu1 %v14596_v32 }
  0x4a   : > { %13449 = vmatprep.subr.bf16.mxu1 %v14311_v1 }
  0x4b   : > { %702 = vmatpush1.bf16.msra.mxu0 %v13840_v24  ;;  %v13992_v24 = vld [vmem:[%s14549_s21 + $0x130] ss:$8 sps:$4 sm:$0xff]  }
  0x4c   : > { %1232 = vmatprep.subr.bf16.mxu0 %v14311_v1 }
  0x4d   : > { %13463 = vmatpush1.bf16.msra.mxu1 %v14606_v35 }
  0x4e   : > { %708 = vmatmul.mubr.bf16.vlgmr.msra.gmra.mrb[0].mxu0 %v13841_v26  ;;  %11660 = vmatprep.subr.bf16.mxu1 %v13960_v60  ;;  %v13996_v26 = vld [vmem:[%s18464_s4 + $0xb8] sm:$0xff]  }
  0x4f   : > { %1233 = vmatpush1.bf16.msra.mxu0 %v14459_v7  ;;  %10996 = vmatprep.mubr.msk.bf16.mxu0 %vm626_vm0, %v13845_v27  ;;  %v13978_v7 = vld [vmem:[%s18464_s4 + $0xd8] sm:$0xff]   ;;  %v13890_v27 = vld [vmem:[%s14449_s13 + $0xc0] ss:$8 sps:$4 sm:$0xff]  }
  0x50   : > { %1234 = vmatprep.subr.bf16.mxu0 %v14311_v1  ;;  %1345 = vmatmul.mubr.bf16.vlgmr.msra.gmra.mrb[0].mxu1 %v13911_v37  ;;  %v13908_v37 = vld [vmem:[%s14549_s21 + $0x14] ss:$8 sps:$4 sm:$0xff]  }
  0x51   : > { %11077 = vmatprep.mubr.msk.bf16.mxu1 %vm626_vm0, %v13919_v38  ;;  %11661 = vmatpush3.bf16.msra.mxu1 %v13962_v61  ;;  %v13914_v38 = vld [vmem:[%s18464_s4 + $0x48] sm:$0xff]   ;;  %v13938_v60 = vld [vmem:[%s14549_s21 + $0x54] ss:$8 sps:$4 sm:$0xff]   ;;  %v13940_v61 = vld [vmem:[%s14549_s21 + $0x50] ss:$8 sps:$4 sm:$0xff]  }
  0x52   : > { %11662 = vmatprep.subr.bf16.mxu1 %v13966_v63  ;;  %v13948_v63 = vld [vmem:[%s14549_s21 + $0x60] ss:$8 sps:$4 sm:$0xff]  }
  0x53   : > { %1235 = vmatpush1.bf16.msra.mxu0 %v14471_v9  ;;  %v13971_v9 = vld [vmem:[%s14549_s21 + $0x110] ss:$8 sps:$4 sm:$0xff]  }
  0x54   : > { %1236 = vmatprep.subr.bf16.mxu0 %v14311_v1 }
  0x55   : > { %11663 = vmatpush3.bf16.msra.mxu1 %v13968_v2  ;;  %v13964_v2 = vld [vmem:[%s14549_s21 + $0x84] ss:$8 sps:$4 sm:$0xff]  }
  0x56   : > { %716 = vmatmul.mubr.bf16.gmra.mrb[4].mxu0 %v13847_v29  ;;  %11664 = vmatprep.subr.bf16.mxu1 %v13972_v4  ;;  %v13894_v29 = vld [vmem:[%s14449_s13 + $0xd0] ss:$8 sps:$4 sm:$0xff]   ;;  %v13967_v4 = vld [vmem:[%s14549_s21 + $0x80] ss:$8 sps:$4 sm:$0xff]  }
  0x57   : > { %10997 = vmatprep.mubr.msk.bf16.mxu0 %vm626_vm0, %v13849_v31  ;;  %1237 = vmatpush1.bf16.msra.mxu0 %v14482_v11  ;;  %v13981_v11 = vld [vmem:[%s14549_s21 + $0x124] ss:$8 sps:$4 sm:$0xff]   ;;  %v13898_v31 = vld [vmem:[%s14449_s13 + $0xe0] ss:$8 sps:$4 sm:$0xff]  }
  0x58   : > { %1238 = vmatprep.subr.bf16.mxu0 %v14311_v1  ;;  %1353 = vmatmul.mubr.bf16.gmra.mrb[4].mxu1 %v13921_v41  ;;  %v13910_v41 = vld [vmem:[%s14549_s21 + $0x10] ss:$8 sps:$4 sm:$0xff]  }
  0x59   : > { %11078 = vmatprep.mubr.msk.bf16.mxu1 %vm626_vm0, %v13927_v42  ;;  %11665 = vmatpush3.bf16.msra.mxu1 %v13973_v5  ;;  %v13916_v42 = vld [vmem:[%s14549_s21 + $0x24] ss:$8 sps:$4 sm:$0xff]   ;;  %v13975_v5 = vld [vmem:[%s14549_s21 + $0x94] ss:$8 sps:$4 sm:$0xff]  }
  0x5a   : > { %11666 = vmatprep.subr.bf16.mxu1 %v13978_v7  ;;  %v14832_v7 = vld [vmem:[#allocation3] sm:$0xff] }
  0x5b   : > { %1239 = vmatpush1.bf16.msra.mxu0 %v14493_v13  ;;  %v13985_v13 = vld [vmem:[%s18464_s4 + $0xa0] sm:$0xff]  }
  0x5c   : > { %1240 = vmatprep.subr.bf16.mxu0 %v14311_v1 }
  0x5d   : > { %11667 = vmatpush3.bf16.msra.mxu1 %v13980_v10  ;;  %v13998_v10 = vld [vmem:[%s18464_s4 + $0x108] sm:$0xff]  }
  0x5e   : > { %724 = vmatmul.mubr.bf16.gmra.mrb[8].mxu0 %v13851_v34  ;;  %11668 = vmatprep.subr.bf16.mxu1 %v13984_v12  ;;  %v13905_v34 = vld [vmem:[%s14549_s21 + $0x4] ss:$8 sps:$4 sm:$0xff]   ;;  %v13999_v12 = vld [vmem:[%s18464_s4 + $0x150] sm:$0xff]  }
  0x5f   : > { %10998 = vmatprep.mubr.msk.bf16.mxu0 %vm626_vm0, %v13853_v36  ;;  %1241 = vmatpush1.bf16.msra.mxu0 %v14504_v15  ;;  %v13882_v15 = vld [vmem:[%s14449_s13 + $0xa0] ss:$8 sps:$4 sm:$0xff]  }
  0x60   : > { %1242 = vmatprep.subr.bf16.mxu0 %v14311_v1  ;;  %1361 = vmatmul.mubr.bf16.gmra.mrb[8].mxu1 %v13929_v45  ;;  %v13907_v36 = vld [vmem:[%s18464_s4] sm:$0xff]   ;;  %v13933_v45 = vld [vmem:[%s18464_s4 + $0x18] sm:$0xff]  }
  0x61   : > { %11079 = vmatprep.mubr.msk.bf16.mxu1 %vm626_vm0, %v13935_v46  ;;  %11669 = vmatpush3.bf16.msra.mxu1 %v13985_v13  ;;  %v13941_v46 = vld [vmem:[%s18464_s4 + $0x60] sm:$0xff]  }
  0x62   : > { %11670 = vmatprep.subr.bf16.mxu1 %v13986_v14 }
  0x63   : > { %1243 = vmatpush1.bf16.msra.mxu0 %v14515_v17  ;;  %v13983_v17 = vld [vmem:[%s14549_s21 + $0x120] ss:$8 sps:$4 sm:$0xff]  }
  0x64   : > { %1244 = vmatprep.subr.bf16.mxu0 %v14311_v1 }
  0x65   : > { %11671 = vmatpush3.bf16.msra.mxu1 %v13987_v18 }
  0x66   : > { %732 = vmatmul.mubr.bf16.gmra.mrb[12].mxu0 %v13855_v39  ;;  %11672 = vmatprep.subr.bf16.mxu1 %v13993_v20  ;;  %v13915_v39 = vld [vmem:[%s18464_s4 + $0x8] sm:$0xff]   ;;  %v14001_v20 = vld [vmem:[%s18464_s4 + $0x158] sm:$0xff]  }
  0x67   : > { %10999 = vmatprep.mubr.msk.bf16.mxu0 %vm626_vm0, %v13857_v40  ;;  %1245 = vmatpush1.bf16.msra.mxu0 %v14526_v19  ;;  %v13990_v19 = vld [vmem:[%s14549_s21 + $0x134] ss:$8 sps:$4 sm:$0xff]  }
  0x68   : > { %1246 = vmatprep.subr.bf16.mxu0 %v14311_v1  ;;  %1369 = vmatmul.mubr.bf16.gmra.mrb[12].mxu1 %v13937_v49  ;;  %v13922_v40 = vld [vmem:[%s18464_s4 + $0x50] sm:$0xff]   ;;  %v13942_v49 = vld [vmem:[%s18464_s4 + $0x20] sm:$0xff]  }
  0x69   : > { %11080 = vmatprep.mubr.msk.bf16.mxu1 %vm626_vm0, %v13943_v50  ;;  %11673 = vmatpush3.bf16.msra.mxu1 %v13994_v22  ;;  %v13951_v50 = vld [vmem:[%s18464_s4 + $0x68] sm:$0xff]   ;;  %v14010_v22 = vld [vmem:[%s18464_s4 + $0x180] sm:$0xff]  }
  0x6b   : > { %1247 = vmatpush1.bf16.msra.mxu0 %v14538_v21  ;;  %v13886_v21 = vld [vmem:[%s14449_s13 + $0xb0] ss:$8 sps:$4 sm:$0xff]  }
  0x6c   : > { %1248 = vmatprep.subr.bf16.mxu0 %v14311_v1 }
  0x6e   : > { %740 = vmatmul.mubr.bf16.gmra.mrb[16].mxu0 %v13859_v43  ;;  %v13923_v43 = vld [vmem:[%s18464_s4 + $0x10] sm:$0xff]  }
  0x6f   : > { %11000 = vmatprep.mubr.msk.bf16.mxu0 %vm626_vm0, %v13861_v44  ;;  %1249 = vmatpush1.bf16.msra.mxu0 %v14554_v23  ;;  %v13888_v23 = vld [vmem:[%s14449_s13 + $0xc4] ss:$8 sps:$4 sm:$0xff]   ;;  %v13930_v44 = vld [vmem:[%s18464_s4 + $0x58] sm:$0xff]  }
  0x70   : > { %1250 = vmatprep.subr.bf16.mxu0 %v14311_v1  ;;  %1377 = vmatmul.mubr.bf16.gmra.mrb[16].mxu1 %v13945_v53  ;;  %v13926_v53 = vld [vmem:[%s14549_s21 + $0x30] ss:$8 sps:$4 sm:$0xff]  }
  0x71   : > { %11081 = vmatprep.mubr.msk.bf16.mxu1 %vm626_vm0, %v13949_v54  ;;  %v13931_v54 = vld [vmem:[%s14549_s21 + $0x44] ss:$8 sps:$4 sm:$0xff]  }
  0x73   : > { %1251 = vmatpush1.bf16.msra.mxu0 %v14562_v25  ;;  %v13995_v25 = vld [vmem:[%s18464_s4 + $0xf8] sm:$0xff]  }
  0x74   : > { %1252 = vmatprep.subr.bf16.mxu0 %v14311_v1  ;;  %11674 = vmatprep.subr.bf16.mxu1 %v13995_v25  ;;  %v14003_v25 = vld [vmem:[%s18464_s4 + $0x160] sm:$0xff]  }
  0x75   : > { %11675 = vmatpush3.bf16.msra.mxu1 %v13996_v26 }
  0x76   : > { %748 = vmatmul.mubr.bf16.gmra.mrb[20].mxu0 %v13863_v47  ;;  %v13918_v47 = vld [vmem:[%s14549_s21 + $0x20] ss:$8 sps:$4 sm:$0xff]  }
  0x77   : > { %11001 = vmatprep.mubr.msk.bf16.mxu0 %vm626_vm0, %v13864_v48  ;;  %1253 = vmatpush1.bf16.msra.mxu0 %v14575_v28  ;;  %v13892_v28 = vld [vmem:[%s14449_s13 + $0xd4] ss:$8 sps:$4 sm:$0xff]  }
  0x78   : > { %1254 = vmatprep.subr.bf16.mxu0 %v14311_v1  ;;  %1385 = vmatmul.mubr.bf16.gmra.mrb[20].mxu1 %v13952_v58  ;;  %v13924_v48 = vld [vmem:[%s14549_s21 + $0x34] ss:$8 sps:$4 sm:$0xff]   ;;  %v13988_v58 = vld [vmem:[%s18464_s4 + $0x140] sm:$0xff]  }
  0x79   : > { %11082 = vmatprep.mubr.msk.bf16.mxu1 %vm626_vm0, %v13957_v59  ;;  %v13934_v59 = vld [vmem:[%s14549_s21 + $0x40] ss:$8 sps:$4 sm:$0xff]  }
  0x7b   : > { %1255 = vmatpush1.bf16.msra.mxu0 %v14584_v30  ;;  %v13895_v30 = vld [vmem:[%s14449_s13 + $0xe4] ss:$8 sps:$4 sm:$0xff]  }
  0x7c   : > { %1256 = vmatprep.subr.bf16.mxu0 %v14311_v1 }
  0x7e   : > { %756 = vmatmul.mubr.bf16.gmra.mrb[24].mxu0 %v13867_v51  ;;  %v13953_v51 = vld [vmem:[%s18464_s4 + $0x28] sm:$0xff]  }
  0x7f   : > { %11002 = vmatprep.mubr.msk.bf16.mxu0 %vm626_vm0, %v13868_v52  ;;  %1257 = vmatpush1.bf16.msra.mxu0 %v14596_v32  ;;  %v13899_v32 = vld [vmem:[%s14449_s13 + $0xf4] ss:$8 sps:$4 sm:$0xff]   ;;  %s14312_s13 = smov [#allocation8]  }
  0x80   : > { %1258 = vmatprep.subr.bf16.mxu0 %v14311_v1  ;;  %v13959_v1 = vld [vmem:[%s14549_s21 + $0x100] ss:$8 sps:$4 sm:$0xff]   ;;  %v13961_v52 = vld [vmem:[%s18464_s4 + $0x70] sm:$0xff]   ;;  %s14251_s20 = sshll.u32 %s14312_s13, 4  ;;  %s14252_s20 = int_to_ptr.vmem [resolvable:$false] %s14251_s20 }
  0x81   : > { %1393 = vmatmul.mubr.bf16.gmra.mrb[24].mxu1 %v13959_v1  ;;  %v13956_v1 = vld [vmem:[%s14549_s21 + $0x70] ss:$8 sps:$4 sm:$0xff]   ;;  %s14253_s23 = scalar_lea.vmem %s14252_s20, 8192  ;;  %p14254_p0 = scmp.lt.s32.totalorder %s18411_s26, %s14252_s20 }
  0x82   : > { %11083 = vmatprep.mubr.msk.bf16.mxu1 %vm626_vm0, %v13969_v3  ;;  %v14009_v3 = vld [vmem:[%s18464_s4 + $0x1c0] sm:$0xff]   ;;  %p14255_p1 = scmp.lt.s32.totalorder %s14253_s23, %s14247_s19 }
  0x83   : > { %1259 = vmatpush1.bf16.msra.mxu0 %v14606_v35  ;;  %v13903_v35 = vld [vmem:[%s14549_s21] ss:$8 sps:$4 sm:$0xff]   ;;  %11884 = vmatprep.subr.bf16.mxu1 %v14009_v3 }
  0x84   : > { %11548 = vmatprep.subr.bf16.mxu0 %v13906_v55  ;;  %v13963_v55 = vld [vmem:[%s18464_s4 + $0x30] sm:$0xff]   ;;  %p14256_p2 = por %p14255_p1, %p14254_p0 }
  0x86   : > { %764 = vmatmul.mubr.bf16.gmra.mrb[28].mxu0 %v13870_v56  ;;  %v13974_v56 = vld [vmem:[%s18464_s4 + $0x78] sm:$0xff]   ;;  %p14257_p3 = pnand %p14256_p2, %p14250_p13 }
  0x87   : > { %11003 = vmatprep.mubr.msk.bf16.mxu0 %vm626_vm0, %v13872_v57  ;;  %v13977_v57 = vld [vmem:[%s18464_s4 + $0x38] sm:$0xff]  }
  0x89   : > { %1401 = vmatmul.mubr.bf16.gmra.mrb[28].mxu1 %v13971_v9  ;;  %v13997_v9 = vld [vmem:[%s18464_s4 + $0x148] sm:$0xff]  }
  0x8a   : > { %11084 = vmatprep.mubr.msk.bf16.mxu1 %vm626_vm0, %v13981_v11  ;;  %v14849_v11 = vld [vmem:[%s18467_s7] ss:$0 sm:$0xff] }
  0x8e   : > { %772 = vmatmul.mubr.bf16.gmra.mrb[32].mxu0 %v13874_v62  ;;  %v13946_v62 = vld [vmem:[%s14549_s21 + $0x64] ss:$8 sps:$4 sm:$0xff]  }
  0x8f   : > { %11004 = vmatprep.mubr.msk.bf16.mxu0 %vm626_vm0, %v13876_v0  ;;  %v13954_v0 = vld [vmem:[%s14549_s21 + $0x74] ss:$8 sps:$4 sm:$0xff]  }
  0x91   : > { %1409 = vmatmul.mubr.bf16.gmra.mrb[32].mxu1 %v13983_v17 }
  0x92   : > { %11085 = vmatprep.mubr.msk.bf16.mxu1 %vm626_vm0, %v13990_v19 }
  0x96   : > { %780 = vmatmul.mubr.bf16.gmra.mrb[36].mxu0 %v13878_v6  ;;  %v13979_v6 = vld [vmem:[%s14549_s21 + $0x90] ss:$8 sps:$4 sm:$0xff]  }
  0x97   : > { %11005 = vmatprep.mubr.msk.bf16.mxu0 %vm626_vm0, %v13880_v8  ;;  %v13989_v8 = vld [vmem:[%s18464_s4 + $0x100] sm:$0xff]  }
  0x99   : > { %1417 = vmatmul.mubr.bf16.gmra.mrb[36].mxu1 %v13992_v24  ;;  %v14011_v24 = vld [vmem:[%s18464_s4 + $0x1c8] sm:$0xff]  }
  0x9e   : > { %788 = vmatmul.mubr.bf16.gmra.mrb[40].mxu0 %v13882_v15 }
  0x9f   : > { %11006 = vmatprep.mubr.msk.bf16.mxu0 %vm626_vm0, %v13884_v16  ;;  %v14000_v16 = vld [vmem:[%s18464_s4 + $0x110] sm:$0xff]  }
  0xa6   : > { %796 = vmatmul.mubr.bf16.gmra.mrb[44].mxu0 %v13886_v21 }
  0xa7   : > { %11007 = vmatprep.mubr.msk.bf16.mxu0 %vm626_vm0, %v13888_v23  ;;  %v14002_v23 = vld [vmem:[%s18464_s4 + $0x118] sm:$0xff]  }
  0xae   : > { %804 = vmatmul.mubr.bf16.gmra.mrb[48].mxu0 %v13890_v27 }
  0xaf   : > { %11008 = vmatprep.mubr.msk.bf16.mxu0 %vm626_vm0, %v13892_v28  ;;  %v14013_v28 = vld [vmem:[%s18464_s4 + $0x188] sm:$0xff]  }
  0xb6   : > { %812 = vmatmul.mubr.bf16.gmra.mrb[52].mxu0 %v13894_v29 }
  0xb7   : > { %11009 = vmatprep.mubr.msk.bf16.mxu0 %vm626_vm0, %v13895_v30  ;;  %v14004_v30 = vld [vmem:[%s18464_s4 + $0x120] sm:$0xff]  }
  0xbe   : > { %820 = vmatmul.mubr.bf16.gmra.mrb[56].mxu0 %v13898_v31  ;;  %v14015_v31 = vld [vmem:[%s18464_s4 + $0x1d0] sm:$0xff]  }
  0xbf   : > { %11010 = vmatprep.mubr.msk.bf16.mxu0 %vm626_vm0, %v13899_v32 }
  0xc6   : > { %828 = vmatmul.mubr.bf16.gmra.mrb[60].mxu0 %v13901_v33 }
  0xc7   : > { %11066 = vmatprep.mubr.msk.bf16.mxu0 %vm626_vm0, %v13905_v34 }
  0xce   : > { %1265 = vmatmul.mubr.bf16.vlgmr.msra.gmra.mrb[64].mxu0 %v13903_v35  ;;  %v14005_v35 = vld [vmem:[%s18464_s4 + $0x168] sm:$0xff]  }
  0xcf   : > { %11549 = vmatpush3.bf16.msra.mxu0 %v13907_v36  ;;  %11067 = vmatprep.mubr.msk.bf16.mxu0 %vm626_vm0, %v13908_v37  ;;  %v14016_v37 = vld [vmem:[%s18464_s4 + $0x190] sm:$0xff]  }
  0xd0   : > { %11550 = vmatprep.subr.bf16.mxu0 %v13914_v38  ;;  %v14006_v38 = vld [vmem:[%s18464_s4 + $0x128] sm:$0xff]  }
  0xd3   : > { %11551 = vmatpush3.bf16.msra.mxu0 %v13915_v39  ;;  %v14017_v39 = vld [vmem:[%s18464_s4 + $0x1d8] sm:$0xff]  }
  0xd4   : > { %11552 = vmatprep.subr.bf16.mxu0 %v13922_v40  ;;  %v14007_v40 = vld [vmem:[%s18464_s4 + $0x170] sm:$0xff]  }
  0xd6   : > { %1273 = vmatmul.mubr.bf16.gmra.mrb[68].mxu0 %v13910_v41 }
  0xd7   : > { %11068 = vmatprep.mubr.msk.bf16.mxu0 %vm626_vm0, %v13916_v42  ;;  %11553 = vmatpush3.bf16.msra.mxu0 %v13923_v43  ;;  %v14018_v43 = vld [vmem:[%s18464_s4 + $0x198] sm:$0xff]  }
  0xd8   : > { %11554 = vmatprep.subr.bf16.mxu0 %v13930_v44 }
  0xdb   : > { %11555 = vmatpush3.bf16.msra.mxu0 %v13933_v45  ;;  %v14008_v45 = vld [vmem:[%s18464_s4 + $0x130] sm:$0xff]  }
  0xdc   : > { %11556 = vmatprep.subr.bf16.mxu0 %v13941_v46  ;;  %v14019_v46 = vld [vmem:[%s18464_s4 + $0x1e0] sm:$0xff]  }
  0xde   : > { %1281 = vmatmul.mubr.bf16.gmra.mrb[72].mxu0 %v13918_v47 }
  0xdf   : > { %11069 = vmatprep.mubr.msk.bf16.mxu0 %vm626_vm0, %v13924_v48  ;;  %11557 = vmatpush3.bf16.msra.mxu0 %v13942_v49 }
  0xe0   : > { %11558 = vmatprep.subr.bf16.mxu0 %v13951_v50  ;;  %v14012_v50 = vld [vmem:[%s18464_s4 + $0x178] sm:$0xff]  }
  0xe3   : > { %11559 = vmatpush3.bf16.msra.mxu0 %v13953_v51 }
  0xe4   : > { %11560 = vmatprep.subr.bf16.mxu0 %v13961_v52  ;;  %v14020_v52 = vld [vmem:[%s18464_s4 + $0x1a0] sm:$0xff]  }
  0xe6   : > { %1289 = vmatmul.mubr.bf16.gmra.mrb[76].mxu0 %v13926_v53  ;;  %v14014_v53 = vld [vmem:[%s18464_s4 + $0x138] sm:$0xff]  }
  0xe7   : > { %11070 = vmatprep.mubr.msk.bf16.mxu0 %vm626_vm0, %v13931_v54  ;;  %11561 = vmatpush3.bf16.msra.mxu0 %v13963_v55  ;;  %v14021_v54 = vld [vmem:[%s18464_s4 + $0x1e8] sm:$0xff]   ;;  %v14023_v55 = vld [vmem:[%s18464_s4 + $0x240] sm:$0xff]  }
  0xe8   : > { %11562 = vmatprep.subr.bf16.mxu0 %v13974_v56 }
  0xeb   : > { %11563 = vmatpush3.bf16.msra.mxu0 %v13977_v57 }
  0xec   : > { %11772 = vmatprep.subr.bf16.mxu0 %v13988_v58  ;;  %v14022_v58 = vld [vmem:[%s18464_s4 + $0x1a8] sm:$0xff]  }
  0xee   : > { %1297 = vmatmul.mubr.bf16.gmra.mrb[80].mxu0 %v13934_v59 }
  0xef   : > { %11071 = vmatprep.mubr.msk.bf16.mxu0 %vm626_vm0, %v13938_v60  ;;  %v14025_v60 = vld [vmem:[%s18464_s4 + $0x1f0] sm:$0xff]  }
  0xf6   : > { %1305 = vmatmul.mubr.bf16.gmra.mrb[84].mxu0 %v13940_v61 }
  0xf7   : > { %11072 = vmatprep.mubr.msk.bf16.mxu0 %vm626_vm0, %v13946_v62 }
  0xfe   : > { %1313 = vmatmul.mubr.bf16.gmra.mrb[88].mxu0 %v13948_v63 }
  0xff   : > { %11073 = vmatprep.mubr.msk.bf16.mxu0 %vm626_vm0, %v13954_v0 }
 0x106   : > { %1321 = vmatmul.mubr.bf16.gmra.mrb[92].mxu0 %v13956_v1  ;;  %v14026_v1 = vld [vmem:[%s18464_s4 + $0x1b0] sm:$0xff]  }
 0x107   : > { %11074 = vmatprep.mubr.msk.bf16.mxu0 %vm626_vm0, %v13964_v2  ;;  %v14027_v2 = vld [vmem:[%s18464_s4 + $0x1f8] sm:$0xff]  }
 0x10e   : > { %1329 = vmatmul.mubr.bf16.gmra.mrb[96].mxu0 %v13967_v4 }
 0x10f   : > { %11075 = vmatprep.mubr.msk.bf16.mxu0 %vm626_vm0, %v13975_v5  ;;  %v14028_v5 = vld [vmem:[%s18464_s4 + $0x1b8] sm:$0xff]  }
 0x116   : > { %1337 = vmatmul.mubr.bf16.gmra.mrb[100].mxu0 %v13979_v6 }
 0x117   : > { %4302 = vmatprep.mubr.bf16.mxu0 %v14832_v7 }
 0x11e   : > { %4303 = vmatmul.mubr.bf16.vlgmr.msra.gmra.mrb[104].mxu0 %v14832_v7 }
 0x11f   : > { %11773 = vmatpush3.bf16.msra.mxu0 %v13989_v8  ;;  %4310 = vmatprep.mubr.bf16.mxu0 %v14832_v7 }
 0x120   : > { %11774 = vmatprep.subr.bf16.mxu0 %v13997_v9 }
 0x121   : > { %v709_v13 = vpop.f32.mrb[0].mxu0 }
 0x122   : > { %v711_v14 = vpop.f32.mrb[1].mxu0  ;;  %v710_v17 = vadd.f32 %v14849_v11, %v709_v13 }
 0x123   : > { %v712_v15 = vpop.f32.mrb[2].mxu0  ;;  %11775 = vmatpush3.bf16.msra.mxu0 %v13998_v10 }
 0x124   : > { %v713_v18 = vadd.f32 %v14849_v11, %v712_v15  ;;  %v714_v19 = vpop.f32.mrb[3].mxu0  ;;  %11776 = vmatprep.subr.bf16.mxu0 %v13999_v12 }
 0x126   : > { %v1432_v21 = vpack.c.bf16 %v713_v18, %v710_v17  ;;  %4311 = vmatmul.mubr.bf16.gmra.mrb[108].mxu0 %v14832_v7 }
 0x127   : > { %11777 = vmatpush3.bf16.msra.mxu0 %v14000_v16 }
 0x128   : > { %4318 = vmatprep.mubr.bf16.mxu0 %v1432_v21  ;;  %4463 = vmatprep.mubr.bf16.mxu1 %v1432_v21 }
 0x129   : > { %v717_v26 = vpop.f32.mrb[4].mxu0  ;;  %4464 = vmatmul.mubr.bf16.vlgmr.msra.gmra.mrb[40].mxu1 %v14832_v7  ;;  %11778 = vmatprep.subr.bf16.mxu0 %v14001_v20 }
 0x12a   : > { %v719_v27 = vpop.f32.mrb[5].mxu0  ;;  %11885 = vmatpush3.bf16.msra.mxu1 %v14010_v22  ;;  %v718_v32 = vadd.f32 %v14849_v11, %v717_v26  ;;  %v1346_v26 = vpop.f32.mrb[0].mxu1 }
 0x12b   : > { %v720_v29 = vpop.f32.mrb[6].mxu0  ;;  %11779 = vmatpush3.bf16.msra.mxu0 %v14002_v23  ;;  %11886 = vmatprep.subr.bf16.mxu1 %v14011_v24  ;;  %v1348_v27 = vpop.f32.mrb[1].mxu1 }
 0x12c   : > { %v721_v33 = vadd.f32 %v14849_v11, %v720_v29  ;;  %v722_v34 = vpop.f32.mrb[7].mxu0  ;;  %11780 = vmatprep.subr.bf16.mxu0 %v14003_v25  ;;  %v1349_v29 = vpop.f32.mrb[2].mxu1 }
 0x12e   : > { %v14890_v36 = vpack.c.bf16 %v721_v33, %v718_v32  ;;  %4319 = vmatmul.mubr.bf16.gmra.mrb[112].mxu0 %v14832_v7  ;;  %11887 = vmatpush3.bf16.msra.mxu1 %v14013_v28 }
 0x12f   : > { %11781 = vmatpush3.bf16.msra.mxu0 %v14004_v30  ;;  %11888 = vmatprep.subr.bf16.mxu1 %v14015_v31  ;;  %v14985_v30 = vld [vmem:[%s18467_s7 + $0x1] ss:$0 sm:$0xff]  ;;  %v1351_v31 = vpop.f32.mrb[3].mxu1 }
 0x130   : > { %4326 = vmatprep.mubr.bf16.mxu0 %v14890_v36  ;;  %4471 = vmatprep.mubr.bf16.mxu1 %v14890_v36  ;;  %v1347_v32 = vadd.f32 %v14985_v30, %v1346_v26  ;;  %v1350_v33 = vadd.f32 %v14985_v30, %v1349_v29  ;;  %v1354_v34 = vpop.f32.mrb[4].mxu1 }
 0x131   : > { %v725_v41 = vpop.f32.mrb[8].mxu0  ;;  %4472 = vmatmul.mubr.bf16.gmra.mrb[44].mxu1 %v1432_v21  ;;  %11782 = vmatprep.subr.bf16.mxu0 %v14005_v35 }
 0x132   : > { %v727_v42 = vpop.f32.mrb[9].mxu0  ;;  %11889 = vmatpush3.bf16.msra.mxu1 %v14016_v37  ;;  %v726_v47 = vadd.f32 %v14849_v11, %v725_v41  ;;  %v1355_v37 = vadd.f32 %v14985_v30, %v1354_v34 }
 0x133   : > { %v728_v44 = vpop.f32.mrb[10].mxu0  ;;  %11783 = vmatpush3.bf16.msra.mxu0 %v14006_v38  ;;  %11890 = vmatprep.subr.bf16.mxu1 %v14017_v39  ;;  %v1356_v38 = vpop.f32.mrb[5].mxu1 }
 0x134   : > { %v729_v48 = vadd.f32 %v14849_v11, %v728_v44  ;;  %v730_v49 = vpop.f32.mrb[11].mxu0  ;;  %11784 = vmatprep.subr.bf16.mxu0 %v14007_v40  ;;  %v14993_v40 = vpack.c.bf16 %v1350_v33, %v1347_v32  ;;  %v1357_v41 = vpop.f32.mrb[6].mxu1 }
 0x135   : > { %v1359_v44 = vpop.f32.mrb[7].mxu1 }
 0x136   : > { %v14921_v51 = vpack.c.bf16 %v729_v48, %v726_v47  ;;  %4327 = vmatmul.mubr.bf16.gmra.mrb[116].mxu0 %v1432_v21  ;;  %11891 = vmatpush3.bf16.msra.mxu1 %v14018_v43  ;;  %v1358_v43 = vadd.f32 %v14985_v30, %v1357_v41  ;;  %1509 = vst [vmem:[#allocation3 + $0x80] sm:$0xff] %v14993_v40  ;;  %v1362_v48 = vpop.f32.mrb[8].mxu1 }
 0x137   : > { %11785 = vmatpush3.bf16.msra.mxu0 %v14008_v45  ;;  %11892 = vmatprep.subr.bf16.mxu1 %v14019_v46 }
 0x138   : > { %4334 = vmatprep.mubr.bf16.mxu0 %v14921_v51  ;;  %4479 = vmatprep.mubr.bf16.mxu1 %v14921_v51  ;;  %v1489_v49 = vpack.c.bf16 %v1358_v43, %v1355_v37 }
 0x139   : > { %v733_v56 = vpop.f32.mrb[12].mxu0  ;;  %4480 = vmatmul.mubr.bf16.gmra.mrb[48].mxu1 %v14890_v36  ;;  %11786 = vmatprep.subr.bf16.mxu0 %v14012_v50  ;;  %v1364_v50 = vpop.f32.mrb[9].mxu1 }
 0x13a   : > { %v735_v57 = vpop.f32.mrb[13].mxu0  ;;  %11893 = vmatpush3.bf16.msra.mxu1 %v14020_v52  ;;  %v734_v61 = vadd.f32 %v14849_v11, %v733_v56  ;;  %1510 = vst [vmem:[#allocation3 + $0x88] sm:$0xff] %v1489_v49 }
 0x13b   : > { %v736_v59 = vpop.f32.mrb[14].mxu0  ;;  %11787 = vmatpush3.bf16.msra.mxu0 %v14014_v53  ;;  %11894 = vmatprep.subr.bf16.mxu1 %v14021_v54  ;;  %v1365_v53 = vpop.f32.mrb[10].mxu1 }
 0x13c   : > { %v737_v62 = vadd.f32 %v14849_v11, %v736_v59  ;;  %v738_v63 = vpop.f32.mrb[15].mxu0  ;;  %11996 = vmatprep.subr.bf16.mxu0 %v14023_v55  ;;  %v1367_v54 = vpop.f32.mrb[11].mxu1  ;;  %v1363_v55 = vadd.f32 %v14985_v30, %v1362_v48  ;;  %v1366_v56 = vadd.f32 %v14985_v30, %v1365_v53 }
 0x13d   : > { %v1370_v57 = vpop.f32.mrb[12].mxu1 }
 0x13e   : > { %v14946_v0 = vpack.c.bf16 %v737_v62, %v734_v61  ;;  %4335 = vmatmul.mubr.bf16.gmra.mrb[120].mxu0 %v14890_v36  ;;  %11895 = vmatpush3.bf16.msra.mxu1 %v14022_v58  ;;  %v1371_v59 = vadd.f32 %v14985_v30, %v1370_v57  ;;  %v15008_v62 = vpack.c.bf16 %v1366_v56, %v1363_v55 }
 0x13f   : > { %11896 = vmatprep.subr.bf16.mxu1 %v14025_v60  ;;  %v1372_v60 = vpop.f32.mrb[13].mxu1 }
 0x140   : > { %4342 = vmatprep.mubr.bf16.mxu0 %v14946_v0  ;;  %4487 = vmatprep.mubr.bf16.mxu1 %v14946_v0  ;;  %v1373_v63 = vpop.f32.mrb[14].mxu1  ;;  %1511 = vst [vmem:[#allocation3 + $0x90] sm:$0xff] %v15008_v62 }
 0x141   : > { %v741_v3 = vpop.f32.mrb[16].mxu0  ;;  %4488 = vmatmul.mubr.bf16.gmra.mrb[52].mxu1 %v14921_v51 }
 0x142   : > { %v743_v4 = vpop.f32.mrb[17].mxu0  ;;  %11897 = vmatpush3.bf16.msra.mxu1 %v14026_v1  ;;  %v742_v8 = vadd.f32 %v14849_v11, %v741_v3  ;;  %v1375_v3 = vpop.f32.mrb[15].mxu1 }
 0x143   : > { %v744_v6 = vpop.f32.mrb[18].mxu0  ;;  %11898 = vmatprep.subr.bf16.mxu1 %v14027_v2  ;;  %v1374_v2 = vadd.f32 %v14985_v30, %v1373_v63 }
 0x144   : > { %v745_v9 = vadd.f32 %v14849_v11, %v744_v6  ;;  %v746_v10 = vpop.f32.mrb[19].mxu0 }
 0x146   : > { %v14963_v12 = vpack.c.bf16 %v745_v9, %v742_v8  ;;  %4343 = vmatmul.mubr.bf16.gmra.mrb[124].mxu0 %v14921_v51  ;;  %11899 = vmatpush3.bf16.msra.mxu1 %v14028_v5  ;;  %v1378_v8 = vpop.f32.mrb[16].mxu1  ;;  %v1491_v9 = vpack.c.bf16 %v1374_v2, %v1371_v59 }
 0x147   : > { %v1380_v10 = vpop.f32.mrb[17].mxu1 }
 0x148   : > { %4350 = vmatprep.mubr.bf16.mxu0 %v14963_v12  ;;  %4495 = vmatprep.mubr.bf16.mxu1 %v14963_v12  ;;  %1512 = vst [vmem:[#allocation3 + $0x98] sm:$0xff] %v1491_v9 }
 0x149   : > { %v749_v13 = vpop.f32.mrb[20].mxu0  ;;  %4496 = vmatmul.mubr.bf16.gmra.mrb[56].mxu1 %v14946_v0 }
 0x14a   : > { %v751_v14 = vpop.f32.mrb[21].mxu0  ;;  %v750_v16 = vadd.f32 %v14849_v11, %v749_v13 }
 0x14b   : > { %v752_v15 = vpop.f32.mrb[22].mxu0  ;;  %v1381_v14 = vpop.f32.mrb[18].mxu1 }
 0x14c   : > { %v753_v17 = vadd.f32 %v14849_v11, %v752_v15  ;;  %v754_v18 = vpop.f32.mrb[23].mxu0  ;;  %v1383_v15 = vpop.f32.mrb[19].mxu1 }
 0x14d   : > { %v1386_v18 = vpop.f32.mrb[20].mxu1 }
 0x14e   : > { %v14971_v19 = vpack.c.bf16 %v753_v17, %v750_v16  ;;  %4351 = vmatmul.mubr.bf16.gmra.mrb[128].mxu0 %v14946_v0  ;;  %v1379_v16 = vadd.f32 %v14985_v30, %v1378_v8  ;;  %v1382_v17 = vadd.f32 %v14985_v30, %v1381_v14 }
 0x150   : > { %4358 = vmatprep.mubr.bf16.mxu0 %v14971_v19  ;;  %4503 = vmatprep.mubr.bf16.mxu1 %v14971_v19 }
 0x151   : > { %v757_v20 = vpop.f32.mrb[24].mxu0  ;;  %4504 = vmatmul.mubr.bf16.gmra.mrb[60].mxu1 %v14963_v12 }
 0x152   : > { %v759_v21 = vpop.f32.mrb[25].mxu0  ;;  %v758_v23 = vadd.f32 %v14849_v11, %v757_v20 }
 0x153   : > { %v760_v22 = vpop.f32.mrb[26].mxu0  ;;  %v1387_v21 = vadd.f32 %v14985_v30, %v1386_v18 }
 0x154   : > { %v761_v24 = vadd.f32 %v14849_v11, %v760_v22  ;;  %v762_v25 = vpop.f32.mrb[27].mxu0  ;;  %v1388_v22 = vpop.f32.mrb[21].mxu1 }
 0x155   : > { %v1389_v25 = vpop.f32.mrb[22].mxu1 }
 0x156   : > { %v14979_v28 = vpack.c.bf16 %v761_v24, %v758_v23  ;;  %4359 = vmatmul.mubr.bf16.gmra.mrb[132].mxu0 %v14963_v12  ;;  %v15023_v24 = vpack.c.bf16 %v1382_v17, %v1379_v16  ;;  %v1390_v27 = vadd.f32 %v14985_v30, %v1389_v25  ;;  %v1391_v29 = vpop.f32.mrb[23].mxu1 }
 0x157   : > { %v1394_v34 = vpop.f32.mrb[24].mxu1 }
 0x158   : > { %4366 = vmatprep.mubr.bf16.mxu0 %v14979_v28  ;;  %4511 = vmatprep.mubr.bf16.mxu1 %v14979_v28  ;;  %1513 = vst [vmem:[#allocation3 + $0xa0] sm:$0xff] %v15023_v24  ;;  %v1396_v37 = vpop.f32.mrb[25].mxu1 }
 0x159   : > { %v765_v35 = vpop.f32.mrb[28].mxu0  ;;  %4512 = vmatmul.mubr.bf16.gmra.mrb[64].mxu1 %v14971_v19 }
 0x15a   : > { %v767_v39 = vpop.f32.mrb[29].mxu0  ;;  %v766_v45 = vadd.f32 %v14849_v11, %v765_v35  ;;  %v1493_v35 = vpack.c.bf16 %v1390_v27, %v1387_v21 }
 0x15b   : > { %v768_v42 = vpop.f32.mrb[30].mxu0  ;;  %v1397_v39 = vpop.f32.mrb[26].mxu1 }
 0x15c   : > { %v769_v46 = vadd.f32 %v14849_v11, %v768_v42  ;;  %v770_v47 = vpop.f32.mrb[31].mxu0  ;;  %1514 = vst [vmem:[#allocation3 + $0xa8] sm:$0xff] %v1493_v35  ;;  %v1399_v41 = vpop.f32.mrb[27].mxu1  ;;  %v1395_v42 = vadd.f32 %v14985_v30, %v1394_v34  ;;  %v1398_v43 = vadd.f32 %v14985_v30, %v1397_v39 }
 0x15d   : > { %v1402_v44 = vpop.f32.mrb[28].mxu1 }
 0x15e   : > { %v14999_v52 = vpack.c.bf16 %v769_v46, %v766_v45  ;;  %4367 = vmatmul.mubr.bf16.gmra.mrb[136].mxu0 %v14971_v19  ;;  %v1403_v46 = vadd.f32 %v14985_v30, %v1402_v44  ;;  %v1404_v47 = vpop.f32.mrb[29].mxu1  ;;  %v15038_v49 = vpack.c.bf16 %v1398_v43, %v1395_v42 }
 0x15f   : > { %v1405_v50 = vpop.f32.mrb[30].mxu1 }
 0x160   : > { %4374 = vmatprep.mubr.bf16.mxu0 %v14999_v52  ;;  %4519 = vmatprep.mubr.bf16.mxu1 %v14999_v52  ;;  %v1406_v54 = vadd.f32 %v14985_v30, %v1405_v50  ;;  %v1407_v55 = vpop.f32.mrb[31].mxu1  ;;  %1515 = vst [vmem:[#allocation3 + $0xb0] sm:$0xff] %v15038_v49 }
 0x161   : > { %v773_v58 = vpop.f32.mrb[32].mxu0  ;;  %4520 = vmatmul.mubr.bf16.gmra.mrb[68].mxu1 %v14979_v28 }
 0x162   : > { %v775_v61 = vpop.f32.mrb[33].mxu0  ;;  %v774_v4 = vadd.f32 %v14849_v11, %v773_v58  ;;  %v1495_v60 = vpack.c.bf16 %v1406_v54, %v1403_v46 }
 0x163   : > { %v776_v1 = vpop.f32.mrb[34].mxu0 }
 0x164   : > { %v777_v5 = vadd.f32 %v14849_v11, %v776_v1  ;;  %v778_v6 = vpop.f32.mrb[35].mxu0  ;;  %v1410_v59 = vpop.f32.mrb[32].mxu1  ;;  %1516 = vst [vmem:[#allocation3 + $0xb8] sm:$0xff] %v1495_v60 }
 0x165   : > { %v1411_v61 = vadd.f32 %v14985_v30, %v1410_v59  ;;  %v1412_v63 = vpop.f32.mrb[33].mxu1  ;;  %v14024_v59 = vld [vmem:[%s18464_s4 + $0x200] sm:$0xff]  }
 0x166   : > { %v15014_v13 = vpack.c.bf16 %v777_v5, %v774_v4  ;;  %4375 = vmatmul.mubr.bf16.gmra.mrb[140].mxu0 %v14979_v28  ;;  %v1413_v2 = vpop.f32.mrb[34].mxu1 }
 0x167   : > { %v1414_v3 = vadd.f32 %v14985_v30, %v1413_v2  ;;  %v1415_v4 = vpop.f32.mrb[35].mxu1  ;;  %v14029_v2 = vld [vmem:[%s18464_s4 + $0x248] sm:$0xff]  }
 0x168   : > { %4382 = vmatprep.mubr.bf16.mxu0 %v15014_v13  ;;  %4527 = vmatprep.mubr.bf16.mxu1 %v15014_v13  ;;  %v14030_v4 = vld [vmem:[%s18464_s4 + $0x208] sm:$0xff]  }
 0x169   : > { %v781_v20 = vpop.f32.mrb[36].mxu0  ;;  %4528 = vmatmul.mubr.bf16.gmra.mrb[72].mxu1 %v14999_v52  ;;  %v15052_v6 = vpack.c.bf16 %v1414_v3, %v1411_v61 }
 0x16a   : > { %v783_v23 = vpop.f32.mrb[37].mxu0  ;;  %v782_v31 = vadd.f32 %v14849_v11, %v781_v20 }
 0x16b   : > { %v784_v26 = vpop.f32.mrb[38].mxu0  ;;  %1517 = vst [vmem:[#allocation3 + $0xc0] sm:$0xff] %v15052_v6 }
 0x16c   : > { %v785_v32 = vadd.f32 %v14849_v11, %v784_v26  ;;  %v786_v33 = vpop.f32.mrb[39].mxu0  ;;  %v1418_v10 = vpop.f32.mrb[36].mxu1 }
 0x16d   : > { %v1419_v17 = vadd.f32 %v14985_v30, %v1418_v10  ;;  %v1420_v18 = vpop.f32.mrb[37].mxu1 }
 0x16e   : > { %v15029_v38 = vpack.c.bf16 %v785_v32, %v782_v31  ;;  %4383 = vmatmul.mubr.bf16.gmra.mrb[144].mxu0 %v14999_v52  ;;  %v1421_v20 = vpop.f32.mrb[38].mxu1  ;;  %v14044_v18 = vld [vmem:[%s18464_s4 + $0x280] sm:$0xff]  }
 0x16f   : > { %v1422_v22 = vadd.f32 %v14985_v30, %v1421_v20  ;;  %v1423_v23 = vpop.f32.mrb[39].mxu1  ;;  %v14034_v20 = vld [vmem:[%s18464_s4 + $0x218] sm:$0xff]  }
 0x170   : > { %4390 = vmatprep.mubr.bf16.mxu0 %v15029_v38  ;;  %4535 = vmatprep.mubr.bf16.mxu1 %v15029_v38 }
 0x171   : > { %v789_v45 = vpop.f32.mrb[40].mxu0  ;;  %4536 = vmatmul.mubr.bf16.gmra.mrb[76].mxu1 %v15014_v13  ;;  %v1497_v25 = vpack.c.bf16 %v1422_v22, %v1419_v17  ;;  %v14045_v22 = vld [vmem:[%s18464_s4 + $0x2c8] sm:$0xff]  }
 0x172   : > { %v791_v48 = vpop.f32.mrb[41].mxu0  ;;  %v790_v56 = vadd.f32 %v14849_v11, %v789_v45  ;;  %v14043_v45 = vld [vmem:[%s18464_s4 + $0x2c0] sm:$0xff]  }
 0x173   : > { %v792_v53 = vpop.f32.mrb[42].mxu0  ;;  %1518 = vst [vmem:[#allocation3 + $0xc8] sm:$0xff] %v1497_v25  ;;  %12108 = vmatprep.subr.bf16.mxu1 %v14043_v45 }
 0x174   : > { %v793_v57 = vadd.f32 %v14849_v11, %v792_v53  ;;  %v794_v58 = vpop.f32.mrb[43].mxu0 }
 0x176   : > { %v15045_v1 = vpack.c.bf16 %v793_v57, %v790_v56  ;;  %4391 = vmatmul.mubr.bf16.gmra.mrb[148].mxu0 %v15014_v13 }
 0x178   : > { %4398 = vmatprep.mubr.bf16.mxu0 %v15045_v1  ;;  %4543 = vmatprep.mubr.bf16.mxu1 %v15045_v1 }
 0x179   : > { %v797_v5 = vpop.f32.mrb[44].mxu0  ;;  %4544 = vmatmul.mubr.bf16.gmra.mrb[80].mxu1 %v15029_v38 }
 0x17a   : > { %v799_v8 = vpop.f32.mrb[45].mxu0  ;;  %v798_v14 = vadd.f32 %v14849_v11, %v797_v5 }
 0x17b   : > { %v800_v9 = vpop.f32.mrb[46].mxu0 }
 0x17c   : > { %v801_v15 = vadd.f32 %v14849_v11, %v800_v9  ;;  %v802_v16 = vpop.f32.mrb[47].mxu0  ;;  %v14032_v9 = vld [vmem:[%s18464_s4 + $0x210] sm:$0xff]  }
 0x17d   : > { %v14033_v16 = vld [vmem:[%s18464_s4 + $0x258] sm:$0xff]  }
 0x17e   : > { %v15058_v21 = vpack.c.bf16 %v801_v15, %v798_v14  ;;  %4399 = vmatmul.mubr.bf16.gmra.mrb[152].mxu0 %v15029_v38 }
 0x180   : > { %4406 = vmatprep.mubr.bf16.mxu0 %v15058_v21  ;;  %4551 = vmatprep.mubr.bf16.mxu1 %v15058_v21 }
 0x181   : > { %v805_v26 = vpop.f32.mrb[48].mxu0  ;;  %4552 = vmatmul.mubr.bf16.gmra.mrb[84].mxu1 %v15045_v1 }
 0x182   : > { %v807_v27 = vpop.f32.mrb[49].mxu0  ;;  %v806_v31 = vadd.f32 %v14849_v11, %v805_v26  ;;  %v14046_v26 = vld [vmem:[%s18464_s4 + $0x288] sm:$0xff]  }
 0x183   : > { %v808_v29 = vpop.f32.mrb[50].mxu0 }
 0x184   : > { %v809_v32 = vadd.f32 %v14849_v11, %v808_v29  ;;  %v810_v33 = vpop.f32.mrb[51].mxu0  ;;  %v14036_v29 = vld [vmem:[%s18464_s4 + $0x220] sm:$0xff]  }
 0x186   : > { %v15067_v34 = vpack.c.bf16 %v809_v32, %v806_v31  ;;  %4407 = vmatmul.mubr.bf16.gmra.mrb[156].mxu0 %v15045_v1 }
 0x188   : > { %4414 = vmatprep.mubr.bf16.mxu0 %v15067_v34  ;;  %4559 = vmatprep.mubr.bf16.mxu1 %v15067_v34 }
 0x189   : > { %v813_v35 = vpop.f32.mrb[52].mxu0  ;;  %4560 = vmatmul.mubr.bf16.gmra.mrb[88].mxu1 %v15058_v21 }
 0x18a   : > { %v815_v37 = vpop.f32.mrb[53].mxu0  ;;  %v814_v41 = vadd.f32 %v14849_v11, %v813_v35  ;;  %v14037_v35 = vld [vmem:[%s18464_s4 + $0x268] sm:$0xff]  }
 0x18b   : > { %v816_v39 = vpop.f32.mrb[54].mxu0  ;;  %v14049_v37 = vld [vmem:[%s18464_s4 + $0x2d0] sm:$0xff]  }
 0x18c   : > { %v817_v42 = vadd.f32 %v14849_v11, %v816_v39  ;;  %v818_v43 = vpop.f32.mrb[55].mxu0 }
 0x18d   : > { %v14051_v43 = vld [vmem:[%s18464_s4 + $0x2d8] sm:$0xff]  }
 0x18e   : > { %v15075_v44 = vpack.c.bf16 %v817_v42, %v814_v41  ;;  %4415 = vmatmul.mubr.bf16.gmra.mrb[160].mxu0 %v15058_v21  ;;  %v14050_v41 = vld [vmem:[%s18464_s4 + $0x290] sm:$0xff]   ;;  %v14038_v42 = vld [vmem:[%s18464_s4 + $0x228] sm:$0xff]  }
 0x190   : > { %4422 = vmatprep.mubr.bf16.mxu0 %v15075_v44  ;;  %4567 = vmatprep.mubr.bf16.mxu1 %v15075_v44 }
 0x191   : > { %v821_v46 = vpop.f32.mrb[56].mxu0  ;;  %4568 = vmatmul.mubr.bf16.gmra.mrb[92].mxu1 %v15067_v34 }
 0x192   : > { %v823_v47 = vpop.f32.mrb[57].mxu0  ;;  %v822_v50 = vadd.f32 %v14849_v11, %v821_v46 }
 0x193   : > { %v824_v48 = vpop.f32.mrb[58].mxu0  ;;  %v14052_v47 = vld [vmem:[%s18464_s4 + $0x298] sm:$0xff]  }
 0x194   : > { %v825_v53 = vadd.f32 %v14849_v11, %v824_v48  ;;  %v826_v54 = vpop.f32.mrb[59].mxu0 }
 0x196   : > { %v15086_v55 = vpack.c.bf16 %v825_v53, %v822_v50  ;;  %4423 = vmatmul.mubr.bf16.gmra.mrb[164].mxu0 %v15067_v34  ;;  %v14040_v50 = vld [vmem:[%s18464_s4 + $0x230] sm:$0xff]  }
 0x197   : > { %4624 = vmatprep.mubr.bf16.mxu0 %v14921_v51 }
 0x198   : > { %4575 = vmatprep.mubr.bf16.mxu1 %v15086_v55 }
 0x199   : > { %v829_v56 = vpop.f32.mrb[60].mxu0  ;;  %4576 = vmatmul.mubr.bf16.gmra.mrb[96].mxu1 %v15075_v44 }
 0x19a   : > { %v831_v57 = vpop.f32.mrb[61].mxu0  ;;  %v830_v60 = vadd.f32 %v14849_v11, %v829_v56 }
 0x19b   : > { %v832_v58 = vpop.f32.mrb[62].mxu0  ;;  %v14053_v57 = vld [vmem:[%s18464_s4 + $0x2e0] sm:$0xff]  }
 0x19c   : > { %v833_v61 = vadd.f32 %v14849_v11, %v832_v58  ;;  %v834_v63 = vpop.f32.mrb[63].mxu0  ;;  %v14031_v11 = vld [vmem:[%s18464_s4 + $0x250] sm:$0xff]  }
 0x19e   : > { %v15100_v3 = vpack.c.bf16 %v833_v61, %v830_v60  ;;  %4625 = vmatmul.mubr.bf16.vlgmr.msra.gmra.mrb[168].mxu0 %v14890_v36  ;;  %v14042_v60 = vld [vmem:[%s18464_s4 + $0x238] sm:$0xff]   ;;  %v14055_v61 = vld [vmem:[%s18464_s4 + $0x2e8] sm:$0xff]  }
 0x19f   : > { %4632 = vmatprep.mubr.bf16.mxu0 %v14946_v0  ;;  %11997 = vmatpush3.bf16.msra.mxu0 %v14024_v59  ;;  %v14054_v59 = vld [vmem:[%s18464_s4 + $0x2a0] sm:$0xff]  }
 0x1a0   : > { %4583 = vmatprep.mubr.bf16.mxu1 %v15100_v3  ;;  %11998 = vmatprep.subr.bf16.mxu0 %v14029_v2 }
 0x1a1   : > { %v1266_v5 = vpop.f32.mrb[64].mxu0  ;;  %4584 = vmatmul.mubr.bf16.gmra.mrb[100].mxu1 %v15086_v55 }
 0x1a2   : > { %v1268_v8 = vpop.f32.mrb[65].mxu0  ;;  %4785 = vmatprep.mubr.bf16.mxu1 %v14832_v7  ;;  %v1267_v10 = vadd.f32 %v14985_v30, %v1266_v5  ;;  %v14059_v5 = vld [vmem:[%s18464_s4 + $0x2f0] sm:$0xff]  }
 0x1a3   : > { %v1269_v36 = vpop.f32.mrb[66].mxu0  ;;  %11999 = vmatpush3.bf16.msra.mxu0 %v14030_v4  ;;  %v14056_v4 = vld [vmem:[%s18464_s4 + $0x2a8] sm:$0xff]  }
 0x1a4   : > { %v1270_v14 = vadd.f32 %v14985_v30, %v1269_v36  ;;  %v1271_v15 = vpop.f32.mrb[67].mxu0  ;;  %12000 = vmatprep.subr.bf16.mxu0 %v14031_v11 }
 0x1a5   : > { %v14061_v15 = vld [vmem:[%s18464_s4 + $0x2f8] sm:$0xff]  }
 0x1a6   : > { %v15121_v17 = vpack.c.bf16 %v1270_v14, %v1267_v10  ;;  %4633 = vmatmul.mubr.bf16.gmra.mrb[172].mxu0 %v14921_v51  ;;  %v14035_v51 = vld [vmem:[%s18464_s4 + $0x260] sm:$0xff]   ;;  %v14060_v14 = vld [vmem:[%s18464_s4 + $0x2b0] sm:$0xff]  }
 0x1a7   : > { %4640 = vmatprep.mubr.bf16.mxu0 %v14963_v12  ;;  %12001 = vmatpush3.bf16.msra.mxu0 %v14032_v9 }
 0x1a8   : > { %1499 = vst [vmem:[#allocation3 + $0x30] sm:$0xff] %v15121_v17  ;;  %12002 = vmatprep.subr.bf16.mxu0 %v14033_v16 }
 0x1a9   : > { %v1274_v23 = vpop.f32.mrb[68].mxu0  ;;  %4786 = vmatmul.mubr.bf16.vlgmr.msra.gmra.mrb[104].mxu1 %v14946_v0 }
 0x1aa   : > { %v1276_v25 = vpop.f32.mrb[69].mxu0  ;;  %4793 = vmatprep.mubr.bf16.mxu1 %v14832_v7  ;;  %12109 = vmatpush3.bf16.msra.mxu1 %v14044_v18  ;;  %v1275_v31 = vadd.f32 %v14985_v30, %v1274_v23 }
 0x1ab   : > { %v1277_v27 = vpop.f32.mrb[70].mxu0  ;;  %12003 = vmatpush3.bf16.msra.mxu0 %v14034_v20  ;;  %12110 = vmatprep.subr.bf16.mxu1 %v14045_v22 }
 0x1ac   : > { %v1278_v32 = vadd.f32 %v14985_v30, %v1277_v27  ;;  %v1279_v33 = vpop.f32.mrb[71].mxu0  ;;  %12004 = vmatprep.subr.bf16.mxu0 %v14035_v51 }
 0x1ae   : > { %v1479_v39 = vpack.c.bf16 %v1278_v32, %v1275_v31  ;;  %4641 = vmatmul.mubr.bf16.gmra.mrb[176].mxu0 %v14946_v0  ;;  %12111 = vmatpush3.bf16.msra.mxu1 %v14046_v26  ;;  %v14039_v0 = vld [vmem:[%s18464_s4 + $0x270] sm:$0xff]  }
 0x1af   : > { %4648 = vmatprep.mubr.bf16.mxu0 %v14971_v19  ;;  %12005 = vmatpush3.bf16.msra.mxu0 %v14036_v29 }
 0x1b0   : > { %1500 = vst [vmem:[#allocation3 + $0x38] sm:$0xff] %v1479_v39  ;;  %12006 = vmatprep.subr.bf16.mxu0 %v14037_v35  ;;  %12112 = vmatprep.subr.bf16.mxu1 %v14049_v37 }
 0x1b1   : > { %v1282_v45 = vpop.f32.mrb[72].mxu0  ;;  %4794 = vmatmul.mubr.bf16.gmra.mrb[108].mxu1 %v14963_v12 }
 0x1b2   : > { %v1284_v46 = vpop.f32.mrb[73].mxu0  ;;  %4801 = vmatprep.mubr.bf16.mxu1 %v14832_v7  ;;  %12113 = vmatpush3.bf16.msra.mxu1 %v14050_v41  ;;  %v1283_v53 = vadd.f32 %v14985_v30, %v1282_v45  ;;  %v14041_v7 = vld [vmem:[%s18464_s4 + $0x278] sm:$0xff]  }
 0x1b3   : > { %v1285_v48 = vpop.f32.mrb[74].mxu0  ;;  %12007 = vmatpush3.bf16.msra.mxu0 %v14038_v42  ;;  %12114 = vmatprep.subr.bf16.mxu1 %v14051_v43 }
 0x1b4   : > { %v1286_v54 = vadd.f32 %v14985_v30, %v1285_v48  ;;  %v1287_v56 = vpop.f32.mrb[75].mxu0  ;;  %12008 = vmatprep.subr.bf16.mxu0 %v14039_v0 }
 0x1b6   : > { %v1480_v58 = vpack.c.bf16 %v1286_v54, %v1283_v53  ;;  %4649 = vmatmul.mubr.bf16.gmra.mrb[180].mxu0 %v14963_v12  ;;  %12115 = vmatpush3.bf16.msra.mxu1 %v14052_v47  ;;  %v14047_v12 = vld [vmem:[%s18464_s4 + $0x340] sm:$0xff]  }
 0x1b7   : > { %4656 = vmatprep.mubr.bf16.mxu0 %v14979_v28  ;;  %12009 = vmatpush3.bf16.msra.mxu0 %v14040_v50 }
 0x1b8   : > { %1501 = vst [vmem:[#allocation3 + $0x40] sm:$0xff] %v1480_v58  ;;  %12010 = vmatprep.subr.bf16.mxu0 %v14041_v7  ;;  %12116 = vmatprep.subr.bf16.mxu1 %v14053_v57 }
 0x1b9   : > { %v1290_v63 = vpop.f32.mrb[76].mxu0  ;;  %4802 = vmatmul.mubr.bf16.gmra.mrb[112].mxu1 %v14971_v19 }
 0x1ba   : > { %v1292_v2 = vpop.f32.mrb[77].mxu0  ;;  %4809 = vmatprep.mubr.bf16.mxu1 %v15121_v17  ;;  %12117 = vmatpush3.bf16.msra.mxu1 %v14054_v59  ;;  %v1291_v8 = vadd.f32 %v14985_v30, %v1290_v63 }
 0x1bb   : > { %v1293_v11 = vpop.f32.mrb[78].mxu0  ;;  %12011 = vmatpush3.bf16.msra.mxu0 %v14042_v60  ;;  %12118 = vmatprep.subr.bf16.mxu1 %v14055_v61 }
 0x1bc   : > { %v1294_v36 = vadd.f32 %v14985_v30, %v1293_v11  ;;  %v1295_v9 = vpop.f32.mrb[79].mxu0  ;;  %12220 = vmatprep.subr.bf16.mxu0 %v14047_v12 }
 0x1be   : > { %v1481_v10 = vpack.c.bf16 %v1294_v36, %v1291_v8  ;;  %4657 = vmatmul.mubr.bf16.gmra.mrb[184].mxu0 %v14971_v19  ;;  %12119 = vmatpush3.bf16.msra.mxu1 %v14056_v4  ;;  %v14062_v19 = vld [vmem:[%s18464_s4 + $0x2b8] sm:$0xff]  }
 0x1bf   : > { %4664 = vmatprep.mubr.bf16.mxu0 %v14999_v52  ;;  %12120 = vmatprep.subr.bf16.mxu1 %v14059_v5 }
 0x1c0   : > { %1502 = vst [vmem:[#allocation3 + $0x48] sm:$0xff] %v1481_v10 }
 0x1c1   : > { %v1298_v16 = vpop.f32.mrb[80].mxu0  ;;  %4810 = vmatmul.mubr.bf16.gmra.mrb[116].mxu1 %v14979_v28 }
 0x1c2   : > { %v1300_v17 = vpop.f32.mrb[81].mxu0  ;;  %4817 = vmatprep.mubr.bf16.mxu1 %v1480_v58  ;;  %12121 = vmatpush3.bf16.msra.mxu1 %v14060_v14  ;;  %v1299_v20 = vadd.f32 %v14985_v30, %v1298_v16 }
 0x1c3   : > { %v1301_v18 = vpop.f32.mrb[82].mxu0  ;;  %12122 = vmatprep.subr.bf16.mxu1 %v14061_v15 }
 0x1c4   : > { %v1302_v22 = vadd.f32 %v14985_v30, %v1301_v18  ;;  %v1303_v51 = vpop.f32.mrb[83].mxu0 }
 0x1c6   : > { %v1482_v23 = vpack.c.bf16 %v1302_v22, %v1299_v20  ;;  %4665 = vmatmul.mubr.bf16.gmra.mrb[188].mxu0 %v14979_v28  ;;  %12123 = vmatpush3.bf16.msra.mxu1 %v14062_v19 }
 0x1c7   : > { %4672 = vmatprep.mubr.bf16.mxu0 %v15014_v13 }
 0x1c8   : > { %1503 = vst [vmem:[#allocation3 + $0x50] sm:$0xff] %v1482_v23 }
 0x1c9   : > { %v1306_v25 = vpop.f32.mrb[84].mxu0  ;;  %4818 = vmatmul.mubr.bf16.gmra.mrb[120].mxu1 %v14999_v52 }
 0x1ca   : > { %v1308_v26 = vpop.f32.mrb[85].mxu0  ;;  %4825 = vmatprep.mubr.bf16.mxu1 %v1482_v23  ;;  %v1307_v29 = vadd.f32 %v14985_v30, %v1306_v25 }
 0x1cb   : > { %v1309_v27 = vpop.f32.mrb[86].mxu0 }
 0x1cc   : > { %v1310_v31 = vadd.f32 %v14985_v30, %v1309_v27  ;;  %v1311_v32 = vpop.f32.mrb[87].mxu0 }
 0x1ce   : > { %v1483_v33 = vpack.c.bf16 %v1310_v31, %v1307_v29  ;;  %4673 = vmatmul.mubr.bf16.gmra.mrb[192].mxu0 %v14999_v52 }
 0x1cf   : > { %4680 = vmatprep.mubr.bf16.mxu0 %v15029_v38 }
 0x1d0   : > { %1504 = vst [vmem:[#allocation3 + $0x58] sm:$0xff] %v1483_v33 }
 0x1d1   : > { %v1314_v28 = vpop.f32.mrb[88].mxu0  ;;  %4826 = vmatmul.mubr.bf16.gmra.mrb[124].mxu1 %v15014_v13 }
 0x1d2   : > { %v1316_v35 = vpop.f32.mrb[89].mxu0  ;;  %v1315_v39 = vadd.f32 %v14985_v30, %v1314_v28 }
 0x1d3   : > { %v1317_v37 = vpop.f32.mrb[90].mxu0 }
 0x1d4   : > { %v1318_v41 = vadd.f32 %v14985_v30, %v1317_v37  ;;  %v1319_v42 = vpop.f32.mrb[91].mxu0 }
 0x1d6   : > { %v1484_v43 = vpack.c.bf16 %v1318_v41, %v1315_v39  ;;  %4681 = vmatmul.mubr.bf16.gmra.mrb[196].mxu0 %v15014_v13  ;;  %v15272_v41 = vld [vmem:[#allocation3] sm:$0xff] }
 0x1d7   : > { %4688 = vmatprep.mubr.bf16.mxu0 %v15045_v1 }
 0x1d8   : > { %1505 = vst [vmem:[#allocation3 + $0x60] sm:$0xff] %v1484_v43  ;;  %4833 = vmatprep.mubr.bf16.mxu1 %v1484_v43 }
 0x1d9   : > { %v1322_v52 = vpop.f32.mrb[92].mxu0  ;;  %4834 = vmatmul.mubr.bf16.gmra.mrb[128].mxu1 %v15029_v38 }
 0x1da   : > { %v1324_v0 = vpop.f32.mrb[93].mxu0  ;;  %v1323_v46 = vadd.f32 %v14985_v30, %v1322_v52 }
 0x1db   : > { %v1325_v45 = vpop.f32.mrb[94].mxu0 }
 0x1dc   : > { %v1326_v47 = vadd.f32 %v14985_v30, %v1325_v45  ;;  %v1327_v48 = vpop.f32.mrb[95].mxu0 }
 0x1de   : > { %v1485_v50 = vpack.c.bf16 %v1326_v47, %v1323_v46  ;;  %4689 = vmatmul.mubr.bf16.gmra.mrb[200].mxu0 %v15029_v38 }
 0x1df   : > { %4696 = vmatprep.mubr.bf16.mxu0 %v15058_v21 }
 0x1e0   : > { %1506 = vst [vmem:[#allocation3 + $0x68] sm:$0xff] %v1485_v50  ;;  %v1906_v50 = vld [vmem:[#allocation3] sm:$0xfe] }
 0x1e1   : > { %v1330_v13 = vpop.f32.mrb[96].mxu0 }
 0x1e2   : > { %v1332_v53 = vpop.f32.mrb[97].mxu0  ;;  %v1331_v56 = vadd.f32 %v14985_v30, %v1330_v13 }
 0x1e3   : > { %v1333_v54 = vpop.f32.mrb[98].mxu0 }
 0x1e4   : > { %v1334_v7 = vadd.f32 %v14985_v30, %v1333_v54  ;;  %v1335_v57 = vpop.f32.mrb[99].mxu0  ;;  %v1907_v54 = vld [vmem:[#allocation3 + $0x8] sm:$0x1] }
 0x1e6   : > { %v1486_v58 = vpack.c.bf16 %v1334_v7, %v1331_v56  ;;  %4697 = vmatmul.mubr.bf16.gmra.mrb[204].mxu0 %v15045_v1 }
 0x1e7   : > { %4704 = vmatprep.mubr.bf16.mxu0 %v15067_v34 }
 0x1e8   : > { %1507 = vst [vmem:[#allocation3 + $0x70] sm:$0xff] %v1486_v58  ;;  %4841 = vmatprep.mubr.bf16.mxu1 %v1486_v58  ;;  %v1971_v58 = vrot.slane %v1906_v50, 1 }
 0x1e9   : > { %v1338_v59 = vpop.f32.mrb[100].mxu0  ;;  %4842 = vmatmul.mubr.bf16.gmra.mrb[132].mxu1 %v15045_v1 }
 0x1ea   : > { %v1340_v38 = vpop.f32.mrb[101].mxu0  ;;  %4849 = vmatprep.mubr.bf16.mxu1 %v14993_v40  ;;  %v1339_v61 = vadd.f32 %v14985_v30, %v1338_v59 }
 0x1eb   : > { %v1341_v60 = vpop.f32.mrb[102].mxu0 }
 0x1ec   : > { %v1342_v12 = vadd.f32 %v14985_v30, %v1341_v60  ;;  %v1343_v63 = vpop.f32.mrb[103].mxu0 }
 0x1ee   : > { %v1487_v2 = vpack.c.bf16 %v1342_v12, %v1339_v61  ;;  %4705 = vmatmul.mubr.bf16.gmra.mrb[208].mxu0 %v15058_v21  ;;  %v1972_v61 = vrot.slane %v1907_v54, 1  ;;  %v1617_v12 = vld [vmem:[#allocation3 + $0x8] sm:$0x1] }
 0x1ef   : > { %4712 = vmatprep.mubr.bf16.mxu0 %v15075_v44 }
 0x1f0   : > { %1508 = vst [vmem:[#allocation3 + $0x78] sm:$0xff] %v1487_v2 }
 0x1f1   : > { %v11564_v4 = vpop.f32.mrb[104].mxu0  ;;  %4850 = vmatmul.mubr.bf16.gmra.mrb[136].mxu1 %v15058_v21 }
 0x1f2   : > { %v11565_v11 = vpop.f32.mrb[105].mxu0  ;;  %4857 = vmatprep.mubr.bf16.mxu1 %v15008_v62  ;;  %v15258_v62 = vld [vmem:[%s18467_s7 + $0x2] ss:$0 sm:$0xff] }
 0x1f3   : > { %v11566_v1 = vadd.f32 %v11565_v11, %v11564_v4  ;;  %v11567_v40 = vpop.f32.mrb[106].mxu0 }
 0x1f4   : > { %v11568_v5 = vpop.f32.mrb[107].mxu0 }
 0x1f5   : > { %v11569_v8 = vadd.f32 %v11568_v5, %v11567_v40  ;;  %v4305_v17 = vadd.f32 %v11566_v1, %v15258_v62  ;;  %v1650_v40 = vshrl.u32 %v15272_v41, 16 }
 0x1f6   : > { %4713 = vmatmul.mubr.bf16.gmra.mrb[212].mxu0 %v15067_v34 }
 0x1f7   : > { %4720 = vmatprep.mubr.bf16.mxu0 %v15086_v55  ;;  %v4308_v20 = vadd.f32 %v11569_v8, %v15258_v62  ;;  %v1657_v8 = vshll.u32 %v1617_v12, 16 }
 0x1f9   : > { %v11570_v30 = vpop.f32.mrb[108].mxu0  ;;  %4858 = vmatmul.mubr.bf16.gmra.mrb[140].mxu1 %v15067_v34 }
 0x1fa   : > { %v11571_v36 = vpop.f32.mrb[109].mxu0  ;;  %4865 = vmatprep.mubr.bf16.mxu1 %v15023_v24 }
 0x1fb   : > { %v11572_v9 = vadd.f32 %v11571_v36, %v11570_v30  ;;  %v11573_v10 = vpop.f32.mrb[110].mxu0 }
 0x1fc   : > { %v11574_v21 = vpop.f32.mrb[111].mxu0  ;;  %v11676_v14 = vpop.f32.mrb[40].mxu1 }
 0x1fd   : > { %v11575_v15 = vadd.f32 %v11574_v21, %v11573_v10  ;;  %v11677_v16 = vpop.f32.mrb[41].mxu1  ;;  %v4313_v28 = vadd.f32 %v11572_v9, %v15258_v62  ;;  %v1973_v9 = vsel %vm1970_vm1, %v1971_v58, %v1972_v61  ;;  %v1908_v10 = vld [vmem:[#allocation3 + $0x10] sm:$0xfe]  ;;  %v1619_v21 = vld [vmem:[#allocation3 + $0x18] sm:$0x1] }
 0x1fe   : > { %v11678_v19 = vadd.f32 %v11677_v16, %v11676_v14  ;;  %v11679_v18 = vpop.f32.mrb[42].mxu1  ;;  %4721 = vmatmul.mubr.bf16.gmra.mrb[216].mxu0 %v15075_v44 }
 0x1ff   : > { %v11680_v34 = vpop.f32.mrb[43].mxu1  ;;  %4728 = vmatprep.mubr.bf16.mxu0 %v15100_v3 }
 0x200   : > { %v15263_v24 = vadd.f32 %v11678_v19, %v4305_v17  ;;  %v11681_v22 = vadd.f32 %v11680_v34, %v11679_v18 }
 0x201   : > { %v11576_v51 = vpop.f32.mrb[112].mxu0  ;;  %4866 = vmatmul.mubr.bf16.gmra.mrb[144].mxu1 %v15075_v44 }
 0x202   : > { %v15267_v23 = vadd.f32 %v11681_v22, %v4308_v20  ;;  %v11577_v25 = vpop.f32.mrb[113].mxu0  ;;  %4873 = vmatprep.mubr.bf16.mxu1 %v15038_v49  ;;  %v4316_v49 = vadd.f32 %v11575_v15, %v15258_v62  ;;  %v1909_v15 = vld [vmem:[#allocation3 + $0x18] sm:$0x1]  ;;  %v1659_v20 = vrot.slane %v1657_v8, 1  ;;  %v1974_v22 = vrot.slane %v1908_v10, 1 }
 0x203   : > { %v11578_v26 = vadd.f32 %v11577_v25, %v11576_v51  ;;  %v11579_v27 = vpop.f32.mrb[114].mxu0  ;;  %v1669_v51 = vshll.u32 %v1619_v21, 16  ;;  %v15325_v8 = vld [vmem:[#allocation3 + $0x18] sm:$0x3]  ;;  %v2454_v10 = vld [vmem:[#allocation3 + $0x8] sm:$0x3] }
 0x204   : > { %v11580_v29 = vpop.f32.mrb[115].mxu0  ;;  %v11682_v31 = vpop.f32.mrb[44].mxu1 }
 0x205   : > { %v11581_v32 = vadd.f32 %v11580_v29, %v11579_v27  ;;  %v11683_v33 = vpop.f32.mrb[45].mxu1  ;;  %v4321_v56 = vadd.f32 %v11578_v26, %v15258_v62  ;;  %v1975_v29 = vrot.slane %v1909_v15, 1 }
 0x206   : > { %v11684_v35 = vadd.f32 %v11683_v33, %v11682_v31  ;;  %v11685_v37 = vpop.f32.mrb[46].mxu1  ;;  %4729 = vmatmul.mubr.bf16.gmra.mrb[220].mxu0 %v15086_v55  ;;  %v2083_v33 = vld [vmem:[#allocation3] sm:$0xfe] }
 0x207   : > { %v11686_v39 = vpop.f32.mrb[47].mxu1  ;;  %4736 = vmatprep.mubr.bf16.mxu0 %v15272_v41  ;;  %v4324_v38 = vadd.f32 %v11581_v32, %v15258_v62  ;;  %v1621_v32 = vld [vmem:[#allocation3 + $0x28] sm:$0x1]  ;;  %v1976_v50 = vsel %vm1970_vm1, %v1974_v22, %v1975_v29  ;;  %v2117_v54 = vshrl.u32 %v2083_v33, 16 }
 0x208   : > { %v15275_v44 = vadd.f32 %v11684_v35, %v4313_v28  ;;  %v11687_v42 = vadd.f32 %v11686_v39, %v11685_v37  ;;  %v14048_v37 = vld [vmem:[%s18464_s4 + $0x300] sm:$0xff]   ;;  %v2084_v39 = vld [vmem:[#allocation3 + $0x8] sm:$0x3] }
 0x209   : > { %v11582_v43 = vpop.f32.mrb[116].mxu0  ;;  %4874 = vmatmul.mubr.bf16.gmra.mrb[148].mxu1 %v15086_v55  ;;  %v2128_v58 = vshll.u32 %v2084_v39, 16  ;;  %v15332_v21 = vrot.slane %v2117_v54, 1 }
 0x20a   : > { %v15279_v52 = vadd.f32 %v11687_v42, %v4316_v49  ;;  %v11583_v0 = vpop.f32.mrb[117].mxu0  ;;  %4881 = vmatprep.mubr.bf16.mxu1 %v15052_v6  ;;  %v1652_v6 = vshll.u32 %v15272_v41, 16 }
 0x20b   : > { %v11584_v45 = vadd.f32 %v11583_v0, %v11582_v43  ;;  %v11585_v46 = vpop.f32.mrb[118].mxu0  ;;  %v1671_v0 = vrot.slane %v1669_v51, 1 }
 0x20c   : > { %v11586_v47 = vpop.f32.mrb[119].mxu0  ;;  %v11688_v48 = vpop.f32.mrb[48].mxu1  ;;  %v1654_v5 = vrot.slane %v1652_v6, 1 }
 0x20d   : > { %v11587_v13 = vadd.f32 %v11586_v47, %v11585_v46  ;;  %v11689_v53 = vpop.f32.mrb[49].mxu1  ;;  %v4329_v16 = vadd.f32 %v11584_v45, %v15258_v62  ;;  %v1910_v45 = vld [vmem:[#allocation3 + $0x20] sm:$0xfe]  ;;  %v1911_v46 = vld [vmem:[#allocation3 + $0x28] sm:$0x1] }
 0x20e   : > { %v11690_v7 = vadd.f32 %v11689_v53, %v11688_v48  ;;  %v11691_v57 = vpop.f32.mrb[50].mxu1  ;;  %4737 = vmatmul.mubr.bf16.gmra.mrb[224].mxu0 %v15100_v3  ;;  %v15297_v34 = vor.u32 %v1654_v5, %v1650_v40  ;;  %v14057_v53 = vld [vmem:[%s18464_s4 + $0x348] sm:$0xff]   ;;  %v1977_v61 = vrot.slane %v1910_v45, 1  ;;  %v1978_v12 = vrot.slane %v1911_v46, 1  ;;  %v2453_v5 = vld [vmem:[#allocation3] sm:$0xfc] }
 0x20f   : > { %v11692_v55 = vpop.f32.mrb[51].mxu1  ;;  %4744 = vmatprep.mubr.bf16.mxu0 %v15272_v41  ;;  %v4332_v26 = vadd.f32 %v11587_v13, %v15258_v62  ;;  %v1681_v13 = vshll.u32 %v1621_v32, 16  ;;  %v14058_v40 = vld [vmem:[%s18464_s4 + $0x308] sm:$0xff]   ;;  %v2145_v46 = vshll.u32 %v15325_v8, 16 }
 0x210   : > { %v15286_v59 = vadd.f32 %v11690_v7, %v4321_v56  ;;  %v11693_v60 = vadd.f32 %v11692_v55, %v11691_v57  ;;  %v1660_v43 = vsel %vm1648_vm2, %v15297_v34, %v1659_v20  ;;  %v2120_v57 = vshll.u32 %v2083_v33, 16 }
 0x211   : > { %v11588_v63 = vpop.f32.mrb[120].mxu0  ;;  %4882 = vmatmul.mubr.bf16.gmra.mrb[152].mxu1 %v15100_v3  ;;  %v2125_v55 = vshrl.u32 %v2084_v39, 16  ;;  %v1683_v51 = vrot.slane %v1681_v13, 1  ;;  %v2518_v33 = vrot.slane %v2453_v5, 2 }
 0x212   : > { %v15290_v2 = vadd.f32 %v11693_v60, %v4324_v38  ;;  %v11589_v4 = vpop.f32.mrb[121].mxu0  ;;  %4889 = vmatprep.mubr.bf16.mxu1 %v15272_v41 }
 0x213   : > { %v11590_v11 = vadd.f32 %v11589_v4, %v11588_v63  ;;  %v11591_v1 = vpop.f32.mrb[122].mxu0  ;;  %v2085_v63 = vld [vmem:[#allocation3 + $0x10] sm:$0xfe] }
 0x214   : > { %v11592_v30 = vpop.f32.mrb[123].mxu0  ;;  %v11694_v36 = vpop.f32.mrb[52].mxu1 }
 0x215   : > { %v11593_v14 = vadd.f32 %v11592_v30, %v11591_v1  ;;  %v11695_v3 = vpop.f32.mrb[53].mxu1  ;;  %v4337_v6 = vadd.f32 %v11590_v11, %v15258_v62  ;;  %v1672_v1 = vsel %vm1648_vm2, %v15297_v34, %v1671_v0 }
 0x216   : > { %v11696_v17 = vadd.f32 %v11695_v3, %v11694_v36  ;;  %v11697_v19 = vpop.f32.mrb[54].mxu1  ;;  %4745 = vmatmul.mubr.bf16.gmra.mrb[228].mxu0 %v15272_v41  ;;  %v14063_v3 = vld [vmem:[%s18464_s4 + $0x350] sm:$0xff]  }
 0x217   : > { %v11698_v18 = vpop.f32.mrb[55].mxu1  ;;  %4946 = vmatprep.mubr.bf16.mxu0 %v1973_v9  ;;  %v4340_v30 = vadd.f32 %v11593_v14, %v15258_v62  ;;  %v15330_v9 = vld [vmem:[#allocation3 + $0x30] sm:$0xfe]  ;;  %v15342_v14 = vrot.slane %v2125_v55, 1 }
 0x218   : > { %v15299_v25 = vadd.f32 %v11696_v17, %v4329_v16  ;;  %v11699_v27 = vadd.f32 %v11698_v18, %v11697_v19  ;;  %v15338_v16 = vld [vmem:[#allocation3 + $0x30] sm:$0xff]  ;;  %v15340_v17 = vrot.slane %v2120_v57, 2  ;;  %v15344_v19 = vrot.slane %v2128_v58, 2 }
 0x219   : > { %v11594_v31 = vpop.f32.mrb[124].mxu0  ;;  %4890 = vmatmul.mubr.bf16.gmra.mrb[156].mxu1 %v15272_v41  ;;  %v2134_v18 = vshrl.u32 %v2085_v63, 16  ;;  %v1980_v32 = vrot.slane %v15330_v9, 1  ;;  %v1686_v0 = vshrl.u32 %v15338_v16, 16  ;;  %v1688_v45 = vshll.u32 %v15338_v16, 16  ;;  %v14070_v9 = vld [vmem:[%s18464_s4 + $0x328] sm:$0xff]  }
 0x21a   : > { %v15303_v28 = vadd.f32 %v11699_v27, %v4332_v26  ;;  %v11595_v35 = vpop.f32.mrb[125].mxu0  ;;  %4897 = vmatprep.mubr.bf16.mxu1 %v15272_v41  ;;  %v2137_v26 = vshll.u32 %v2085_v63, 16  ;;  %v2142_v27 = vshrl.u32 %v15325_v8, 16  ;;  %v2123_v13 = vor.u32 %v15340_v17, %v15332_v21  ;;  %v15373_v57 = vld [vmem:[#allocation3 + $0x30] sm:$0xfe]  ;;  %v14067_v21 = vld [vmem:[%s18464_s4 + $0x360] sm:$0xff]  }
 0x21b   : > { %v15309_v49 = vadd.f32 %v11595_v35, %v11594_v31  ;;  %v11597_v42 = vpop.f32.mrb[126].mxu0  ;;  %v2519_v35 = vrot.slane %v2454_v10, 2  ;;  %v15369_v54 = vrot.slane %v2134_v18, 1  ;;  %v1913_v63 = vld [vmem:[#allocation3 + $0x38] sm:$0x1]  ;;  %v1690_v17 = vrot.slane %v1688_v45, 1 }
 0x21c   : > { %v11598_v47 = vpop.f32.mrb[127].mxu0  ;;  %v11700_v48 = vpop.f32.mrb[56].mxu1  ;;  %v2087_v10 = vld [vmem:[#allocation3 + $0x20] sm:$0xfe] }
 0x21d   : > { %v15317_v56 = vadd.f32 %v11598_v47, %v11597_v42  ;;  %v11701_v7 = vpop.f32.mrb[57].mxu1  ;;  %v14065_v47 = vld [vmem:[%s18464_s4 + $0x358] sm:$0xff]   ;;  %v4345_v55 = vadd.f32 %v15309_v49, %v15258_v62  ;;  %v15444_v16 = vld [vmem:[#allocation3 + $0x40] sm:$0xff] }
 0x21e   : > { %v11702_v38 = vadd.f32 %v11701_v7, %v11700_v48  ;;  %v11703_v60 = vpop.f32.mrb[58].mxu1  ;;  %4947 = vmatmul.mubr.bf16.vlgmr.msra.gmra.mrb[232].mxu0 %v1660_v43  ;;  %v1979_v43 = vsel %vm1970_vm1, %v1977_v61, %v1978_v12  ;;  %v15371_v7 = vld [vmem:[#allocation3 + $0x30] sm:$0xfc]  ;;  %v15381_v61 = vrot.slane %v2142_v27, 1  ;;  %v14066_v49 = vld [vmem:[%s18464_s4 + $0x318] sm:$0xff]  }
 0x21f   : > { %v11704_v4 = vpop.f32.mrb[59].mxu1  ;;  %12221 = vmatpush3.bf16.msra.mxu0 %v14048_v37  ;;  %4954 = vmatprep.mubr.bf16.mxu0 %v1976_v50  ;;  %v14064_v37 = vld [vmem:[%s18464_s4 + $0x310] sm:$0xff]  }
 0x220   : > { %v15327_v11 = vadd.f32 %v11702_v38, %v4337_v6  ;;  %v11705_v36 = vadd.f32 %v11704_v4, %v11703_v60  ;;  %12222 = vmatprep.subr.bf16.mxu0 %v14057_v53  ;;  %v2131_v53 = vor.u32 %v15344_v19, %v15342_v14  ;;  %v15377_v38 = vld [vmem:[#allocation3 + $0x10] sm:$0xfc]  ;;  %v15379_v60 = vrot.slane %v2137_v26, 2  ;;  %v1623_v4 = vld [vmem:[#allocation3 + $0x38] sm:$0x1] }
 0x221   : > { %v11600_v15 = vpop.f32.mrb[128].mxu0  ;;  %4898 = vmatmul.mubr.bf16.gmra.mrb[160].mxu1 %v15272_v41  ;;  %v15399_v14 = vld [vmem:[#allocation3 + $0x38] sm:$0x3]  ;;  %v2168_v19 = vshrl.u32 %v15373_v57, 16  ;;  %v1981_v26 = vrot.slane %v1913_v63, 1  ;;  %v1693_v27 = vshll.u32 %v1623_v4, 16 }
 0x222   : > { %v15346_v20 = vadd.f32 %v11705_v36, %v4340_v30  ;;  %v11601_v22 = vpop.f32.mrb[129].mxu0  ;;  %4905 = vmatprep.mubr.bf16.mxu1 %v15272_v41  ;;  %v2456_v30 = vld [vmem:[#allocation3 + $0x18] sm:$0x3]  ;;  %v15391_v36 = vrot.slane %v2145_v46, 2  ;;  %v2140_v45 = vor.u32 %v15379_v60, %v15369_v54  ;;  %v15429_v4 = vld [vmem:[#allocation3 + $0x20] sm:$0xfc] }
 0x223   : > { %v15350_v29 = vadd.f32 %v11601_v22, %v11600_v15  ;;  %v11603_v31 = vpop.f32.mrb[130].mxu0  ;;  %12223 = vmatpush3.bf16.msra.mxu0 %v14058_v40  ;;  %v2520_v40 = vsel %vm2517_vm3, %v2518_v33, %v2519_v35  ;;  %v1684_v15 = vsel %vm1648_vm2, %v15297_v34, %v1683_v51  ;;  %v2088_v33 = vld [vmem:[#allocation3 + $0x28] sm:$0x3]  ;;  %v2522_v51 = vrot.slane %v2456_v30, 2 }
 0x224   : > { %v11604_v39 = vpop.f32.mrb[131].mxu0  ;;  %v11706_v42 = vpop.f32.mrb[60].mxu1  ;;  %12224 = vmatprep.subr.bf16.mxu0 %v14063_v3  ;;  %v2148_v46 = vor.u32 %v15391_v36, %v15381_v61  ;;  %v1695_v63 = vrot.slane %v1693_v27, 1  ;;  %v2171_v36 = vshll.u32 %v15373_v57, 16  ;;  %v14071_v57 = vld [vmem:[%s18464_s4 + $0x370] sm:$0xff]  }
 0x225   : > { %v15363_v48 = vadd.f32 %v11604_v39, %v11603_v31  ;;  %v11707_v50 = vpop.f32.mrb[61].mxu1  ;;  %v2132_v31 = vsel %vm2115_vm4, %v2123_v13, %v2131_v53  ;;  %v14068_v39 = vld [vmem:[%s18464_s4 + $0x320] sm:$0xff]   ;;  %v14069_v13 = vld [vmem:[%s18464_s4 + $0x368] sm:$0xff]   ;;  %v4353_v54 = vadd.f32 %v15350_v29, %v15258_v62 }
 0x226   : > { %v11708_v58 = vadd.f32 %v11707_v50, %v11706_v42  ;;  %v11709_v6 = vpop.f32.mrb[62].mxu1  ;;  %4955 = vmatmul.mubr.bf16.gmra.mrb[236].mxu0 %v1672_v1  ;;  %v4348_v1 = vadd.f32 %v15317_v56, %v15258_v62  ;;  %v2527_v56 = vrot.slane %v15371_v7, 2  ;;  %v2528_v50 = vrot.slane %v15399_v14, 2 }
 0x227   : > { %v11710_v12 = vpop.f32.mrb[63].mxu1  ;;  %4962 = vmatprep.mubr.bf16.mxu0 %v1979_v43  ;;  %12225 = vmatpush3.bf16.msra.mxu0 %v14064_v37  ;;  %v2151_v37 = vshrl.u32 %v2087_v10, 16  ;;  %v2149_v14 = vsel %vm2115_vm4, %v2140_v45, %v2148_v46  ;;  %v14072_v45 = vld [vmem:[%s18464_s4 + $0x330] sm:$0xff]  }
 0x228   : > { %v15387_v5 = vadd.f32 %v11708_v58, %v4345_v55  ;;  %v11711_v8 = vadd.f32 %v11710_v12, %v11709_v6  ;;  %12226 = vmatprep.subr.bf16.mxu0 %v14065_v47  ;;  %v2154_v47 = vshll.u32 %v2087_v10, 16  ;;  %v2159_v58 = vshrl.u32 %v2088_v33, 16 }
 0x229   : > { %v11606_v3 = vpop.f32.mrb[132].mxu0  ;;  %4906 = vmatmul.mubr.bf16.gmra.mrb[164].mxu1 %v15272_v41  ;;  %v2521_v41 = vrot.slane %v15377_v38, 2  ;;  %v2162_v6 = vshll.u32 %v2088_v33, 16  ;;  %v15422_v38 = vrot.slane %v2168_v19, 1  ;;  %v1982_v12 = vsel %vm1970_vm1, %v1980_v32, %v1981_v26 }
 0x22a   : > { %v15403_v18 = vadd.f32 %v11711_v8, %v4348_v1  ;;  %v11607_v22 = vpop.f32.mrb[133].mxu0  ;;  %5107 = vmatprep.mubr.bf16.mxu1 %v2520_v40  ;;  %v2090_v40 = vld [vmem:[#allocation3 + $0x38] sm:$0x3]  ;;  %v1691_v1 = vor.u32 %v1690_v17, %v1686_v0  ;;  %v1915_v8 = vld [vmem:[#allocation3 + $0x48] sm:$0x1]  ;;  %v15434_v29 = vrot.slane %v2151_v37, 1  ;;  %v4356_v10 = vadd.f32 %v15363_v48, %v15258_v62 }
 0x22b   : > { %v15406_v35 = vadd.f32 %v11607_v22, %v11606_v3  ;;  %v11609_v34 = vpop.f32.mrb[134].mxu0  ;;  %12227 = vmatpush3.bf16.msra.mxu0 %v14066_v49  ;;  %v2523_v30 = vsel %vm2517_vm3, %v2521_v41, %v2522_v51  ;;  %v2458_v0 = vld [vmem:[#allocation3 + $0x28] sm:$0x3]  ;;  %v15446_v3 = vrot.slane %v2154_v47, 2  ;;  %v1914_v17 = vld [vmem:[#allocation3 + $0x40] sm:$0xfe] }
 0x22c   : > { %v11610_v42 = vpop.f32.mrb[135].mxu0  ;;  %v11712_v43 = vpop.f32.mrb[64].mxu1  ;;  %12228 = vmatprep.subr.bf16.mxu0 %v14067_v21  ;;  %v2161_v19 = vrot.slane %v2159_v58, 1  ;;  %v2164_v22 = vrot.slane %v2162_v6, 2  ;;  %v2176_v26 = vshrl.u32 %v2090_v40, 16  ;;  %v1984_v33 = vrot.slane %v1915_v8, 1 }
 0x22d   : > { %v15420_v53 = vadd.f32 %v11610_v42, %v11609_v34  ;;  %v11713_v55 = vpop.f32.mrb[65].mxu1  ;;  %v1625_v34 = vld [vmem:[#allocation3 + $0x48] sm:$0x1]  ;;  %v2524_v41 = vrot.slane %v15429_v4, 2  ;;  %v2179_v51 = vshll.u32 %v2090_v40, 16  ;;  %v1700_v42 = vshll.u32 %v15444_v16, 16 }
 0x22e   : > { %v11714_v60 = vadd.f32 %v11713_v55, %v11712_v43  ;;  %v11715_v61 = vpop.f32.mrb[66].mxu1  ;;  %4963 = vmatmul.mubr.bf16.gmra.mrb[240].mxu0 %v1684_v15  ;;  %v15458_v43 = vrot.slane %v2171_v36, 2  ;;  %v1983_v55 = vrot.slane %v1914_v17, 1  ;;  %v2157_v58 = vor.u32 %v15446_v3, %v15434_v29  ;;  %v2091_v40 = vld [vmem:[#allocation3 + $0x40] sm:$0xfe]  ;;  %v15498_v17 = vld [vmem:[#allocation3 + $0x50] sm:$0xff] }
 0x22f   : > { %v11716_v49 = vpop.f32.mrb[67].mxu1  ;;  %4970 = vmatprep.mubr.bf16.mxu0 %v1982_v12  ;;  %12229 = vmatpush3.bf16.msra.mxu0 %v14068_v39  ;;  %v15469_v6 = vsel %vm2517_vm3, %v2527_v56, %v2528_v50  ;;  %v1705_v12 = vshll.u32 %v1625_v34, 16  ;;  %v2165_v4 = vor.u32 %v2164_v22, %v2161_v19  ;;  %v15481_v50 = vrot.slane %v2179_v51, 2  ;;  %v15483_v8 = vld [vmem:[#allocation3 + $0x40] sm:$0xfc] }
 0x230   : > { %v15440_v32 = vadd.f32 %v11714_v60, %v4353_v54  ;;  %v11717_v21 = vadd.f32 %v11716_v49, %v11715_v61  ;;  %12230 = vmatprep.subr.bf16.mxu0 %v14069_v13  ;;  %v1696_v13 = vsel %vm1648_vm2, %v1691_v1, %v1695_v63  ;;  %v14073_v54 = vld [vmem:[%s18464_s4 + $0x378] sm:$0xff]   ;;  %v15476_v63 = vrot.slane %v2176_v26, 1  ;;  %v15502_v22 = vld [vmem:[#allocation3 + $0x80] sm:$0xff] }
 0x231   : > { %v11612_v15 = vpop.f32.mrb[136].mxu0  ;;  %5108 = vmatmul.mubr.bf16.vlgmr.msra.gmra.mrb[168].mxu1 %v2132_v31  ;;  %v2525_v31 = vrot.slane %v2458_v0, 2  ;;  %v4361_v49 = vadd.f32 %v15406_v35, %v15258_v62  ;;  %v1985_v56 = vsel %vm1970_vm1, %v1983_v55, %v1984_v33  ;;  %v1698_v36 = vshrl.u32 %v15444_v16, 16  ;;  %v14074_v0 = vld [vmem:[%s18464_s4 + $0x338] sm:$0xff]   ;;  %v15500_v16 = vld [vmem:[#allocation3 + $0x88] sm:$0x1] }
 0x232   : > { %v15452_v48 = vadd.f32 %v11717_v21, %v4356_v10  ;;  %v11613_v27 = vpop.f32.mrb[137].mxu0  ;;  %5115 = vmatprep.mubr.bf16.mxu1 %v2523_v30  ;;  %v15485_v30 = vld [vmem:[#allocation3 + $0x80] sm:$0xfe]  ;;  %v1917_v10 = vld [vmem:[#allocation3 + $0x58] sm:$0x1]  ;;  %v2174_v35 = vor.u32 %v15458_v43, %v15422_v38  ;;  %v2185_v19 = vshrl.u32 %v2091_v40, 16  ;;  %v2166_v33 = vsel %vm2115_vm4, %v2157_v58, %v2165_v4 }
 0x233   : > { %v15455_v37 = vadd.f32 %v11613_v27, %v11612_v15  ;;  %v11615_v39 = vpop.f32.mrb[138].mxu0  ;;  %12231 = vmatpush3.bf16.msra.mxu0 %v14070_v9  ;;  %v1702_v9 = vrot.slane %v1700_v42, 1  ;;  %v2526_v21 = vsel %vm2517_vm3, %v2524_v41, %v2525_v31  ;;  %v1707_v26 = vrot.slane %v1705_v12, 1  ;;  %v1916_v27 = vld [vmem:[#allocation3 + $0x50] sm:$0xfe] }
 0x234   : > { %v11616_v46 = vpop.f32.mrb[139].mxu0  ;;  %v11718_v47 = vpop.f32.mrb[68].mxu1  ;;  %12232 = vmatprep.subr.bf16.mxu0 %v14071_v57  ;;  %v4364_v57 = vadd.f32 %v15420_v53, %v15258_v62  ;;  %v2530_v34 = vrot.slane %v15483_v8, 2  ;;  %v2188_v41 = vshll.u32 %v2091_v40, 16  ;;  %v1627_v42 = vld [vmem:[#allocation3 + $0x58] sm:$0x1]  ;;  %v2182_v31 = vor.u32 %v15481_v50, %v15476_v63 }
 0x235   : > { %v15474_v60 = vadd.f32 %v11616_v46, %v11615_v39  ;;  %v11719_v61 = vpop.f32.mrb[69].mxu1  ;;  %v1987_v39 = vrot.slane %v1917_v10, 1  ;;  %v1995_v43 = vrot.slane %v15485_v30, 1  ;;  %v1748_v55 = vshll.u32 %v15502_v22, 16  ;;  %v1633_v50 = vld [vmem:[#allocation3 + $0x88] sm:$0x1] }
 0x236   : > { %v11720_v7 = vadd.f32 %v11719_v61, %v11718_v47  ;;  %v11721_v1 = vpop.f32.mrb[70].mxu1  ;;  %4971 = vmatmul.mubr.bf16.gmra.mrb[244].mxu0 %v1696_v13  ;;  %v1712_v47 = vshll.u32 %v15498_v17, 16  ;;  %v2092_v13 = vld [vmem:[#allocation3 + $0x48] sm:$0x3]  ;;  %v1986_v61 = vrot.slane %v1916_v27, 1  ;;  %v1996_v12 = vrot.slane %v15500_v16, 1 }
 0x237   : > { %v11722_v29 = vpop.f32.mrb[71].mxu1  ;;  %4978 = vmatprep.mubr.bf16.mxu0 %v1985_v56  ;;  %12233 = vmatpush3.bf16.msra.mxu0 %v14072_v45  ;;  %v15516_v4 = vrot.slane %v2185_v19, 1  ;;  %v1746_v63 = vshrl.u32 %v15502_v22, 16  ;;  %v15522_v56 = vrot.slane %v2188_v41, 2  ;;  %v4369_v30 = vadd.f32 %v15455_v37, %v15258_v62  ;;  %v15527_v10 = vld [vmem:[#allocation3 + $0x48] sm:$0x3] }
 0x238   : > { %v15494_v3 = vadd.f32 %v11720_v7, %v4361_v49  ;;  %v11723_v15 = vadd.f32 %v11722_v29, %v11721_v1  ;;  %12234 = vmatprep.subr.bf16.mxu0 %v14073_v54  ;;  %v1717_v1 = vshll.u32 %v1627_v42, 16  ;;  %v1919_v16 = vld [vmem:[#allocation3 + $0x68] sm:$0x1]  ;;  %v15532_v19 = vsel %vm2115_vm4, %v2174_v35, %v2182_v31  ;;  %v15542_v42 = vld [vmem:[#allocation3 + $0x90] sm:$0xfe] }
 0x239   : > { %v11618_v38 = vpop.f32.mrb[140].mxu0  ;;  %5116 = vmatmul.mubr.bf16.gmra.mrb[172].mxu1 %v2149_v14  ;;  %v1703_v14 = vor.u32 %v1702_v9, %v1698_v36  ;;  %v1988_v9 = vsel %vm1970_vm1, %v1986_v61, %v1987_v39  ;;  %v4372_v37 = vadd.f32 %v15474_v60, %v15258_v62  ;;  %v1753_v39 = vshll.u32 %v1633_v50, 16  ;;  %v1629_v61 = vld [vmem:[#allocation3 + $0x68] sm:$0x1] }
 0x23a   : > { %v15506_v51 = vadd.f32 %v11723_v15, %v4364_v57  ;;  %v11619_v53 = vpop.f32.mrb[141].mxu0  ;;  %5123 = vmatprep.mubr.bf16.mxu1 %v2526_v21  ;;  %v2193_v21 = vshrl.u32 %v2092_v13, 16  ;;  %v1714_v15 = vrot.slane %v1712_v47, 1  ;;  %v1710_v35 = vshrl.u32 %v15498_v17, 16  ;;  %v1918_v47 = vld [vmem:[#allocation3 + $0x60] sm:$0xfe] }
 0x23b   : > { %v15511_v45 = vadd.f32 %v11619_v53, %v11618_v38  ;;  %v11621_v46 = vpop.f32.mrb[142].mxu0  ;;  %12235 = vmatpush3.bf16.msra.mxu0 %v14074_v0  ;;  %v1708_v7 = vsel %vm1648_vm2, %v1703_v14, %v1707_v26  ;;  %v15529_v0 = vld [vmem:[#allocation3 + $0x80] sm:$0xfc]  ;;  %v2196_v38 = vshll.u32 %v2092_v13, 16  ;;  %v15534_v26 = vrot.slane %v1748_v55, 1 }
 0x23c   : > { %v11622_v58 = vpop.f32.mrb[143].mxu0  ;;  %v11724_v54 = vpop.f32.mrb[72].mxu1  ;;  %v15540_v53 = vld [vmem:[#allocation3 + $0x60] sm:$0xff]  ;;  %v1719_v31 = vrot.slane %v1717_v1, 1  ;;  %v15548_v13 = vsel %vm1970_vm1, %v1995_v43, %v1996_v12  ;;  %v15557_v17 = vld [vmem:[#allocation3 + $0x88] sm:$0x3]  ;;  %v1715_v43 = vor.u32 %v1714_v15, %v1710_v35 }
 0x23d   : > { %v15519_v40 = vadd.f32 %v11622_v58, %v11621_v46  ;;  %v11725_v49 = vpop.f32.mrb[73].mxu1  ;;  %v15544_v46 = vld [vmem:[#allocation3 + $0x98] sm:$0x1]  ;;  %v1724_v12 = vshll.u32 %v15540_v53, 16  ;;  %v2198_v50 = vrot.slane %v2196_v38, 2  ;;  %v4377_v35 = vadd.f32 %v15511_v45, %v15258_v62 }
 0x23e   : > { %v11726_v29 = vadd.f32 %v11725_v49, %v11724_v54  ;;  %v11727_v36 = vpop.f32.mrb[74].mxu1  ;;  %4979 = vmatmul.mubr.bf16.gmra.mrb[248].mxu0 %v1708_v7  ;;  %v1990_v54 = vrot.slane %v1919_v16, 1  ;;  %v2531_v49 = vrot.slane %v15527_v10, 2  ;;  %v15555_v7 = vrot.slane %v2193_v21, 1  ;;  %v1921_v10 = vld [vmem:[#allocation3 + $0x78] sm:$0x1] }
 0x23f   : > { %v11728_v57 = vpop.f32.mrb[75].mxu1  ;;  %4986 = vmatprep.mubr.bf16.mxu0 %v1988_v9  ;;  %v1989_v9 = vrot.slane %v1918_v47, 1  ;;  %v1720_v15 = vsel %vm1648_vm2, %v1715_v43, %v1719_v31  ;;  %v4380_v45 = vadd.f32 %v15519_v40, %v15258_v62  ;;  %v1920_v21 = vld [vmem:[#allocation3 + $0x70] sm:$0xfe]  ;;  %v1631_v43 = vld [vmem:[#allocation3 + $0x78] sm:$0x1]  ;;  %v2191_v38 = vor.u32 %v15522_v56, %v15516_v4 }
 0x240   : > { %v15538_v27 = vadd.f32 %v11726_v29, %v4369_v30  ;;  %v11729_v41 = vadd.f32 %v11728_v57, %v11727_v36  ;;  %v15562_v30 = vld [vmem:[#allocation3 + $0x90] sm:$0xff]  ;;  %v15564_v29 = vld [vmem:[#allocation3 + $0x98] sm:$0x1]  ;;  %v15566_v57 = vrot.slane %v1753_v39, 1  ;;  %v2199_v31 = vor.u32 %v2198_v50, %v15555_v7 }
 0x241   : > { %v11624_v14 = vpop.f32.mrb[144].mxu0  ;;  %5124 = vmatmul.mubr.bf16.gmra.mrb[176].mxu1 %v2166_v33  ;;  %v1760_v60 = vshll.u32 %v15562_v30, 16  ;;  %v1722_v7 = vshrl.u32 %v15540_v53, 16  ;;  %v2532_v40 = vsel %vm2517_vm3, %v2530_v34, %v2531_v49  ;;  %v2464_v53 = vld [vmem:[#allocation3 + $0x58] sm:$0x3] }
 0x242   : > { %v15551_v55 = vadd.f32 %v11729_v41, %v4372_v37  ;;  %v11625_v58 = vpop.f32.mrb[145].mxu0  ;;  %5131 = vmatprep.mubr.bf16.mxu1 %v15469_v6  ;;  %v1729_v41 = vshll.u32 %v1629_v61, 16  ;;  %v2200_v61 = vsel %vm2115_vm4, %v2191_v38, %v2199_v31 }
 0x243   : > { %v15559_v1 = vadd.f32 %v11625_v58, %v11624_v14  ;;  %v11627_v33 = vpop.f32.mrb[146].mxu0  ;;  %v15574_v14 = vld [vmem:[#allocation3 + $0x80] sm:$0xfe]  ;;  %v1991_v58 = vsel %vm1970_vm1, %v1989_v9, %v1990_v54  ;;  %v15589_v54 = vld [vmem:[#allocation3 + $0x50] sm:$0xfe] }
 0x244   : > { %v11628_v36 = vpop.f32.mrb[147].mxu0  ;;  %v11730_v6 = vpop.f32.mrb[76].mxu1  ;;  %v2094_v9 = vld [vmem:[#allocation3 + $0x58] sm:$0x3]  ;;  %v1731_v50 = vrot.slane %v1729_v41, 1  ;;  %v2202_v4 = vshrl.u32 %v15589_v54, 16 }
 0x245   : > { %v15570_v16 = vadd.f32 %v11628_v36, %v11627_v33  ;;  %v11731_v37 = vpop.f32.mrb[77].mxu1  ;;  %v1726_v36 = vrot.slane %v1724_v12, 1  ;;  %v2253_v12 = vshrl.u32 %v15574_v14, 16  ;;  %v2213_v56 = vshll.u32 %v2094_v9, 16 }
 0x246   : > { %v11732_v47 = vadd.f32 %v11731_v37, %v11730_v6  ;;  %v11733_v39 = vpop.f32.mrb[78].mxu1  ;;  %4987 = vmatmul.mubr.bf16.gmra.mrb[252].mxu0 %v1720_v15  ;;  %v15587_v15 = vld [vmem:[#allocation3 + $0x70] sm:$0xff]  ;;  %v2205_v38 = vshll.u32 %v15589_v54, 16 }
 0x247   : > { %v11734_v33 = vpop.f32.mrb[79].mxu1  ;;  %4994 = vmatprep.mubr.bf16.mxu0 %v1991_v58  ;;  %v1727_v49 = vor.u32 %v1726_v36, %v1722_v7  ;;  %v1736_v41 = vshll.u32 %v15587_v15, 16  ;;  %v4385_v36 = vadd.f32 %v15559_v1, %v15258_v62  ;;  %v2215_v1 = vrot.slane %v2213_v56, 2  ;;  %v2466_v56 = vld [vmem:[#allocation3 + $0x68] sm:$0x3] }
 0x248   : > { %v15585_v6 = vadd.f32 %v11732_v47, %v4377_v35  ;;  %v11735_v37 = vadd.f32 %v11734_v33, %v11733_v39  ;;  %v1993_v33 = vrot.slane %v1921_v10, 1  ;;  %v1992_v35 = vrot.slane %v1920_v21, 1 }
 0x249   : > { %v11630_v58 = vpop.f32.mrb[148].mxu0  ;;  %5132 = vmatmul.mubr.bf16.gmra.mrb[180].mxu1 %v15532_v19  ;;  %v15605_v19 = vor.u32 %v15534_v26, %v1746_v63  ;;  %v1732_v26 = vsel %vm1648_vm2, %v1727_v49, %v1731_v50  ;;  %v2096_v49 = vld [vmem:[#allocation3 + $0x68] sm:$0x3] }
 0x24a   : > { %18507 = vst [vmem:[#allocation11_spill] sm:$0xff] %v15585_v6  ;;  %v15598_v47 = vadd.f32 %v11735_v37, %v4380_v45  ;;  %v11631_v39 = vpop.f32.mrb[149].mxu0  ;;  %5139 = vmatprep.mubr.bf16.mxu1 %v2532_v40  ;;  %v2463_v45 = vld [vmem:[#allocation3 + $0x50] sm:$0xfc]  ;;  %v2210_v37 = vshrl.u32 %v2094_v9, 16  ;;  %v1994_v21 = vsel %vm1970_vm1, %v1992_v35, %v1993_v33  ;;  %v1738_v9 = vrot.slane %v1736_v41, 1 }
 0x24b   : > { %v15607_v8 = vadd.f32 %v11631_v39, %v11630_v58  ;;  %v11633_v34 = vpop.f32.mrb[150].mxu0  ;;  %v1741_v58 = vshll.u32 %v1631_v43, 16  ;;  %v2534_v39 = vrot.slane %v2464_v53, 2  ;;  %v1762_v6 = vrot.slane %v1760_v60, 1  ;;  %v2095_v60 = vld [vmem:[#allocation3 + $0x60] sm:$0xfe] }
 0x24c   : > { %18508 = vst [vmem:[#allocation12_spill] sm:$0xff] %v15598_v47  ;;  %v11634_v10 = vpop.f32.mrb[151].mxu0  ;;  %v11736_v40 = vpop.f32.mrb[80].mxu1  ;;  %v4388_v43 = vadd.f32 %v15570_v16, %v15258_v62  ;;  %v18509_v33 = vshll.u32 %v15564_v29, 16 }
 0x24d   : > { %v15612_v22 = vadd.f32 %v11634_v10, %v11633_v34  ;;  %v11737_v63 = vpop.f32.mrb[81].mxu1  ;;  %v2533_v34 = vrot.slane %v2463_v45, 2  ;;  %v2212_v10 = vrot.slane %v2210_v37, 1  ;;  %v1743_v35 = vrot.slane %v1741_v58, 1 }
 0x24e   : > { %v11738_v7 = vadd.f32 %v11737_v63, %v11736_v40  ;;  %v11739_v47 = vpop.f32.mrb[82].mxu1  ;;  %4995 = vmatmul.mubr.bf16.gmra.mrb[0].mxu0 %v1732_v26  ;;  %v1734_v63 = vshrl.u32 %v15587_v15, 16  ;;  %v15627_v41 = vrot.slane %v18509_v33, 1  ;;  %v2204_v37 = vrot.slane %v2202_v4, 1 }
 0x24f   : > { %v11740_v31 = vpop.f32.mrb[83].mxu1  ;;  %5002 = vmatprep.mubr.bf16.mxu0 %v1994_v21  ;;  %v2535_v54 = vsel %vm2517_vm3, %v2533_v34, %v2534_v39  ;;  %v15631_v26 = vrot.slane %v2253_v12, 1  ;;  %v2227_v58 = vshrl.u32 %v2096_v49, 16  ;;  %v2230_v39 = vshll.u32 %v2096_v49, 16  ;;  %v2465_v34 = vld [vmem:[#allocation3 + $0x60] sm:$0xfc] }
 0x250   : > { %v15621_v50 = vadd.f32 %v11738_v7, %v4385_v36  ;;  %v11741_v53 = vadd.f32 %v11740_v31, %v11739_v47  ;;  %v2207_v47 = vrot.slane %v2205_v38, 2  ;;  %v2100_v7 = vld [vmem:[#allocation3 + $0x88] sm:$0x3]  ;;  %v2216_v31 = vor.u32 %v2215_v1, %v2212_v10 }
 0x251   : > { %v11636_v40 = vpop.f32.mrb[152].mxu0  ;;  %5140 = vmatmul.mubr.bf16.gmra.mrb[184].mxu1 %v2200_v61  ;;  %v1739_v61 = vor.u32 %v1738_v9, %v1734_v63  ;;  %v18511_v4 = vshll.u32 %v15574_v14, 16  ;;  %v2537_v63 = vrot.slane %v2466_v56, 2  ;;  %v2222_v49 = vshll.u32 %v2095_v60, 16 }
 0x252   : > { %v15629_v45 = vadd.f32 %v11741_v53, %v4388_v43  ;;  %v11637_v16 = vpop.f32.mrb[153].mxu0  ;;  %5147 = vmatprep.mubr.bf16.mxu1 %v2535_v54  ;;  %v18510_v43 = vshrl.u32 %v15562_v30, 16  ;;  %v2219_v54 = vshrl.u32 %v2095_v60, 16  ;;  %v4393_v33 = vadd.f32 %v15607_v8, %v15258_v62 }
 0x253   : > { %v15633_v36 = vadd.f32 %v11637_v16, %v11636_v40  ;;  %v11639_v15 = vpop.f32.mrb[154].mxu0  ;;  %v15639_v38 = vrot.slane %v18511_v4, 2  ;;  %v1744_v9 = vsel %vm1648_vm2, %v1739_v61, %v1743_v35  ;;  %v2208_v30 = vor.u32 %v2207_v47, %v2204_v37  ;;  %v15650_v35 = vld [vmem:[%s18467_s7 + $0x2] ss:$0 sm:$0xff]  ;;  %v2098_v47 = vld [vmem:[#allocation3 + $0x78] sm:$0x3] }
 0x254   : > { %v11640_v29 = vpop.f32.mrb[155].mxu0  ;;  %v11742_v21 = vpop.f32.mrb[84].mxu1  ;;  %v1763_v53 = vor.u32 %v1762_v6, %v18510_v43  ;;  %v2261_v6 = vshrl.u32 %v2100_v7, 16  ;;  %v2536_v14 = vrot.slane %v2465_v34, 2  ;;  %v2229_v43 = vrot.slane %v2227_v58, 1 }
 0x255   : > { %v15641_v12 = vadd.f32 %v11640_v29, %v11639_v15  ;;  %v11743_v40 = vpop.f32.mrb[85].mxu1  ;;  %v2232_v15 = vrot.slane %v2230_v39, 2  ;;  %v2264_v29 = vshll.u32 %v2100_v7, 16  ;;  %v4396_v62 = vadd.f32 %v15650_v35, %v15612_v22  ;;  %v15661_v7 = vld [vmem:[#allocation3 + $0x90] sm:$0xfe] }
 0x256   : > { %v11744_v10 = vadd.f32 %v11743_v40, %v11742_v21  ;;  %v11745_v1 = vpop.f32.mrb[86].mxu1  ;;  %5003 = vmatmul.mubr.bf16.gmra.mrb[4].mxu0 %v1744_v9  ;;  %v2217_v37 = vsel %vm2115_vm4, %v2208_v30, %v2216_v31  ;;  %v2538_v61 = vsel %vm2517_vm3, %v2536_v14, %v2537_v63  ;;  %v2221_v58 = vrot.slane %v2219_v54, 1  ;;  %v2468_v40 = vld [vmem:[#allocation3 + $0x78] sm:$0x3] }
 0x257   : > { %v11746_v16 = vpop.f32.mrb[87].mxu1  ;;  %5010 = vmatprep.mubr.bf16.mxu0 %v15548_v13  ;;  %v1756_v13 = vsel %vm1648_vm2, %v15605_v19, %v15566_v57  ;;  %v2224_v39 = vrot.slane %v2222_v49, 2  ;;  %v18513_v34 = vrot.slane %v15544_v46, 1  ;;  %v18514_v31 = vrot.slane %v15542_v42, 1  ;;  %v15681_v46 = vld [vmem:[#allocation3 + $0xa0] sm:$0xff] }
 0x258   : > { %v15654_v8 = vadd.f32 %v11744_v10, %v4393_v33  ;;  %v11747_v60 = vadd.f32 %v11746_v16, %v11745_v1  ;;  %v18515_v57 = vrot.slane %v15557_v17, 2  ;;  %v18516_v19 = vrot.slane %v15529_v0, 2  ;;  %v2097_v42 = vld [vmem:[#allocation3 + $0x70] sm:$0xfe] }
 0x259   : > { %v11642_v56 = vpop.f32.mrb[156].mxu0  ;;  %5148 = vmatmul.mubr.bf16.gmra.mrb[188].mxu1 %v2217_v37  ;;  %v2000_v4 = vsel %vm1970_vm1, %v18514_v31, %v18513_v34  ;;  %v15677_v9 = vrot.slane %v2261_v6, 1  ;;  %v2233_v33 = vor.u32 %v2232_v15, %v2229_v43  ;;  %v2244_v10 = vshrl.u32 %v2098_v47, 16  ;;  %v2467_v17 = vld [vmem:[#allocation3 + $0x70] sm:$0xfc] }
 0x25a   : > { %v15663_v21 = vadd.f32 %v11747_v60, %v4396_v62  ;;  %v11643_v22 = vpop.f32.mrb[157].mxu0  ;;  %5155 = vmatprep.mubr.bf16.mxu1 %v2538_v61  ;;  %v15675_v54 = vsel %vm2517_vm3, %v18516_v19, %v18515_v57  ;;  %v15683_v1 = vrot.slane %v2264_v29, 2  ;;  %v15687_v0 = vsel %vm1648_vm2, %v1763_v53, %v15627_v41  ;;  %v1926_v60 = vld [vmem:[#allocation3 + $0xa0] sm:$0xfe] }
 0x25b   : > { %v15679_v63 = vadd.f32 %v11643_v22, %v11642_v56  ;;  %v11645_v49 = vpop.f32.mrb[158].mxu0  ;;  %v2247_v14 = vshll.u32 %v2098_v47, 16  ;;  %v2270_v62 = vshrl.u32 %v15661_v7, 16  ;;  %v2225_v37 = vor.u32 %v2224_v39, %v2221_v58  ;;  %v1927_v47 = vld [vmem:[#allocation3 + $0xa8] sm:$0x1] }
 0x25c   : > { %18512 = vst [vmem:[#allocation13_spill] sm:$0xff] %v15663_v21  ;;  %v11646_v30 = vpop.f32.mrb[159].mxu0  ;;  %v11748_v16 = vpop.f32.mrb[88].mxu1  ;;  %v2540_v29 = vrot.slane %v2468_v40, 2  ;;  %v2273_v56 = vshll.u32 %v15661_v7, 16  ;;  %v4401_v61 = vadd.f32 %v15650_v35, %v15633_v36  ;;  %v2236_v22 = vshrl.u32 %v2097_v42, 16 }
 0x25d   : > { %v15692_v43 = vadd.f32 %v11646_v30, %v11645_v49  ;;  %v11749_v15 = vpop.f32.mrb[89].mxu1  ;;  %v2239_v34 = vshll.u32 %v2097_v42, 16  ;;  %v2234_v57 = vsel %vm2115_vm4, %v2225_v37, %v2233_v33  ;;  %v2539_v19 = vrot.slane %v2467_v17, 2  ;;  %v1637_v49 = vld [vmem:[#allocation3 + $0xa8] sm:$0x1] }
 0x25e   : > { %v11750_v41 = vadd.f32 %v11749_v15, %v11748_v16  ;;  %v11751_v53 = vpop.f32.mrb[90].mxu1  ;;  %5011 = vmatmul.mubr.bf16.gmra.mrb[8].mxu0 %v1756_v13  ;;  %v1772_v58 = vshll.u32 %v15681_v46, 16  ;;  %v2246_v39 = vrot.slane %v2244_v10, 1  ;;  %v4404_v7 = vadd.f32 %v15650_v35, %v15641_v12  ;;  %v15703_v13 = vld [vmem:[#allocation3 + $0x90] sm:$0xfc] }
 0x25f   : > { %v11752_v31 = vpop.f32.mrb[91].mxu1  ;;  %5018 = vmatprep.mubr.bf16.mxu0 %v2000_v4  ;;  %v2249_v30 = vrot.slane %v2247_v14, 2  ;;  %v2102_v16 = vld [vmem:[#allocation3 + $0x98] sm:$0x3]  ;;  %v2001_v15 = vrot.slane %v1926_v60, 1  ;;  %v2002_v4 = vrot.slane %v1927_v47, 1  ;;  %v2541_v33 = vsel %vm2517_vm3, %v2539_v19, %v2540_v29 }
 0x260   : > { %v15701_v40 = vadd.f32 %v11750_v41, %v4401_v61  ;;  %v11753_v36 = vadd.f32 %v11752_v31, %v11751_v53  ;;  %v1770_v17 = vshrl.u32 %v15681_v46, 16  ;;  %v15707_v37 = vld [vmem:[#allocation3 + $0x98] sm:$0x3]  ;;  %v1777_v61 = vshll.u32 %v1637_v49, 16  ;;  %v15713_v19 = vld [vmem:[#allocation3 + $0xb0] sm:$0xff] }
 0x261   : > { %v11648_v42 = vpop.f32.mrb[160].mxu0  ;;  %5156 = vmatmul.mubr.bf16.gmra.mrb[192].mxu1 %v2234_v57  ;;  %v2238_v41 = vrot.slane %v2236_v22, 1  ;;  %v2241_v14 = vrot.slane %v2239_v34, 2  ;;  %v1774_v6 = vrot.slane %v1772_v58, 1  ;;  %v2278_v60 = vshrl.u32 %v2102_v16, 16 }
 0x262   : > { %18517 = vst [vmem:[#allocation14_spill] sm:$0xff] %v15701_v40  ;;  %v15709_v10 = vadd.f32 %v11753_v36, %v4404_v7  ;;  %v11649_v12 = vpop.f32.mrb[161].mxu0  ;;  %5163 = vmatprep.mubr.bf16.mxu1 %v2541_v33  ;;  %v2281_v47 = vshll.u32 %v2102_v16, 16  ;;  %v2250_v29 = vor.u32 %v2249_v30, %v2246_v39  ;;  %v2003_v36 = vsel %vm1970_vm1, %v2001_v15, %v2002_v4  ;;  %v1928_v7 = vld [vmem:[#allocation3 + $0xb0] sm:$0xfe] }
 0x263   : > { %v15711_v53 = vadd.f32 %v11649_v12, %v11648_v42  ;;  %v11651_v31 = vpop.f32.mrb[162].mxu0  ;;  %v15722_v58 = vrot.slane %v2270_v62, 1  ;;  %v15724_v16 = vrot.slane %v2273_v56, 2  ;;  %v2103_v42 = vld [vmem:[#allocation3 + $0xa0] sm:$0xfe]  ;;  %v4409_v39 = vadd.f32 %v15650_v35, %v15679_v63 }
 0x264   : > { %18518 = vst [vmem:[#allocation15_spill] sm:$0xff] %v15709_v10  ;;  %v11652_v57 = vpop.f32.mrb[163].mxu0  ;;  %v11754_v40 = vpop.f32.mrb[92].mxu1  ;;  %v1779_v12 = vrot.slane %v1777_v61, 1  ;;  %v1929_v49 = vld [vmem:[#allocation3 + $0xb8] sm:$0x1]  ;;  %v1775_v46 = vor.u32 %v1774_v6, %v1770_v17  ;;  %v4412_v63 = vadd.f32 %v15650_v35, %v15692_v43 }
 0x265   : > { %v15719_v22 = vadd.f32 %v11652_v57, %v11651_v31  ;;  %v11755_v34 = vpop.f32.mrb[93].mxu1  ;;  %v2242_v31 = vor.u32 %v2241_v14, %v2238_v41  ;;  %v1784_v62 = vshll.u32 %v15713_v19, 16  ;;  %v15730_v15 = vrot.slane %v2278_v60, 1  ;;  %v2104_v4 = vld [vmem:[#allocation3 + $0xa8] sm:$0x3] }
 0x266   : > { %v11756_v30 = vadd.f32 %v11755_v34, %v11754_v40  ;;  %v11757_v33 = vpop.f32.mrb[94].mxu1  ;;  %5019 = vmatmul.mubr.bf16.gmra.mrb[12].mxu0 %v15687_v0  ;;  %v15732_v56 = vrot.slane %v2281_v47, 2  ;;  %v1639_v34 = vld [vmem:[#allocation3 + $0xb8] sm:$0x1]  ;;  %v2473_v41 = vld [vmem:[#allocation3 + $0xa0] sm:$0xfc]  ;;  %v2276_v43 = vor.u32 %v15724_v16, %v15722_v58 }
 0x267   : > { %v11758_v57 = vpop.f32.mrb[95].mxu1  ;;  %5026 = vmatprep.mubr.bf16.mxu0 %v2003_v36  ;;  %v2251_v61 = vsel %vm2115_vm4, %v2242_v31, %v2250_v29  ;;  %v2474_v14 = vld [vmem:[#allocation3 + $0xa8] sm:$0x3]  ;;  %v2004_v6 = vrot.slane %v1928_v7, 1  ;;  %v2005_v17 = vrot.slane %v1929_v49, 1  ;;  %v2287_v60 = vshrl.u32 %v2103_v42, 16 }
 0x268   : > { %v15736_v40 = vadd.f32 %v11756_v30, %v4409_v39  ;;  %v11759_v0 = vadd.f32 %v11758_v57, %v11757_v33  ;;  %v2290_v10 = vshll.u32 %v2103_v42, 16  ;;  %v2295_v39 = vshrl.u32 %v2104_v4, 16 }
 0x269   : > { %v11654_v36 = vpop.f32.mrb[164].mxu0  ;;  %5164 = vmatmul.mubr.bf16.gmra.mrb[196].mxu1 %v2251_v61  ;;  %v2298_v30 = vshll.u32 %v2104_v4, 16  ;;  %v1782_v31 = vshrl.u32 %v15713_v19, 16  ;;  %v1786_v7 = vrot.slane %v1784_v62, 1  ;;  %v1789_v49 = vshll.u32 %v1639_v34, 16 }
 0x26a   : > { %v15739_v47 = vadd.f32 %v11759_v0, %v4412_v63  ;;  %v11655_v21 = vpop.f32.mrb[165].mxu0  ;;  %5171 = vmatprep.mubr.bf16.mxu1 %v15675_v54  ;;  %v1780_v42 = vsel %vm1648_vm2, %v1775_v46, %v1779_v12  ;;  %v2284_v63 = vor.u32 %v15732_v56, %v15730_v15  ;;  %v2548_v54 = vrot.slane %v2473_v41, 2  ;;  %v15757_v19 = vld [vmem:[#allocation3 + $0xb0] sm:$0xfe]  ;;  %v15761_v15 = vld [vmem:[#allocation3 + $0xc0] sm:$0xff] }
 0x26b   : > { %v15744_v29 = vadd.f32 %v11655_v21, %v11654_v36  ;;  %v11657_v33 = vpop.f32.mrb[166].mxu0  ;;  %v2549_v0 = vrot.slane %v2474_v14, 2  ;;  %v2006_v21 = vsel %vm1970_vm1, %v2004_v6, %v2005_v17  ;;  %v15753_v16 = vrot.slane %v2287_v60, 1  ;;  %v1931_v6 = vld [vmem:[#allocation3 + $0xc8] sm:$0x1] }
 0x26c   : > { %18519 = vst [vmem:[#allocation16_spill] sm:$0xff] %v15739_v47  ;;  %v11658_v57 = vpop.f32.mrb[167].mxu0  ;;  %v11760_v61 = vpop.f32.mrb[96].mxu1  ;;  %v15755_v4 = vrot.slane %v2290_v10, 2  ;;  %v4417_v62 = vadd.f32 %v15650_v35, %v15711_v53  ;;  %v15763_v56 = vrot.slane %v2295_v39, 1  ;;  %v15765_v34 = vrot.slane %v2298_v30, 2 }
 0x26d   : > { %v15750_v47 = vadd.f32 %v11658_v57, %v11657_v33  ;;  %v11761_v58 = vpop.f32.mrb[97].mxu1  ;;  %v1787_v14 = vor.u32 %v1786_v7, %v1782_v31  ;;  %v1791_v36 = vrot.slane %v1789_v49, 1  ;;  %v1930_v10 = vld [vmem:[#allocation3 + $0xc0] sm:$0xfe]  ;;  %v18520_v17 = vor.u32 %v15683_v1, %v15677_v9  ;;  %v15778_v57 = vld [vmem:[#allocation3 + $0xb0] sm:$0xfc] }
 0x26e   : > { %v11762_v46 = vadd.f32 %v11761_v58, %v11760_v61  ;;  %v11763_v12 = vpop.f32.mrb[98].mxu1  ;;  %5027 = vmatmul.mubr.bf16.gmra.mrb[16].mxu0 %v1780_v42  ;;  %v18521_v53 = vor.u32 %v15639_v38, %v15631_v26  ;;  %v4420_v39 = vadd.f32 %v15650_v35, %v15719_v22  ;;  %v15780_v31 = vld [vmem:[#allocation3 + $0xb8] sm:$0x3]  ;;  %v2304_v7 = vshrl.u32 %v15757_v19, 16 }
 0x26f   : > { %v11764_v41 = vpop.f32.mrb[99].mxu1  ;;  %5034 = vmatprep.mubr.bf16.mxu0 %v2006_v21  ;;  %v18522_v9 = vrot.slane %v15707_v37, 2  ;;  %v18523_v26 = vrot.slane %v15703_v13, 2  ;;  %v1796_v1 = vshll.u32 %v15761_v15, 16  ;;  %v2285_v22 = vsel %vm2115_vm4, %v2276_v43, %v2284_v63 }
 0x270   : > { %v2268_v60 = vsel %vm2115_vm4, %v18521_v53, %v18520_v17  ;;  %v15776_v33 = vadd.f32 %v11762_v46, %v4417_v62  ;;  %v11765_v30 = vadd.f32 %v11764_v41, %v11763_v12  ;;  %v2550_v61 = vsel %vm2517_vm3, %v2548_v54, %v2549_v0  ;;  %v1641_v46 = vld [vmem:[#allocation3 + $0xc8] sm:$0x1]  ;;  %v2106_v53 = vld [vmem:[#allocation3 + $0xb8] sm:$0x3] }
 0x271   : > { %v11788_v49 = vpop.f32.mrb[168].mxu0  ;;  %5172 = vmatmul.mubr.bf16.gmra.mrb[200].mxu1 %v2268_v60  ;;  %v2547_v38 = vsel %vm2517_vm3, %v18523_v26, %v18522_v9  ;;  %v2007_v21 = vrot.slane %v1930_v10, 1  ;;  %v2008_v62 = vrot.slane %v1931_v6, 1  ;;  %v2293_v37 = vor.u32 %v15755_v4, %v15753_v16  ;;  %v1932_v6 = vld [vmem:[#allocation3 + $0xd0] sm:$0xfe] }
 0x272   : > { %v15791_v42 = vadd.f32 %v11765_v30, %v4420_v39  ;;  %v11789_v58 = vpop.f32.mrb[169].mxu0  ;;  %5179 = vmatprep.mubr.bf16.mxu1 %v2547_v38  ;;  %v2307_v43 = vshll.u32 %v15757_v19, 16  ;;  %v1792_v0 = vsel %vm1648_vm2, %v1787_v14, %v1791_v36  ;;  %v1794_v10 = vshrl.u32 %v15761_v15, 16  ;;  %v1933_v19 = vld [vmem:[#allocation3 + $0xd8] sm:$0x1] }
 0x273   : > { %v11790_v12 = vadd.f32 %v11789_v58, %v11788_v49  ;;  %v11791_v13 = vpop.f32.mrb[170].mxu0  ;;  %v2301_v60 = vor.u32 %v15765_v34, %v15763_v56  ;;  %v15802_v16 = vrot.slane %v2304_v7, 1  ;;  %v1798_v49 = vrot.slane %v1796_v1, 1  ;;  %v2107_v56 = vld [vmem:[#allocation3 + $0xc0] sm:$0xfe] }
 0x274   : > { %v11766_v63 = vpop.f32.mrb[100].mxu1  ;;  %v11792_v54 = vpop.f32.mrb[171].mxu0  ;;  %v1801_v9 = vshll.u32 %v1641_v46, 16  ;;  %v4425_v26 = vadd.f32 %v15650_v35, %v15744_v29  ;;  %v2009_v15 = vsel %vm1970_vm1, %v2007_v21, %v2008_v62  ;;  %v2312_v38 = vshrl.u32 %v2106_v53, 16  ;;  %v14222_v58 = vld [vmem:[#allocation3] sm:$0xff] }
 0x275   : > { %v15805_v4 = vadd.f32 %v11790_v12, %v15263_v24  ;;  %v11793_v39 = vadd.f32 %v11792_v54, %v11791_v13  ;;  %v11767_v30 = vpop.f32.mrb[101].mxu1  ;;  %v2010_v7 = vrot.slane %v1932_v6, 1  ;;  %v1808_v1 = vshll.u32 %v14222_v58, 16  ;;  %v2108_v12 = vld [vmem:[#allocation3 + $0xc8] sm:$0x3] }
 0x276   : > { %v11768_v14 = vadd.f32 %v11767_v30, %v11766_v63  ;;  %v11769_v36 = vpop.f32.mrb[102].mxu1  ;;  %5035 = vmatmul.mubr.bf16.gmra.mrb[20].mxu0 %v1792_v0  ;;  %v2315_v46 = vshll.u32 %v2106_v53, 16  ;;  %v4428_v29 = vadd.f32 %v15650_v35, %v15750_v47  ;;  %v2011_v54 = vrot.slane %v1933_v19, 1  ;;  %v1643_v21 = vld [vmem:[#allocation3 + $0xd8] sm:$0x1] }
 0x277   : > { %v15811_v34 = vadd.f32 %v11793_v39, %v15267_v23  ;;  %v11770_v24 = vpop.f32.mrb[103].mxu1  ;;  %5042 = vmatprep.mubr.bf16.mxu0 %v2009_v15  ;;  %v1799_v0 = vor.u32 %v1798_v49, %v1794_v10  ;;  %v1803_v30 = vrot.slane %v1801_v9, 1  ;;  %v15817_v23 = vrot.slane %v2307_v43, 2  ;;  %v1645_v43 = vld [vmem:[#allocation3 + $0xe8] sm:$0x1] }
 0x278   : > { %v15815_v13 = vadd.f32 %v11768_v14, %v4425_v26  ;;  %v11771_v63 = vadd.f32 %v11770_v24, %v11769_v36  ;;  %v2321_v39 = vshrl.u32 %v2107_v56, 16  ;;  %v2324_v53 = vshll.u32 %v2107_v56, 16 }
 0x279   : > { %v11794_v62 = vpop.f32.mrb[172].mxu0  ;;  %5180 = vmatmul.mubr.bf16.gmra.mrb[204].mxu1 %v2285_v22  ;;  %v2329_v41 = vshrl.u32 %v2108_v12, 16  ;;  %v2332_v17 = vshll.u32 %v2108_v12, 16  ;;  %v1806_v26 = vshrl.u32 %v14222_v58, 16  ;;  %v1810_v14 = vrot.slane %v1808_v1, 1 }
 0x27a   : > { %v15819_v6 = vadd.f32 %v11771_v63, %v4428_v29  ;;  %v11795_v15 = vpop.f32.mrb[173].mxu0  ;;  %5187 = vmatprep.mubr.bf16.mxu1 %v2550_v61  ;;  %v1813_v19 = vshll.u32 %v1643_v21, 16  ;;  %v2012_v10 = vsel %vm1970_vm1, %v2010_v7, %v2011_v54  ;;  %v2302_v22 = vsel %vm2115_vm4, %v2293_v37, %v2301_v60  ;;  %v1934_v63 = vld [vmem:[#allocation3 + $0xe0] sm:$0xfe]  ;;  %v1935_v58 = vld [vmem:[#allocation3 + $0xe8] sm:$0x1] }
 0x27b   : > { %v11796_v35 = vadd.f32 %v11795_v15, %v11794_v62  ;;  %v11797_v47 = vpop.f32.mrb[174].mxu0  ;;  %v2314_v49 = vrot.slane %v2312_v38, 1  ;;  %v2317_v9 = vrot.slane %v2315_v46, 2  ;;  %v1804_v12 = vsel %vm1648_vm2, %v1799_v0, %v1803_v30  ;;  %v2477_v7 = vld [vmem:[#allocation3 + $0xc0] sm:$0xfc] }
 0x27c   : > { %v11798_v36 = vpop.f32.mrb[175].mxu0  ;;  %v11900_v24 = vpop.f32.mrb[104].mxu1  ;;  %v15827_v1 = vrot.slane %v2321_v39, 1  ;;  %v2326_v54 = vrot.slane %v2324_v53, 2  ;;  %v2331_v37 = vrot.slane %v2329_v41, 1  ;;  %v2334_v60 = vrot.slane %v2332_v17, 2 }
 0x27d   : > { %v15824_v29 = vadd.f32 %v11796_v35, %v15275_v44  ;;  %v11799_v61 = vadd.f32 %v11798_v36, %v11797_v47  ;;  %v11901_v56 = vpop.f32.mrb[105].mxu1  ;;  %v15832_v46 = vor.u32 %v1810_v14, %v1806_v26  ;;  %v1815_v15 = vrot.slane %v1813_v19, 1  ;;  %v2478_v30 = vld [vmem:[#allocation3 + $0xc8] sm:$0x3] }
 0x27e   : > { %v11902_v21 = vadd.f32 %v11901_v56, %v11900_v24  ;;  %v11903_v62 = vpop.f32.mrb[106].mxu1  ;;  %5043 = vmatmul.mubr.bf16.gmra.mrb[24].mxu0 %v1804_v12  ;;  %v1825_v0 = vshll.u32 %v1645_v43, 16  ;;  %v2013_v47 = vrot.slane %v1934_v63, 1  ;;  %v2014_v36 = vrot.slane %v1935_v58, 1  ;;  %v15847_v43 = vld [vmem:[#allocation3 + $0xf0] sm:$0xfe] }
 0x27f   : > { %v15830_v38 = vadd.f32 %v11799_v61, %v15279_v52  ;;  %v11904_v44 = vpop.f32.mrb[107].mxu1  ;;  %5050 = vmatprep.mubr.bf16.mxu0 %v2012_v10  ;;  %v18524_v41 = vrot.slane %v15780_v31, 2  ;;  %v18525_v52 = vrot.slane %v15778_v57, 2  ;;  %v2310_v53 = vor.u32 %v15817_v23, %v15802_v16  ;;  %v1937_v16 = vld [vmem:[#allocation3 + $0xf8] sm:$0x1] }
 0x280   : > { %v15835_v39 = vadd.f32 %v11902_v21, %v15805_v4  ;;  %v11905_v35 = vadd.f32 %v11904_v44, %v11903_v62  ;;  %v2554_v26 = vrot.slane %v2477_v7, 2  ;;  %v2318_v19 = vor.u32 %v2317_v9, %v2314_v49  ;;  %v2631_v21 = vld [vmem:[#allocation3] sm:$0xfc] }
 0x281   : > { %v11800_v24 = vpop.f32.mrb[176].mxu0  ;;  %5188 = vmatmul.mubr.bf16.gmra.mrb[208].mxu1 %v2302_v22  ;;  %v2553_v17 = vsel %vm2517_vm3, %v18525_v52, %v18524_v41  ;;  %v2555_v10 = vrot.slane %v2478_v30, 2  ;;  %v1647_v22 = vld [vmem:[#allocation3 + $0xf8] sm:$0x1]  ;;  %v2327_v31 = vor.u32 %v2326_v54, %v15827_v1  ;;  %v1816_v56 = vsel %vm1648_vm2, %v15832_v46, %v1815_v15  ;;  %v2632_v54 = vld [vmem:[#allocation3 + $0x8] sm:$0x7] }
 0x282   : > { %v15845_v14 = vadd.f32 %v11905_v35, %v15811_v34  ;;  %v11801_v4 = vpop.f32.mrb[177].mxu0  ;;  %5195 = vmatprep.mubr.bf16.mxu1 %v2553_v17  ;;  %v1827_v12 = vrot.slane %v1825_v0, 1  ;;  %v2335_v23 = vor.u32 %v2334_v60, %v2331_v37  ;;  %v2015_v58 = vsel %vm1970_vm1, %v2013_v47, %v2014_v36  ;;  %v2109_v0 = vld [vmem:[#allocation3 + $0xd0] sm:$0xfe]  ;;  %v2110_v35 = vld [vmem:[#allocation3 + $0xd8] sm:$0x3] }
 0x283   : > { %v11802_v61 = vadd.f32 %v11801_v4, %v11800_v24  ;;  %v11803_v57 = vpop.f32.mrb[178].mxu0  ;;  %v2016_v1 = vrot.slane %v15847_v43, 1  ;;  %v1837_v7 = vshll.u32 %v1647_v22, 16  ;;  %v2319_v15 = vsel %vm2115_vm4, %v2310_v53, %v2318_v19  ;;  %v3001_v41 = vld [vmem:[#allocation3] sm:$0xf8] }
 0x284   : > { %v11804_v63 = vpop.f32.mrb[179].mxu0  ;;  %v11906_v34 = vpop.f32.mrb[108].mxu1  ;;  %v2556_v37 = vsel %vm2517_vm3, %v2554_v26, %v2555_v10  ;;  %v2017_v60 = vrot.slane %v1937_v16, 1  ;;  %v1828_v36 = vsel %vm1648_vm2, %v15832_v46, %v1827_v12  ;;  %v2336_v24 = vsel %vm2115_vm4, %v2327_v31, %v2335_v23  ;;  %v3002_v52 = vld [vmem:[#allocation3 + $0x8] sm:$0x7] }
 0x285   : > { %v15854_v49 = vadd.f32 %v11802_v61, %v15286_v59  ;;  %v11805_v9 = vadd.f32 %v11804_v63, %v11803_v57  ;;  %v11907_v62 = vpop.f32.mrb[109].mxu1  ;;  %v2665_v17 = vshrl.u32 %v2631_v21, 16  ;;  %v2668_v4 = vshll.u32 %v2631_v21, 16  ;;  %v2479_v10 = vld [vmem:[#allocation3 + $0xd0] sm:$0xfc] }
 0x286   : > { %v11908_v44 = vadd.f32 %v11907_v62, %v11906_v34  ;;  %v11909_v30 = vpop.f32.mrb[110].mxu1  ;;  %5051 = vmatmul.mubr.bf16.gmra.mrb[28].mxu0 %v1816_v56  ;;  %v2673_v19 = vshrl.u32 %v2632_v54, 16  ;;  %v2480_v43 = vld [vmem:[#allocation3 + $0xd8] sm:$0x3]  ;;  %v1839_v22 = vrot.slane %v1837_v7, 1  ;;  %v2676_v61 = vshll.u32 %v2632_v54, 16 }
 0x287   : > { %v15860_v59 = vadd.f32 %v11805_v9, %v15290_v2  ;;  %v11910_v47 = vpop.f32.mrb[111].mxu1  ;;  %5058 = vmatprep.mubr.bf16.mxu0 %v2015_v58  ;;  %v2338_v57 = vshrl.u32 %v2109_v0, 16  ;;  %v2341_v56 = vshll.u32 %v2109_v0, 16  ;;  %v3066_v16 = vrot.slane %v3001_v41, 3  ;;  %v2111_v41 = vld [vmem:[#allocation3 + $0xe0] sm:$0xfe] }
 0x288   : > { %v15866_v53 = vadd.f32 %v11908_v44, %v15824_v29  ;;  %v11911_v26 = vadd.f32 %v11910_v47, %v11909_v30  ;;  %v2346_v23 = vshrl.u32 %v2110_v35, 16  ;;  %v2349_v29 = vshll.u32 %v2110_v35, 16 }
 0x289   : > { %v11806_v2 = vpop.f32.mrb[180].mxu0  ;;  %5196 = vmatmul.mubr.bf16.gmra.mrb[212].mxu1 %v2319_v15  ;;  %v3067_v58 = vrot.slane %v3002_v52, 3  ;;  %v2557_v21 = vrot.slane %v2479_v10, 2  ;;  %v2558_v9 = vrot.slane %v2480_v43, 2  ;;  %v2018_v7 = vsel %vm1970_vm1, %v2016_v1, %v2017_v60 }
 0x28a   : > { %v15869_v12 = vadd.f32 %v11911_v26, %v15830_v38  ;;  %v11807_v31 = vpop.f32.mrb[181].mxu0  ;;  %5203 = vmatprep.mubr.bf16.mxu1 %v2556_v37  ;;  %v15872_v54 = vrot.slane %v2665_v17, 2  ;;  %v15874_v30 = vrot.slane %v2668_v4, 3  ;;  %v15876_v38 = vrot.slane %v2673_v19, 2  ;;  %v2112_v17 = vld [vmem:[#allocation3 + $0xe8] sm:$0x3] }
 0x28b   : > { %v11808_v63 = vadd.f32 %v11807_v31, %v11806_v2  ;;  %v11809_v34 = vpop.f32.mrb[182].mxu0  ;;  %v15881_v35 = vrot.slane %v2676_v61, 3  ;;  %v2340_v47 = vrot.slane %v2338_v57, 1  ;;  %v2343_v10 = vrot.slane %v2341_v56, 2  ;;  %v2633_v61 = vld [vmem:[#allocation3 + $0x10] sm:$0xfc] }
 0x28c   : > { %v11810_v62 = vpop.f32.mrb[183].mxu0  ;;  %v11912_v44 = vpop.f32.mrb[112].mxu1  ;;  %v2348_v1 = vrot.slane %v2346_v23, 1  ;;  %v2351_v60 = vrot.slane %v2349_v29, 2  ;;  %v3068_v43 = vsel %vm3065_vm5, %v3066_v16, %v3067_v58  ;;  %v2559_v2 = vsel %vm2517_vm3, %v2557_v21, %v2558_v9  ;;  %v2481_v56 = vld [vmem:[#allocation3 + $0xe0] sm:$0xfc] }
 0x28d   : > { %v15879_v15 = vadd.f32 %v11808_v63, %v15299_v25  ;;  %v11811_v37 = vadd.f32 %v11810_v62, %v11809_v34  ;;  %v11913_v0 = vpop.f32.mrb[113].mxu1  ;;  %v1840_v25 = vsel %vm1648_vm2, %v15832_v46, %v1839_v22  ;;  %v2482_v31 = vld [vmem:[#allocation3 + $0xe8] sm:$0x3]  ;;  %v2355_v23 = vshrl.u32 %v2111_v41, 16  ;;  %v2634_v22 = vld [vmem:[#allocation3 + $0x18] sm:$0x7] }
 0x28e   : > { %v11914_v52 = vadd.f32 %v11913_v0, %v11912_v44  ;;  %v11915_v26 = vpop.f32.mrb[114].mxu1  ;;  %5059 = vmatmul.mubr.bf16.gmra.mrb[32].mxu0 %v1828_v36  ;;  %v2671_v63 = vor.u32 %v15874_v30, %v15872_v54  ;;  %v2679_v46 = vor.u32 %v15881_v35, %v15876_v38  ;;  %v2363_v16 = vshrl.u32 %v2112_v17, 16  ;;  %v3003_v62 = vld [vmem:[#allocation3 + $0x10] sm:$0xf8] }
 0x28f   : > { %v15884_v4 = vadd.f32 %v11811_v37, %v15303_v28  ;;  %v11916_v19 = vpop.f32.mrb[115].mxu1  ;;  %5066 = vmatprep.mubr.bf16.mxu0 %v2018_v7  ;;  %v2358_v28 = vshll.u32 %v2111_v41, 16  ;;  %v2366_v34 = vshll.u32 %v2112_v17, 16  ;;  %v2344_v21 = vor.u32 %v2343_v10, %v2340_v47  ;;  %v3004_v37 = vld [vmem:[#allocation3 + $0x18] sm:$0x7] }
 0x290   : > { %v15891_v57 = vadd.f32 %v11914_v52, %v15854_v49  ;;  %v11917_v36 = vadd.f32 %v11916_v19, %v11915_v26  ;;  %v2352_v9 = vor.u32 %v2351_v60, %v2348_v1  ;;  %v2682_v44 = vshrl.u32 %v2633_v61, 16 }
 0x291   : > { %v11812_v29 = vpop.f32.mrb[184].mxu0  ;;  %5204 = vmatmul.mubr.bf16.gmra.mrb[216].mxu1 %v2336_v24  ;;  %v2685_v0 = vshll.u32 %v2633_v61, 16  ;;  %v2560_v54 = vrot.slane %v2481_v56, 2  ;;  %v2561_v30 = vrot.slane %v2482_v31, 2  ;;  %v2690_v35 = vshrl.u32 %v2634_v22, 16 }
 0x292   : > { %v15898_v49 = vadd.f32 %v11917_v36, %v15860_v59  ;;  %v11813_v58 = vpop.f32.mrb[185].mxu0  ;;  %5211 = vmatprep.mubr.bf16.mxu1 %v2559_v2  ;;  %v2693_v52 = vshll.u32 %v2634_v22, 16  ;;  %v2357_v26 = vrot.slane %v2355_v23, 1  ;;  %v2360_v17 = vrot.slane %v2358_v28, 2  ;;  %v2113_v31 = vld [vmem:[#allocation3 + $0xf0] sm:$0xfe] }
 0x293   : > { %v11814_v7 = vadd.f32 %v11813_v58, %v11812_v29  ;;  %v11815_v24 = vpop.f32.mrb[186].mxu0  ;;  %v2365_v10 = vrot.slane %v2363_v16, 1  ;;  %v2368_v1 = vrot.slane %v2366_v34, 2  ;;  %v2353_v61 = vsel %vm2115_vm4, %v2344_v21, %v2352_v9  ;;  %v2114_v58 = vld [vmem:[#allocation3 + $0xf8] sm:$0x3] }
 0x294   : > { %v11816_v41 = vpop.f32.mrb[187].mxu0  ;;  %v11918_v38 = vpop.f32.mrb[116].mxu1  ;;  %v3069_v36 = vrot.slane %v3003_v62, 3  ;;  %v3070_v56 = vrot.slane %v3004_v37, 3  ;;  %v2684_v28 = vrot.slane %v2682_v44, 2  ;;  %v2562_v22 = vsel %vm2517_vm3, %v2560_v54, %v2561_v30 }
 0x295   : > { %v15901_v59 = vadd.f32 %v11814_v7, %v15327_v11  ;;  %v11817_v19 = vadd.f32 %v11816_v41, %v11815_v24  ;;  %v11919_v47 = vpop.f32.mrb[117].mxu1  ;;  %v2687_v11 = vrot.slane %v2685_v0, 3  ;;  %v2695_v7 = vrot.slane %v2693_v52, 3  ;;  %v2483_v21 = vld [vmem:[#allocation3 + $0xf0] sm:$0xfc] }
 0x296   : > { %v11920_v60 = vadd.f32 %v11919_v47, %v11918_v38  ;;  %v11921_v2 = vpop.f32.mrb[118].mxu1  ;;  %5067 = vmatmul.mubr.bf16.gmra.mrb[36].mxu0 %v1840_v25  ;;  %v2692_v25 = vrot.slane %v2690_v35, 2  ;;  %v2484_v9 = vld [vmem:[#allocation3 + $0xf8] sm:$0x3]  ;;  %v2680_v24 = vsel %vm2663_vm6, %v2671_v63, %v2679_v46  ;;  %v2369_v37 = vor.u32 %v2368_v1, %v2365_v10  ;;  %v2636_v10 = vld [vmem:[#allocation3 + $0x28] sm:$0x7] }
 0x297   : > { %v15905_v29 = vadd.f32 %v11817_v19, %v15346_v20  ;;  %v11922_v23 = vpop.f32.mrb[119].mxu1  ;;  %5268 = vmatprep.mubr.bf16.mxu0 %v3068_v43  ;;  %v2361_v20 = vor.u32 %v2360_v17, %v2357_v26  ;;  %v2635_v43 = vld [vmem:[#allocation3 + $0x20] sm:$0xfc]  ;;  %v2372_v44 = vshrl.u32 %v2113_v31, 16  ;;  %v2380_v30 = vshrl.u32 %v2114_v58, 16 }
 0x298   : > { %v15909_v16 = vadd.f32 %v11920_v60, %v15879_v15  ;;  %v11923_v34 = vadd.f32 %v11922_v23, %v11921_v2  ;;  %v2375_v15 = vshll.u32 %v2113_v31, 16  ;;  %v2383_v41 = vshll.u32 %v2114_v58, 16  ;;  %v3005_v23 = vld [vmem:[#allocation3 + $0x20] sm:$0xf8] }
 0x299   : > { %v11818_v62 = vpop.f32.mrb[188].mxu0  ;;  %5212 = vmatmul.mubr.bf16.gmra.mrb[220].mxu1 %v2353_v61  ;;  %v3071_v52 = vsel %vm3065_vm5, %v3069_v36, %v3070_v56  ;;  %v2563_v19 = vrot.slane %v2483_v21, 2  ;;  %v2564_v47 = vrot.slane %v2484_v9, 2  ;;  %v2688_v26 = vor.u32 %v2687_v11, %v2684_v28 }
 0x29a   : > { %v15913_v0 = vadd.f32 %v11923_v34, %v15884_v4  ;;  %v11819_v54 = vpop.f32.mrb[189].mxu0  ;;  %5219 = vmatprep.mubr.bf16.mxu1 %v2562_v22  ;;  %v2696_v17 = vor.u32 %v2695_v7, %v2692_v25  ;;  %v2699_v1 = vshrl.u32 %v2635_v43, 16  ;;  %v2702_v60 = vshll.u32 %v2635_v43, 16  ;;  %v3006_v22 = vld [vmem:[#allocation3 + $0x28] sm:$0x7] }
 0x29b   : > { %v11820_v38 = vadd.f32 %v11819_v54, %v11818_v62  ;;  %v11821_v35 = vpop.f32.mrb[190].mxu0  ;;  %v2370_v31 = vsel %vm2115_vm4, %v2361_v20, %v2369_v37  ;;  %v2374_v58 = vrot.slane %v2372_v44, 1  ;;  %v2377_v56 = vrot.slane %v2375_v15, 2 }
 0x29c   : > { %v11822_v63 = vpop.f32.mrb[191].mxu0  ;;  %v11924_v46 = vpop.f32.mrb[120].mxu1  ;;  %v2382_v21 = vrot.slane %v2380_v30, 1  ;;  %v2385_v9 = vrot.slane %v2383_v41, 2  ;;  %v2707_v25 = vshrl.u32 %v2636_v10, 16  ;;  %v2710_v7 = vshll.u32 %v2636_v10, 16 }
 0x29d   : > { %v4667_v4 = vadd.f32 %v11820_v38, %v15387_v5  ;;  %v11823_v2 = vadd.f32 %v11822_v63, %v11821_v35  ;;  %v11925_v61 = vpop.f32.mrb[121].mxu1  ;;  %v2565_v5 = vsel %vm2517_vm3, %v2563_v19, %v2564_v47  ;;  %v3072_v37 = vrot.slane %v3005_v23, 3 }
 0x29e   : > { %v11926_v34 = vadd.f32 %v11925_v61, %v11924_v46  ;;  %v11927_v36 = vpop.f32.mrb[122].mxu1  ;;  %5269 = vmatmul.mubr.bf16.vlgmr.msra.gmra.mrb[40].mxu0 %v2680_v24  ;;  %v3073_v43 = vrot.slane %v3006_v22, 3  ;;  %v2697_v24 = vsel %vm2663_vm6, %v2688_v26, %v2696_v17  ;;  %v2701_v15 = vrot.slane %v2699_v1, 2 }
 0x29f   : > { %v4670_v28 = vadd.f32 %v11823_v2, %v15403_v18  ;;  %v11928_v11 = vpop.f32.mrb[123].mxu1  ;;  %5276 = vmatprep.mubr.bf16.mxu0 %v3071_v52  ;;  %v2378_v30 = vor.u32 %v2377_v56, %v2374_v58  ;;  %v2386_v41 = vor.u32 %v2385_v9, %v2382_v21  ;;  %v2704_v52 = vrot.slane %v2702_v60, 3  ;;  %v3008_v58 = vld [vmem:[#allocation3 + $0x38] sm:$0x7] }
 0x2a0   : > { %v15921_v62 = vadd.f32 %v11926_v34, %v15901_v59  ;;  %v11929_v20 = vadd.f32 %v11928_v11, %v11927_v36  ;;  %v2709_v59 = vrot.slane %v2707_v25, 2  ;;  %v2712_v19 = vrot.slane %v2710_v7, 3  ;;  %v2637_v34 = vld [vmem:[#allocation3 + $0x30] sm:$0xfc] }
 0x2a1   : > { %v11824_v44 = vpop.f32.mrb[192].mxu0  ;;  %5220 = vmatmul.mubr.bf16.gmra.mrb[224].mxu1 %v2370_v31  ;;  %v3074_v46 = vsel %vm3065_vm5, %v3072_v37, %v3073_v43  ;;  %v2387_v1 = vsel %vm2115_vm4, %v2378_v30, %v2386_v41  ;;  %v2705_v60 = vor.u32 %v2704_v52, %v2701_v15  ;;  %v3007_v11 = vld [vmem:[#allocation3 + $0x30] sm:$0xf8] }
 0x2a2   : > { %v15925_v54 = vadd.f32 %v11929_v20, %v15905_v29  ;;  %v11825_v18 = vpop.f32.mrb[193].mxu0  ;;  %5227 = vmatprep.mubr.bf16.mxu1 %v2565_v5  ;;  %v2638_v29 = vld [vmem:[#allocation3 + $0x38] sm:$0x7]  ;;  %v2713_v22 = vor.u32 %v2712_v19, %v2709_v59  ;;  %v3076_v5 = vrot.slane %v3008_v58, 3  ;;  %v2716_v20 = vshrl.u32 %v2637_v34, 16 }
 0x2a3   : > { %v11826_v38 = vadd.f32 %v11825_v18, %v11824_v44  ;;  %v11827_v35 = vpop.f32.mrb[194].mxu0  ;;  %v2727_v21 = vshll.u32 %v2638_v29, 16  ;;  %v3075_v18 = vrot.slane %v3007_v11, 3 }
 0x2a4   : > { %v11828_v47 = vpop.f32.mrb[195].mxu0  ;;  %v11930_v63 = vpop.f32.mrb[124].mxu1  ;;  %v2714_v44 = vsel %vm2663_vm6, %v2705_v60, %v2713_v22  ;;  %v2718_v19 = vrot.slane %v2716_v20, 2 }
 0x2a5   : > { %v4675_v26 = vadd.f32 %v11826_v38, %v15440_v32  ;;  %v11829_v17 = vadd.f32 %v11828_v47, %v11827_v35  ;;  %v11931_v10 = vpop.f32.mrb[125].mxu1  ;;  %v2724_v32 = vshrl.u32 %v2638_v29, 16  ;;  %v2729_v30 = vrot.slane %v2727_v21, 3 }
 0x2a6   : > { %v11932_v2 = vadd.f32 %v11931_v10, %v11930_v63  ;;  %v11933_v61 = vpop.f32.mrb[126].mxu1  ;;  %5277 = vmatmul.mubr.bf16.gmra.mrb[44].mxu0 %v2697_v24  ;;  %v2640_v63 = vld [vmem:[#allocation3 + $0x48] sm:$0x7] }
 0x2a7   : > { %v4678_v31 = vadd.f32 %v11829_v17, %v15452_v48  ;;  %v11934_v23 = vpop.f32.mrb[127].mxu1  ;;  %5284 = vmatprep.mubr.bf16.mxu0 %v3074_v46  ;;  %v2719_v48 = vshll.u32 %v2637_v34, 16  ;;  %v2726_v15 = vrot.slane %v2724_v32, 2  ;;  %v3010_v10 = vld [vmem:[#allocation3 + $0x48] sm:$0x7]  ;;  %v2741_v60 = vshrl.u32 %v2640_v63, 16 }
 0x2a8   : > { %v15931_v36 = vadd.f32 %v11932_v2, %v4667_v4  ;;  %v11935_v56 = vadd.f32 %v11934_v23, %v11933_v61  ;;  %v2639_v61 = vld [vmem:[#allocation3 + $0x40] sm:$0xfc]  ;;  %v2744_v22 = vshll.u32 %v2640_v63, 16  ;;  %v3079_v32 = vrot.slane %v3010_v10, 3 }
 0x2a9   : > { %v11830_v9 = vpop.f32.mrb[196].mxu0  ;;  %5228 = vmatmul.mubr.bf16.gmra.mrb[228].mxu1 %v2387_v1  ;;  %v2721_v47 = vrot.slane %v2719_v48, 3  ;;  %v3009_v23 = vld [vmem:[#allocation3 + $0x40] sm:$0xf8]  ;;  %v2736_v11 = vshll.u32 %v2639_v61, 16 }
 0x2aa   : > { %v15933_v25 = vadd.f32 %v11935_v56, %v4670_v28  ;;  %v11831_v7 = vpop.f32.mrb[197].mxu0  ;;  %v3077_v28 = vsel %vm3065_vm5, %v3075_v18, %v3076_v5  ;;  %v3078_v5 = vrot.slane %v3009_v23, 3 }
 0x2ab   : > { %v11832_v37 = vadd.f32 %v11831_v7, %v11830_v9  ;;  %v11833_v43 = vpop.f32.mrb[198].mxu0  ;;  %v2722_v34 = vor.u32 %v2721_v47, %v2718_v19  ;;  %v2733_v9 = vshrl.u32 %v2639_v61, 16 }
 0x2ac   : > { %v11834_v24 = vpop.f32.mrb[199].mxu0  ;;  %v11936_v4 = vpop.f32.mrb[128].mxu1 }
 0x2ad   : > { %v15937_v41 = vadd.f32 %v11832_v37, %v15494_v3  ;;  %v11835_v38 = vadd.f32 %v11834_v24, %v11833_v43  ;;  %v11937_v35 = vpop.f32.mrb[129].mxu1  ;;  %v2730_v3 = vor.u32 %v2729_v30, %v2726_v15  ;;  %v2743_v37 = vrot.slane %v2741_v60, 2  ;;  %v3012_v15 = vld [vmem:[#allocation3 + $0x58] sm:$0x7]  ;;  %v2641_v30 = vld [vmem:[#allocation3 + $0x50] sm:$0xfc] }
 0x2ae   : > { %5285 = vmatmul.mubr.bf16.gmra.mrb[48].mxu0 %v2714_v44  ;;  %v11938_v52 = vadd.f32 %v11937_v35, %v11936_v4  ;;  %v11939_v59 = vpop.f32.mrb[130].mxu1  ;;  %v2746_v43 = vrot.slane %v2744_v22, 3  ;;  %v2642_v44 = vld [vmem:[#allocation3 + $0x58] sm:$0x7]  ;;  %v2735_v18 = vrot.slane %v2733_v9, 2  ;;  %v2738_v4 = vrot.slane %v2736_v11, 3 }
 0x2af   : > { %v15941_v46 = vadd.f32 %v11835_v38, %v15506_v51  ;;  %5292 = vmatprep.mubr.bf16.mxu0 %v3077_v28  ;;  %v11940_v17 = vpop.f32.mrb[131].mxu1  ;;  %v2758_v38 = vshrl.u32 %v2642_v44, 16  ;;  %v2761_v35 = vshll.u32 %v2642_v44, 16  ;;  %v3082_v19 = vrot.slane %v3012_v15, 3  ;;  %v18526_v60 = vld [vmem:[#allocation11_spill] sm:$0xff] }
 0x2b0   : > { %v15943_v29 = vadd.f32 %v11938_v52, %v4675_v26  ;;  %v11941_v2 = vadd.f32 %v11940_v17, %v11939_v59  ;;  %v2731_v26 = vsel %vm2663_vm6, %v2722_v34, %v2730_v3  ;;  %v3011_v52 = vld [vmem:[#allocation3 + $0x50] sm:$0xf8]  ;;  %v2750_v47 = vshrl.u32 %v2641_v30, 16 }
 0x2b1   : > { %v11836_v1 = vpop.f32.mrb[200].mxu0  ;;  %v2753_v63 = vshll.u32 %v2641_v30, 16  ;;  %v2739_v3 = vor.u32 %v2738_v4, %v2735_v18  ;;  %v2763_v23 = vrot.slane %v2761_v35, 3  ;;  %v2643_v4 = vld [vmem:[#allocation3 + $0x60] sm:$0xfc] }
 0x2b2   : > { %v11837_v58 = vpop.f32.mrb[201].mxu0  ;;  %v15945_v56 = vadd.f32 %v11941_v2, %v4678_v31  ;;  %v3080_v31 = vsel %vm3065_vm5, %v3078_v5, %v3079_v32  ;;  %v2752_v11 = vrot.slane %v2750_v47, 2  ;;  %v18527_v5 = vld [vmem:[#allocation12_spill] sm:$0xff]  ;;  %v3013_v30 = vld [vmem:[#allocation3 + $0x60] sm:$0xf8] }
 0x2b3   : > { %v11838_v21 = vadd.f32 %v11837_v58, %v11836_v1  ;;  %v11839_v51 = vpop.f32.mrb[202].mxu0  ;;  %v2760_v1 = vrot.slane %v2758_v38, 2 }
 0x2b4   : > { %v11840_v7 = vpop.f32.mrb[203].mxu0 }
 0x2b5   : > { %v15949_v20 = vadd.f32 %v11838_v21, %v15538_v27  ;;  %v11841_v48 = vadd.f32 %v11840_v7, %v11839_v51  ;;  %v2747_v27 = vor.u32 %v2746_v43, %v2743_v37  ;;  %v2755_v7 = vrot.slane %v2753_v63, 3  ;;  %v3014_v43 = vld [vmem:[#allocation3 + $0x68] sm:$0x7] }
 0x2b6   : > { %5293 = vmatmul.mubr.bf16.gmra.mrb[52].mxu0 %v2731_v26  ;;  %v2644_v26 = vld [vmem:[#allocation3 + $0x68] sm:$0x7]  ;;  %v2767_v63 = vshrl.u32 %v2643_v4, 16 }
 0x2b7   : > { %v15953_v24 = vadd.f32 %v11841_v48, %v15551_v55  ;;  %5300 = vmatprep.mubr.bf16.mxu0 %v3080_v31  ;;  %v3081_v55 = vrot.slane %v3011_v52, 3  ;;  %v2748_v34 = vsel %vm2663_vm6, %v2739_v3, %v2747_v27  ;;  %v2764_v31 = vor.u32 %v2763_v23, %v2760_v1 }
 0x2b8   : > { %v2775_v38 = vshrl.u32 %v2644_v26, 16  ;;  %v2778_v35 = vshll.u32 %v2644_v26, 16  ;;  %v2756_v27 = vor.u32 %v2755_v7, %v2752_v11  ;;  %v3084_v3 = vrot.slane %v3013_v30, 3 }
 0x2b9   : > { %v11842_v28 = vpop.f32.mrb[204].mxu0  ;;  %v3083_v21 = vsel %vm3065_vm5, %v3081_v55, %v3082_v19 }
 0x2ba   : > { %v11843_v59 = vpop.f32.mrb[205].mxu0  ;;  %v2777_v23 = vrot.slane %v2775_v38, 2 }
 0x2bb   : > { %v11844_v17 = vadd.f32 %v11843_v59, %v11842_v28  ;;  %v11845_v10 = vpop.f32.mrb[206].mxu0  ;;  %v3085_v59 = vrot.slane %v3014_v43, 3 }
 0x2bc   : > { %v11846_v2 = vpop.f32.mrb[207].mxu0  ;;  %v11942_v61 = vpop.f32.mrb[132].mxu1 }
 0x2bd   : > { %v15956_v22 = vadd.f32 %v11844_v17, %v18526_v60  ;;  %v11847_v58 = vadd.f32 %v11846_v2, %v11845_v10  ;;  %v11943_v32 = vpop.f32.mrb[133].mxu1  ;;  %v2770_v17 = vshll.u32 %v2643_v4, 16  ;;  %v2780_v60 = vrot.slane %v2778_v35, 3  ;;  %v3015_v4 = vld [vmem:[#allocation3 + $0x70] sm:$0xf8] }
 0x2be   : > { %5301 = vmatmul.mubr.bf16.gmra.mrb[56].mxu0 %v2748_v34  ;;  %v11944_v51 = vadd.f32 %v11943_v32, %v11942_v61  ;;  %v11945_v9 = vpop.f32.mrb[134].mxu1 }
 0x2bf   : > { %v15961_v48 = vadd.f32 %v11847_v58, %v18527_v5  ;;  %5308 = vmatprep.mubr.bf16.mxu0 %v3083_v21  ;;  %v11946_v37 = vpop.f32.mrb[135].mxu1  ;;  %v2646_v58 = vld [vmem:[#allocation3 + $0x78] sm:$0x7]  ;;  %v2645_v21 = vld [vmem:[#allocation3 + $0x70] sm:$0xfc]  ;;  %v2772_v11 = vrot.slane %v2770_v17, 3 }
 0x2c0   : > { %v15964_v44 = vadd.f32 %v11944_v51, %v15937_v41  ;;  %v11947_v18 = vadd.f32 %v11946_v37, %v11945_v9  ;;  %v2765_v41 = vsel %vm2663_vm6, %v2756_v27, %v2764_v31  ;;  %v2769_v9 = vrot.slane %v2767_v63, 2 }
 0x2c1   : > { %v11848_v15 = vpop.f32.mrb[208].mxu0  ;;  %v2792_v5 = vshrl.u32 %v2646_v58, 16  ;;  %v2795_v37 = vshll.u32 %v2646_v58, 16  ;;  %v2784_v38 = vshrl.u32 %v2645_v21, 16  ;;  %v2787_v35 = vshll.u32 %v2645_v21, 16 }
 0x2c2   : > { %v11849_v28 = vpop.f32.mrb[209].mxu0  ;;  %v15967_v52 = vadd.f32 %v11947_v18, %v15941_v46  ;;  %v3086_v46 = vsel %vm3065_vm5, %v3084_v3, %v3085_v59  ;;  %v2781_v18 = vor.u32 %v2780_v60, %v2777_v23  ;;  %v2773_v59 = vor.u32 %v2772_v11, %v2769_v9  ;;  %v3017_v9 = vld [vmem:[#allocation3 + $0x80] sm:$0xf8] }
 0x2c3   : > { %v11850_v19 = vadd.f32 %v11849_v28, %v11848_v15  ;;  %v11851_v47 = vpop.f32.mrb[210].mxu0  ;;  %v3087_v63 = vrot.slane %v3015_v4, 3  ;;  %v2786_v60 = vrot.slane %v2784_v38, 2  ;;  %v2789_v58 = vrot.slane %v2787_v35, 3 }
 0x2c4   : > { %v11852_v10 = vpop.f32.mrb[211].mxu0  ;;  %v11948_v2 = vpop.f32.mrb[136].mxu1 }
 0x2c5   : > { %v15971_v55 = vadd.f32 %v11850_v19, %v15621_v50  ;;  %v11853_v61 = vadd.f32 %v11852_v10, %v11851_v47  ;;  %v11949_v1 = vpop.f32.mrb[137].mxu1  ;;  %v3016_v50 = vld [vmem:[#allocation3 + $0x78] sm:$0x7]  ;;  %v2647_v19 = vld [vmem:[#allocation3 + $0x80] sm:$0xfc]  ;;  %v2794_v10 = vrot.slane %v2792_v5, 2 }
 0x2c6   : > { %5309 = vmatmul.mubr.bf16.gmra.mrb[60].mxu0 %v2765_v41  ;;  %v11950_v34 = vadd.f32 %v11949_v1, %v11948_v2  ;;  %v11951_v32 = vpop.f32.mrb[138].mxu1  ;;  %v3088_v30 = vrot.slane %v3016_v50, 3  ;;  %v2782_v2 = vsel %vm2663_vm6, %v2773_v59, %v2781_v18  ;;  %v2801_v11 = vshrl.u32 %v2647_v19, 16 }
 0x2c7   : > { %v15975_v51 = vadd.f32 %v11853_v61, %v15629_v45  ;;  %5316 = vmatprep.mubr.bf16.mxu0 %v3086_v46  ;;  %v11952_v7 = vpop.f32.mrb[139].mxu1  ;;  %v2648_v46 = vld [vmem:[#allocation3 + $0x88] sm:$0x7] }
 0x2c8   : > { %v11953_v26 = vadd.f32 %v11952_v7, %v11951_v32  ;;  %v15978_v43 = vadd.f32 %v11950_v34, %v15949_v20  ;;  %v2797_v20 = vrot.slane %v2795_v37, 3  ;;  %v18528_v34 = vld [vmem:[#allocation13_spill] sm:$0xff]  ;;  %v2812_v18 = vshll.u32 %v2648_v46, 16 }
 0x2c9   : > { %v11854_v31 = vpop.f32.mrb[212].mxu0 }
 0x2ca   : > { %v11855_v15 = vpop.f32.mrb[213].mxu0  ;;  %v15981_v45 = vadd.f32 %v11953_v26, %v15953_v24  ;;  %v3089_v24 = vsel %vm3065_vm5, %v3087_v63, %v3088_v30  ;;  %v2798_v7 = vor.u32 %v2797_v20, %v2794_v10  ;;  %v2804_v26 = vshll.u32 %v2647_v19, 16  ;;  %v18529_v10 = vld [vmem:[#allocation14_spill] sm:$0xff] }
 0x2cb   : > { %v11856_v28 = vadd.f32 %v11855_v15, %v11854_v31  ;;  %v11857_v27 = vpop.f32.mrb[214].mxu0  ;;  %v2809_v31 = vshrl.u32 %v2648_v46, 16  ;;  %v2790_v15 = vor.u32 %v2789_v58, %v2786_v60  ;;  %v3090_v30 = vrot.slane %v3017_v9, 3  ;;  %v18530_v46 = vld [vmem:[#allocation15_spill] sm:$0xff]  ;;  %v3019_v9 = vld [vmem:[#allocation3 + $0x90] sm:$0xf8] }
 0x2cc   : > { %v11858_v47 = vpop.f32.mrb[215].mxu0  ;;  %v11954_v17 = vpop.f32.mrb[140].mxu1  ;;  %v2803_v19 = vrot.slane %v2801_v11, 2 }
 0x2cd   : > { %v15984_v41 = vadd.f32 %v11856_v28, %v15654_v8  ;;  %v11859_v3 = vadd.f32 %v11858_v47, %v11857_v27  ;;  %v11955_v61 = vpop.f32.mrb[141].mxu1  ;;  %v3018_v8 = vld [vmem:[#allocation3 + $0x88] sm:$0x7]  ;;  %v2799_v47 = vsel %vm2663_vm6, %v2790_v15, %v2798_v7 }
 0x2ce   : > { %5317 = vmatmul.mubr.bf16.gmra.mrb[64].mxu0 %v2782_v2  ;;  %v11956_v1 = vadd.f32 %v11955_v61, %v11954_v17  ;;  %v11957_v23 = vpop.f32.mrb[142].mxu1  ;;  %v3091_v38 = vrot.slane %v3018_v8, 3  ;;  %v2806_v17 = vrot.slane %v2804_v26, 3  ;;  %v2811_v61 = vrot.slane %v2809_v31, 2  ;;  %v3020_v8 = vld [vmem:[#allocation3 + $0x98] sm:$0x7] }
 0x2cf   : > { %v15989_v32 = vadd.f32 %v11859_v3, %v18528_v34  ;;  %5324 = vmatprep.mubr.bf16.mxu0 %v3089_v24  ;;  %v11958_v21 = vpop.f32.mrb[143].mxu1  ;;  %v2814_v24 = vrot.slane %v2812_v18, 3 }
 0x2d0   : > { %v11959_v50 = vadd.f32 %v11958_v21, %v11957_v23  ;;  %v15992_v5 = vadd.f32 %v11956_v1, %v15956_v22  ;;  %v2649_v22 = vld [vmem:[#allocation3 + $0x90] sm:$0xfc]  ;;  %v2650_v1 = vld [vmem:[#allocation3 + $0x98] sm:$0x7]  ;;  %v3092_v23 = vsel %vm3065_vm5, %v3090_v30, %v3091_v38  ;;  %v2807_v18 = vor.u32 %v2806_v17, %v2803_v19 }
 0x2d1   : > { %v11860_v37 = vpop.f32.mrb[216].mxu0  ;;  %v2818_v11 = vshrl.u32 %v2649_v22, 16  ;;  %v2826_v26 = vshrl.u32 %v2650_v1, 16  ;;  %v2829_v15 = vshll.u32 %v2650_v1, 16  ;;  %v3093_v38 = vrot.slane %v3019_v9, 3 }
 0x2d2   : > { %v11861_v4 = vpop.f32.mrb[217].mxu0  ;;  %v15995_v35 = vadd.f32 %v11959_v50, %v15961_v48  ;;  %v14075_v48 = vld [vmem:[%s18465_s5 + $0x140] sm:$0xff]   ;;  %v2821_v50 = vshll.u32 %v2649_v22, 16  ;;  %v2652_v1 = vld [vmem:[#allocation3 + $0xa8] sm:$0x7] }
 0x2d3   : > { %v11862_v28 = vadd.f32 %v11861_v4, %v11860_v37  ;;  %v11863_v27 = vpop.f32.mrb[218].mxu0  ;;  %13148 = vmatprep.subr.bf16.mxu0 %v14075_v48  ;;  %v2815_v4 = vor.u32 %v2814_v24, %v2811_v61  ;;  %v2831_v24 = vrot.slane %v2829_v15, 3  ;;  %v3021_v9 = vld [vmem:[#allocation3 + $0xa0] sm:$0xf8]  ;;  %v2846_v15 = vshll.u32 %v2652_v1, 16 }
 0x2d4   : > { %v11864_v59 = vpop.f32.mrb[219].mxu0  ;;  %v11960_v63 = vpop.f32.mrb[144].mxu1  ;;  %13149 = vmatpush3.bf16.msra.mxu0 %v14075_v48 }
 0x2d5   : > { %v15999_v20 = vadd.f32 %v11862_v28, %v18529_v10  ;;  %v11865_v3 = vadd.f32 %v11864_v59, %v11863_v27  ;;  %v11961_v2 = vpop.f32.mrb[145].mxu1  ;;  %v3094_v28 = vrot.slane %v3020_v8, 3  ;;  %v2816_v17 = vsel %vm2663_vm6, %v2807_v18, %v2815_v4  ;;  %v3022_v8 = vld [vmem:[#allocation3 + $0xa8] sm:$0x7] }
 0x2d6   : > { %5325 = vmatmul.mubr.bf16.gmra.mrb[68].mxu0 %v2799_v47  ;;  %v11962_v60 = vadd.f32 %v11961_v2, %v11960_v63  ;;  %v11963_v58 = vpop.f32.mrb[146].mxu1  ;;  %v2651_v63 = vld [vmem:[#allocation3 + $0xa0] sm:$0xfc]  ;;  %v2823_v2 = vrot.slane %v2821_v50, 3  ;;  %v2843_v50 = vshrl.u32 %v2652_v1, 16 }
 0x2d7   : > { %v16006_v34 = vadd.f32 %v11865_v3, %v18530_v46  ;;  %5332 = vmatprep.mubr.bf16.mxu0 %v3092_v23  ;;  %v11964_v21 = vpop.f32.mrb[147].mxu1  ;;  %v2820_v3 = vrot.slane %v2818_v11, 2  ;;  %v2654_v1 = vld [vmem:[#allocation3 + $0xb8] sm:$0x7] }
 0x2d8   : > { %v11965_v7 = vadd.f32 %v11964_v21, %v11963_v58  ;;  %v16009_v37 = vadd.f32 %v11962_v60, %v15971_v55  ;;  %v2828_v55 = vrot.slane %v2826_v26, 2  ;;  %v18531_v58 = vld [vmem:[#allocation16_spill] sm:$0xff] }
 0x2d9   : > { %v11866_v31 = vpop.f32.mrb[220].mxu0  ;;  %v2824_v18 = vor.u32 %v2823_v2, %v2820_v3 }
 0x2da   : > { %v11867_v30 = vpop.f32.mrb[221].mxu0  ;;  %v16012_v27 = vadd.f32 %v11965_v7, %v15975_v51  ;;  %v3095_v51 = vsel %vm3065_vm5, %v3093_v38, %v3094_v28  ;;  %v2838_v7 = vshll.u32 %v2651_v63, 16  ;;  %v2832_v4 = vor.u32 %v2831_v24, %v2828_v55 }
 0x2db   : > { %v11868_v59 = vadd.f32 %v11867_v30, %v11866_v31  ;;  %v11869_v47 = vpop.f32.mrb[222].mxu0  ;;  %v3096_v38 = vrot.slane %v3021_v9, 3  ;;  %v3097_v28 = vrot.slane %v3022_v8, 3  ;;  %v2848_v24 = vrot.slane %v2846_v15, 3  ;;  %v3024_v8 = vld [vmem:[#allocation3 + $0xb8] sm:$0x7] }
 0x2dc   : > { %v11870_v10 = vpop.f32.mrb[223].mxu0  ;;  %v11966_v22 = vpop.f32.mrb[148].mxu1  ;;  %v2833_v2 = vsel %vm2663_vm6, %v2824_v18, %v2832_v4 }
 0x2dd   : > { %v16015_v48 = vadd.f32 %v11868_v59, %v15736_v40  ;;  %v11871_v19 = vadd.f32 %v11870_v10, %v11869_v47  ;;  %v11967_v61 = vpop.f32.mrb[149].mxu1  ;;  %v2835_v40 = vshrl.u32 %v2651_v63, 16 }
 0x2de   : > { %5333 = vmatmul.mubr.bf16.gmra.mrb[72].mxu0 %v2816_v17  ;;  %v11968_v23 = vadd.f32 %v11967_v61, %v11966_v22  ;;  %v11969_v60 = vpop.f32.mrb[150].mxu1  ;;  %v2653_v22 = vld [vmem:[#allocation3 + $0xb0] sm:$0xfc]  ;;  %v2840_v61 = vrot.slane %v2838_v7, 3 }
 0x2df   : > { %v16020_v46 = vadd.f32 %v11871_v19, %v18531_v58  ;;  %5340 = vmatprep.mubr.bf16.mxu0 %v3095_v51  ;;  %v11970_v21 = vpop.f32.mrb[151].mxu1  ;;  %v2837_v63 = vrot.slane %v2835_v40, 2  ;;  %v2845_v51 = vrot.slane %v2843_v50, 2  ;;  %v2852_v40 = vshrl.u32 %v2653_v22, 16 }
 0x2e0   : > { %v11971_v11 = vadd.f32 %v11970_v21, %v11969_v60  ;;  %v16023_v26 = vadd.f32 %v11968_v23, %v15984_v41  ;;  %v3098_v23 = vsel %vm3065_vm5, %v3096_v38, %v3097_v28  ;;  %v3023_v21 = vld [vmem:[#allocation3 + $0xb0] sm:$0xf8]  ;;  %v2860_v50 = vshrl.u32 %v2654_v1, 16 }
 0x2e1   : > { %v11872_v31 = vpop.f32.mrb[224].mxu0  ;;  %v2841_v15 = vor.u32 %v2840_v61, %v2837_v63  ;;  %v3099_v28 = vrot.slane %v3023_v21, 3 }
 0x2e2   : > { %v11873_v30 = vpop.f32.mrb[225].mxu0  ;;  %v16026_v59 = vadd.f32 %v11971_v11, %v15989_v32  ;;  %v14076_v32 = vld [vmem:[%s18465_s5 + $0x148] sm:$0xff]   ;;  %v2855_v11 = vshll.u32 %v2653_v22, 16  ;;  %v2655_v22 = vld [vmem:[#allocation3 + $0xc0] sm:$0xfc] }
 0x2e3   : > { %v11874_v47 = vadd.f32 %v11873_v30, %v11872_v31  ;;  %v11875_v10 = vpop.f32.mrb[226].mxu0  ;;  %13150 = vmatprep.subr.bf16.mxu0 %v14076_v32  ;;  %v2863_v31 = vshll.u32 %v2654_v1, 16  ;;  %v2849_v30 = vor.u32 %v2848_v24, %v2845_v51  ;;  %v2869_v21 = vshrl.u32 %v2655_v22, 16 }
 0x2e4   : > { %v11876_v19 = vpop.f32.mrb[227].mxu0  ;;  %v11972_v17 = vpop.f32.mrb[152].mxu1  ;;  %13151 = vmatpush3.bf16.msra.mxu0 %v14076_v32  ;;  %v2857_v1 = vrot.slane %v2855_v11, 3  ;;  %v2872_v11 = vshll.u32 %v2655_v22, 16 }
 0x2e5   : > { %v16029_v41 = vadd.f32 %v11874_v47, %v15776_v33  ;;  %v11877_v3 = vadd.f32 %v11876_v19, %v11875_v10  ;;  %v11973_v55 = vpop.f32.mrb[153].mxu1  ;;  %v2850_v61 = vsel %vm2663_vm6, %v2841_v15, %v2849_v30 }
 0x2e6   : > { %5341 = vmatmul.mubr.bf16.gmra.mrb[76].mxu0 %v2833_v2  ;;  %v11974_v60 = vadd.f32 %v11973_v55, %v11972_v17  ;;  %v11975_v58 = vpop.f32.mrb[154].mxu1  ;;  %v2656_v17 = vld [vmem:[#allocation3 + $0xc8] sm:$0x7]  ;;  %v2854_v55 = vrot.slane %v2852_v40, 2 }
 0x2e7   : > { %v16037_v9 = vadd.f32 %v11877_v3, %v15791_v42  ;;  %5348 = vmatprep.mubr.bf16.mxu0 %v3098_v23  ;;  %v11976_v33 = vpop.f32.mrb[155].mxu1  ;;  %v3100_v42 = vrot.slane %v3024_v8, 3  ;;  %v2865_v23 = vrot.slane %v2863_v31, 3  ;;  %v3026_v40 = vld [vmem:[#allocation3 + $0xc8] sm:$0x7] }
 0x2e8   : > { %v11977_v7 = vadd.f32 %v11976_v33, %v11975_v58  ;;  %v16040_v18 = vadd.f32 %v11974_v60, %v15999_v20  ;;  %v2862_v20 = vrot.slane %v2860_v50, 2  ;;  %v3025_v58 = vld [vmem:[#allocation3 + $0xc0] sm:$0xf8]  ;;  %v2858_v50 = vor.u32 %v2857_v1, %v2854_v55 }
 0x2e9   : > { %v11878_v4 = vpop.f32.mrb[228].mxu0 }
 0x2ea   : > { %v11879_v38 = vpop.f32.mrb[229].mxu0  ;;  %v16043_v47 = vadd.f32 %v11977_v7, %v16006_v34  ;;  %v3101_v34 = vsel %vm3065_vm5, %v3099_v28, %v3100_v42  ;;  %v2880_v7 = vshll.u32 %v2656_v17, 16  ;;  %v2866_v31 = vor.u32 %v2865_v23, %v2862_v20  ;;  %v3027_v23 = vld [vmem:[#allocation3 + $0xd0] sm:$0xf8] }
 0x2eb   : > { %v11880_v10 = vadd.f32 %v11879_v38, %v11878_v4  ;;  %v11881_v19 = vpop.f32.mrb[230].mxu0  ;;  %v2657_v38 = vld [vmem:[#allocation3 + $0xd0] sm:$0xfc]  ;;  %v3102_v42 = vrot.slane %v3025_v58, 3 }
 0x2ec   : > { %v11882_v3 = vpop.f32.mrb[231].mxu0  ;;  %v11978_v2 = vpop.f32.mrb[156].mxu1  ;;  %v2882_v55 = vrot.slane %v2880_v7, 3  ;;  %v2867_v20 = vsel %vm2663_vm6, %v2858_v50, %v2866_v31  ;;  %v2889_v58 = vshll.u32 %v2657_v38, 16 }
 0x2ed   : > { %v16046_v32 = vadd.f32 %v11880_v10, %v15815_v13  ;;  %v11883_v63 = vadd.f32 %v11882_v3, %v11881_v19  ;;  %v11979_v51 = vpop.f32.mrb[157].mxu1  ;;  %v2877_v13 = vshrl.u32 %v2656_v17, 16  ;;  %v3103_v10 = vrot.slane %v3026_v40, 3 }
 0x2ee   : > { %5349 = vmatmul.mubr.bf16.gmra.mrb[80].mxu0 %v2850_v61  ;;  %v11980_v24 = vadd.f32 %v11979_v51, %v11978_v2  ;;  %v11981_v60 = vpop.f32.mrb[158].mxu1  ;;  %v2871_v19 = vrot.slane %v2869_v21, 2  ;;  %v2886_v61 = vshrl.u32 %v2657_v38, 16 }
 0x2ef   : > { %v16051_v33 = vadd.f32 %v11883_v63, %v15819_v6  ;;  %5356 = vmatprep.mubr.bf16.mxu0 %v3101_v34  ;;  %v11982_v8 = vpop.f32.mrb[159].mxu1  ;;  %v2658_v6 = vld [vmem:[#allocation3 + $0xd8] sm:$0x7]  ;;  %v2874_v63 = vrot.slane %v2872_v11, 3  ;;  %v2879_v17 = vrot.slane %v2877_v13, 2  ;;  %v3104_v21 = vsel %vm3065_vm5, %v3102_v42, %v3103_v10 }
 0x2f0   : > { %v11983_v4 = vadd.f32 %v11982_v8, %v11981_v60  ;;  %v16054_v15 = vadd.f32 %v11980_v24, %v16015_v48  ;;  %v3028_v60 = vld [vmem:[#allocation3 + $0xd8] sm:$0x7]  ;;  %v2897_v11 = vshll.u32 %v2658_v6, 16  ;;  %v2888_v42 = vrot.slane %v2886_v61, 2 }
 0x2f1   : > { %v12012_v30 = vpop.f32.mrb[232].mxu0  ;;  %v2875_v7 = vor.u32 %v2874_v63, %v2871_v19  ;;  %v2883_v50 = vor.u32 %v2882_v55, %v2879_v17  ;;  %v2891_v10 = vrot.slane %v2889_v58, 3  ;;  %v3029_v55 = vld [vmem:[#allocation3 + $0xe0] sm:$0xf8] }
 0x2f2   : > { %v12013_v28 = vpop.f32.mrb[233].mxu0  ;;  %v16057_v3 = vadd.f32 %v11983_v4, %v16020_v46  ;;  %v2894_v46 = vshrl.u32 %v2658_v6, 16 }
 0x2f3   : > { %v12014_v2 = vadd.f32 %v12013_v28, %v12012_v30  ;;  %v12015_v22 = vpop.f32.mrb[234].mxu0  ;;  %v3105_v30 = vrot.slane %v3027_v23, 3  ;;  %v3106_v28 = vrot.slane %v3028_v60, 3  ;;  %v3030_v23 = vld [vmem:[#allocation3 + $0xe8] sm:$0x7] }
 0x2f4   : > { %v12016_v1 = vpop.f32.mrb[235].mxu0  ;;  %v11984_v48 = vpop.f32.mrb[160].mxu1 }
 0x2f5   : > { %v16061_v51 = vadd.f32 %v12014_v2, %v15835_v39  ;;  %v12017_v34 = vadd.f32 %v12016_v1, %v12015_v22  ;;  %v11985_v24 = vpop.f32.mrb[161].mxu1  ;;  %v2659_v39 = vld [vmem:[#allocation3 + $0xe0] sm:$0xfc]  ;;  %v2660_v2 = vld [vmem:[#allocation3 + $0xe8] sm:$0x7]  ;;  %v2896_v1 = vrot.slane %v2894_v46, 2  ;;  %v3107_v58 = vsel %vm3065_vm5, %v3105_v30, %v3106_v28 }
 0x2f6   : > { %5357 = vmatmul.mubr.bf16.gmra.mrb[84].mxu0 %v2867_v20  ;;  %v11986_v8 = vadd.f32 %v11985_v24, %v11984_v48  ;;  %v11987_v40 = vpop.f32.mrb[162].mxu1  ;;  %v2899_v20 = vrot.slane %v2897_v11, 3  ;;  %v2906_v48 = vshll.u32 %v2659_v39, 16  ;;  %v2884_v24 = vsel %vm2663_vm6, %v2875_v7, %v2883_v50  ;;  %v5440_v46 = vld [vmem:[#allocation6 + $0x10] sm:$0x1] }
 0x2f7   : > { %v16065_v13 = vadd.f32 %v12017_v34, %v15845_v14  ;;  %5364 = vmatprep.mubr.bf16.mxu0 %v3104_v21  ;;  %v11988_v31 = vpop.f32.mrb[163].mxu1  ;;  %v2903_v14 = vshrl.u32 %v2659_v39, 16  ;;  %v2911_v34 = vshrl.u32 %v2660_v2, 16  ;;  %v2914_v11 = vshll.u32 %v2660_v2, 16  ;;  %v14141_v50 = vld [vmem:[%s18465_s5 + $0x210] sm:$0xff]  }
 0x2f8   : > { %v11989_v4 = vadd.f32 %v11988_v31, %v11987_v40  ;;  %v16068_v38 = vadd.f32 %v11986_v8, %v16029_v41  ;;  %v14077_v41 = vld [vmem:[%s18465_s5 + $0x150] sm:$0xff]   ;;  %v5441_v7 = vsel %vm16079_vm9, 0, %v5440_v46  ;;  %v5496_v31 = vld [vmem:[#allocation6 + $0x18] sm:$0x1]  ;;  %v2892_v28 = vor.u32 %v2891_v10, %v2888_v42 }
 0x2f9   : > { %v12018_v22 = vpop.f32.mrb[236].mxu0  ;;  %13152 = vmatprep.subr.bf16.mxu0 %v14077_v41  ;;  %5442 = vst [vmem:[#allocation6 + $0x10] sm:$0x1] %v5441_v7  ;;  %v2900_v2 = vor.u32 %v2899_v20, %v2896_v1  ;;  %v2908_v46 = vrot.slane %v2906_v48, 3  ;;  %v2916_v7 = vrot.slane %v2914_v11, 3 }
 0x2fa   : > { %v12019_v6 = vpop.f32.mrb[237].mxu0  ;;  %v16071_v19 = vadd.f32 %v11989_v4, %v16037_v9  ;;  %13153 = vmatpush3.bf16.msra.mxu0 %v14077_v41  ;;  %v2661_v20 = vld [vmem:[#allocation3 + $0xf0] sm:$0xfc] }
 0x2fb   : > { %v12020_v63 = vadd.f32 %v12019_v6, %v12018_v22  ;;  %v12021_v17 = vpop.f32.mrb[238].mxu0  ;;  %v2901_v1 = vsel %vm2663_vm6, %v2892_v28, %v2900_v2  ;;  %v3031_v11 = vld [vmem:[#allocation3 + $0xf0] sm:$0xf8] }
 0x2fc   : > { %v12022_v61 = vpop.f32.mrb[239].mxu0  ;;  %v11990_v60 = vpop.f32.mrb[164].mxu1 }
 0x2fd   : > { %v16084_v21 = vadd.f32 %v12020_v63, %v15866_v53  ;;  %v12023_v8 = vadd.f32 %v12022_v61, %v12021_v17  ;;  %v11991_v40 = vpop.f32.mrb[165].mxu1  ;;  %v5497_v53 = vsel %vm16090_vm11, 0, %v5496_v31  ;;  %v3108_v63 = vrot.slane %v3029_v55, 3 }
 0x2fe   : > { %5365 = vmatmul.mubr.bf16.gmra.mrb[88].mxu0 %v2884_v24  ;;  %v11992_v39 = vadd.f32 %v11991_v40, %v11990_v60  ;;  %v11993_v4 = vpop.f32.mrb[166].mxu1  ;;  %5498 = vst [vmem:[#allocation6 + $0x18] sm:$0x1] %v5497_v53  ;;  %v3109_v17 = vrot.slane %v3030_v23, 3  ;;  %v2905_v60 = vrot.slane %v2903_v14, 2  ;;  %v2913_v40 = vrot.slane %v2911_v34, 2 }
 0x2ff   : > { %v16097_v30 = vadd.f32 %v12023_v8, %v15869_v12  ;;  %5372 = vmatprep.mubr.bf16.mxu0 %v3107_v58  ;;  %v11994_v22 = vpop.f32.mrb[167].mxu1 }
 0x300   : > { %v11995_v6 = vadd.f32 %v11994_v22, %v11993_v4  ;;  %v16100_v61 = vadd.f32 %v11992_v39, %v16046_v32  ;;  %v3110_v23 = vsel %vm3065_vm5, %v3108_v63, %v3109_v17  ;;  %v2662_v32 = vld [vmem:[#allocation3 + $0xf8] sm:$0x7]  ;;  %v2909_v34 = vor.u32 %v2908_v46, %v2905_v60  ;;  %v14078_v46 = vld [vmem:[%s18465_s5 + $0x100] sm:$0xff]  }
 0x301   : > { %v12024_v24 = vpop.f32.mrb[240].mxu0  ;;  %v2917_v8 = vor.u32 %v2916_v7, %v2913_v40  ;;  %v2920_v4 = vshrl.u32 %v2661_v20, 16  ;;  %v2923_v22 = vshll.u32 %v2661_v20, 16  ;;  %v2931_v63 = vshll.u32 %v2662_v32, 16  ;;  %12332 = vmatprep.subr.bf16.mxu1 %v14078_v46 }
 0x302   : > { %v12025_v31 = vpop.f32.mrb[241].mxu0  ;;  %v16103_v12 = vadd.f32 %v11995_v6, %v16051_v33  ;;  %v3032_v33 = vld [vmem:[#allocation3 + $0xf8] sm:$0x7]  ;;  %v2928_v6 = vshrl.u32 %v2662_v32, 16 }
 0x303   : > { %v12026_v42 = vadd.f32 %v12025_v31, %v12024_v24  ;;  %v12027_v10 = vpop.f32.mrb[242].mxu0  ;;  %v3112_v17 = vrot.slane %v3032_v33, 3  ;;  %v2918_v7 = vsel %vm2663_vm6, %v2909_v34, %v2917_v8  ;;  %v5443_v31 = vld [vmem:[#allocation6 + $0x20] sm:$0x1]  ;;  %v2925_v32 = vrot.slane %v2923_v22, 3 }
 0x304   : > { %v12028_v41 = vpop.f32.mrb[243].mxu0  ;;  %v12124_v55 = vpop.f32.mrb[168].mxu1 }
 0x305   : > { %v16108_v58 = vadd.f32 %v12026_v42, %v15891_v57  ;;  %v12029_v14 = vadd.f32 %v12028_v41, %v12027_v10  ;;  %v12125_v48 = vpop.f32.mrb[169].mxu1  ;;  %v3111_v57 = vrot.slane %v3031_v11, 3  ;;  %v5499_v42 = vld [vmem:[#allocation6 + $0x28] sm:$0x1] }
 0x306   : > { %5373 = vmatmul.mubr.bf16.gmra.mrb[92].mxu0 %v2901_v1  ;;  %v12127_v39 = vpop.f32.mrb[170].mxu1  ;;  %v12126_v53 = vadd.f32 %v12125_v48, %v12124_v55  ;;  %v2922_v1 = vrot.slane %v2920_v4, 2  ;;  %v5500_v41 = vsel %vm16090_vm11, 0, %v5499_v42  ;;  %v2933_v48 = vrot.slane %v2931_v63, 3 }
 0x307   : > { %v16111_v28 = vadd.f32 %v12029_v14, %v15898_v49  ;;  %5380 = vmatprep.mubr.bf16.mxu0 %v3110_v23  ;;  %v12128_v2 = vpop.f32.mrb[171].mxu1  ;;  %v14079_v49 = vld [vmem:[%s18465_s5 + $0xc0] sm:$0xff]   ;;  %v2930_v14 = vrot.slane %v2928_v6, 2  ;;  %5501 = vst [vmem:[#allocation6 + $0x28] sm:$0x1] %v5500_v41 }
 0x308   : > { %v16114_v24 = vadd.f32 %v12126_v53, %v16061_v51  ;;  %v12129_v60 = vadd.f32 %v12128_v2, %v12127_v39  ;;  %v5444_v51 = vsel %vm16079_vm9, 0, %v5443_v31  ;;  %12333 = vmatpush3.bf16.msra.mxu1 %v14079_v49  ;;  %v2926_v22 = vor.u32 %v2925_v32, %v2922_v1  ;;  %v14084_v49 = vld [vmem:[%s18465_s5 + $0x158] sm:$0xff]  }
 0x309   : > { %v12030_v40 = vpop.f32.mrb[244].mxu0  ;;  %5445 = vst [vmem:[#allocation6 + $0x20] sm:$0x1] %v5444_v51  ;;  %v2934_v6 = vor.u32 %v2933_v48, %v2930_v14  ;;  %v14083_v51 = vld [vmem:[%s18465_s5 + $0xd0] sm:$0xff]   ;;  %13154 = vmatprep.subr.bf16.mxu0 %v14084_v49  ;;  %v5502_v41 = vld [vmem:[#allocation6 + $0x38] sm:$0x1] }
 0x30a   : > { %v12031_v10 = vpop.f32.mrb[245].mxu0  ;;  %v16124_v20 = vadd.f32 %v12129_v60, %v16065_v13  ;;  %v3113_v13 = vsel %vm3065_vm5, %v3111_v57, %v3112_v17  ;;  %v14081_v57 = vld [vmem:[%s18465_s5 + $0xc8] sm:$0xff]   ;;  %13155 = vmatpush3.bf16.msra.mxu0 %v14084_v49 }
 0x30b   : > { %v12032_v55 = vadd.f32 %v12031_v10, %v12030_v40  ;;  %v12033_v23 = vpop.f32.mrb[246].mxu0  ;;  %v2935_v1 = vsel %vm2663_vm6, %v2926_v22, %v2934_v6  ;;  %v14086_v22 = vld [vmem:[%s18465_s5 + $0xd8] sm:$0xff]  }
 0x30c   : > { %v12034_v34 = vpop.f32.mrb[247].mxu0  ;;  %v12130_v8 = vpop.f32.mrb[172].mxu1 }
 0x30d   : > { %v16132_v11 = vadd.f32 %v12032_v55, %v15909_v16  ;;  %v12035_v33 = vadd.f32 %v12034_v34, %v12033_v23  ;;  %v12131_v39 = vpop.f32.mrb[173].mxu1  ;;  %v14080_v16 = vld [vmem:[%s18465_s5 + $0x108] sm:$0xff]  }
 0x30e   : > { %5381 = vmatmul.mubr.bf16.gmra.mrb[96].mxu0 %v2918_v7  ;;  %v12133_v4 = vpop.f32.mrb[174].mxu1  ;;  %v12132_v53 = vadd.f32 %v12131_v39, %v12130_v8  ;;  %12334 = vmatprep.subr.bf16.mxu1 %v14080_v16 }
 0x30f   : > { %v16135_v2 = vadd.f32 %v12035_v33, %v15913_v0  ;;  %5388 = vmatprep.mubr.bf16.mxu0 %v3113_v13  ;;  %v12134_v63 = vpop.f32.mrb[175].mxu1  ;;  %v14082_v0 = vld [vmem:[%s18465_s5 + $0x110] sm:$0xff]   ;;  %12335 = vmatpush3.bf16.msra.mxu1 %v14081_v57  ;;  %v5449_v57 = vld [vmem:[#allocation6 + $0x40] sm:$0x1] }
 0x310   : > { %v16138_v60 = vadd.f32 %v12132_v53, %v16084_v21  ;;  %v12135_v46 = vadd.f32 %v12134_v63, %v12133_v4  ;;  %v5446_v21 = vld [vmem:[#allocation6 + $0x30] sm:$0x1]  ;;  %12336 = vmatprep.subr.bf16.mxu1 %v14082_v0  ;;  %v5505_v0 = vld [vmem:[#allocation6 + $0x48] sm:$0x1] }
 0x311   : > { %v12036_v17 = vpop.f32.mrb[248].mxu0  ;;  %v5447_v31 = vsel %vm16079_vm9, 0, %v5446_v21  ;;  %v14088_v21 = vld [vmem:[%s18465_s5 + $0xe0] sm:$0xff]  }
 0x312   : > { %v12037_v40 = vpop.f32.mrb[249].mxu0  ;;  %v16153_v7 = vadd.f32 %v12135_v46, %v16097_v30  ;;  %5448 = vst [vmem:[#allocation6 + $0x30] sm:$0x1] %v5447_v31  ;;  %v5503_v30 = vsel %vm16090_vm11, 0, %v5502_v41 }
 0x313   : > { %v12038_v42 = vadd.f32 %v12037_v40, %v12036_v17  ;;  %v12039_v10 = vpop.f32.mrb[250].mxu0  ;;  %5504 = vst [vmem:[#allocation6 + $0x38] sm:$0x1] %v5503_v30  ;;  %12337 = vmatpush3.bf16.msra.mxu1 %v14083_v51  ;;  %v5506_v40 = vsel %vm16090_vm11, 0, %v5505_v0 }
 0x314   : > { %v12040_v55 = vpop.f32.mrb[251].mxu0  ;;  %v12136_v23 = vpop.f32.mrb[176].mxu1  ;;  %5507 = vst [vmem:[#allocation6 + $0x48] sm:$0x1] %v5506_v40 }
 0x315   : > { %v16164_v32 = vadd.f32 %v12038_v42, %v15921_v62  ;;  %v12041_v14 = vadd.f32 %v12040_v55, %v12039_v10  ;;  %v12137_v48 = vpop.f32.mrb[177].mxu1  ;;  %v14085_v62 = vld [vmem:[%s18465_s5 + $0x118] sm:$0xff]  }
 0x316   : > { %5389 = vmatmul.mubr.bf16.gmra.mrb[100].mxu0 %v2935_v1  ;;  %v12139_v34 = vpop.f32.mrb[178].mxu1  ;;  %v12138_v8 = vadd.f32 %v12137_v48, %v12136_v23  ;;  %12338 = vmatprep.subr.bf16.mxu1 %v14085_v62  ;;  %v14092_v48 = vld [vmem:[%s18465_s5 + $0x168] sm:$0xff]  }
 0x317   : > { %v16167_v13 = vadd.f32 %v12041_v14, %v15925_v54  ;;  %v12140_v33 = vpop.f32.mrb[179].mxu1  ;;  %v14087_v54 = vld [vmem:[%s18465_s5 + $0x120] sm:$0xff]   ;;  %12339 = vmatpush3.bf16.msra.mxu1 %v14086_v22  ;;  %v14091_v14 = vld [vmem:[%s18465_s5 + $0xe8] sm:$0xff]  }
 0x318   : > { %v16170_v39 = vadd.f32 %v12138_v8, %v16108_v58  ;;  %v12141_v4 = vadd.f32 %v12140_v33, %v12139_v34  ;;  %v14089_v58 = vld [vmem:[%s18465_s5 + $0x160] sm:$0xff]   ;;  %12340 = vmatprep.subr.bf16.mxu1 %v14087_v54  ;;  %v14093_v34 = vld [vmem:[%s18465_s5 + $0x130] sm:$0xff]  }
 0x319   : > { %v12042_v53 = vpop.f32.mrb[252].mxu0  ;;  %13156 = vmatprep.subr.bf16.mxu0 %v14089_v58 }
 0x31a   : > { %v12043_v6 = vpop.f32.mrb[253].mxu0  ;;  %v16182_v63 = vadd.f32 %v12141_v4, %v16111_v28  ;;  %v5450_v28 = vsel %vm16079_vm9, 0, %v5449_v57  ;;  %13157 = vmatpush3.bf16.msra.mxu0 %v14089_v58  ;;  %v5452_v4 = vld [vmem:[#allocation6 + $0x50] sm:$0x1] }
 0x31b   : > { %v12044_v46 = vadd.f32 %v12043_v6, %v12042_v53  ;;  %v12045_v16 = vpop.f32.mrb[254].mxu0  ;;  %5451 = vst [vmem:[#allocation6 + $0x40] sm:$0x1] %v5450_v28  ;;  %12341 = vmatpush3.bf16.msra.mxu1 %v14088_v21  ;;  %13158 = vmatprep.subr.bf16.mxu0 %v14092_v48  ;;  %v5508_v53 = vld [vmem:[#allocation6 + $0x58] sm:$0x1]  ;;  %v5453_v54 = vsel %vm16079_vm9, 0, %v5452_v4 }
 0x31c   : > { %v12046_v17 = vpop.f32.mrb[255].mxu0  ;;  %v12142_v49 = vpop.f32.mrb[180].mxu1  ;;  %v5509_v6 = vsel %vm16090_vm11, 0, %v5508_v53  ;;  %5454 = vst [vmem:[#allocation6 + $0x50] sm:$0x1] %v5453_v54 }
 0x31d   : > { %v16195_v31 = vadd.f32 %v12044_v46, %v15931_v36  ;;  %v12047_v42 = vadd.f32 %v12046_v17, %v12045_v16  ;;  %v12143_v10 = vpop.f32.mrb[181].mxu1  ;;  %v14090_v36 = vld [vmem:[%s18465_s5 + $0x128] sm:$0xff]   ;;  %5510 = vst [vmem:[#allocation6 + $0x58] sm:$0x1] %v5509_v6 }
 0x31e   : > { %v12145_v1 = vpop.f32.mrb[182].mxu1  ;;  %v12144_v51 = vadd.f32 %v12143_v10, %v12142_v49  ;;  %12342 = vmatprep.subr.bf16.mxu1 %v14090_v36  ;;  %13159 = vmatpush3.bf16.msra.mxu0 %v14092_v48  ;;  %v14096_v10 = vld [vmem:[%s18465_s5 + $0x138] sm:$0xff]  }
 0x31f   : > { %v16198_v41 = vadd.f32 %v12047_v42, %v15933_v25  ;;  %v12146_v55 = vpop.f32.mrb[183].mxu1  ;;  %12343 = vmatpush3.bf16.msra.mxu1 %v14091_v14 }
 0x320   : > { %v16201_v23 = vadd.f32 %v12144_v51, %v16132_v11  ;;  %v12147_v30 = vadd.f32 %v12146_v55, %v12145_v1  ;;  %v14095_v11 = vld [vmem:[%s18465_s5 + $0x170] sm:$0xff]   ;;  %12344 = vmatprep.subr.bf16.mxu1 %v14093_v34  ;;  %v5455_v51 = vld [vmem:[#allocation6 + $0x60] sm:$0x1]  ;;  %v5511_v55 = vld [vmem:[#allocation6 + $0x68] sm:$0x1] }
 0x321   : > { %v12048_v25 = vpop.f32.mrb[0].mxu0  ;;  %13160 = vmatprep.subr.bf16.mxu0 %v14095_v11  ;;  %v5456_v36 = vsel %vm16079_vm9, 0, %v5455_v51  ;;  %v5512_v14 = vsel %vm16090_vm11, 0, %v5511_v55 }
 0x322   : > { %v12049_v8 = vpop.f32.mrb[1].mxu0  ;;  %v16219_v33 = vadd.f32 %v12147_v30, %v16135_v2  ;;  %v14094_v2 = vld [vmem:[%s18465_s5 + $0xf0] sm:$0xff]   ;;  %13161 = vmatpush3.bf16.msra.mxu0 %v14095_v11  ;;  %5457 = vst [vmem:[#allocation6 + $0x60] sm:$0x1] %v5456_v36  ;;  %5513 = vst [vmem:[#allocation6 + $0x68] sm:$0x1] %v5512_v14 }
 0x323   : > { %v12050_v62 = vadd.f32 %v12049_v8, %v12048_v25  ;;  %v12051_v22 = vpop.f32.mrb[2].mxu0  ;;  %12345 = vmatpush3.bf16.msra.mxu1 %v14094_v2  ;;  %v5458_v2 = vld [vmem:[#allocation6 + $0x70] sm:$0x1]  ;;  %v5461_v14 = vld [vmem:[#allocation6 + $0x80] sm:$0x1] }
 0x324   : > { %v12052_v58 = vpop.f32.mrb[3].mxu0  ;;  %v12148_v46 = vpop.f32.mrb[184].mxu1  ;;  %12346 = vmatprep.subr.bf16.mxu1 %v14096_v10 }
 0x325   : > { %v4997_v16 = vadd.f32 %v12050_v62, %v15943_v29  ;;  %v12053_v57 = vadd.f32 %v12052_v58, %v12051_v22  ;;  %v12149_v0 = vpop.f32.mrb[185].mxu1  ;;  %v14097_v29 = vld [vmem:[%s18465_s5 + $0xf8] sm:$0xff]  }
 0x326   : > { %v12151_v17 = vpop.f32.mrb[186].mxu1  ;;  %v12150_v49 = vadd.f32 %v12149_v0, %v12148_v46 }
 0x327   : > { %v16230_v21 = vadd.f32 %v12053_v57, %v15945_v56  ;;  %v12152_v28 = vpop.f32.mrb[187].mxu1  ;;  %v14098_v56 = vld [vmem:[%s18465_s5 + $0x178] sm:$0xff]   ;;  %12347 = vmatpush3.bf16.msra.mxu1 %v14097_v29 }
 0x328   : > { %v16233_v40 = vadd.f32 %v12150_v49, %v16164_v32  ;;  %v12153_v42 = vadd.f32 %v12152_v28, %v12151_v17  ;;  %13162 = vmatprep.subr.bf16.mxu0 %v14098_v56  ;;  %v5514_v57 = vld [vmem:[#allocation6 + $0x78] sm:$0x1] }
 0x329   : > { %v12054_v1 = vpop.f32.mrb[4].mxu0  ;;  %13163 = vmatpush3.bf16.msra.mxu0 %v14098_v56  ;;  %v5515_v49 = vsel %vm16090_vm11, 0, %v5514_v57 }
 0x32a   : > { %v12055_v30 = vpop.f32.mrb[5].mxu0  ;;  %v16245_v32 = vadd.f32 %v12153_v42, %v16167_v13  ;;  %5516 = vst [vmem:[#allocation6 + $0x78] sm:$0x1] %v5515_v49 }
 0x32b   : > { %v12056_v48 = vadd.f32 %v12055_v30, %v12054_v1  ;;  %v12057_v25 = vpop.f32.mrb[6].mxu0 }
 0x32c   : > { %v12058_v34 = vpop.f32.mrb[7].mxu0  ;;  %v12154_v11 = vpop.f32.mrb[188].mxu1 }
 0x32d   : > { %v5005_v8 = vadd.f32 %v12056_v48, %v15964_v44  ;;  %v12059_v13 = vadd.f32 %v12058_v34, %v12057_v25  ;;  %v12155_v4 = vpop.f32.mrb[189].mxu1  ;;  %v5459_v44 = vsel %vm16079_vm9, 0, %v5458_v2  ;;  %v5517_v48 = vld [vmem:[#allocation6 + $0x88] sm:$0x1]  ;;  %v5462_v34 = vsel %vm16079_vm9, 0, %v5461_v14 }
 0x32e   : > { %v12157_v53 = vpop.f32.mrb[190].mxu1  ;;  %v12156_v62 = vadd.f32 %v12155_v4, %v12154_v11  ;;  %5460 = vst [vmem:[#allocation6 + $0x70] sm:$0x1] %v5459_v44  ;;  %v5518_v11 = vsel %vm16090_vm11, 0, %v5517_v48  ;;  %5463 = vst [vmem:[#allocation6 + $0x80] sm:$0x1] %v5462_v34 }
 0x32f   : > { %v5008_v22 = vadd.f32 %v12059_v13, %v15967_v52  ;;  %v12158_v54 = vpop.f32.mrb[191].mxu1  ;;  %5519 = vst [vmem:[#allocation6 + $0x88] sm:$0x1] %v5518_v11 }
 0x330   : > { %v16254_v6 = vadd.f32 %v12156_v62, %v16195_v31  ;;  %v12159_v58 = vadd.f32 %v12158_v54, %v12157_v53 }
 0x331   : > { %v12060_v46 = vpop.f32.mrb[8].mxu0 }
 0x332   : > { %v12061_v0 = vpop.f32.mrb[9].mxu0  ;;  %v16257_v17 = vadd.f32 %v12159_v58, %v16198_v41 }
 0x333   : > { %v12062_v28 = vadd.f32 %v12061_v0, %v12060_v46  ;;  %v12063_v52 = vpop.f32.mrb[10].mxu0 }
 0x334   : > { %v12064_v31 = vpop.f32.mrb[11].mxu0  ;;  %v12160_v42 = vpop.f32.mrb[192].mxu1 }
 0x335   : > { %v5013_v10 = vadd.f32 %v12062_v28, %v15978_v43  ;;  %v12065_v29 = vadd.f32 %v12064_v31, %v12063_v52  ;;  %v12161_v56 = vpop.f32.mrb[193].mxu1  ;;  %v5520_v28 = vld [vmem:[#allocation6 + $0x98] sm:$0x1] }
 0x336   : > { %v12163_v1 = vpop.f32.mrb[194].mxu1  ;;  %v12162_v51 = vadd.f32 %v12161_v56, %v12160_v42  ;;  %v5521_v42 = vsel %vm16090_vm11, 0, %v5520_v28 }
 0x337   : > { %v5016_v41 = vadd.f32 %v12065_v29, %v15981_v45  ;;  %v12164_v55 = vpop.f32.mrb[195].mxu1  ;;  %5522 = vst [vmem:[#allocation6 + $0x98] sm:$0x1] %v5521_v42 }
 0x338   : > { %v16265_v30 = vadd.f32 %v12162_v51, %v4997_v16  ;;  %v12165_v36 = vadd.f32 %v12164_v55, %v12163_v1 }
 0x339   : > { %v12066_v25 = vpop.f32.mrb[12].mxu0 }
 0x33a   : > { %v12067_v43 = vpop.f32.mrb[13].mxu0  ;;  %v16272_v13 = vadd.f32 %v12165_v36, %v16230_v21  ;;  %v5464_v21 = vld [vmem:[#allocation6 + $0x90] sm:$0x1] }
 0x33b   : > { %v12068_v45 = vadd.f32 %v12067_v43, %v12066_v25  ;;  %v12069_v4 = vpop.f32.mrb[14].mxu0  ;;  %v5465_v31 = vsel %vm16079_vm9, 0, %v5464_v21 }
 0x33c   : > { %v12070_v16 = vpop.f32.mrb[15].mxu0  ;;  %v12166_v53 = vpop.f32.mrb[196].mxu1  ;;  %5466 = vst [vmem:[#allocation6 + $0x90] sm:$0x1] %v5465_v31 }
 0x33d   : > { %v5021_v62 = vadd.f32 %v12068_v45, %v15992_v5  ;;  %v12071_v54 = vadd.f32 %v12070_v16, %v12069_v4  ;;  %v12167_v58 = vpop.f32.mrb[197].mxu1  ;;  %v5467_v45 = vld [vmem:[#allocation6 + $0xa0] sm:$0x1] }
 0x33e   : > { %v12169_v46 = vpop.f32.mrb[198].mxu1  ;;  %v12168_v2 = vadd.f32 %v12167_v58, %v12166_v53  ;;  %v5468_v53 = vsel %vm16079_vm9, 0, %v5467_v45 }
 0x33f   : > { %v5024_v57 = vadd.f32 %v12071_v54, %v15995_v35  ;;  %v12170_v0 = vpop.f32.mrb[199].mxu1  ;;  %v5523_v54 = vld [vmem:[#allocation6 + $0xa8] sm:$0x1]  ;;  %5469 = vst [vmem:[#allocation6 + $0xa0] sm:$0x1] %v5468_v53 }
 0x340   : > { %v16276_v44 = vadd.f32 %v12168_v2, %v5005_v8  ;;  %v12171_v49 = vadd.f32 %v12170_v0, %v12169_v46  ;;  %v5524_v46 = vsel %vm16090_vm11, 0, %v5523_v54 }
 0x341   : > { %v12072_v52 = vpop.f32.mrb[16].mxu0  ;;  %5525 = vst [vmem:[#allocation6 + $0xa8] sm:$0x1] %v5524_v46 }
 0x342   : > { %v12073_v5 = vpop.f32.mrb[17].mxu0  ;;  %v16282_v29 = vadd.f32 %v12171_v49, %v5008_v22 }
 0x343   : > { %v12074_v56 = vadd.f32 %v12073_v5, %v12072_v52  ;;  %v12075_v35 = vpop.f32.mrb[18].mxu0  ;;  %v5470_v5 = vld [vmem:[#allocation6 + $0xb0] sm:$0x1] }
 0x344   : > { %v12076_v1 = vpop.f32.mrb[19].mxu0  ;;  %v12172_v8 = vpop.f32.mrb[200].mxu1 }
 0x345   : > { %v5029_v51 = vadd.f32 %v12074_v56, %v16009_v37  ;;  %v12077_v55 = vadd.f32 %v12076_v1, %v12075_v35  ;;  %v12173_v36 = vpop.f32.mrb[201].mxu1  ;;  %v5526_v56 = vld [vmem:[#allocation6 + $0xb8] sm:$0x1]  ;;  %v5471_v1 = vsel %vm16079_vm9, 0, %v5470_v5 }
 0x346   : > { %v12174_v14 = vadd.f32 %v12173_v36, %v12172_v8  ;;  %v12175_v48 = vpop.f32.mrb[202].mxu1  ;;  %v5527_v8 = vsel %vm16090_vm11, 0, %v5526_v56  ;;  %5472 = vst [vmem:[#allocation6 + $0xb0] sm:$0x1] %v5471_v1 }
 0x347   : > { %v5032_v25 = vadd.f32 %v12077_v55, %v16012_v27  ;;  %v12176_v34 = vpop.f32.mrb[203].mxu1  ;;  %5528 = vst [vmem:[#allocation6 + $0xb8] sm:$0x1] %v5527_v8 }
 0x348   : > { %v12177_v11 = vadd.f32 %v12176_v34, %v12175_v48  ;;  %v16286_v43 = vadd.f32 %v12174_v14, %v5013_v10 }
 0x349   : > { %v12078_v22 = vpop.f32.mrb[20].mxu0 }
 0x34a   : > { %v12079_v4 = vpop.f32.mrb[21].mxu0  ;;  %v16288_v16 = vadd.f32 %v12177_v11, %v5016_v41 }
 0x34b   : > { %v12080_v37 = vadd.f32 %v12079_v4, %v12078_v22  ;;  %v12081_v58 = vpop.f32.mrb[22].mxu0 }
 0x34c   : > { %v12082_v27 = vpop.f32.mrb[23].mxu0  ;;  %v12178_v2 = vpop.f32.mrb[204].mxu1 }
 0x34d   : > { %v5037_v10 = vadd.f32 %v12080_v37, %v16023_v26  ;;  %v12083_v0 = vadd.f32 %v12082_v27, %v12081_v58  ;;  %v12179_v49 = vpop.f32.mrb[205].mxu1  ;;  %v5529_v58 = vld [vmem:[#allocation6 + $0xc8] sm:$0x1] }
 0x34e   : > { %v12180_v21 = vadd.f32 %v12179_v49, %v12178_v2  ;;  %v12181_v41 = vpop.f32.mrb[206].mxu1  ;;  %v5530_v2 = vsel %vm16090_vm11, 0, %v5529_v58 }
 0x34f   : > { %v5040_v28 = vadd.f32 %v12083_v0, %v16026_v59  ;;  %v12182_v52 = vpop.f32.mrb[207].mxu1  ;;  %5531 = vst [vmem:[#allocation6 + $0xc8] sm:$0x1] %v5530_v2 }
 0x350   : > { %v12183_v31 = vadd.f32 %v12182_v52, %v12181_v41  ;;  %v16296_v42 = vadd.f32 %v12180_v21, %v5021_v62 }
 0x351   : > { %v12084_v35 = vpop.f32.mrb[24].mxu0 }
 0x352   : > { %v12085_v26 = vpop.f32.mrb[25].mxu0  ;;  %v16302_v55 = vadd.f32 %v12183_v31, %v5024_v57  ;;  %v5473_v57 = vld [vmem:[#allocation6 + $0xc0] sm:$0x1] }
 0x353   : > { %v12086_v36 = vadd.f32 %v12085_v26, %v12084_v35  ;;  %v12087_v59 = vpop.f32.mrb[26].mxu0  ;;  %v5474_v27 = vsel %vm16079_vm9, 0, %v5473_v57 }
 0x354   : > { %v12088_v14 = vpop.f32.mrb[27].mxu0  ;;  %v12184_v48 = vpop.f32.mrb[208].mxu1  ;;  %5475 = vst [vmem:[#allocation6 + $0xc0] sm:$0x1] %v5474_v27 }
 0x355   : > { %v5045_v62 = vadd.f32 %v12086_v36, %v16040_v18  ;;  %v12089_v34 = vadd.f32 %v12088_v14, %v12087_v59  ;;  %v12185_v11 = vpop.f32.mrb[209].mxu1  ;;  %v16321_v36 = vld [vmem:[%s18465_s5 + $0x80] sm:$0xff]  }
 0x356   : > { %v12186_v22 = vadd.f32 %v12185_v11, %v12184_v48  ;;  %v12187_v45 = vpop.f32.mrb[210].mxu1  ;;  %v5532_v48 = vld [vmem:[#allocation6 + $0xd8] sm:$0x1]  ;;  %13196 = vmatprep.subr.bf16.mxu0 %v16321_v36 }
 0x357   : > { %v5048_v4 = vadd.f32 %v12089_v34, %v16043_v47  ;;  %v12188_v53 = vpop.f32.mrb[211].mxu1 }
 0x358   : > { %v12189_v54 = vadd.f32 %v12188_v53, %v12187_v45  ;;  %v16306_v37 = vadd.f32 %v12186_v22, %v5029_v51 }
 0x359   : > { %v12090_v46 = vpop.f32.mrb[28].mxu0 }
 0x35a   : > { %v12091_v18 = vpop.f32.mrb[29].mxu0  ;;  %v16312_v0 = vadd.f32 %v12189_v54, %v5032_v25 }
 0x35b   : > { %v12092_v49 = vadd.f32 %v12091_v18, %v12090_v46  ;;  %v12093_v47 = vpop.f32.mrb[30].mxu0 }
 0x35c   : > { %v12094_v21 = vpop.f32.mrb[31].mxu0  ;;  %v12190_v41 = vpop.f32.mrb[212].mxu1 }
 0x35d   : > { %v5053_v51 = vadd.f32 %v12092_v49, %v16054_v15  ;;  %v12095_v52 = vadd.f32 %v12094_v21, %v12093_v47  ;;  %v12191_v31 = vpop.f32.mrb[213].mxu1  ;;  %v5476_v15 = vld [vmem:[#allocation6 + $0xd0] sm:$0x1]  ;;  %v5479_v49 = vld [vmem:[#allocation6 + $0xe0] sm:$0x1] }
 0x35e   : > { %v12192_v5 = vadd.f32 %v12191_v31, %v12190_v41  ;;  %v12193_v56 = vpop.f32.mrb[214].mxu1  ;;  %v5535_v47 = vld [vmem:[#allocation6 + $0xe8] sm:$0x1]  ;;  %v5480_v41 = vsel %vm16079_vm9, 0, %v5479_v49 }
 0x35f   : > { %v5056_v35 = vadd.f32 %v12095_v52, %v16057_v3  ;;  %v12194_v1 = vpop.f32.mrb[215].mxu1  ;;  %v5477_v3 = vsel %vm16079_vm9, 0, %v5476_v15  ;;  %v5536_v52 = vsel %vm16090_vm11, 0, %v5535_v47  ;;  %5481 = vst [vmem:[#allocation6 + $0xe0] sm:$0x1] %v5480_v41 }
 0x360   : > { %v12195_v8 = vadd.f32 %v12194_v1, %v12193_v56  ;;  %v16316_v26 = vadd.f32 %v12192_v5, %v5037_v10  ;;  %v5533_v10 = vsel %vm16090_vm11, 0, %v5532_v48  ;;  %5478 = vst [vmem:[#allocation6 + $0xd0] sm:$0x1] %v5477_v3  ;;  %5537 = vst [vmem:[#allocation6 + $0xe8] sm:$0x1] %v5536_v52 }
 0x361   : > { %v12096_v25 = vpop.f32.mrb[32].mxu0  ;;  %5534 = vst [vmem:[#allocation6 + $0xd8] sm:$0x1] %v5533_v10  ;;  %v5538_v10 = vld [vmem:[#allocation6 + $0xf8] sm:$0x1] }
 0x362   : > { %v12097_v59 = vpop.f32.mrb[33].mxu0  ;;  %v16323_v14 = vadd.f32 %v12195_v8, %v5040_v28  ;;  %v16358_v47 = vld [vmem:[%s18467_s7 + $0x4] ss:$0 sm:$0xff] }
 0x363   : > { %v12098_v34 = vadd.f32 %v12097_v59, %v12096_v25  ;;  %v12099_v11 = vpop.f32.mrb[34].mxu0 }
 0x364   : > { %v12100_v22 = vpop.f32.mrb[35].mxu0  ;;  %v12196_v45 = vpop.f32.mrb[216].mxu1 }
 0x365   : > { %v5061_v53 = vadd.f32 %v12098_v34, %v16068_v38  ;;  %v12101_v28 = vadd.f32 %v12100_v22, %v12099_v11  ;;  %v12197_v54 = vpop.f32.mrb[217].mxu1 }
 0x366   : > { %v12198_v57 = vadd.f32 %v12197_v54, %v12196_v45  ;;  %v12199_v58 = vpop.f32.mrb[218].mxu1 }
 0x367   : > { %v5064_v46 = vadd.f32 %v12101_v28, %v16071_v19  ;;  %v12200_v27 = vpop.f32.mrb[219].mxu1 }
 0x368   : > { %v12201_v2 = vadd.f32 %v12200_v27, %v12199_v58  ;;  %v16332_v18 = vadd.f32 %v12198_v57, %v5045_v62 }
 0x369   : > { %v12102_v21 = vpop.f32.mrb[36].mxu0 }
 0x36a   : > { %v12103_v38 = vpop.f32.mrb[37].mxu0  ;;  %v16338_v31 = vadd.f32 %v12201_v2, %v5048_v4  ;;  %v5482_v4 = vld [vmem:[#allocation6 + $0xf0] sm:$0x1] }
 0x36b   : > { %v12104_v5 = vadd.f32 %v12103_v38, %v12102_v21  ;;  %v12105_v19 = vpop.f32.mrb[38].mxu0  ;;  %v5483_v45 = vsel %vm16079_vm9, 0, %v5482_v4 }
 0x36c   : > { %v12106_v56 = vpop.f32.mrb[39].mxu0  ;;  %v12202_v1 = vpop.f32.mrb[220].mxu1  ;;  %5484 = vst [vmem:[#allocation6 + $0xf0] sm:$0x1] %v5483_v45 }
 0x36d   : > { %v5069_v62 = vadd.f32 %v12104_v5, %v16100_v61  ;;  %v12107_v8 = vadd.f32 %v12106_v56, %v12105_v19  ;;  %v12203_v25 = vpop.f32.mrb[221].mxu1  ;;  %v5539_v61 = vsel %vm16090_vm11, 0, %v5538_v10 }
 0x36e   : > { %v12204_v59 = vadd.f32 %v12203_v25, %v12202_v1  ;;  %v12205_v15 = vpop.f32.mrb[222].mxu1  ;;  %5540 = vst [vmem:[#allocation6 + $0xf8] sm:$0x1] %v5539_v61 }
 0x36f   : > { %v16342_v48 = vadd.f32 %v12107_v8, %v16103_v12  ;;  %v12206_v34 = vpop.f32.mrb[223].mxu1 }
 0x370   : > { %v12207_v11 = vadd.f32 %v12206_v34, %v12205_v15  ;;  %v16344_v3 = vadd.f32 %v12204_v59, %v5053_v51  ;;  %v5485_v15 = vld [vmem:[#allocation6 + $0x100] sm:$0x1] }
 0x371   : > { %v12236_v22 = vpop.f32.mrb[40].mxu0  ;;  %v5486_v4 = vsel %vm16079_vm9, 0, %v5485_v15 }
 0x372   : > { %v12237_v28 = vpop.f32.mrb[41].mxu0  ;;  %v16350_v54 = vadd.f32 %v12207_v11, %v5056_v35  ;;  %5487 = vst [vmem:[#allocation6 + $0x100] sm:$0x1] %v5486_v4  ;;  %v18540_v4 = vmov 0 }
 0x373   : > { %v12238_v12 = vadd.f32 %v12237_v28, %v12236_v22  ;;  %v12239_v57 = vpop.f32.mrb[42].mxu0  ;;  %v18541_v4 = vsel %vm16401_vm13, 4294967295, %v18540_v4 }
 0x374   : > { %v12240_v58 = vpop.f32.mrb[43].mxu0  ;;  %v12208_v27 = vpop.f32.mrb[224].mxu1  ;;  %18542 = vst [vmem:[#allocation15_spill] sm:$0xff] %v18541_v4 }
 0x375   : > { %v16353_v51 = vadd.f32 %v12238_v12, %v16114_v24  ;;  %v12241_v2 = vadd.f32 %v12240_v58, %v12239_v57  ;;  %v12209_v49 = vpop.f32.mrb[225].mxu1  ;;  %v16369_v24 = vld [vmem:[%s18467_s7 + $0x5] ss:$0 sm:$0xff] }
 0x376   : > { %v12210_v21 = vadd.f32 %v12209_v49, %v12208_v27  ;;  %v12211_v41 = vpop.f32.mrb[226].mxu1 }
 0x377   : > { %18536 = vst [vmem:[#allocation11_spill] sm:$0xff] %v16353_v51  ;;  %v5547_v35 = vmax.f32 %v16353_v51, 0.0  ;;  %v16362_v52 = vadd.f32 %v12241_v2, %v16124_v20  ;;  %v12212_v38 = vpop.f32.mrb[227].mxu1  ;;  %v5541_v20 = vld [vmem:[#allocation6 + $0x108] sm:$0x1]  ;;  %v5892_v51 = vld [vmem:[#allocation6 + $0xe0] sm:$0xff] }
 0x378   : > { %v12213_v5 = vadd.f32 %v12212_v38, %v12211_v41  ;;  %v16364_v19 = vadd.f32 %v12210_v21, %v5061_v53  ;;  %v5542_v45 = vsel %vm16090_vm11, 0, %v5541_v20 }
 0x379   : > { %18537 = vst [vmem:[#allocation12_spill] sm:$0xff] %v16362_v52  ;;  %v5583_v56 = vmul.f32 %v16358_v47, %v5547_v35  ;;  %v5548_v1 = vmax.f32 %v16362_v52, 0.0  ;;  %v12242_v8 = vpop.f32.mrb[44].mxu0  ;;  %5543 = vst [vmem:[#allocation6 + $0x108] sm:$0x1] %v5542_v45 }
 0x37a   : > { %v12243_v25 = vpop.f32.mrb[45].mxu0  ;;  %v16373_v59 = vadd.f32 %v12213_v5, %v5064_v46 }
 0x37b   : > { %v5584_v34 = vmul.f32 %v16358_v47, %v5548_v1  ;;  %v12244_v11 = vadd.f32 %v12243_v25, %v12242_v8  ;;  %v12245_v53 = vpop.f32.mrb[46].mxu0  ;;  %v5619_v61 = vadd.f32 %v16369_v24, %v5583_v56  ;;  %v5817_v25 = vld [vmem:[#allocation6 + $0x18] sm:$0x1] }
 0x37c   : > { %v12246_v10 = vpop.f32.mrb[47].mxu0  ;;  %v12214_v22 = vpop.f32.mrb[228].mxu1 }
 0x37d   : > { %v5620_v46 = vadd.f32 %v16369_v24, %v5584_v34  ;;  %v16383_v28 = vadd.f32 %v12244_v11, %v16138_v60  ;;  %v12247_v12 = vadd.f32 %v12246_v10, %v12245_v53  ;;  %v12215_v57 = vpop.f32.mrb[229].mxu1  ;;  %v14104_v60 = vld [vmem:[%s18465_s5 + $0x40] sm:$0xff]   ;;  %v5814_v10 = vld [vmem:[#allocation6 + $0x10] sm:$0xff] }
 0x37e   : > { %v12216_v58 = vadd.f32 %v12215_v57, %v12214_v22  ;;  %v12217_v27 = vpop.f32.mrb[230].mxu1  ;;  %12468 = vmatprep.subr.bf16.mxu1 %v14104_v60 }
 0x37f   : > { %18538 = vst [vmem:[#allocation13_spill] sm:$0xff] %v16383_v28  ;;  %v5651_v2 = vpack.c.bf16 %v5620_v46, %v5619_v61  ;;  %v5549_v49 = vmax.f32 %v16383_v28, 0.0  ;;  %v16387_v21 = vadd.f32 %v12247_v12, %v16153_v7  ;;  %v12218_v41 = vpop.f32.mrb[231].mxu1 }
 0x380   : > { %v12219_v35 = vadd.f32 %v12218_v41, %v12217_v27  ;;  %v16389_v38 = vadd.f32 %v12216_v58, %v5069_v62 }
 0x381   : > { %18539 = vst [vmem:[#allocation14_spill] sm:$0xff] %v16387_v21  ;;  %v5668_v5 = vshrl.u32 %v5651_v2, 16  ;;  %v5585_v56 = vmul.f32 %v16358_v47, %v5549_v49  ;;  %v5550_v1 = vmax.f32 %v16387_v21, 0.0  ;;  %v12248_v8 = vpop.f32.mrb[48].mxu0  ;;  %v5671_v62 = vshll.u32 %v5651_v2, 16 }
 0x382   : > { %v12249_v15 = vpop.f32.mrb[49].mxu0  ;;  %v16397_v7 = vadd.f32 %v12219_v35, %v16342_v48 }
 0x383   : > { %v5670_v20 = vrot.slane %v5668_v5, 7  ;;  %v5586_v34 = vmul.f32 %v16358_v47, %v5550_v1  ;;  %v12250_v11 = vadd.f32 %v12249_v15, %v12248_v8  ;;  %v12251_v53 = vpop.f32.mrb[50].mxu0  ;;  %v5621_v22 = vadd.f32 %v16369_v24, %v5585_v56 }
 0x384   : > { %v12252_v45 = vpop.f32.mrb[51].mxu0 }
 0x385   : > { %v5673_v61 = vor.u32 %v5671_v62, %v5670_v20  ;;  %v5818_v48 = vsel %vm16079_vm9, %v5670_v20, %v5817_v25  ;;  %v5622_v46 = vadd.f32 %v16369_v24, %v5586_v34  ;;  %v16410_v12 = vadd.f32 %v12250_v11, %v16170_v39  ;;  %v5823_v39 = vld [vmem:[#allocation6 + $0x28] sm:$0x1]  ;;  %v5820_v34 = vld [vmem:[#allocation6 + $0x20] sm:$0xff] }
 0x386   : > { %5819 = vst [vmem:[#allocation6 + $0x18] sm:$0x1] %v5818_v48  ;;  %v12253_v57 = vadd.f32 %v12252_v45, %v12251_v53 }
 0x387   : > { %18543 = vst [vmem:[#allocation16_spill] sm:$0xff] %v16410_v12  ;;  %v16414_v58 = vsel %vm16401_vm13, %v5673_v61, %v5814_v10  ;;  %v5652_v27 = vpack.c.bf16 %v5622_v46, %v5621_v22  ;;  %v5551_v2 = vmax.f32 %v16410_v12, 0.0 }
 0x388   : > { %5816 = vst [vmem:[#allocation6 + $0x10] sm:$0xff] %v16414_v58  ;;  %v16419_v49 = vadd.f32 %v12253_v57, %v16182_v63  ;;  %v5997_v41 = vshll.u32 %v16414_v58, 16  ;;  %v5995_v53 = vshrl.u32 %v16414_v58, 16 }
 0x389   : > { %v5675_v35 = vshrl.u32 %v5652_v27, 16  ;;  %v12254_v60 = vpop.f32.mrb[52].mxu0  ;;  %v5587_v5 = vmul.f32 %v16358_v47, %v5551_v2  ;;  %v5678_v15 = vshll.u32 %v5652_v27, 16 }
 0x38a   : > { %18544 = vst [vmem:[#allocation17_spill] sm:$0xff] %v16419_v49  ;;  %v5552_v56 = vmax.f32 %v16419_v49, 0.0  ;;  %v12255_v1 = vpop.f32.mrb[53].mxu0  ;;  %v5999_v8 = vrot.slane %v5997_v41, 1 }
 0x38b   : > { %v5677_v25 = vrot.slane %v5675_v35, 7  ;;  %v12256_v20 = vadd.f32 %v12255_v1, %v12254_v60  ;;  %v12257_v62 = vpop.f32.mrb[54].mxu0  ;;  %v5623_v57 = vadd.f32 %v16369_v24, %v5587_v5  ;;  %v5493_v35 = vld [vmem:[#allocation6 + $0x8] sm:$0x1] }
 0x38c   : > { %v5588_v11 = vmul.f32 %v16358_v47, %v5552_v56  ;;  %v12258_v63 = vpop.f32.mrb[55].mxu0  ;;  %v6000_v2 = vor.u32 %v5999_v8, %v5995_v53  ;;  %v5494_v1 = vsel %vm16090_vm11, 0, %v5493_v35 }
 0x38d   : > { %v5680_v10 = vor.u32 %v5678_v15, %v5677_v25  ;;  %v5824_v22 = vsel %vm16079_vm9, %v5677_v25, %v5823_v39  ;;  %v16429_v45 = vadd.f32 %v12256_v20, %v16201_v23  ;;  %v12259_v61 = vadd.f32 %v12258_v63, %v12257_v62  ;;  %v6237_v48 = vld [vmem:[#allocation6 + $0x18] sm:$0x1]  ;;  %5495 = vst [vmem:[#allocation6 + $0x8] sm:$0x1] %v5494_v1 }
 0x38e   : > { %v5949_v46 = vld [vmem:[#allocation6 + $0x18] sm:$0x1]  ;;  %5825 = vst [vmem:[#allocation6 + $0x28] sm:$0x1] %v5824_v22  ;;  %v5624_v27 = vadd.f32 %v16369_v24, %v5588_v11  ;;  %v6310_v8 = vrot.slane %v6237_v48, 1  ;;  %v5826_v48 = vld [vmem:[#allocation6 + $0x30] sm:$0xff] }
 0x38f   : > { %18545 = vst [vmem:[#allocation18_spill] sm:$0xff] %v16429_v45  ;;  %v6002_v41 = vshll.u32 %v5949_v46, 16  ;;  %v16435_v60 = vsel %vm16401_vm13, %v5680_v10, %v5820_v34  ;;  %v5553_v39 = vmax.f32 %v16429_v45, 0.0  ;;  %v16439_v23 = vadd.f32 %v12259_v61, %v16219_v33  ;;  %v6236_v56 = vld [vmem:[#allocation6 + $0x10] sm:$0xfe]  ;;  %v14105_v33 = vld [vmem:[%s18465_s5] sm:$0xff]  }
 0x390   : > { %5822 = vst [vmem:[#allocation6 + $0x20] sm:$0xff] %v16435_v60  ;;  %v5653_v5 = vpack.c.bf16 %v5624_v27, %v5623_v57  ;;  %v6309_v25 = vrot.slane %v6236_v56, 1  ;;  %v6009_v11 = vshll.u32 %v16435_v60, 16  ;;  %v14107_v61 = vld [vmem:[%s18465_s5 + $0x48] sm:$0xff]   ;;  %v5829_v46 = vld [vmem:[#allocation6 + $0x38] sm:$0x1] }
 0x391   : > { %18546 = vst [vmem:[#allocation19_spill] sm:$0xff] %v16439_v23  ;;  %v6004_v15 = vrot.slane %v6002_v41, 1  ;;  %v5589_v20 = vmul.f32 %v16358_v47, %v5553_v39  ;;  %v5554_v62 = vmax.f32 %v16439_v23, 0.0  ;;  %v12260_v34 = vpop.f32.mrb[56].mxu0  ;;  %v5874_v45 = vld [vmem:[#allocation6 + $0xb0] sm:$0xff] }
 0x392   : > { %v5682_v63 = vshrl.u32 %v5653_v5, 16  ;;  %v12261_v53 = vpop.f32.mrb[57].mxu0  ;;  %v16451_v10 = vsel %vm1970_vm1, %v6309_v25, %v6310_v8  ;;  %v6011_v35 = vrot.slane %v6009_v11, 1  ;;  %v5685_v56 = vshll.u32 %v5653_v5, 16  ;;  %v5437_v25 = vld [vmem:[#allocation6] sm:$0x1] }
 0x393   : > { %v16454_v22 = vsel %vm1648_vm2, %v6000_v2, %v6004_v15  ;;  %v5590_v57 = vmul.f32 %v16358_v47, %v5554_v62  ;;  %v12262_v27 = vadd.f32 %v12261_v53, %v12260_v34  ;;  %v12263_v41 = vpop.f32.mrb[58].mxu0  ;;  %13164 = vmatprep.mubr.bf16.mxu0 %v16451_v10  ;;  %v6007_v2 = vshrl.u32 %v16435_v60, 16  ;;  %v14108_v5 = vld [vmem:[%s18465_s5 + $0x8] sm:$0xff]  }
 0x394   : > { %6766 = vmatprep.mubr.bf16.mxu1 %v16454_v22  ;;  %v5684_v39 = vrot.slane %v5682_v63, 7  ;;  %v12264_v1 = vpop.f32.mrb[59].mxu0  ;;  %v5625_v8 = vadd.f32 %v16369_v24, %v5589_v20 }
 0x395   : > { %6767 = vmatmul.mubr.bf16.vlgmr.msra.gmra.mrb[232].mxu1 %v16414_v58  ;;  %v5626_v15 = vadd.f32 %v16369_v24, %v5590_v57  ;;  %v16467_v62 = vadd.f32 %v12262_v27, %v16233_v40  ;;  %v12265_v34 = vadd.f32 %v12264_v1, %v12263_v41  ;;  %v6239_v53 = vld [vmem:[#allocation6 + $0x28] sm:$0x1]  ;;  %v6012_v63 = vor.u32 %v6011_v35, %v6007_v2  ;;  %v14109_v40 = vld [vmem:[%s18465_s5 + $0x50] sm:$0xff]  }
 0x396   : > { %v5951_v49 = vld [vmem:[#allocation6 + $0x28] sm:$0x1]  ;;  %12469 = vmatpush3.bf16.msra.mxu1 %v14105_v33  ;;  %v5687_v11 = vor.u32 %v5685_v56, %v5684_v39  ;;  %v5830_v58 = vsel %vm16079_vm9, %v5684_v39, %v5829_v46  ;;  %v5438_v41 = vsel %vm16079_vm9, 0, %v5437_v25 }
 0x397   : > { %18547 = vst [vmem:[#allocation20_spill] sm:$0xff] %v16467_v62  ;;  %v6014_v23 = vshll.u32 %v5951_v49, 16  ;;  %12470 = vmatprep.subr.bf16.mxu1 %v14107_v61  ;;  %5831 = vst [vmem:[#allocation6 + $0x38] sm:$0x1] %v5830_v58  ;;  %v5654_v20 = vpack.c.bf16 %v5626_v15, %v5625_v8  ;;  %v5555_v57 = vmax.f32 %v16467_v62, 0.0  ;;  %v16479_v33 = vadd.f32 %v12265_v34, %v16245_v32  ;;  %v14100_v2 = vld [vmem:[%s18465_s5 + $0x88] sm:$0xff]  }
 0x398   : > { %v6238_v27 = vld [vmem:[#allocation6 + $0x20] sm:$0xfe]  ;;  %v16485_v46 = vsel %vm16401_vm13, %v5687_v11, %v5826_v48  ;;  %v6313_v61 = vrot.slane %v6239_v53, 1  ;;  %5439 = vst [vmem:[#allocation6] sm:$0x1] %v5438_v41  ;;  %v14110_v34 = vld [vmem:[%s18465_s5 + $0x10] sm:$0xff]  }
 0x399   : > { %18548 = vst [vmem:[#allocation21_spill] sm:$0xff] %v16479_v33  ;;  %v6312_v49 = vrot.slane %v6238_v27, 1  ;;  %v6016_v35 = vrot.slane %v6014_v23, 1  ;;  %5828 = vst [vmem:[#allocation6 + $0x30] sm:$0xff] %v16485_v46  ;;  %v5689_v39 = vshrl.u32 %v5654_v20, 16  ;;  %v5591_v56 = vmul.f32 %v16358_v47, %v5555_v57  ;;  %v12266_v1 = vpop.f32.mrb[60].mxu0 }
 0x39a   : > { %v5556_v32 = vmax.f32 %v16479_v33, 0.0  ;;  %12471 = vmatpush3.bf16.msra.mxu1 %v14108_v5  ;;  %v5835_v25 = vld [vmem:[#allocation6 + $0x48] sm:$0x1]  ;;  %v12267_v48 = vpop.f32.mrb[61].mxu0  ;;  %v6021_v15 = vshll.u32 %v16485_v46, 16  ;;  %v5692_v11 = vshll.u32 %v5654_v20, 16 }
 0x39b   : > { %v16494_v8 = vsel %vm1970_vm1, %v6312_v49, %v6313_v61  ;;  %v16497_v23 = vsel %vm1648_vm2, %v6012_v63, %v6016_v35  ;;  %12472 = vmatprep.subr.bf16.mxu1 %v14109_v40  ;;  %v5691_v53 = vrot.slane %v5689_v39, 7  ;;  %v12268_v5 = vadd.f32 %v12267_v48, %v12266_v1  ;;  %v12269_v57 = vpop.f32.mrb[62].mxu0  ;;  %v14112_v63 = vld [vmem:[%s18465_s5 + $0x58] sm:$0xff]   ;;  %v5832_v27 = vld [vmem:[#allocation6 + $0x40] sm:$0xff] }
 0x39c   : > { %v5592_v58 = vmul.f32 %v16358_v47, %v5556_v32  ;;  %13165 = vmatmul.mubr.bf16.vlgmr.msra.gmra.mrb[104].mxu0 %v16494_v8  ;;  %6774 = vmatprep.mubr.bf16.mxu1 %v16497_v23  ;;  %v5627_v40 = vadd.f32 %v16369_v24, %v5591_v56  ;;  %v12270_v41 = vpop.f32.mrb[63].mxu0  ;;  %v6023_v49 = vrot.slane %v6021_v15, 1  ;;  %v14101_v56 = vld [vmem:[%s18465_s5 + $0x90] sm:$0xff]   ;;  %v6019_v15 = vshrl.u32 %v16485_v46, 16 }
 0x39d   : > { %6775 = vmatmul.mubr.bf16.gmra.mrb[236].mxu1 %v16435_v60  ;;  %13197 = vmatpush3.bf16.msra.mxu0 %v16321_v36  ;;  %v5694_v20 = vor.u32 %v5692_v11, %v5691_v53  ;;  %v5836_v61 = vsel %vm16079_vm9, %v5691_v53, %v5835_v25  ;;  %v16516_v39 = vadd.f32 %v12268_v5, %v16254_v6  ;;  %v14113_v36 = vld [vmem:[%s18465_s5 + $0x18] sm:$0xff]   ;;  %v14114_v53 = vld [vmem:[%s18465_s5 + $0x60] sm:$0xff]  }
 0x39e   : > { %v5628_v35 = vadd.f32 %v16369_v24, %v5592_v58  ;;  %13198 = vmatprep.subr.bf16.mxu0 %v14100_v2  ;;  %5837 = vst [vmem:[#allocation6 + $0x48] sm:$0x1] %v5836_v61  ;;  %v12271_v32 = vadd.f32 %v12270_v41, %v12269_v57  ;;  %v6241_v60 = vld [vmem:[#allocation6 + $0x38] sm:$0x1]  ;;  %12473 = vmatpush3.bf16.msra.mxu1 %v14110_v34 }
 0x39f   : > { %18549 = vst [vmem:[#allocation22_spill] sm:$0xff] %v16516_v39  ;;  %v5953_v1 = vld [vmem:[#allocation6 + $0x38] sm:$0x1]  ;;  %v16526_v25 = vsel %vm16401_vm13, %v5694_v20, %v5832_v27  ;;  %v5557_v48 = vmax.f32 %v16516_v39, 0.0  ;;  %12474 = vmatprep.subr.bf16.mxu1 %v14112_v63  ;;  %v6316_v20 = vrot.slane %v6241_v60, 1  ;;  %v6024_v63 = vor.u32 %v6023_v49, %v6019_v15  ;;  %v14115_v60 = vld [vmem:[%s18465_s5 + $0x20] sm:$0xff]  }
 0x3a0   : > { %v5655_v6 = vpack.c.bf16 %v5628_v35, %v5627_v40  ;;  %5834 = vst [vmem:[#allocation6 + $0x40] sm:$0xff] %v16526_v25  ;;  %v16535_v34 = vadd.f32 %v12271_v32, %v16257_v17  ;;  %v6240_v11 = vld [vmem:[#allocation6 + $0x30] sm:$0xfe]  ;;  %v6026_v58 = vshll.u32 %v5953_v1, 16  ;;  %v6033_v5 = vshll.u32 %v16526_v25, 16  ;;  %v14102_v32 = vld [vmem:[%s18465_s5 + $0x98] sm:$0xff]  }
 0x3a1   : > { %13199 = vmatpush3.bf16.msra.mxu0 %v14100_v2  ;;  %v5841_v27 = vld [vmem:[#allocation6 + $0x58] sm:$0x1]  ;;  %v12272_v40 = vpop.f32.mrb[64].mxu0  ;;  %v6315_v41 = vrot.slane %v6240_v11, 1  ;;  %v5593_v35 = vmul.f32 %v16358_v47, %v5557_v48 }
 0x3a2   : > { %18550 = vst [vmem:[#allocation23_spill] sm:$0xff] %v16535_v34  ;;  %v5696_v57 = vshrl.u32 %v5655_v6, 16  ;;  %13200 = vmatprep.subr.bf16.mxu0 %v14101_v56  ;;  %v5699_v61 = vshll.u32 %v5655_v6, 16  ;;  %v5558_v33 = vmax.f32 %v16535_v34, 0.0  ;;  %v12273_v62 = vpop.f32.mrb[65].mxu0  ;;  %v6028_v17 = vrot.slane %v6026_v58, 1  ;;  %12475 = vmatpush3.bf16.msra.mxu1 %v14113_v36 }
 0x3a3   : > { %v12274_v1 = vadd.f32 %v12273_v62, %v12272_v40  ;;  %v12275_v39 = vpop.f32.mrb[66].mxu0  ;;  %v16544_v11 = vsel %vm1970_vm1, %v6315_v41, %v6316_v20  ;;  %v6035_v49 = vrot.slane %v6033_v5, 1  ;;  %12476 = vmatprep.subr.bf16.mxu1 %v14114_v53  ;;  %v5838_v6 = vld [vmem:[#allocation6 + $0x50] sm:$0xff]  ;;  %v6031_v62 = vshrl.u32 %v16526_v25, 16  ;;  %v14117_v53 = vld [vmem:[%s18465_s5 + $0x68] sm:$0xff]  }
 0x3a4   : > { %v5698_v2 = vrot.slane %v5696_v57, 7  ;;  %v5594_v48 = vmul.f32 %v16358_v47, %v5558_v33  ;;  %13168 = vmatprep.mubr.bf16.mxu0 %v16544_v11  ;;  %v12276_v15 = vpop.f32.mrb[67].mxu0  ;;  %v16552_v36 = vsel %vm1648_vm2, %v6024_v63, %v6028_v17  ;;  %v5629_v20 = vadd.f32 %v16369_v24, %v5593_v35 }
 0x3a5   : > { %13201 = vmatpush3.bf16.msra.mxu0 %v14101_v56  ;;  %v16561_v57 = vadd.f32 %v12274_v1, %v16265_v30  ;;  %v12277_v33 = vadd.f32 %v12276_v15, %v12275_v39  ;;  %6782 = vmatprep.mubr.bf16.mxu1 %v16552_v36  ;;  %v6243_v40 = vld [vmem:[#allocation6 + $0x48] sm:$0x1]  ;;  %v14103_v56 = vld [vmem:[%s18465_s5 + $0xa0] sm:$0xff]  }
 0x3a6   : > { %v5701_v58 = vor.u32 %v5699_v61, %v5698_v2  ;;  %v5842_v5 = vsel %vm16079_vm9, %v5698_v2, %v5841_v27  ;;  %v5955_v41 = vld [vmem:[#allocation6 + $0x48] sm:$0x1]  ;;  %v5630_v63 = vadd.f32 %v16369_v24, %v5594_v48  ;;  %6783 = vmatmul.mubr.bf16.gmra.mrb[240].mxu1 %v16485_v46  ;;  %13202 = vmatprep.subr.bf16.mxu0 %v14102_v32  ;;  %v6319_v48 = vrot.slane %v6243_v40, 1  ;;  %v5844_v40 = vld [vmem:[#allocation6 + $0x60] sm:$0xff] }
 0x3a7   : > { %18551 = vst [vmem:[#allocation24_spill] sm:$0xff] %v16561_v57  ;;  %5843 = vst [vmem:[#allocation6 + $0x58] sm:$0x1] %v5842_v5  ;;  %v6038_v27 = vshll.u32 %v5955_v41, 16  ;;  %v5559_v39 = vmax.f32 %v16561_v57, 0.0  ;;  %v16576_v61 = vadd.f32 %v12277_v33, %v16272_v13  ;;  %v6036_v2 = vor.u32 %v6035_v49, %v6031_v62  ;;  %12477 = vmatpush3.bf16.msra.mxu1 %v14115_v60  ;;  %v14106_v60 = vld [vmem:[%s18465_s5 + $0xa8] sm:$0xff]  }
 0x3a8   : > { %v16572_v30 = vsel %vm16401_vm13, %v5701_v58, %v5838_v6  ;;  %v6242_v17 = vld [vmem:[#allocation6 + $0x40] sm:$0xfe]  ;;  %v5656_v35 = vpack.c.bf16 %v5630_v63, %v5629_v20  ;;  %12478 = vmatprep.subr.bf16.mxu1 %v14117_v53  ;;  %v14118_v6 = vld [vmem:[%s18465_s5 + $0x28] sm:$0xff]   ;;  %v14119_v33 = vld [vmem:[%s18465_s5 + $0x70] sm:$0xff]  }
 0x3a9   : > { %18552 = vst [vmem:[#allocation25_spill] sm:$0xff] %v16576_v61  ;;  %5840 = vst [vmem:[#allocation6 + $0x50] sm:$0xff] %v16572_v30  ;;  %v6318_v1 = vrot.slane %v6242_v17, 1  ;;  %v6040_v46 = vrot.slane %v6038_v27, 1  ;;  %13203 = vmatpush3.bf16.msra.mxu0 %v14102_v32  ;;  %v5595_v15 = vmul.f32 %v16358_v47, %v5559_v39  ;;  %v5560_v13 = vmax.f32 %v16576_v61, 0.0  ;;  %v12278_v58 = vpop.f32.mrb[68].mxu0 }
 0x3aa   : > { %v6045_v49 = vshll.u32 %v16572_v30, 16  ;;  %13204 = vmatprep.subr.bf16.mxu0 %v14103_v56  ;;  %v5703_v62 = vshrl.u32 %v5656_v35, 16  ;;  %v12279_v5 = vpop.f32.mrb[69].mxu0  ;;  %v5847_v41 = vld [vmem:[#allocation6 + $0x68] sm:$0x1] }
 0x3ab   : > { %v16589_v32 = vsel %vm1970_vm1, %v6318_v1, %v6319_v48  ;;  %v16592_v53 = vsel %vm1648_vm2, %v6036_v2, %v6040_v46  ;;  %v5596_v20 = vmul.f32 %v16358_v47, %v5560_v13  ;;  %v12280_v63 = vadd.f32 %v12279_v5, %v12278_v58  ;;  %v12281_v27 = vpop.f32.mrb[70].mxu0  ;;  %v14111_v46 = vld [vmem:[%s18465_s5 + $0xb0] sm:$0xff]   ;;  %12479 = vmatpush3.bf16.msra.mxu1 %v14118_v6 }
 0x3ac   : > { %13169 = vmatmul.mubr.bf16.gmra.mrb[108].mxu0 %v16589_v32  ;;  %6790 = vmatprep.mubr.bf16.mxu1 %v16592_v53  ;;  %v6047_v39 = vrot.slane %v6045_v49, 1  ;;  %v5705_v17 = vrot.slane %v5703_v62, 7  ;;  %v5706_v1 = vshll.u32 %v5656_v35, 16  ;;  %v12282_v48 = vpop.f32.mrb[71].mxu0  ;;  %v6043_v2 = vshrl.u32 %v16572_v30, 16  ;;  %v14120_v13 = vld [vmem:[%s18465_s5 + $0x30] sm:$0xff]  }
 0x3ad   : > { %13205 = vmatpush3.bf16.msra.mxu0 %v14103_v56  ;;  %v5631_v58 = vadd.f32 %v16369_v24, %v5595_v15  ;;  %v5632_v5 = vadd.f32 %v16369_v24, %v5596_v20  ;;  %v16610_v49 = vadd.f32 %v12280_v63, %v16276_v44  ;;  %v12283_v35 = vadd.f32 %v12282_v48, %v12281_v27  ;;  %v14122_v56 = vld [vmem:[%s18465_s5 + $0x78] sm:$0xff]  }
 0x3ae   : > { %v6245_v62 = vld [vmem:[#allocation6 + $0x58] sm:$0x1]  ;;  %13206 = vmatprep.subr.bf16.mxu0 %v14106_v60  ;;  %v5708_v6 = vor.u32 %v5706_v1, %v5705_v17  ;;  %v5848_v57 = vsel %vm16079_vm9, %v5705_v17, %v5847_v41  ;;  %6791 = vmatmul.mubr.bf16.gmra.mrb[244].mxu1 %v16526_v25  ;;  %v6048_v48 = vor.u32 %v6047_v39, %v6043_v2 }
 0x3af   : > { %18553 = vst [vmem:[#allocation26_spill] sm:$0xff] %v16610_v49  ;;  %v5957_v61 = vld [vmem:[#allocation6 + $0x58] sm:$0x1]  ;;  %12480 = vmatprep.subr.bf16.mxu1 %v14119_v33  ;;  %5849 = vst [vmem:[#allocation6 + $0x68] sm:$0x1] %v5848_v57  ;;  %v5657_v20 = vpack.c.bf16 %v5632_v5, %v5631_v58  ;;  %v5561_v44 = vmax.f32 %v16610_v49, 0.0  ;;  %v16620_v63 = vadd.f32 %v12283_v35, %v16282_v29 }
 0x3b0   : > { %v6050_v15 = vshll.u32 %v5957_v61, 16  ;;  %v6244_v27 = vld [vmem:[#allocation6 + $0x50] sm:$0xfe]  ;;  %v16624_v34 = vsel %vm16401_vm13, %v5708_v6, %v5844_v40  ;;  %v6322_v12 = vrot.slane %v6245_v62, 1  ;;  %12481 = vmatpush3.bf16.msra.mxu1 %v14120_v13  ;;  %v14124_v25 = vld [vmem:[%s18465_s5 + $0x38] sm:$0xff]  }
 0x3b1   : > { %18554 = vst [vmem:[#allocation27_spill] sm:$0xff] %v16620_v63  ;;  %v6321_v1 = vrot.slane %v6244_v27, 1  ;;  %13207 = vmatpush3.bf16.msra.mxu0 %v14106_v60  ;;  %5846 = vst [vmem:[#allocation6 + $0x60] sm:$0xff] %v16624_v34  ;;  %v5710_v57 = vshrl.u32 %v5657_v20, 16  ;;  %v5597_v29 = vmul.f32 %v16358_v47, %v5561_v44  ;;  %v5562_v61 = vmax.f32 %v16620_v63, 0.0  ;;  %v12284_v33 = vpop.f32.mrb[72].mxu0  ;;  %12482 = vmatprep.subr.bf16.mxu1 %v14122_v56 }
 0x3b2   : > { %v6052_v41 = vrot.slane %v6050_v15, 1  ;;  %13208 = vmatprep.subr.bf16.mxu0 %v14111_v46  ;;  %v14116_v40 = vld [vmem:[%s18465_s5 + $0xb8] sm:$0xff]   ;;  %v12285_v39 = vpop.f32.mrb[73].mxu0  ;;  %v6057_v13 = vshll.u32 %v16624_v34, 16  ;;  %v5713_v5 = vshll.u32 %v5657_v20, 16  ;;  %v5850_v56 = vld [vmem:[#allocation6 + $0x70] sm:$0xff] }
 0x3b3   : > { %v5853_v60 = vld [vmem:[#allocation6 + $0x78] sm:$0x1]  ;;  %v16636_v17 = vsel %vm1970_vm1, %v6321_v1, %v6322_v12  ;;  %v5712_v58 = vrot.slane %v5710_v57, 7  ;;  %v5598_v35 = vmul.f32 %v16358_v47, %v5562_v61  ;;  %v12286_v62 = vadd.f32 %v12285_v39, %v12284_v33  ;;  %v12287_v6 = vpop.f32.mrb[74].mxu0  ;;  %v5856_v63 = vld [vmem:[#allocation6 + $0x80] sm:$0xff] }
 0x3b4   : > { %v16639_v2 = vsel %vm1648_vm2, %v6048_v48, %v6052_v41  ;;  %13172 = vmatprep.mubr.bf16.mxu0 %v16636_v17  ;;  %v5633_v15 = vadd.f32 %v16369_v24, %v5597_v29  ;;  %v12288_v12 = vpop.f32.mrb[75].mxu0  ;;  %v6059_v44 = vrot.slane %v6057_v13, 1  ;;  %12483 = vmatpush3.bf16.msra.mxu1 %v14124_v25  ;;  %v14121_v41 = vld [vmem:[%s18465_s5 + $0x1c0] sm:$0xff]  }
 0x3b5   : > { %6798 = vmatprep.mubr.bf16.mxu1 %v16639_v2  ;;  %13209 = vmatpush3.bf16.msra.mxu0 %v14111_v46  ;;  %v5715_v27 = vor.u32 %v5713_v5, %v5712_v58  ;;  %v5854_v48 = vsel %vm16079_vm9, %v5712_v58, %v5853_v60  ;;  %v5634_v20 = vadd.f32 %v16369_v24, %v5598_v35 }
 0x3b6   : > { %v16650_v1 = vadd.f32 %v12286_v62, %v16286_v43  ;;  %13210 = vmatprep.subr.bf16.mxu0 %v14116_v40  ;;  %5855 = vst [vmem:[#allocation6 + $0x78] sm:$0x1] %v5854_v48  ;;  %v12289_v57 = vadd.f32 %v12288_v12, %v12287_v6  ;;  %6799 = vmatmul.mubr.bf16.gmra.mrb[248].mxu1 %v16572_v30  ;;  %v6247_v46 = vld [vmem:[#allocation6 + $0x68] sm:$0x1]  ;;  %v6055_v43 = vshrl.u32 %v16624_v34, 16 }
 0x3b7   : > { %v5959_v25 = vld [vmem:[#allocation6 + $0x68] sm:$0x1]  ;;  %v16658_v29 = vsel %vm16401_vm13, %v5715_v27, %v5850_v56  ;;  %v5658_v61 = vpack.c.bf16 %v5634_v20, %v5633_v15  ;;  %v6325_v62 = vrot.slane %v6247_v46, 1 }
 0x3b8   : > { %18555 = vst [vmem:[#allocation28_spill] sm:$0xff] %v16650_v1  ;;  %v5563_v33 = vmax.f32 %v16650_v1, 0.0  ;;  %5852 = vst [vmem:[#allocation6 + $0x70] sm:$0xff] %v16658_v29  ;;  %v16664_v60 = vadd.f32 %v12289_v57, %v16288_v16  ;;  %v6246_v39 = vld [vmem:[#allocation6 + $0x60] sm:$0xfe]  ;;  %v6062_v13 = vshll.u32 %v5959_v25, 16  ;;  %v6060_v6 = vor.u32 %v6059_v44, %v6055_v43 }
 0x3b9   : > { %v6069_v30 = vshll.u32 %v16658_v29, 16  ;;  %13211 = vmatpush3.bf16.msra.mxu0 %v14116_v40  ;;  %v5717_v58 = vshrl.u32 %v5658_v61, 16  ;;  %v12290_v5 = vpop.f32.mrb[76].mxu0  ;;  %v6324_v35 = vrot.slane %v6246_v39, 1  ;;  %v5720_v56 = vshll.u32 %v5658_v61, 16 }
 0x3ba   : > { %18556 = vst [vmem:[#allocation29_spill] sm:$0xff] %v16664_v60  ;;  %12604 = vmatprep.subr.bf16.mxu0 %v14121_v41  ;;  %v5859_v15 = vld [vmem:[#allocation6 + $0x88] sm:$0x1]  ;;  %v5599_v12 = vmul.f32 %v16358_v47, %v5563_v33  ;;  %v5564_v27 = vmax.f32 %v16664_v60, 0.0  ;;  %v12291_v48 = vpop.f32.mrb[77].mxu0  ;;  %v6064_v16 = vrot.slane %v6062_v13, 1 }
 0x3bb   : > { %v5719_v20 = vrot.slane %v5717_v58, 7  ;;  %v12292_v57 = vadd.f32 %v12291_v48, %v12290_v5  ;;  %v12293_v25 = vpop.f32.mrb[78].mxu0  ;;  %v16670_v1 = vsel %vm1970_vm1, %v6324_v35, %v6325_v62  ;;  %v6071_v40 = vrot.slane %v6069_v30, 1 }
 0x3bc   : > { %v5600_v46 = vmul.f32 %v16358_v47, %v5564_v27  ;;  %13173 = vmatmul.mubr.bf16.gmra.mrb[112].mxu0 %v16670_v1  ;;  %v12294_v44 = vpop.f32.mrb[79].mxu0  ;;  %v16675_v41 = vsel %vm1648_vm2, %v6060_v6, %v6064_v16  ;;  %v6067_v61 = vshrl.u32 %v16658_v29, 16  ;;  %v5635_v5 = vadd.f32 %v16369_v24, %v5599_v12 }
 0x3bd   : > { %v5722_v33 = vor.u32 %v5720_v56, %v5719_v20  ;;  %v5860_v43 = vsel %vm16079_vm9, %v5719_v20, %v5859_v15  ;;  %v16681_v39 = vadd.f32 %v12292_v57, %v16296_v42  ;;  %v12295_v13 = vadd.f32 %v12294_v44, %v12293_v25  ;;  %6806 = vmatprep.mubr.bf16.mxu1 %v16675_v41  ;;  %v6249_v30 = vld [vmem:[#allocation6 + $0x78] sm:$0x1] }
 0x3be   : > { %v5961_v58 = vld [vmem:[#allocation6 + $0x78] sm:$0x1]  ;;  %5861 = vst [vmem:[#allocation6 + $0x88] sm:$0x1] %v5860_v43  ;;  %v5636_v35 = vadd.f32 %v16369_v24, %v5600_v46  ;;  %6807 = vmatmul.mubr.bf16.gmra.mrb[252].mxu1 %v16624_v34  ;;  %v6072_v27 = vor.u32 %v6071_v40, %v6067_v61  ;;  %v6328_v16 = vrot.slane %v6249_v30, 1 }
 0x3bf   : > { %18557 = vst [vmem:[#allocation30_spill] sm:$0xff] %v16681_v39  ;;  %v6074_v62 = vshll.u32 %v5961_v58, 16  ;;  %v16689_v6 = vsel %vm16401_vm13, %v5722_v33, %v5856_v63  ;;  %v5565_v42 = vmax.f32 %v16681_v39, 0.0  ;;  %v16693_v56 = vadd.f32 %v12295_v13, %v16302_v55  ;;  %v6248_v15 = vld [vmem:[#allocation6 + $0x70] sm:$0xfe] }
 0x3c0   : > { %5858 = vst [vmem:[#allocation6 + $0x80] sm:$0xff] %v16689_v6  ;;  %v5659_v48 = vpack.c.bf16 %v5636_v35, %v5635_v5  ;;  %v6327_v12 = vrot.slane %v6248_v15, 1  ;;  %v6081_v63 = vshll.u32 %v16689_v6, 16  ;;  %v5865_v61 = vld [vmem:[#allocation6 + $0x98] sm:$0x1]  ;;  %v5862_v15 = vld [vmem:[#allocation6 + $0x90] sm:$0xff] }
 0x3c1   : > { %18558 = vst [vmem:[#allocation31_spill] sm:$0xff] %v16693_v56  ;;  %v6076_v20 = vrot.slane %v6074_v62, 1  ;;  %v5601_v57 = vmul.f32 %v16358_v47, %v5565_v42  ;;  %v5566_v25 = vmax.f32 %v16693_v56, 0.0  ;;  %v12296_v46 = vpop.f32.mrb[80].mxu0  ;;  %v6079_v42 = vshrl.u32 %v16689_v6, 16 }
 0x3c2   : > { %v5724_v44 = vshrl.u32 %v5659_v48, 16  ;;  %v12297_v33 = vpop.f32.mrb[81].mxu0  ;;  %v16700_v55 = vsel %vm1970_vm1, %v6327_v12, %v6328_v16  ;;  %v6083_v58 = vrot.slane %v6081_v63, 1  ;;  %v5727_v35 = vshll.u32 %v5659_v48, 16 }
 0x3c3   : > { %v16703_v40 = vsel %vm1648_vm2, %v6072_v27, %v6076_v20  ;;  %v5602_v43 = vmul.f32 %v16358_v47, %v5566_v25  ;;  %v12298_v13 = vadd.f32 %v12297_v33, %v12296_v46  ;;  %v12299_v30 = vpop.f32.mrb[82].mxu0  ;;  %13176 = vmatprep.mubr.bf16.mxu0 %v16700_v55  ;;  %v5637_v12 = vadd.f32 %v16369_v24, %v5601_v57 }
 0x3c4   : > { %6814 = vmatprep.mubr.bf16.mxu1 %v16703_v40  ;;  %v5726_v5 = vrot.slane %v5724_v44, 7  ;;  %v12300_v62 = vpop.f32.mrb[83].mxu0 }
 0x3c5   : > { %v5638_v27 = vadd.f32 %v16369_v24, %v5602_v43  ;;  %v16712_v16 = vadd.f32 %v12298_v13, %v16306_v37  ;;  %v12301_v20 = vadd.f32 %v12300_v62, %v12299_v30  ;;  %v6251_v25 = vld [vmem:[#allocation6 + $0x88] sm:$0x1]  ;;  %v6084_v37 = vor.u32 %v6083_v58, %v6079_v42 }
 0x3c6   : > { %v5963_v46 = vld [vmem:[#allocation6 + $0x88] sm:$0x1]  ;;  %v5729_v33 = vor.u32 %v5727_v35, %v5726_v5  ;;  %v5866_v63 = vsel %vm16079_vm9, %v5726_v5, %v5865_v61  ;;  %6815 = vmatmul.mubr.bf16.gmra.mrb[0].mxu1 %v16658_v29  ;;  %v6331_v35 = vrot.slane %v6251_v25, 1 }
 0x3c7   : > { %18559 = vst [vmem:[#allocation32_spill] sm:$0xff] %v16712_v16  ;;  %v6086_v48 = vshll.u32 %v5963_v46, 16  ;;  %5867 = vst [vmem:[#allocation6 + $0x98] sm:$0x1] %v5866_v63  ;;  %v5660_v44 = vpack.c.bf16 %v5638_v27, %v5637_v12  ;;  %v5567_v60 = vmax.f32 %v16712_v16, 0.0  ;;  %v16719_v57 = vadd.f32 %v12301_v20, %v16312_v0 }
 0x3c8   : > { %v6250_v43 = vld [vmem:[#allocation6 + $0x80] sm:$0xfe]  ;;  %v16723_v13 = vsel %vm16401_vm13, %v5729_v33, %v5862_v15  ;;  %v5871_v46 = vld [vmem:[#allocation6 + $0xa8] sm:$0x1] }
 0x3c9   : > { %18560 = vst [vmem:[#allocation33_spill] sm:$0xff] %v16719_v57  ;;  %v6330_v30 = vrot.slane %v6250_v43, 1  ;;  %v6088_v62 = vrot.slane %v6086_v48, 1  ;;  %5864 = vst [vmem:[#allocation6 + $0x90] sm:$0xff] %v16723_v13  ;;  %v5731_v61 = vshrl.u32 %v5660_v44, 16  ;;  %v5603_v5 = vmul.f32 %v16358_v47, %v5567_v60  ;;  %v12302_v27 = vpop.f32.mrb[84].mxu0 }
 0x3ca   : > { %v5568_v12 = vmax.f32 %v16719_v57, 0.0  ;;  %v12303_v0 = vpop.f32.mrb[85].mxu0  ;;  %v6093_v42 = vshll.u32 %v16723_v13, 16  ;;  %v5734_v25 = vshll.u32 %v5660_v44, 16  ;;  %v5868_v60 = vld [vmem:[#allocation6 + $0xa0] sm:$0xff] }
 0x3cb   : > { %v16729_v20 = vsel %vm1970_vm1, %v6330_v30, %v6331_v35  ;;  %v16732_v58 = vsel %vm1648_vm2, %v6084_v37, %v6088_v62  ;;  %v5733_v15 = vrot.slane %v5731_v61, 7  ;;  %v12304_v63 = vadd.f32 %v12303_v0, %v12302_v27  ;;  %v12305_v48 = vpop.f32.mrb[86].mxu0 }
 0x3cc   : > { %v5604_v33 = vmul.f32 %v16358_v47, %v5568_v12  ;;  %13177 = vmatmul.mubr.bf16.gmra.mrb[116].mxu0 %v16729_v20  ;;  %6822 = vmatprep.mubr.bf16.mxu1 %v16732_v58  ;;  %v5639_v43 = vadd.f32 %v16369_v24, %v5603_v5  ;;  %v12306_v30 = vpop.f32.mrb[87].mxu0  ;;  %v6095_v35 = vrot.slane %v6093_v42, 1 }
 0x3cd   : > { %v5736_v57 = vor.u32 %v5734_v25, %v5733_v15  ;;  %v5872_v37 = vsel %vm16079_vm9, %v5733_v15, %v5871_v46  ;;  %v16743_v44 = vadd.f32 %v12304_v63, %v16316_v26  ;;  %v12307_v61 = vadd.f32 %v12306_v30, %v12305_v48 }
 0x3ce   : > { %v5640_v62 = vadd.f32 %v16369_v24, %v5604_v33  ;;  %5873 = vst [vmem:[#allocation6 + $0xa8] sm:$0x1] %v5872_v37  ;;  %6823 = vmatmul.mubr.bf16.gmra.mrb[4].mxu1 %v16689_v6  ;;  %v6253_v12 = vld [vmem:[#allocation6 + $0x98] sm:$0x1]  ;;  %v6091_v46 = vshrl.u32 %v16723_v13, 16 }
 0x3cf   : > { %18561 = vst [vmem:[#allocation34_spill] sm:$0xff] %v16743_v44  ;;  %v5965_v27 = vld [vmem:[#allocation6 + $0x98] sm:$0x1]  ;;  %v16748_v5 = vsel %vm16401_vm13, %v5736_v57, %v5868_v60  ;;  %v5569_v42 = vmax.f32 %v16743_v44, 0.0  ;;  %v16754_v26 = vadd.f32 %v12307_v61, %v16323_v14  ;;  %v6334_v37 = vrot.slane %v6253_v12, 1 }
 0x3d0   : > { %v5661_v0 = vpack.c.bf16 %v5640_v62, %v5639_v43  ;;  %5870 = vst [vmem:[#allocation6 + $0xa0] sm:$0xff] %v16748_v5  ;;  %v6252_v15 = vld [vmem:[#allocation6 + $0x90] sm:$0xfe]  ;;  %v6098_v25 = vshll.u32 %v5965_v27, 16  ;;  %v6105_v33 = vshll.u32 %v16748_v5, 16  ;;  %v6096_v57 = vor.u32 %v6095_v35, %v6091_v46 }
 0x3d1   : > { %18562 = vst [vmem:[#allocation35_spill] sm:$0xff] %v16754_v26  ;;  %v12308_v48 = vpop.f32.mrb[88].mxu0  ;;  %v6333_v30 = vrot.slane %v6252_v15, 1  ;;  %v5877_v43 = vld [vmem:[#allocation6 + $0xb8] sm:$0x1]  ;;  %v5605_v62 = vmul.f32 %v16358_v47, %v5569_v42  ;;  %v5570_v16 = vmax.f32 %v16754_v26, 0.0 }
 0x3d2   : > { %v5738_v63 = vshrl.u32 %v5661_v0, 16  ;;  %v5741_v60 = vshll.u32 %v5661_v0, 16  ;;  %v12309_v44 = vpop.f32.mrb[89].mxu0  ;;  %v6100_v56 = vrot.slane %v6098_v25, 1  ;;  %v6107_v49 = vrot.slane %v6105_v33, 1 }
 0x3d3   : > { %v12310_v14 = vadd.f32 %v12309_v44, %v12308_v48  ;;  %v12311_v61 = vpop.f32.mrb[90].mxu0  ;;  %v16760_v27 = vsel %vm1970_vm1, %v6333_v30, %v6334_v37  ;;  %v5606_v15 = vmul.f32 %v16358_v47, %v5570_v16  ;;  %v6103_v0 = vshrl.u32 %v16748_v5, 16 }
 0x3d4   : > { %v5740_v39 = vrot.slane %v5738_v63, 7  ;;  %13180 = vmatprep.mubr.bf16.mxu0 %v16760_v27  ;;  %v12312_v35 = vpop.f32.mrb[91].mxu0  ;;  %v16765_v12 = vsel %vm1648_vm2, %v6096_v57, %v6100_v56  ;;  %v5641_v16 = vadd.f32 %v16369_v24, %v5605_v62  ;;  %v16778_v56 = vld [vmem:[%s18467_s7 + $0x5] ss:$0 sm:$0xff] }
 0x3d5   : > { %v16771_v46 = vadd.f32 %v12310_v14, %v16332_v18  ;;  %v12313_v25 = vadd.f32 %v12312_v35, %v12311_v61  ;;  %6830 = vmatprep.mubr.bf16.mxu1 %v16765_v12  ;;  %v6255_v33 = vld [vmem:[#allocation6 + $0xa8] sm:$0x1]  ;;  %v5642_v63 = vadd.f32 %v16778_v56, %v5606_v15  ;;  %v6108_v37 = vor.u32 %v6107_v49, %v6103_v0  ;;  %v16794_v14 = vld [vmem:[%s18467_s7 + $0x4] ss:$0 sm:$0xff] }
 0x3d6   : > { %v5743_v42 = vor.u32 %v5741_v60, %v5740_v39  ;;  %v5878_v44 = vsel %vm16079_vm9, %v5740_v39, %v5877_v43  ;;  %v5967_v47 = vld [vmem:[#allocation6 + $0xa8] sm:$0x1]  ;;  %6831 = vmatmul.mubr.bf16.gmra.mrb[8].mxu1 %v16723_v13  ;;  %v6337_v43 = vrot.slane %v6255_v33, 1 }
 0x3d7   : > { %18563 = vst [vmem:[#allocation36_spill] sm:$0xff] %v16771_v46  ;;  %5879 = vst [vmem:[#allocation6 + $0xb8] sm:$0x1] %v5878_v44  ;;  %v6110_v39 = vshll.u32 %v5967_v47, 16  ;;  %v5571_v48 = vmax.f32 %v16771_v46, 0.0  ;;  %v16788_v30 = vadd.f32 %v12313_v25, %v16338_v31  ;;  %v5662_v57 = vpack.c.bf16 %v5642_v63, %v5641_v16 }
 0x3d8   : > { %v16784_v18 = vsel %vm16401_vm13, %v5743_v42, %v5874_v45  ;;  %v6254_v24 = vld [vmem:[#allocation6 + $0xa0] sm:$0xfe]  ;;  %v5883_v44 = vld [vmem:[#allocation6 + $0xc8] sm:$0x1] }
 0x3d9   : > { %18564 = vst [vmem:[#allocation37_spill] sm:$0xff] %v16788_v30  ;;  %5876 = vst [vmem:[#allocation6 + $0xb0] sm:$0xff] %v16784_v18  ;;  %v6336_v60 = vrot.slane %v6254_v24, 1  ;;  %v6112_v62 = vrot.slane %v6110_v39, 1  ;;  %v5607_v45 = vmul.f32 %v16794_v14, %v5571_v48  ;;  %v5572_v61 = vmax.f32 %v16788_v30, 0.0  ;;  %v12314_v15 = vpop.f32.mrb[92].mxu0 }
 0x3da   : > { %v6117_v31 = vshll.u32 %v16784_v18, 16  ;;  %v5745_v35 = vshrl.u32 %v5662_v57, 16  ;;  %v12315_v49 = vpop.f32.mrb[93].mxu0  ;;  %v5748_v39 = vshll.u32 %v5662_v57, 16  ;;  %v6115_v24 = vshrl.u32 %v16784_v18, 16 }
 0x3db   : > { %v16800_v0 = vsel %vm1970_vm1, %v6336_v60, %v6337_v43  ;;  %v16803_v42 = vsel %vm1648_vm2, %v6108_v37, %v6112_v62  ;;  %v5608_v25 = vmul.f32 %v16794_v14, %v5572_v61  ;;  %v12316_v33 = vadd.f32 %v12315_v49, %v12314_v15  ;;  %v12317_v47 = vpop.f32.mrb[94].mxu0  ;;  %v5880_v60 = vld [vmem:[#allocation6 + $0xc0] sm:$0xff] }
 0x3dc   : > { %13181 = vmatmul.mubr.bf16.gmra.mrb[120].mxu0 %v16800_v0  ;;  %6838 = vmatprep.mubr.bf16.mxu1 %v16803_v42  ;;  %v6119_v16 = vrot.slane %v6117_v31, 1  ;;  %v5747_v63 = vrot.slane %v5745_v35, 7  ;;  %v12318_v48 = vpop.f32.mrb[95].mxu0  ;;  %v5643_v43 = vadd.f32 %v16778_v56, %v5607_v45 }
 0x3dd   : > { %v5644_v37 = vadd.f32 %v16778_v56, %v5608_v25  ;;  %v16812_v62 = vadd.f32 %v12316_v33, %v16344_v3  ;;  %v12319_v61 = vadd.f32 %v12318_v48, %v12317_v47 }
 0x3de   : > { %v6257_v15 = vld [vmem:[#allocation6 + $0xb8] sm:$0x1]  ;;  %v5750_v30 = vor.u32 %v5748_v39, %v5747_v63  ;;  %v5884_v31 = vsel %vm16079_vm9, %v5747_v63, %v5883_v44  ;;  %6839 = vmatmul.mubr.bf16.gmra.mrb[12].mxu1 %v16748_v5  ;;  %v6120_v3 = vor.u32 %v6119_v16, %v6115_v24 }
 0x3df   : > { %18565 = vst [vmem:[#allocation38_spill] sm:$0xff] %v16812_v62  ;;  %v5969_v49 = vld [vmem:[#allocation6 + $0xb8] sm:$0x1]  ;;  %5885 = vst [vmem:[#allocation6 + $0xc8] sm:$0x1] %v5884_v31  ;;  %v5663_v35 = vpack.c.bf16 %v5644_v37, %v5643_v43  ;;  %v5573_v46 = vmax.f32 %v16812_v62, 0.0  ;;  %v16819_v45 = vadd.f32 %v12319_v61, %v16350_v54 }
 0x3e0   : > { %v6122_v57 = vshll.u32 %v5969_v49, 16  ;;  %v6256_v25 = vld [vmem:[#allocation6 + $0xb0] sm:$0xfe]  ;;  %v16823_v33 = vsel %vm16401_vm13, %v5750_v30, %v5880_v60  ;;  %v6340_v39 = vrot.slane %v6257_v15, 1  ;;  %v5889_v49 = vld [vmem:[#allocation6 + $0xd8] sm:$0x1] }
 0x3e1   : > { %18566 = vst [vmem:[#allocation39_spill] sm:$0xff] %v16819_v45  ;;  %v6339_v47 = vrot.slane %v6256_v25, 1  ;;  %5882 = vst [vmem:[#allocation6 + $0xc0] sm:$0xff] %v16823_v33  ;;  %v5752_v44 = vshrl.u32 %v5663_v35, 16  ;;  %v5609_v63 = vmul.f32 %v16794_v14, %v5573_v46  ;;  %v5574_v43 = vmax.f32 %v16819_v45, 0.0  ;;  %v12320_v37 = vpop.f32.mrb[96].mxu0 }
 0x3e2   : > { %v6124_v48 = vrot.slane %v6122_v57, 1  ;;  %v12321_v54 = vpop.f32.mrb[97].mxu0  ;;  %v6129_v30 = vshll.u32 %v16823_v33, 16  ;;  %v5755_v60 = vshll.u32 %v5663_v35, 16  ;;  %v5886_v46 = vld [vmem:[#allocation6 + $0xd0] sm:$0xff] }
 0x3e3   : > { %v16829_v61 = vsel %vm1970_vm1, %v6339_v47, %v6340_v39  ;;  %v5754_v24 = vrot.slane %v5752_v44, 7  ;;  %v5610_v15 = vmul.f32 %v16794_v14, %v5574_v43  ;;  %v12322_v31 = vadd.f32 %v12321_v54, %v12320_v37  ;;  %v12323_v57 = vpop.f32.mrb[98].mxu0 }
 0x3e4   : > { %v16832_v16 = vsel %vm1648_vm2, %v6120_v3, %v6124_v48  ;;  %13184 = vmatprep.mubr.bf16.mxu0 %v16829_v61  ;;  %v5645_v25 = vadd.f32 %v16778_v56, %v5609_v63  ;;  %v12324_v47 = vpop.f32.mrb[99].mxu0  ;;  %v6131_v39 = vrot.slane %v6129_v30, 1 }
 0x3e5   : > { %6846 = vmatprep.mubr.bf16.mxu1 %v16832_v16  ;;  %v5757_v45 = vor.u32 %v5755_v60, %v5754_v24  ;;  %v5890_v3 = vsel %vm16079_vm9, %v5754_v24, %v5889_v49  ;;  %v5646_v48 = vadd.f32 %v16778_v56, %v5610_v15  ;;  %v16843_v35 = vadd.f32 %v12322_v31, %v16364_v19 }
 0x3e6   : > { %5891 = vst [vmem:[#allocation6 + $0xd8] sm:$0x1] %v5890_v3  ;;  %v12325_v44 = vadd.f32 %v12324_v47, %v12323_v57  ;;  %6847 = vmatmul.mubr.bf16.gmra.mrb[16].mxu1 %v16784_v18  ;;  %v6259_v43 = vld [vmem:[#allocation6 + $0xc8] sm:$0x1]  ;;  %v6127_v49 = vshrl.u32 %v16823_v33, 16 }
 0x3e7   : > { %18567 = vst [vmem:[#allocation40_spill] sm:$0xff] %v16843_v35  ;;  %v5971_v37 = vld [vmem:[#allocation6 + $0xc8] sm:$0x1]  ;;  %v16848_v63 = vsel %vm16401_vm13, %v5757_v45, %v5886_v46  ;;  %v5664_v54 = vpack.c.bf16 %v5646_v48, %v5645_v25  ;;  %v5575_v30 = vmax.f32 %v16843_v35, 0.0  ;;  %v6343_v3 = vrot.slane %v6259_v43, 1 }
 0x3e8   : > { %5888 = vst [vmem:[#allocation6 + $0xd0] sm:$0xff] %v16848_v63  ;;  %v16854_v19 = vadd.f32 %v12325_v44, %v16373_v59  ;;  %v6258_v24 = vld [vmem:[#allocation6 + $0xc0] sm:$0xfe]  ;;  %v6134_v60 = vshll.u32 %v5971_v37, 16  ;;  %v6141_v15 = vshll.u32 %v16848_v63, 16  ;;  %v6132_v45 = vor.u32 %v6131_v39, %v6127_v49 }
 0x3e9   : > { %v5759_v31 = vshrl.u32 %v5664_v54, 16  ;;  %v12326_v57 = vpop.f32.mrb[100].mxu0  ;;  %v6342_v47 = vrot.slane %v6258_v24, 1  ;;  %v5762_v46 = vshll.u32 %v5664_v54, 16  ;;  %v5895_v25 = vld [vmem:[#allocation6 + $0xe8] sm:$0x1]  ;;  %v5611_v48 = vmul.f32 %v16794_v14, %v5575_v30 }
 0x3ea   : > { %18568 = vst [vmem:[#allocation41_spill] sm:$0xff] %v16854_v19  ;;  %v5576_v35 = vmax.f32 %v16854_v19, 0.0  ;;  %v12327_v62 = vpop.f32.mrb[101].mxu0  ;;  %v6136_v26 = vrot.slane %v6134_v60, 1  ;;  %v6143_v21 = vrot.slane %v6141_v15, 1  ;;  %v6139_v54 = vshrl.u32 %v16848_v63, 16 }
 0x3eb   : > { %v5761_v52 = vrot.slane %v5759_v31, 7  ;;  %v12328_v59 = vadd.f32 %v12327_v62, %v12326_v57  ;;  %v12329_v44 = vpop.f32.mrb[102].mxu0  ;;  %v16860_v37 = vsel %vm1970_vm1, %v6342_v47, %v6343_v3  ;;  %v5647_v31 = vadd.f32 %v16778_v56, %v5611_v48 }
 0x3ec   : > { %v5612_v24 = vmul.f32 %v16794_v14, %v5576_v35  ;;  %13185 = vmatmul.mubr.bf16.gmra.mrb[124].mxu0 %v16860_v37  ;;  %v12330_v39 = vpop.f32.mrb[103].mxu0  ;;  %v16865_v43 = vsel %vm1648_vm2, %v6132_v45, %v6136_v26  ;;  %v6144_v45 = vor.u32 %v6143_v21, %v6139_v54  ;;  %v5901_v21 = vld [vmem:[#allocation6 + $0xf8] sm:$0x1] }
 0x3ed   : > { %v5764_v30 = vor.u32 %v5762_v46, %v5761_v52  ;;  %v5896_v62 = vsel %vm16079_vm9, %v5761_v52, %v5895_v25  ;;  %v16871_v49 = vadd.f32 %v12328_v59, %v16389_v38  ;;  %v12331_v60 = vadd.f32 %v12330_v39, %v12329_v44  ;;  %6854 = vmatprep.mubr.bf16.mxu1 %v16865_v43  ;;  %v6261_v15 = vld [vmem:[#allocation6 + $0xd8] sm:$0x1] }
 0x3ee   : > { %v5973_v35 = vld [vmem:[#allocation6 + $0xd8] sm:$0x1]  ;;  %5897 = vst [vmem:[#allocation6 + $0xe8] sm:$0x1] %v5896_v62  ;;  %v5648_v26 = vadd.f32 %v16778_v56, %v5612_v24  ;;  %6855 = vmatmul.mubr.bf16.gmra.mrb[20].mxu1 %v16823_v33  ;;  %v6346_v48 = vrot.slane %v6261_v15, 1 }
 0x3ef   : > { %18569 = vst [vmem:[#allocation42_spill] sm:$0xff] %v16871_v49  ;;  %v6146_v57 = vshll.u32 %v5973_v35, 16  ;;  %v16879_v47 = vsel %vm16401_vm13, %v5764_v30, %v5892_v51  ;;  %v5577_v52 = vmax.f32 %v16871_v49, 0.0  ;;  %v16883_v38 = vadd.f32 %v12331_v60, %v16397_v7  ;;  %v6260_v3 = vld [vmem:[#allocation6 + $0xd0] sm:$0xfe] }
 0x3f0   : > { %18570 = vst [vmem:[#allocation43_spill] sm:$0xff] %v16879_v47  ;;  %5894 = vst [vmem:[#allocation6 + $0xe0] sm:$0xff] %v16879_v47  ;;  %v5665_v46 = vpack.c.bf16 %v5648_v26, %v5647_v31  ;;  %v6345_v25 = vrot.slane %v6260_v3, 1  ;;  %v6153_v51 = vshll.u32 %v16879_v47, 16  ;;  %v5898_v35 = vld [vmem:[#allocation6 + $0xf0] sm:$0xff]  ;;  %v6151_v3 = vshrl.u32 %v16879_v47, 16 }
 0x3f1   : > { %18571 = vst [vmem:[#allocation44_spill] sm:$0xff] %v16883_v38  ;;  %v6148_v59 = vrot.slane %v6146_v57, 1  ;;  %v5613_v44 = vmul.f32 %v16794_v14, %v5577_v52  ;;  %v5578_v24 = vmax.f32 %v16883_v38, 0.0 }
 0x3f2   : > { %v5766_v39 = vshrl.u32 %v5665_v46, 16  ;;  %v16890_v30 = vsel %vm1970_vm1, %v6345_v25, %v6346_v48  ;;  %v6155_v62 = vrot.slane %v6153_v51, 1  ;;  %v5769_v15 = vshll.u32 %v5665_v46, 16 }
 0x3f3   : > { %v16893_v7 = vsel %vm1648_vm2, %v6144_v45, %v6148_v59  ;;  %v5614_v54 = vmul.f32 %v16794_v14, %v5578_v24  ;;  %13188 = vmatprep.mubr.bf16.mxu0 %v16890_v30  ;;  %v5649_v31 = vadd.f32 %v16778_v56, %v5613_v44 }
 0x3f4   : > { %6862 = vmatprep.mubr.bf16.mxu1 %v16893_v7  ;;  %v5768_v60 = vrot.slane %v5766_v39, 7  ;;  %v6156_v46 = vor.u32 %v6155_v62, %v6151_v3 }
 0x3f5   : > { %v5650_v26 = vadd.f32 %v16778_v56, %v5614_v54  ;;  %v6263_v57 = vld [vmem:[#allocation6 + $0xe8] sm:$0x1] }
 0x3f6   : > { %v5975_v52 = vld [vmem:[#allocation6 + $0xe8] sm:$0x1]  ;;  %v5771_v45 = vor.u32 %v5769_v15, %v5768_v60  ;;  %v5902_v14 = vsel %vm16079_vm9, %v5768_v60, %v5901_v21  ;;  %6863 = vmatmul.mubr.bf16.gmra.mrb[24].mxu1 %v16848_v63  ;;  %v6349_v24 = vrot.slane %v6263_v57, 1 }
 0x3f7   : > { %v6158_v25 = vshll.u32 %v5975_v52, 16  ;;  %5903 = vst [vmem:[#allocation6 + $0xf8] sm:$0x1] %v5902_v14  ;;  %v5666_v48 = vpack.c.bf16 %v5650_v26, %v5649_v31  ;;  %v6262_v59 = vld [vmem:[#allocation6 + $0xe0] sm:$0xfe] }
 0x3f8   : > { %v16906_v44 = vsel %vm16401_vm13, %v5771_v45, %v5898_v35  ;;  %v6348_v56 = vrot.slane %v6262_v59, 1  ;;  %v5907_v21 = vld [vmem:[#allocation6 + $0x108] sm:$0x1]  ;;  %v5904_v35 = vld [vmem:[#allocation6 + $0x100] sm:$0xff] }
 0x3f9   : > { %v6160_v51 = vrot.slane %v6158_v25, 1  ;;  %5900 = vst [vmem:[#allocation6 + $0xf0] sm:$0xff] %v16906_v44  ;;  %v5773_v39 = vshrl.u32 %v5666_v48, 16  ;;  %v6165_v54 = vshll.u32 %v16906_v44, 16  ;;  %v5776_v31 = vshll.u32 %v5666_v48, 16  ;;  %v5946_v26 = vld [vmem:[#allocation6] sm:$0xff] }
 0x3fa   : > { %v16911_v60 = vsel %vm1970_vm1, %v6348_v56, %v6349_v24  ;;  %v6163_v48 = vshrl.u32 %v16906_v44, 16  ;;  %v5985_v56 = vshll.u32 %v5946_v26, 16 }
 0x3fb   : > { %v16914_v15 = vsel %vm1648_vm2, %v6156_v46, %v6160_v51  ;;  %v5775_v62 = vrot.slane %v5773_v39, 7  ;;  %13189 = vmatmul.mubr.bf16.gmra.mrb[128].mxu0 %v16911_v60  ;;  %v6167_v3 = vrot.slane %v6165_v54, 1  ;;  %v5947_v46 = vld [vmem:[#allocation6 + $0x8] sm:$0x1] }
 0x3fc   : > { %6870 = vmatprep.mubr.bf16.mxu1 %v16914_v15  ;;  %v5990_v19 = vshll.u32 %v5947_v46, 16  ;;  %v5987_v38 = vrot.slane %v5985_v56, 1 }
 0x3fd   : > { %v5778_v57 = vor.u32 %v5776_v31, %v5775_v62  ;;  %v5908_v52 = vsel %vm16079_vm9, %v5775_v62, %v5907_v21  ;;  %v6168_v21 = vor.u32 %v6167_v3, %v6163_v48  ;;  %v6234_v31 = vld [vmem:[#allocation6] sm:$0xfe] }
 0x3fe   : > { %5909 = vst [vmem:[#allocation6 + $0x108] sm:$0x1] %v5908_v52  ;;  %6871 = vmatmul.mubr.bf16.gmra.mrb[28].mxu1 %v16879_v47  ;;  %v6265_v45 = vld [vmem:[#allocation6 + $0xf8] sm:$0x1]  ;;  %v6235_v52 = vld [vmem:[#allocation6 + $0x8] sm:$0x1] }
 0x3ff   : > { %v5977_v14 = vld [vmem:[#allocation6 + $0xf8] sm:$0x1]  ;;  %v16923_v25 = vsel %vm16401_vm13, %v5778_v57, %v5904_v35  ;;  %v6352_v54 = vrot.slane %v6265_v45, 1  ;;  %v6306_v3 = vrot.slane %v6234_v31, 1  ;;  %v6307_v48 = vrot.slane %v6235_v52, 1  ;;  %v14225_v52 = vld [vmem:[#allocation6 + $0x10] sm:$0xff] }
 0x400   : > { %v6170_v59 = vshll.u32 %v5977_v14, 16  ;;  %5906 = vst [vmem:[#allocation6 + $0x100] sm:$0xff] %v16923_v25  ;;  %v6264_v24 = vld [vmem:[#allocation6 + $0xf0] sm:$0xfe]  ;;  %v6177_v51 = vshll.u32 %v16923_v25, 16  ;;  %v5983_v14 = vshrl.u32 %v5946_v26, 16 }
 0x401   : > { %v6351_v39 = vrot.slane %v6264_v24, 1  ;;  %v6308_v47 = vsel %vm1970_vm1, %v6306_v3, %v6307_v48  ;;  %v14135_v3 = vld [vmem:[%s18465_s5 + $0x1f0] sm:$0xff]   ;;  %v14226_v48 = vld [vmem:[#allocation6 + $0x20] sm:$0xff] }
 0x402   : > { %v6172_v62 = vrot.slane %v6170_v59, 1  ;;  %v6179_v49 = vrot.slane %v6177_v51, 1  ;;  %v6175_v59 = vshrl.u32 %v16923_v25, 16 }
 0x403   : > { %v16929_v35 = vsel %vm1970_vm1, %v6351_v39, %v6352_v54  ;;  %v5988_v54 = vor.u32 %v5987_v38, %v5983_v14  ;;  %v14132_v14 = vld [vmem:[%s18465_s5 + $0x1a0] sm:$0xff]  }
 0x404   : > { %v16932_v57 = vsel %vm1648_vm2, %v6168_v21, %v6172_v62  ;;  %13192 = vmatprep.mubr.bf16.mxu0 %v16929_v35  ;;  %v5992_v21 = vrot.slane %v5990_v19, 1  ;;  %v6180_v56 = vor.u32 %v6179_v49, %v6175_v59  ;;  %v14123_v19 = vld [vmem:[%s18465_s5 + $0x180] sm:$0xff]   ;;  %v14127_v49 = vld [vmem:[%s18465_s5 + $0x1d0] sm:$0xff]  }
 0x405   : > { %6878 = vmatprep.mubr.bf16.mxu1 %v16932_v57  ;;  %v6267_v24 = vld [vmem:[#allocation6 + $0x108] sm:$0x1]  ;;  %v14136_v59 = vld [vmem:[%s18465_s5 + $0x1b0] sm:$0xff]  }
 0x406   : > { %v5979_v45 = vld [vmem:[#allocation6 + $0x108] sm:$0x1]  ;;  %6879 = vmatmul.mubr.bf16.gmra.mrb[32].mxu1 %v16906_v44  ;;  %v6355_v28 = vrot.slane %v6267_v24, 1  ;;  %v5993_v38 = vsel %vm1648_vm2, %v5988_v54, %v5992_v21  ;;  %v14139_v54 = vld [vmem:[%s18465_s5 + $0x200] sm:$0xff]   ;;  %v14227_v21 = vld [vmem:[#allocation6 + $0x30] sm:$0xff] }
 0x407   : > { %v6182_v46 = vshll.u32 %v5979_v45, 16  ;;  %v6266_v39 = vld [vmem:[#allocation6 + $0x100] sm:$0xfe]  ;;  %v14133_v24 = vld [vmem:[%s18465_s5 + $0x1e8] sm:$0xff]  }
 0x408   : > { %v6354_v62 = vrot.slane %v6266_v39, 1  ;;  %v14134_v45 = vld [vmem:[%s18465_s5 + $0x1a8] sm:$0xff]   ;;  %v14138_v39 = vld [vmem:[%s18465_s5 + $0x1b8] sm:$0xff]  }
 0x409   : > { %v6184_v4 = vrot.slane %v6182_v46, 1  ;;  %v14137_v46 = vld [vmem:[%s18465_s5 + $0x1f8] sm:$0xff]  }
 0x40a   : > { %v16940_v51 = vsel %vm1970_vm1, %v6354_v62, %v6355_v28  ;;  %v14125_v28 = vld [vmem:[%s18465_s5 + $0x1c8] sm:$0xff]   ;;  %v14228_v62 = vld [vmem:[#allocation6 + $0x40] sm:$0xff] }
 0x40b   : > { %v16943_v31 = vsel %vm1648_vm2, %v6180_v56, %v6184_v4  ;;  %13193 = vmatmul.mubr.bf16.gmra.mrb[132].mxu0 %v16940_v51  ;;  %v14126_v4 = vld [vmem:[%s18465_s5 + $0x188] sm:$0xff]   ;;  %v14229_v56 = vld [vmem:[#allocation6 + $0x50] sm:$0xff] }
 0x40c   : > { %6886 = vmatprep.mubr.bf16.mxu1 %v16943_v31  ;;  %13212 = vmatprep.mubr.bf16.mxu0 %v6308_v47  ;;  %v14129_v47 = vld [vmem:[%s18465_s5 + $0x1d8] sm:$0xff]  }
 0x40e   : > { %6887 = vmatmul.mubr.bf16.gmra.mrb[36].mxu1 %v16923_v25 }
 0x40f   : > { %7232 = vmatprep.mubr.bf16.mxu1 %v5993_v38  ;;  %v5488_v38 = vld [vmem:[#allocation6 + $0x110] sm:$0x1] }
 0x413   : > { %13213 = vmatmul.mubr.bf16.vlgmr.msra.gmra.mrb[104].mxu0 %v16451_v10  ;;  %v14128_v10 = vld [vmem:[%s18465_s5 + $0x190] sm:$0xff]  }
 0x414   : > { %13216 = vmatprep.mubr.bf16.mxu0 %v16494_v8  ;;  %12605 = vmatpush3.bf16.msra.mxu0 %v14123_v19  ;;  %v5544_v19 = vld [vmem:[#allocation6 + $0x118] sm:$0x1] }
 0x415   : > { %12606 = vmatprep.subr.bf16.mxu0 %v14125_v28  ;;  %v5489_v28 = vsel %vm16079_vm9, 0, %v5488_v38 }
 0x416   : > { %7233 = vmatmul.mubr.bf16.vlgmr.msra.gmra.mrb[40].mxu1 %v5946_v26  ;;  %v14130_v26 = vld [vmem:[%s18465_s5 + $0x198] sm:$0xff]   ;;  %5490 = vst [vmem:[#allocation6 + $0x110] sm:$0x1] %v5489_v28 }
 0x417   : > { %7240 = vmatprep.mubr.bf16.mxu1 %v16454_v22  ;;  %v14131_v22 = vld [vmem:[%s18465_s5 + $0x1e0] sm:$0xff]  }
 0x418   : > { %12607 = vmatpush3.bf16.msra.mxu0 %v14126_v4  ;;  %v5545_v4 = vsel %vm16090_vm11, 0, %v5544_v19 }
 0x419   : > { %12608 = vmatprep.subr.bf16.mxu0 %v14127_v49  ;;  %5546 = vst [vmem:[#allocation6 + $0x118] sm:$0x1] %v5545_v4 }
 0x41b   : > { %13217 = vmatmul.mubr.bf16.gmra.mrb[108].mxu0 %v16544_v11 }
 0x41c   : > { %13220 = vmatprep.mubr.bf16.mxu0 %v16589_v32  ;;  %12609 = vmatpush3.bf16.msra.mxu0 %v14128_v10 }
 0x41d   : > { %12610 = vmatprep.subr.bf16.mxu0 %v14129_v47 }
 0x41e   : > { %7241 = vmatmul.mubr.bf16.gmra.mrb[44].mxu1 %v14225_v52 }
 0x41f   : > { %7248 = vmatprep.mubr.bf16.mxu1 %v16497_v23 }
 0x420   : > { %12611 = vmatpush3.bf16.msra.mxu0 %v14130_v26 }
 0x421   : > { %12612 = vmatprep.subr.bf16.mxu0 %v14131_v22 }
 0x423   : > { %13221 = vmatmul.mubr.bf16.gmra.mrb[112].mxu0 %v16636_v17 }
 0x424   : > { %13224 = vmatprep.mubr.bf16.mxu0 %v16670_v1  ;;  %12613 = vmatpush3.bf16.msra.mxu0 %v14132_v14 }
 0x425   : > { %12614 = vmatprep.subr.bf16.mxu0 %v14133_v24 }
 0x426   : > { %7249 = vmatmul.mubr.bf16.gmra.mrb[48].mxu1 %v14226_v48 }
 0x427   : > { %7256 = vmatprep.mubr.bf16.mxu1 %v16552_v36 }
 0x428   : > { %12615 = vmatpush3.bf16.msra.mxu0 %v14134_v45 }
 0x429   : > { %12616 = vmatprep.subr.bf16.mxu0 %v14135_v3 }
 0x42b   : > { %13225 = vmatmul.mubr.bf16.gmra.mrb[116].mxu0 %v16700_v55 }
 0x42c   : > { %13228 = vmatprep.mubr.bf16.mxu0 %v16729_v20  ;;  %12617 = vmatpush3.bf16.msra.mxu0 %v14136_v59  ;;  %v14230_v59 = vld [vmem:[#allocation6 + $0x60] sm:$0xff] }
 0x42d   : > { %12618 = vmatprep.subr.bf16.mxu0 %v14137_v46 }
 0x42e   : > { %7257 = vmatmul.mubr.bf16.gmra.mrb[52].mxu1 %v14227_v21 }
 0x42f   : > { %7264 = vmatprep.mubr.bf16.mxu1 %v16592_v53 }
 0x430   : > { %12619 = vmatpush3.bf16.msra.mxu0 %v14138_v39 }
 0x431   : > { %13244 = vmatprep.subr.bf16.mxu0 %v14139_v54 }
 0x433   : > { %13229 = vmatmul.mubr.bf16.gmra.mrb[120].mxu0 %v16760_v27 }
 0x434   : > { %13232 = vmatprep.mubr.bf16.mxu0 %v16800_v0 }
 0x436   : > { %7265 = vmatmul.mubr.bf16.gmra.mrb[56].mxu1 %v14228_v62 }
 0x437   : > { %7272 = vmatprep.mubr.bf16.mxu1 %v16639_v2 }
 0x43b   : > { %13233 = vmatmul.mubr.bf16.gmra.mrb[124].mxu0 %v16829_v61 }
 0x43c   : > { %13236 = vmatprep.mubr.bf16.mxu0 %v16860_v37 }
 0x43e   : > { %7273 = vmatmul.mubr.bf16.gmra.mrb[60].mxu1 %v14229_v56 }
 0x43f   : > { %7280 = vmatprep.mubr.bf16.mxu1 %v16675_v41 }
 0x443   : > { %13237 = vmatmul.mubr.bf16.gmra.mrb[128].mxu0 %v16890_v30 }
 0x444   : > { %13240 = vmatprep.mubr.bf16.mxu0 %v16911_v60 }
 0x446   : > { %7281 = vmatmul.mubr.bf16.gmra.mrb[64].mxu1 %v16624_v34  ;;  %v14140_v34 = vld [vmem:[%s18465_s5 + $0x208] sm:$0xff]  }
 0x447   : > { %7288 = vmatprep.mubr.bf16.mxu1 %v16703_v40 }
 0x44b   : > { %13241 = vmatmul.mubr.bf16.gmra.mrb[132].mxu0 %v16929_v35 }
 0x44c   : > { %7796 = vmatprep.mubr.bf16.mxu0 %v16497_v23  ;;  %v14142_v23 = vld [vmem:[%s18465_s5 + $0x218] sm:$0xff]  }
 0x44e   : > { %7289 = vmatmul.mubr.bf16.gmra.mrb[68].mxu1 %v16658_v29  ;;  %v14144_v29 = vld [vmem:[%s18465_s5 + $0x228] sm:$0xff]  }
 0x44f   : > { %7296 = vmatprep.mubr.bf16.mxu1 %v16732_v58 }
 0x453   : > { %7797 = vmatmul.mubr.bf16.vlgmr.msra.gmra.mrb[136].mxu0 %v14226_v48 }
 0x454   : > { %7804 = vmatprep.mubr.bf16.mxu0 %v16552_v36  ;;  %13245 = vmatpush3.bf16.msra.mxu0 %v14139_v54  ;;  %v14143_v36 = vld [vmem:[%s18465_s5 + $0x220] sm:$0xff]   ;;  %v14231_v54 = vld [vmem:[#allocation6 + $0x70] sm:$0xff] }
 0x455   : > { %13246 = vmatprep.subr.bf16.mxu0 %v14140_v34 }
 0x456   : > { %7297 = vmatmul.mubr.bf16.gmra.mrb[72].mxu1 %v16689_v6 }
 0x457   : > { %7304 = vmatprep.mubr.bf16.mxu1 %v16765_v12 }
 0x458   : > { %13247 = vmatpush3.bf16.msra.mxu0 %v14140_v34 }
 0x459   : > { %13248 = vmatprep.subr.bf16.mxu0 %v14141_v50 }
 0x45b   : > { %7805 = vmatmul.mubr.bf16.gmra.mrb[140].mxu0 %v14227_v21 }
 0x45c   : > { %7812 = vmatprep.mubr.bf16.mxu0 %v16592_v53  ;;  %13249 = vmatpush3.bf16.msra.mxu0 %v14141_v50  ;;  %v14145_v53 = vld [vmem:[%s18465_s5 + $0x230] sm:$0xff]  }
 0x45d   : > { %13250 = vmatprep.subr.bf16.mxu0 %v14142_v23 }
 0x45e   : > { %7305 = vmatmul.mubr.bf16.gmra.mrb[76].mxu1 %v16723_v13 }
 0x45f   : > { %7312 = vmatprep.mubr.bf16.mxu1 %v16803_v42 }
 0x460   : > { %13251 = vmatpush3.bf16.msra.mxu0 %v14142_v23 }
 0x461   : > { %13252 = vmatprep.subr.bf16.mxu0 %v14143_v36 }
 0x463   : > { %7813 = vmatmul.mubr.bf16.gmra.mrb[144].mxu0 %v14228_v62 }
 0x464   : > { %7820 = vmatprep.mubr.bf16.mxu0 %v16639_v2  ;;  %13253 = vmatpush3.bf16.msra.mxu0 %v14143_v36  ;;  %v14146_v2 = vld [vmem:[%s18465_s5 + $0x238] sm:$0xff]  }
 0x465   : > { %13254 = vmatprep.subr.bf16.mxu0 %v14144_v29 }
 0x466   : > { %7313 = vmatmul.mubr.bf16.gmra.mrb[80].mxu1 %v16748_v5 }
 0x467   : > { %7320 = vmatprep.mubr.bf16.mxu1 %v16832_v16 }
 0x468   : > { %v12348_v49 = vpop.f32.mrb[232].mxu1  ;;  %13255 = vmatpush3.bf16.msra.mxu0 %v14144_v29 }
 0x469   : > { %v12349_v10 = vpop.f32.mrb[233].mxu1  ;;  %13256 = vmatprep.subr.bf16.mxu0 %v14145_v53 }
 0x46a   : > { %v17054_v47 = vadd.f32 %v12349_v10, %v12348_v49  ;;  %v12351_v26 = vpop.f32.mrb[234].mxu1 }
 0x46b   : > { %v12352_v22 = vpop.f32.mrb[235].mxu1  ;;  %7821 = vmatmul.mubr.bf16.gmra.mrb[148].mxu0 %v14229_v56 }
 0x46c   : > { %v17059_v52 = vadd.f32 %v12352_v22, %v12351_v26  ;;  %7828 = vmatprep.mubr.bf16.mxu0 %v16675_v41  ;;  %13257 = vmatpush3.bf16.msra.mxu0 %v14145_v53 }
 0x46d   : > { %13258 = vmatprep.subr.bf16.mxu0 %v14146_v2 }
 0x46e   : > { %7321 = vmatmul.mubr.bf16.gmra.mrb[84].mxu1 %v16784_v18 }
 0x46f   : > { %7328 = vmatprep.mubr.bf16.mxu1 %v16865_v43 }
 0x470   : > { %v12354_v14 = vpop.f32.mrb[236].mxu1  ;;  %13259 = vmatpush3.bf16.msra.mxu0 %v14146_v2 }
 0x471   : > { %v12355_v24 = vpop.f32.mrb[237].mxu1 }
 0x472   : > { %v17064_v45 = vadd.f32 %v12355_v24, %v12354_v14  ;;  %v12357_v3 = vpop.f32.mrb[238].mxu1 }
 0x473   : > { %v12358_v48 = vpop.f32.mrb[239].mxu1  ;;  %7829 = vmatmul.mubr.bf16.gmra.mrb[152].mxu0 %v14230_v59 }
 0x474   : > { %v17066_v46 = vadd.f32 %v12358_v48, %v12357_v3  ;;  %7836 = vmatprep.mubr.bf16.mxu0 %v16703_v40 }
 0x476   : > { %7329 = vmatmul.mubr.bf16.gmra.mrb[88].mxu1 %v16823_v33 }
 0x477   : > { %7336 = vmatprep.mubr.bf16.mxu1 %v16893_v7 }
 0x479   : > { %v12360_v41 = vpop.f32.mrb[240].mxu1 }
 0x47a   : > { %v12361_v39 = vpop.f32.mrb[241].mxu1 }
 0x47b   : > { %7837 = vmatmul.mubr.bf16.gmra.mrb[156].mxu0 %v14231_v54  ;;  %v17071_v21 = vadd.f32 %v12361_v39, %v12360_v41  ;;  %v12363_v62 = vpop.f32.mrb[242].mxu1 }
 0x47c   : > { %7844 = vmatprep.mubr.bf16.mxu0 %v16732_v58  ;;  %v12364_v56 = vpop.f32.mrb[243].mxu1  ;;  %v18572_v58 = vld [vmem:[#allocation43_spill] sm:$0xff] }
 0x47d   : > { %v17074_v38 = vadd.f32 %v12364_v56, %v12363_v62 }
 0x47e   : > { %7337 = vmatmul.mubr.bf16.gmra.mrb[92].mxu1 %v16848_v63 }
 0x47f   : > { %7344 = vmatprep.mubr.bf16.mxu1 %v16914_v15 }
 0x481   : > { %v12366_v40 = vpop.f32.mrb[244].mxu1 }
 0x482   : > { %v12367_v19 = vpop.f32.mrb[245].mxu1 }
 0x483   : > { %7845 = vmatmul.mubr.bf16.gmra.mrb[160].mxu0 %v16689_v6  ;;  %v17079_v28 = vadd.f32 %v12367_v19, %v12366_v40  ;;  %v12369_v4 = vpop.f32.mrb[246].mxu1 }
 0x484   : > { %7852 = vmatprep.mubr.bf16.mxu0 %v16765_v12  ;;  %v12370_v34 = vpop.f32.mrb[247].mxu1 }
 0x485   : > { %v17082_v50 = vadd.f32 %v12370_v34, %v12369_v4 }
 0x486   : > { %7345 = vmatmul.mubr.bf16.gmra.mrb[96].mxu1 %v18572_v58 }
 0x487   : > { %7352 = vmatprep.mubr.bf16.mxu1 %v16932_v57 }
 0x489   : > { %v12372_v23 = vpop.f32.mrb[248].mxu1 }
 0x48a   : > { %v12373_v36 = vpop.f32.mrb[249].mxu1 }
 0x48b   : > { %7853 = vmatmul.mubr.bf16.gmra.mrb[164].mxu0 %v16723_v13  ;;  %v17087_v29 = vadd.f32 %v12373_v36, %v12372_v23  ;;  %v12375_v53 = vpop.f32.mrb[250].mxu1  ;;  %v5980_v23 = vld [vmem:[#allocation6 + $0x110] sm:$0xff] }
 0x48c   : > { %7860 = vmatprep.mubr.bf16.mxu0 %v16803_v42  ;;  %v12376_v6 = vpop.f32.mrb[251].mxu1 }
 0x48d   : > { %v17090_v49 = vadd.f32 %v12376_v6, %v12375_v53  ;;  %v6189_v6 = vshll.u32 %v5980_v23, 16 }
 0x48e   : > { %7353 = vmatmul.mubr.bf16.gmra.mrb[100].mxu1 %v16906_v44 }
 0x491   : > { %v12378_v12 = vpop.f32.mrb[252].mxu1 }
 0x492   : > { %v12379_v10 = vpop.f32.mrb[253].mxu1 }
 0x493   : > { %7861 = vmatmul.mubr.bf16.gmra.mrb[168].mxu0 %v16748_v5  ;;  %v17094_v26 = vadd.f32 %v12379_v10, %v12378_v12  ;;  %v12381_v2 = vpop.f32.mrb[254].mxu1  ;;  %v5981_v12 = vld [vmem:[#allocation6 + $0x118] sm:$0x1] }
 0x494   : > { %7868 = vmatprep.mubr.bf16.mxu0 %v16832_v16  ;;  %v12382_v13 = vpop.f32.mrb[255].mxu1 }
 0x495   : > { %v17097_v22 = vadd.f32 %v12382_v13, %v12381_v2  ;;  %v6191_v2 = vrot.slane %v6189_v6, 1  ;;  %v6194_v13 = vshll.u32 %v5981_v12, 16  ;;  %v14148_v6 = vld [vmem:[%s18466_s6 + $0xc0] sm:$0xff]  }
 0x499   : > { %v12384_v14 = vpop.f32.mrb[0].mxu1 }
 0x49a   : > { %v12385_v24 = vpop.f32.mrb[1].mxu1 }
 0x49b   : > { %7869 = vmatmul.mubr.bf16.gmra.mrb[172].mxu0 %v16784_v18  ;;  %v17100_v42 = vadd.f32 %v12385_v24, %v12384_v14  ;;  %v12387_v3 = vpop.f32.mrb[2].mxu1 }
 0x49c   : > { %7876 = vmatprep.mubr.bf16.mxu0 %v16865_v43  ;;  %v12388_v48 = vpop.f32.mrb[3].mxu1 }
 0x49d   : > { %v17103_v59 = vadd.f32 %v12388_v48, %v12387_v3 }
 0x4a1   : > { %v12390_v5 = vpop.f32.mrb[4].mxu1 }
 0x4a2   : > { %v12391_v41 = vpop.f32.mrb[5].mxu1 }
 0x4a3   : > { %7877 = vmatmul.mubr.bf16.gmra.mrb[176].mxu0 %v16823_v33  ;;  %v17106_v16 = vadd.f32 %v12391_v41, %v12390_v5  ;;  %v12393_v39 = vpop.f32.mrb[6].mxu1  ;;  %v6196_v5 = vrot.slane %v6194_v13, 1 }
 0x4a4   : > { %7884 = vmatprep.mubr.bf16.mxu0 %v16893_v7  ;;  %v12394_v54 = vpop.f32.mrb[7].mxu1 }
 0x4a5   : > { %v17109_v62 = vadd.f32 %v12394_v54, %v12393_v39 }
 0x4a9   : > { %v12396_v18 = vpop.f32.mrb[8].mxu1 }
 0x4aa   : > { %v12397_v56 = vpop.f32.mrb[9].mxu1 }
 0x4ab   : > { %7885 = vmatmul.mubr.bf16.gmra.mrb[180].mxu0 %v16848_v63  ;;  %v17112_v43 = vadd.f32 %v12397_v56, %v12396_v18  ;;  %v12399_v40 = vpop.f32.mrb[10].mxu1 }
 0x4ac   : > { %7892 = vmatprep.mubr.bf16.mxu0 %v16914_v15  ;;  %v12400_v19 = vpop.f32.mrb[11].mxu1  ;;  %v6187_v15 = vshrl.u32 %v5980_v23, 16 }
 0x4ad   : > { %v17115_v4 = vadd.f32 %v12400_v19, %v12399_v40 }
 0x4b1   : > { %v12402_v33 = vpop.f32.mrb[12].mxu1 }
 0x4b2   : > { %v12403_v34 = vpop.f32.mrb[13].mxu1 }
 0x4b3   : > { %7893 = vmatmul.mubr.bf16.gmra.mrb[184].mxu0 %v18572_v58  ;;  %v17118_v7 = vadd.f32 %v12403_v34, %v12402_v33  ;;  %v12405_v36 = vpop.f32.mrb[14].mxu1 }
 0x4b4   : > { %7900 = vmatprep.mubr.bf16.mxu0 %v16932_v57  ;;  %v12406_v53 = vpop.f32.mrb[15].mxu1  ;;  %v6192_v57 = vor.u32 %v6191_v2, %v6187_v15 }
 0x4b5   : > { %v17121_v63 = vadd.f32 %v12406_v53, %v12405_v36 }
 0x4b6   : > { %v6197_v39 = vsel %vm1648_vm2, %v6192_v57, %v6196_v5 }
 0x4b9   : > { %v12408_v10 = vpop.f32.mrb[16].mxu1 }
 0x4ba   : > { %v12409_v14 = vpop.f32.mrb[17].mxu1 }
 0x4bb   : > { %7901 = vmatmul.mubr.bf16.gmra.mrb[188].mxu0 %v16906_v44  ;;  %v17124_v24 = vadd.f32 %v12409_v14, %v12408_v10  ;;  %v12411_v58 = vpop.f32.mrb[18].mxu1 }
 0x4bc   : > { %7908 = vmatprep.mubr.bf16.mxu0 %v16943_v31  ;;  %v12412_v3 = vpop.f32.mrb[19].mxu1 }
 0x4bd   : > { %v17127_v48 = vadd.f32 %v12412_v3, %v12411_v58 }
 0x4c1   : > { %v12414_v41 = vpop.f32.mrb[20].mxu1 }
 0x4c2   : > { %v12415_v54 = vpop.f32.mrb[21].mxu1 }
 0x4c3   : > { %7909 = vmatmul.mubr.bf16.gmra.mrb[192].mxu0 %v16923_v25  ;;  %v17131_v18 = vadd.f32 %v12415_v54, %v12414_v41  ;;  %v12417_v56 = vpop.f32.mrb[22].mxu1  ;;  %v14147_v25 = vld [vmem:[%s18466_s6 + $0x100] sm:$0xff]  }
 0x4c4   : > { %v12418_v44 = vpop.f32.mrb[23].mxu1  ;;  %7916 = vmatprep.mubr.bf16.mxu0 %v6197_v39  ;;  %12740 = vmatprep.subr.bf16.mxu1 %v14147_v25 }
 0x4c5   : > { %v17133_v40 = vadd.f32 %v12418_v44, %v12417_v56  ;;  %12741 = vmatpush3.bf16.msra.mxu1 %v14148_v6  ;;  %v14152_v6 = vld [vmem:[%s18466_s6 + $0xd0] sm:$0xff]  }
 0x4c9   : > { %v12420_v19 = vpop.f32.mrb[24].mxu1 }
 0x4ca   : > { %v12421_v31 = vpop.f32.mrb[25].mxu1 }
 0x4cb   : > { %7917 = vmatmul.mubr.bf16.gmra.mrb[196].mxu0 %v5980_v23  ;;  %v17135_v33 = vadd.f32 %v12421_v31, %v12420_v19  ;;  %v12423_v34 = vpop.f32.mrb[26].mxu1  ;;  %v14151_v31 = vld [vmem:[%s18466_s6 + $0x110] sm:$0xff]  }
 0x4cc   : > { %13260 = vmatprep.mubr.bf16.mxu0 %v16494_v8  ;;  %v12424_v36 = vpop.f32.mrb[27].mxu1 }
 0x4cd   : > { %v17138_v53 = vadd.f32 %v12424_v36, %v12423_v34 }
 0x4d1   : > { %v12426_v12 = vpop.f32.mrb[28].mxu1 }
 0x4d2   : > { %v12427_v23 = vpop.f32.mrb[29].mxu1 }
 0x4d3   : > { %13261 = vmatmul.mubr.bf16.vlgmr.msra.gmra.mrb[104].mxu0 %v16544_v11  ;;  %v17147_v10 = vadd.f32 %v12427_v23, %v12426_v12  ;;  %v12429_v8 = vpop.f32.mrb[30].mxu1  ;;  %v14149_v11 = vld [vmem:[%s18466_s6 + $0x108] sm:$0xff]  }
 0x4d4   : > { %13264 = vmatprep.mubr.bf16.mxu0 %v16589_v32  ;;  %v12430_v15 = vpop.f32.mrb[31].mxu1  ;;  %12742 = vmatprep.subr.bf16.mxu1 %v14149_v11  ;;  %v14150_v32 = vld [vmem:[%s18466_s6 + $0xc8] sm:$0xff]  }
 0x4d5   : > { %v17150_v2 = vadd.f32 %v12430_v15, %v12429_v8  ;;  %12743 = vmatpush3.bf16.msra.mxu1 %v14150_v32 }
 0x4d6   : > { %12744 = vmatprep.subr.bf16.mxu1 %v14151_v31 }
 0x4d9   : > { %v12432_v13 = vpop.f32.mrb[32].mxu1  ;;  %12745 = vmatpush3.bf16.msra.mxu1 %v14152_v6 }
 0x4da   : > { %v12433_v14 = vpop.f32.mrb[33].mxu1 }
 0x4db   : > { %13265 = vmatmul.mubr.bf16.gmra.mrb[108].mxu0 %v16636_v17  ;;  %v17153_v58 = vadd.f32 %v12433_v14, %v12432_v13  ;;  %v12435_v3 = vpop.f32.mrb[34].mxu1 }
 0x4dc   : > { %13268 = vmatprep.mubr.bf16.mxu0 %v16670_v1  ;;  %v12436_v57 = vpop.f32.mrb[35].mxu1 }
 0x4dd   : > { %v17156_v5 = vadd.f32 %v12436_v57, %v12435_v3  ;;  %v14153_v57 = vld [vmem:[%s18466_s6 + $0x118] sm:$0xff]  }
 0x4de   : > { %12746 = vmatprep.subr.bf16.mxu1 %v14153_v57 }
 0x4e1   : > { %v12438_v41 = vpop.f32.mrb[36].mxu1 }
 0x4e2   : > { %v12439_v17 = vpop.f32.mrb[37].mxu1 }
 0x4e3   : > { %13269 = vmatmul.mubr.bf16.gmra.mrb[112].mxu0 %v16700_v55  ;;  %v17165_v39 = vadd.f32 %v12439_v17, %v12438_v41  ;;  %v12441_v1 = vpop.f32.mrb[38].mxu1 }
 0x4e4   : > { %13272 = vmatprep.mubr.bf16.mxu0 %v16729_v20  ;;  %v12442_v54 = vpop.f32.mrb[39].mxu1 }
 0x4e5   : > { %v17168_v56 = vadd.f32 %v12442_v54, %v12441_v1  ;;  %v6269_v1 = vld [vmem:[#allocation6 + $0x118] sm:$0x1] }
 0x4e6   : > { %v6358_v31 = vrot.slane %v6269_v1, 1 }
 0x4e9   : > { %v12484_v44 = vpop.f32.mrb[40].mxu1 }
 0x4ea   : > { %v12485_v19 = vpop.f32.mrb[41].mxu1 }
 0x4eb   : > { %13273 = vmatmul.mubr.bf16.gmra.mrb[116].mxu0 %v16760_v27  ;;  %v12486_v34 = vadd.f32 %v12485_v19, %v12484_v44  ;;  %v12487_v36 = vpop.f32.mrb[42].mxu1 }
 0x4ec   : > { %13276 = vmatprep.mubr.bf16.mxu0 %v16800_v0  ;;  %v12488_v55 = vpop.f32.mrb[43].mxu1 }
 0x4ed   : > { %v17176_v25 = vadd.f32 %v12486_v34, %v17054_v47  ;;  %v12489_v20 = vadd.f32 %v12488_v55, %v12487_v36 }
 0x4ef   : > { %v17182_v12 = vadd.f32 %v12489_v20, %v17059_v52 }
 0x4f1   : > { %v12490_v23 = vpop.f32.mrb[44].mxu1 }
 0x4f2   : > { %v12491_v27 = vpop.f32.mrb[45].mxu1 }
 0x4f3   : > { %13277 = vmatmul.mubr.bf16.gmra.mrb[120].mxu0 %v16829_v61  ;;  %v12492_v8 = vadd.f32 %v12491_v27, %v12490_v23  ;;  %v12493_v0 = vpop.f32.mrb[46].mxu1 }
 0x4f4   : > { %13280 = vmatprep.mubr.bf16.mxu0 %v16860_v37  ;;  %v12494_v15 = vpop.f32.mrb[47].mxu1 }
 0x4f5   : > { %v17187_v47 = vadd.f32 %v12492_v8, %v17064_v45  ;;  %v12495_v13 = vadd.f32 %v12494_v15, %v12493_v0 }
 0x4f7   : > { %v17190_v14 = vadd.f32 %v12495_v13, %v17066_v46  ;;  %v14154_v46 = vld [vmem:[%s18466_s6 + $0xd8] sm:$0xff]  }
 0x4f8   : > { %12747 = vmatpush3.bf16.msra.mxu1 %v14154_v46 }
 0x4f9   : > { %v12496_v3 = vpop.f32.mrb[48].mxu1 }
 0x4fa   : > { %v12497_v52 = vpop.f32.mrb[49].mxu1 }
 0x4fb   : > { %13281 = vmatmul.mubr.bf16.gmra.mrb[124].mxu0 %v16890_v30  ;;  %v12498_v61 = vadd.f32 %v12497_v52, %v12496_v3  ;;  %v12499_v11 = vpop.f32.mrb[50].mxu1  ;;  %v6268_v30 = vld [vmem:[#allocation6 + $0x110] sm:$0xfe] }
 0x4fc   : > { %13284 = vmatprep.mubr.bf16.mxu0 %v16911_v60  ;;  %v12500_v37 = vpop.f32.mrb[51].mxu1  ;;  %v6357_v19 = vrot.slane %v6268_v30, 1 }
 0x4fd   : > { %v17198_v45 = vadd.f32 %v12498_v61, %v17071_v21  ;;  %v12501_v32 = vadd.f32 %v12500_v37, %v12499_v11 }
 0x4fe   : > { %v6359_v55 = vsel %vm1970_vm1, %v6357_v19, %v6358_v31 }
 0x4ff   : > { %v17204_v41 = vadd.f32 %v12501_v32, %v17074_v38 }
 0x501   : > { %v12502_v17 = vpop.f32.mrb[52].mxu1 }
 0x502   : > { %v12503_v54 = vpop.f32.mrb[53].mxu1 }
 0x503   : > { %13285 = vmatmul.mubr.bf16.gmra.mrb[128].mxu0 %v16929_v35  ;;  %v12504_v60 = vadd.f32 %v12503_v54, %v12502_v17  ;;  %v12505_v44 = vpop.f32.mrb[54].mxu1  ;;  %v14155_v35 = vld [vmem:[%s18466_s6 + $0x120] sm:$0xff]  }
 0x504   : > { %13288 = vmatprep.mubr.bf16.mxu0 %v16940_v51  ;;  %v12506_v21 = vpop.f32.mrb[55].mxu1  ;;  %12748 = vmatprep.subr.bf16.mxu1 %v14155_v35 }
 0x505   : > { %v17209_v34 = vadd.f32 %v12504_v60, %v17079_v28  ;;  %v12507_v36 = vadd.f32 %v12506_v21, %v12505_v44  ;;  %v14159_v21 = vld [vmem:[%s18466_s6 + $0x40] sm:$0xff]  }
 0x506   : > { %12876 = vmatprep.subr.bf16.mxu0 %v14159_v21 }
 0x507   : > { %v17212_v38 = vadd.f32 %v12507_v36, %v17082_v50  ;;  %v14156_v50 = vld [vmem:[%s18466_s6 + $0xe0] sm:$0xff]  }
 0x508   : > { %12749 = vmatpush3.bf16.msra.mxu1 %v14156_v50 }
 0x509   : > { %v12508_v20 = vpop.f32.mrb[56].mxu1 }
 0x50a   : > { %v12509_v6 = vpop.f32.mrb[57].mxu1 }
 0x50b   : > { %13289 = vmatmul.mubr.bf16.gmra.mrb[132].mxu0 %v6359_v55  ;;  %v12510_v51 = vadd.f32 %v12509_v6, %v12508_v20  ;;  %v12511_v23 = vpop.f32.mrb[58].mxu1 }
 0x50c   : > { %v12512_v27 = vpop.f32.mrb[59].mxu1 }
 0x50d   : > { %v17219_v28 = vadd.f32 %v12510_v51, %v17087_v29  ;;  %v12513_v8 = vadd.f32 %v12512_v27, %v12511_v23 }
 0x50f   : > { %v17225_v0 = vadd.f32 %v12513_v8, %v17090_v49  ;;  %v14157_v49 = vld [vmem:[%s18466_s6 + $0x128] sm:$0xff]  }
 0x510   : > { %12750 = vmatprep.subr.bf16.mxu1 %v14157_v49 }
 0x511   : > { %v12514_v15 = vpop.f32.mrb[60].mxu1 }
 0x512   : > { %v12515_v13 = vpop.f32.mrb[61].mxu1 }
 0x513   : > { %v12516_v3 = vadd.f32 %v12515_v13, %v12514_v15  ;;  %v12517_v52 = vpop.f32.mrb[62].mxu1 }
 0x514   : > { %v12518_v57 = vpop.f32.mrb[63].mxu1 }
 0x515   : > { %v17228_v61 = vadd.f32 %v12516_v3, %v17094_v26  ;;  %v12519_v11 = vadd.f32 %v12518_v57, %v12517_v52  ;;  %v14158_v26 = vld [vmem:[%s18466_s6 + $0xe8] sm:$0xff]  }
 0x516   : > { %12751 = vmatpush3.bf16.msra.mxu1 %v14158_v26 }
 0x517   : > { %v17231_v29 = vadd.f32 %v12519_v11, %v17097_v22 }
 0x519   : > { %v12520_v37 = vpop.f32.mrb[64].mxu1 }
 0x51a   : > { %v12521_v32 = vpop.f32.mrb[65].mxu1 }
 0x51b   : > { %v12522_v46 = vadd.f32 %v12521_v32, %v12520_v37  ;;  %v12523_v17 = vpop.f32.mrb[66].mxu1 }
 0x51c   : > { %v12524_v30 = vpop.f32.mrb[67].mxu1 }
 0x51d   : > { %v17237_v1 = vadd.f32 %v12522_v46, %v17100_v42  ;;  %v12525_v54 = vadd.f32 %v12524_v30, %v12523_v17 }
 0x51f   : > { %v17243_v22 = vadd.f32 %v12525_v54, %v17103_v59 }
 0x521   : > { %v12526_v60 = vpop.f32.mrb[68].mxu1 }
 0x522   : > { %v12527_v44 = vpop.f32.mrb[69].mxu1 }
 0x523   : > { %v12528_v19 = vadd.f32 %v12527_v44, %v12526_v60  ;;  %v12529_v31 = vpop.f32.mrb[70].mxu1 }
 0x524   : > { %v12530_v36 = vpop.f32.mrb[71].mxu1 }
 0x525   : > { %v17249_v42 = vadd.f32 %v12528_v19, %v17106_v16  ;;  %v12531_v55 = vadd.f32 %v12530_v36, %v12529_v31 }
 0x526   : > { %v12620_v20 = vpop.f32.mrb[136].mxu0 }
 0x527   : > { %v17252_v6 = vadd.f32 %v12531_v55, %v17109_v62  ;;  %v12621_v59 = vpop.f32.mrb[137].mxu0 }
 0x528   : > { %v12622_v35 = vadd.f32 %v12621_v59, %v12620_v20  ;;  %v12623_v51 = vpop.f32.mrb[138].mxu0 }
 0x529   : > { %v12624_v23 = vpop.f32.mrb[139].mxu0  ;;  %v12532_v27 = vpop.f32.mrb[72].mxu1 }
 0x52a   : > { %v12625_v8 = vadd.f32 %v12624_v23, %v12623_v51  ;;  %v12533_v50 = vpop.f32.mrb[73].mxu1  ;;  %v17255_v15 = vadd.f32 %v17176_v25, %v12622_v35  ;;  %v14160_v25 = vld [vmem:[%s18466_s6] sm:$0xff]  }
 0x52b   : > { %v12534_v13 = vadd.f32 %v12533_v50, %v12532_v27  ;;  %v12535_v3 = vpop.f32.mrb[74].mxu1  ;;  %12877 = vmatpush3.bf16.msra.mxu0 %v14160_v25 }
 0x52c   : > { %v12536_v52 = vpop.f32.mrb[75].mxu1  ;;  %v17258_v16 = vadd.f32 %v17182_v12, %v12625_v8 }
 0x52d   : > { %v17261_v57 = vadd.f32 %v12534_v13, %v17112_v43  ;;  %v12537_v62 = vadd.f32 %v12536_v52, %v12535_v3  ;;  %v14161_v3 = vld [vmem:[%s18466_s6 + $0x48] sm:$0xff]  }
 0x52e   : > { %v12626_v11 = vpop.f32.mrb[140].mxu0  ;;  %v14162_v52 = vld [vmem:[%s18466_s6 + $0x8] sm:$0xff]   ;;  %12878 = vmatprep.subr.bf16.mxu0 %v14161_v3 }
 0x52f   : > { %v17264_v37 = vadd.f32 %v12537_v62, %v17115_v4  ;;  %v12627_v32 = vpop.f32.mrb[141].mxu0  ;;  %12879 = vmatpush3.bf16.msra.mxu0 %v14162_v52 }
 0x530   : > { %v12628_v49 = vadd.f32 %v12627_v32, %v12626_v11  ;;  %v12629_v46 = vpop.f32.mrb[142].mxu0 }
 0x531   : > { %v12630_v17 = vpop.f32.mrb[143].mxu0  ;;  %v12538_v30 = vpop.f32.mrb[76].mxu1 }
 0x532   : > { %v12631_v12 = vadd.f32 %v12630_v17, %v12629_v46  ;;  %v12539_v54 = vpop.f32.mrb[77].mxu1  ;;  %v17270_v43 = vadd.f32 %v17187_v47, %v12628_v49  ;;  %v14166_v46 = vld [vmem:[%s18466_s6 + $0x10] sm:$0xff]  }
 0x533   : > { %v12540_v26 = vadd.f32 %v12539_v54, %v12538_v30  ;;  %v12541_v60 = vpop.f32.mrb[78].mxu1 }
 0x534   : > { %v12542_v44 = vpop.f32.mrb[79].mxu1  ;;  %v17273_v4 = vadd.f32 %v17190_v14, %v12631_v12 }
 0x535   : > { %v17276_v21 = vadd.f32 %v12540_v26, %v17118_v7  ;;  %v12543_v19 = vadd.f32 %v12542_v44, %v12541_v60 }
 0x536   : > { %v12632_v31 = vpop.f32.mrb[144].mxu0 }
 0x537   : > { %v17279_v36 = vadd.f32 %v12543_v19, %v17121_v63  ;;  %v12633_v55 = vpop.f32.mrb[145].mxu0 }
 0x538   : > { %v12634_v20 = vadd.f32 %v12633_v55, %v12632_v31  ;;  %v12635_v59 = vpop.f32.mrb[146].mxu0 }
 0x539   : > { %v12636_v35 = vpop.f32.mrb[147].mxu0  ;;  %v12544_v47 = vpop.f32.mrb[80].mxu1 }
 0x53a   : > { %v12637_v51 = vadd.f32 %v12636_v35, %v12635_v59  ;;  %v12545_v23 = vpop.f32.mrb[81].mxu1  ;;  %v17282_v27 = vadd.f32 %v17198_v45, %v12634_v20  ;;  %v14163_v45 = vld [vmem:[%s18466_s6 + $0x130] sm:$0xff]   ;;  %v14167_v20 = vld [vmem:[%s18466_s6 + $0x58] sm:$0xff]   ;;  %v14169_v59 = vld [vmem:[%s18466_s6 + $0x60] sm:$0xff]  }
 0x53b   : > { %v12546_v14 = vadd.f32 %v12545_v23, %v12544_v47  ;;  %v12547_v8 = vpop.f32.mrb[82].mxu1  ;;  %12752 = vmatprep.subr.bf16.mxu1 %v14163_v45  ;;  %v14170_v23 = vld [vmem:[%s18466_s6 + $0x20] sm:$0xff]  }
 0x53c   : > { %v12548_v50 = vpop.f32.mrb[83].mxu1  ;;  %v17285_v7 = vadd.f32 %v17204_v41, %v12637_v51  ;;  %v14164_v41 = vld [vmem:[%s18466_s6 + $0x50] sm:$0xff]  }
 0x53d   : > { %v17288_v13 = vadd.f32 %v12546_v14, %v17124_v24  ;;  %v12549_v63 = vadd.f32 %v12548_v50, %v12547_v8  ;;  %v14165_v24 = vld [vmem:[%s18466_s6 + $0xf0] sm:$0xff]   ;;  %12880 = vmatprep.subr.bf16.mxu0 %v14164_v41 }
 0x53e   : > { %v12638_v62 = vpop.f32.mrb[148].mxu0  ;;  %12753 = vmatpush3.bf16.msra.mxu1 %v14165_v24  ;;  %12881 = vmatpush3.bf16.msra.mxu0 %v14166_v46  ;;  %v14172_v46 = vld [vmem:[%s18466_s6 + $0x28] sm:$0xff]  }
 0x53f   : > { %v17306_v11 = vadd.f32 %v12549_v63, %v17127_v48  ;;  %v12639_v32 = vpop.f32.mrb[149].mxu0  ;;  %12882 = vmatprep.subr.bf16.mxu0 %v14167_v20 }
 0x540   : > { %v12640_v25 = vadd.f32 %v12639_v32, %v12638_v62  ;;  %v12641_v49 = vpop.f32.mrb[150].mxu0 }
 0x541   : > { %v12642_v17 = vpop.f32.mrb[151].mxu0  ;;  %v12550_v30 = vpop.f32.mrb[84].mxu1 }
 0x542   : > { %v12643_v12 = vadd.f32 %v12642_v17, %v12641_v49  ;;  %v12551_v54 = vpop.f32.mrb[85].mxu1  ;;  %v17312_v26 = vadd.f32 %v17209_v34, %v12640_v25  ;;  %v14168_v34 = vld [vmem:[%s18466_s6 + $0x18] sm:$0xff]  }
 0x543   : > { %v12552_v48 = vadd.f32 %v12551_v54, %v12550_v30  ;;  %v12553_v60 = vpop.f32.mrb[86].mxu1  ;;  %12883 = vmatpush3.bf16.msra.mxu0 %v14168_v34  ;;  %v14175_v30 = vld [vmem:[%s18466_s6 + $0xf8] sm:$0xff]  }
 0x544   : > { %v12554_v44 = vpop.f32.mrb[87].mxu1  ;;  %v17315_v19 = vadd.f32 %v17212_v38, %v12643_v12  ;;  %12884 = vmatprep.subr.bf16.mxu0 %v14169_v59 }
 0x545   : > { %v17318_v31 = vadd.f32 %v12552_v48, %v17131_v18  ;;  %v12555_v55 = vadd.f32 %v12554_v44, %v12553_v60 }
 0x546   : > { %v12644_v35 = vpop.f32.mrb[152].mxu0 }
 0x547   : > { %v17330_v38 = vadd.f32 %v12555_v55, %v17133_v40  ;;  %v12645_v47 = vpop.f32.mrb[153].mxu0  ;;  %12885 = vmatpush3.bf16.msra.mxu0 %v14170_v23  ;;  %v14176_v55 = vld [vmem:[%s18466_s6 + $0x30] sm:$0xff]  }
 0x548   : > { %v12646_v18 = vadd.f32 %v12645_v47, %v12644_v35  ;;  %v12647_v51 = vpop.f32.mrb[154].mxu0 }
 0x549   : > { %v12648_v14 = vpop.f32.mrb[155].mxu0  ;;  %v12556_v8 = vpop.f32.mrb[88].mxu1 }
 0x54a   : > { %v12649_v50 = vadd.f32 %v12648_v14, %v12647_v51  ;;  %v12557_v63 = vpop.f32.mrb[89].mxu1  ;;  %v17336_v3 = vadd.f32 %v17219_v28, %v12646_v18  ;;  %v14171_v28 = vld [vmem:[%s18466_s6 + $0x68] sm:$0xff]   ;;  %v14177_v14 = vld [vmem:[%s18466_s6 + $0x78] sm:$0xff]  }
 0x54b   : > { %v12558_v52 = vadd.f32 %v12557_v63, %v12556_v8  ;;  %v12559_v40 = vpop.f32.mrb[90].mxu1  ;;  %12886 = vmatprep.subr.bf16.mxu0 %v14171_v28  ;;  %v14178_v8 = vld [vmem:[%s18466_s6 + $0x38] sm:$0xff]  }
 0x54c   : > { %v12560_v45 = vpop.f32.mrb[91].mxu1  ;;  %v17339_v62 = vadd.f32 %v17225_v0, %v12649_v50  ;;  %v14173_v0 = vld [vmem:[%s18466_s6 + $0x138] sm:$0xff]   ;;  %12887 = vmatpush3.bf16.msra.mxu0 %v14172_v46 }
 0x54d   : > { %v17342_v41 = vadd.f32 %v12558_v52, %v17135_v33  ;;  %v12561_v24 = vadd.f32 %v12560_v45, %v12559_v40  ;;  %12754 = vmatprep.subr.bf16.mxu1 %v14173_v0 }
 0x54e   : > { %v12650_v32 = vpop.f32.mrb[156].mxu0  ;;  %12755 = vmatpush3.bf16.msra.mxu1 %v14175_v30 }
 0x54f   : > { %v17345_v25 = vadd.f32 %v12561_v24, %v17138_v53  ;;  %v12651_v49 = vpop.f32.mrb[157].mxu0  ;;  %v14174_v53 = vld [vmem:[%s18466_s6 + $0x70] sm:$0xff]  }
 0x550   : > { %v12652_v33 = vadd.f32 %v12651_v49, %v12650_v32  ;;  %v12653_v17 = vpop.f32.mrb[158].mxu0  ;;  %12888 = vmatprep.subr.bf16.mxu0 %v14174_v53 }
 0x551   : > { %v12654_v12 = vpop.f32.mrb[159].mxu0  ;;  %v12562_v54 = vpop.f32.mrb[92].mxu1  ;;  %12889 = vmatpush3.bf16.msra.mxu0 %v14176_v55 }
 0x552   : > { %v12655_v48 = vadd.f32 %v12654_v12, %v12653_v17  ;;  %v12563_v60 = vpop.f32.mrb[93].mxu1  ;;  %v17363_v44 = vadd.f32 %v17228_v61, %v12652_v33  ;;  %12890 = vmatprep.subr.bf16.mxu0 %v14177_v14 }
 0x553   : > { %v12564_v20 = vadd.f32 %v12563_v60, %v12562_v54  ;;  %v12565_v34 = vpop.f32.mrb[94].mxu1 }
 0x554   : > { %v12566_v59 = vpop.f32.mrb[95].mxu1  ;;  %v17369_v35 = vadd.f32 %v17231_v29, %v12655_v48  ;;  %v8550_v29 = vld [vmem:[#allocation6] sm:$0xff] }
 0x555   : > { %v17372_v47 = vadd.f32 %v12564_v20, %v17147_v10  ;;  %v12567_v18 = vadd.f32 %v12566_v59, %v12565_v34  ;;  %v8551_v10 = vld [vmem:[#allocation6 + $0x8] sm:$0x1]  ;;  %v8587_v52 = vshrl.u32 %v8550_v29, 16  ;;  %v8589_v40 = vshll.u32 %v8550_v29, 16  ;;  %12891 = vmatpush3.bf16.msra.mxu0 %v14178_v8  ;;  %v17399_v34 = vld [vmem:[%s18466_s6 + $0x140] sm:$0xff]  }
 0x556   : > { %v12656_v51 = vpop.f32.mrb[160].mxu0  ;;  %13292 = vmatprep.subr.bf16.mxu1 %v17399_v34 }
 0x557   : > { %v17375_v61 = vadd.f32 %v12567_v18, %v17150_v2  ;;  %v12657_v23 = vpop.f32.mrb[161].mxu0  ;;  %v8594_v2 = vshll.u32 %v8551_v10, 16  ;;  %v8591_v46 = vrot.slane %v8589_v40, 1 }
 0x558   : > { %v12658_v50 = vadd.f32 %v12657_v23, %v12656_v51  ;;  %v12659_v63 = vpop.f32.mrb[162].mxu0 }
 0x559   : > { %v12660_v45 = vpop.f32.mrb[163].mxu0  ;;  %v12568_v24 = vpop.f32.mrb[96].mxu1  ;;  %v8596_v17 = vrot.slane %v8594_v2, 1  ;;  %v8592_v12 = vor.u32 %v8591_v46, %v8587_v52 }
 0x55a   : > { %v12661_v32 = vadd.f32 %v12660_v45, %v12659_v63  ;;  %v12569_v49 = vpop.f32.mrb[97].mxu1  ;;  %v17384_v28 = vadd.f32 %v17237_v1, %v12658_v50 }
 0x55b   : > { %v12570_v0 = vadd.f32 %v12569_v49, %v12568_v24  ;;  %v12571_v33 = vpop.f32.mrb[98].mxu1  ;;  %v8597_v55 = vsel %vm1648_vm2, %v8592_v12, %v8596_v17 }
 0x55c   : > { %v12572_v53 = vpop.f32.mrb[99].mxu1  ;;  %v17387_v30 = vadd.f32 %v17243_v22, %v12661_v32  ;;  %9835 = vmatprep.mubr.bf16.mxu0 %v8597_v55 }
 0x55d   : > { %v17390_v54 = vadd.f32 %v12570_v0, %v17153_v58  ;;  %v12573_v48 = vadd.f32 %v12572_v53, %v12571_v33  ;;  %9836 = vmatmul.mubr.bf16.vlgmr.msra.gmra.mrb[200].mxu0 %v8550_v29 }
 0x55e   : > { %v12662_v60 = vpop.f32.mrb[164].mxu0 }
 0x55f   : > { %v17394_v1 = vadd.f32 %v12573_v48, %v17156_v5  ;;  %v12663_v20 = vpop.f32.mrb[165].mxu0 }
 0x560   : > { %v12664_v22 = vadd.f32 %v12663_v20, %v12662_v60  ;;  %v12665_v59 = vpop.f32.mrb[166].mxu0 }
 0x561   : > { %v12666_v18 = vpop.f32.mrb[167].mxu0  ;;  %v12574_v58 = vpop.f32.mrb[100].mxu1 }
 0x562   : > { %v12667_v51 = vadd.f32 %v12666_v18, %v12665_v59  ;;  %v12575_v23 = vpop.f32.mrb[101].mxu1  ;;  %v17403_v14 = vadd.f32 %v17249_v42, %v12664_v22 }
 0x563   : > { %v12576_v5 = vadd.f32 %v12575_v23, %v12574_v58  ;;  %v12577_v8 = vpop.f32.mrb[102].mxu1 }
 0x564   : > { %v12578_v50 = vpop.f32.mrb[103].mxu1  ;;  %v17406_v63 = vadd.f32 %v17252_v6, %v12667_v51 }
 0x565   : > { %v17409_v10 = vadd.f32 %v12576_v5, %v17165_v39  ;;  %v12579_v52 = vadd.f32 %v12578_v50, %v12577_v8 }
 0x566   : > { %v12668_v29 = vpop.f32.mrb[168].mxu0 }
 0x567   : > { %v17412_v40 = vadd.f32 %v12579_v52, %v17168_v56  ;;  %v12669_v45 = vpop.f32.mrb[169].mxu0 }
 0x568   : > { %v12670_v24 = vadd.f32 %v12669_v45, %v12668_v29  ;;  %v12671_v2 = vpop.f32.mrb[170].mxu0 }
 0x569   : > { %v12672_v32 = vpop.f32.mrb[171].mxu0 }
 0x56a   : > { %v12673_v42 = vadd.f32 %v12672_v32, %v12671_v2  ;;  %v17415_v49 = vadd.f32 %v17261_v57, %v12670_v24 }
 0x56c   : > { %v17418_v46 = vadd.f32 %v17264_v37, %v12673_v42 }
 0x56e   : > { %v12674_v6 = vpop.f32.mrb[172].mxu0 }
 0x56f   : > { %v12675_v0 = vpop.f32.mrb[173].mxu0 }
 0x570   : > { %v12676_v39 = vadd.f32 %v12675_v0, %v12674_v6  ;;  %v12677_v33 = vpop.f32.mrb[174].mxu0 }
 0x571   : > { %v12678_v17 = vpop.f32.mrb[175].mxu0 }
 0x572   : > { %v12679_v53 = vadd.f32 %v12678_v17, %v12677_v33  ;;  %v17421_v56 = vadd.f32 %v17276_v21, %v12676_v39 }
 0x574   : > { %v17424_v12 = vadd.f32 %v17279_v36, %v12679_v53 }
 0x576   : > { %v12680_v48 = vpop.f32.mrb[176].mxu0 }
 0x577   : > { %v12681_v60 = vpop.f32.mrb[177].mxu0 }
 0x578   : > { %v12682_v55 = vadd.f32 %v12681_v60, %v12680_v48  ;;  %v12683_v57 = vpop.f32.mrb[178].mxu0 }
 0x579   : > { %v12684_v20 = vpop.f32.mrb[179].mxu0 }
 0x57a   : > { %v12685_v22 = vadd.f32 %v12684_v20, %v12683_v57  ;;  %v17427_v37 = vadd.f32 %v17288_v13, %v12682_v55 }
 0x57c   : > { %v17430_v59 = vadd.f32 %v17306_v11, %v12685_v22 }
 0x57e   : > { %v12686_v18 = vpop.f32.mrb[180].mxu0 }
 0x57f   : > { %v12687_v58 = vpop.f32.mrb[181].mxu0 }
 0x580   : > { %v12688_v51 = vadd.f32 %v12687_v58, %v12686_v18  ;;  %v12689_v21 = vpop.f32.mrb[182].mxu0 }
 0x581   : > { %v12690_v23 = vpop.f32.mrb[183].mxu0 }
 0x582   : > { %v12691_v5 = vadd.f32 %v12690_v23, %v12689_v21  ;;  %v17433_v36 = vadd.f32 %v17318_v31, %v12688_v51 }
 0x584   : > { %v17436_v8 = vadd.f32 %v17330_v38, %v12691_v5 }
 0x586   : > { %v12692_v50 = vpop.f32.mrb[184].mxu0 }
 0x587   : > { %v12693_v52 = vpop.f32.mrb[185].mxu0 }
 0x588   : > { %v12694_v29 = vadd.f32 %v12693_v52, %v12692_v50  ;;  %v12695_v13 = vpop.f32.mrb[186].mxu0 }
 0x589   : > { %v12696_v45 = vpop.f32.mrb[187].mxu0 }
 0x58a   : > { %v12697_v24 = vadd.f32 %v12696_v45, %v12695_v13  ;;  %v17439_v11 = vadd.f32 %v17342_v41, %v12694_v29 }
 0x58c   : > { %v17442_v2 = vadd.f32 %v17345_v25, %v12697_v24 }
 0x58e   : > { %v12698_v32 = vpop.f32.mrb[188].mxu0 }
 0x58f   : > { %v12699_v42 = vpop.f32.mrb[189].mxu0 }
 0x590   : > { %v12700_v6 = vadd.f32 %v12699_v42, %v12698_v32  ;;  %v12701_v31 = vpop.f32.mrb[190].mxu0 }
 0x591   : > { %v12702_v0 = vpop.f32.mrb[191].mxu0 }
 0x592   : > { %v12703_v39 = vadd.f32 %v12702_v0, %v12701_v31  ;;  %v17445_v38 = vadd.f32 %v17372_v47, %v12700_v6 }
 0x594   : > { %v17448_v33 = vadd.f32 %v17375_v61, %v12703_v39 }
 0x596   : > { %v12704_v17 = vpop.f32.mrb[192].mxu0 }
 0x597   : > { %v12705_v53 = vpop.f32.mrb[193].mxu0 }
 0x598   : > { %v12706_v48 = vadd.f32 %v12705_v53, %v12704_v17  ;;  %v12707_v41 = vpop.f32.mrb[194].mxu0 }
 0x599   : > { %v12708_v60 = vpop.f32.mrb[195].mxu0 }
 0x59a   : > { %v12709_v55 = vadd.f32 %v12708_v60, %v12707_v41  ;;  %v17451_v25 = vadd.f32 %v17390_v54, %v12706_v48  ;;  %v17465_v54 = vld [vmem:[%s18467_s7 + $0x3] ss:$0 sm:$0xff] }
 0x59c   : > { %v17454_v57 = vadd.f32 %v17394_v1, %v12709_v55 }
 0x59e   : > { %v12710_v20 = vpop.f32.mrb[196].mxu0 }
 0x59f   : > { %v12711_v22 = vpop.f32.mrb[197].mxu0 }
 0x5a0   : > { %v12712_v18 = vadd.f32 %v12711_v22, %v12710_v20  ;;  %v12713_v47 = vpop.f32.mrb[198].mxu0 }
 0x5a1   : > { %v12714_v58 = vpop.f32.mrb[199].mxu0 }
 0x5a2   : > { %v12715_v51 = vadd.f32 %v12714_v58, %v12713_v47  ;;  %v17457_v61 = vadd.f32 %v17409_v10, %v12712_v18 }
 0x5a4   : > { %v17460_v21 = vadd.f32 %v17412_v40, %v12715_v51  ;;  %v17474_v40 = vld [vmem:[%s18467_s7 + $0x7] ss:$0 sm:$0xff] }
 0x5a6   : > { %v13262_v23 = vpop.f32.mrb[104].mxu0 }
 0x5a7   : > { %v13466_v1 = vadd.f32 %v17270_v43, %v13262_v23  ;;  %v7959_v5 = vpop.f32.mrb[105].mxu0 }
 0x5a8   : > { %v13469_v50 = vadd.f32 %v17255_v15, %v7959_v5  ;;  %v13263_v52 = vpop.f32.mrb[106].mxu0 }
 0x5a9   : > { %v8124_v29 = vadd.f32 %v13466_v1, %v17465_v54  ;;  %v13472_v10 = vadd.f32 %v17273_v4, %v13263_v52  ;;  %v7962_v13 = vpop.f32.mrb[107].mxu0  ;;  %v17484_v4 = vld [vmem:[%s18467_s7 + $0x8] ss:$0 sm:$0xff] }
 0x5aa   : > { %v8122_v45 = vadd.f32 %v13469_v50, %v17465_v54  ;;  %v13475_v24 = vadd.f32 %v17258_v16, %v7962_v13 }
 0x5ab   : > { %v8156_v32 = vmax.f32 %v8124_v29, 0.0  ;;  %v8125_v43 = vadd.f32 %v13472_v10, %v17465_v54 }
 0x5ac   : > { %v8154_v42 = vmax.f32 %v8122_v45, 0.0  ;;  %v8123_v15 = vadd.f32 %v13475_v24, %v17465_v54 }
 0x5ad   : > { %v8192_v6 = vmul.f32 %v17474_v40, %v8156_v32  ;;  %v8157_v31 = vmax.f32 %v8125_v43, 0.0 }
 0x5ae   : > { %v8190_v0 = vmul.f32 %v17474_v40, %v8154_v42  ;;  %v8155_v39 = vmax.f32 %v8123_v15, 0.0  ;;  %v13266_v17 = vpop.f32.mrb[108].mxu0 }
 0x5af   : > { %v8193_v16 = vmul.f32 %v17474_v40, %v8157_v31  ;;  %v13478_v53 = vadd.f32 %v17312_v26, %v13266_v17  ;;  %v7975_v48 = vpop.f32.mrb[109].mxu0  ;;  %v8228_v20 = vadd.f32 %v17484_v4, %v8192_v6 }
 0x5b0   : > { %v8191_v41 = vmul.f32 %v17474_v40, %v8155_v39  ;;  %v13481_v60 = vadd.f32 %v17282_v27, %v7975_v48  ;;  %v13267_v55 = vpop.f32.mrb[110].mxu0  ;;  %v8226_v51 = vadd.f32 %v17484_v4, %v8190_v0 }
 0x5b1   : > { %v8229_v22 = vadd.f32 %v17484_v4, %v8193_v16  ;;  %v8128_v18 = vadd.f32 %v13478_v53, %v17465_v54  ;;  %v13484_v47 = vadd.f32 %v17315_v19, %v13267_v55  ;;  %v7978_v58 = vpop.f32.mrb[111].mxu0  ;;  %v8427_v16 = vld [vmem:[#allocation6 + $0x28] sm:$0x1] }
 0x5b2   : > { %v8227_v23 = vadd.f32 %v17484_v4, %v8191_v41  ;;  %v8126_v26 = vadd.f32 %v13481_v60, %v17465_v54  ;;  %v13487_v1 = vadd.f32 %v17285_v7, %v7978_v58 }
 0x5b3   : > { %v8259_v5 = vpack.c.bf16 %v8229_v22, %v8228_v20  ;;  %v8160_v27 = vmax.f32 %v8128_v18, 0.0  ;;  %v8129_v50 = vadd.f32 %v13484_v47, %v17465_v54  ;;  %v8421_v18 = vld [vmem:[#allocation6 + $0x18] sm:$0x1] }
 0x5b4   : > { %v8258_v52 = vpack.c.bf16 %v8227_v23, %v8226_v51  ;;  %v8158_v29 = vmax.f32 %v8126_v26, 0.0  ;;  %v8127_v10 = vadd.f32 %v13487_v1, %v17465_v54  ;;  %v8424_v51 = vld [vmem:[#allocation6 + $0x20] sm:$0xff] }
 0x5b5   : > { %v8282_v13 = vshrl.u32 %v8259_v5, 16  ;;  %v8285_v45 = vshll.u32 %v8259_v5, 16  ;;  %v8196_v19 = vmul.f32 %v17474_v40, %v8160_v27  ;;  %v8161_v24 = vmax.f32 %v8129_v50, 0.0  ;;  %v8418_v50 = vld [vmem:[#allocation6 + $0x10] sm:$0xff] }
 0x5b6   : > { %v8275_v32 = vshrl.u32 %v8258_v52, 16  ;;  %v8278_v43 = vshll.u32 %v8258_v52, 16  ;;  %v8194_v42 = vmul.f32 %v17474_v40, %v8158_v29  ;;  %v8159_v15 = vmax.f32 %v8127_v10, 0.0  ;;  %v13270_v6 = vpop.f32.mrb[112].mxu0 }
 0x5b7   : > { %v8284_v7 = vrot.slane %v8282_v13, 7  ;;  %v8232_v31 = vadd.f32 %v17484_v4, %v8196_v19  ;;  %v8197_v0 = vmul.f32 %v17474_v40, %v8161_v24  ;;  %v13490_v39 = vadd.f32 %v17363_v44, %v13270_v6  ;;  %v7991_v17 = vpop.f32.mrb[113].mxu0 }
 0x5b8   : > { %v8277_v53 = vrot.slane %v8275_v32, 7  ;;  %v8230_v48 = vadd.f32 %v17484_v4, %v8194_v42  ;;  %v8195_v41 = vmul.f32 %v17474_v40, %v8159_v15  ;;  %v13493_v60 = vadd.f32 %v17336_v3, %v7991_v17  ;;  %v13271_v55 = vpop.f32.mrb[114].mxu0 }
 0x5b9   : > { %v8287_v20 = vor.u32 %v8285_v45, %v8284_v7  ;;  %v8428_v22 = vsel %vm16079_vm9, %v8284_v7, %v8427_v16  ;;  %v8233_v47 = vadd.f32 %v17484_v4, %v8197_v0  ;;  %v8132_v58 = vadd.f32 %v13490_v39, %v17465_v54  ;;  %v7994_v44 = vpop.f32.mrb[115].mxu0 }
 0x5ba   : > { %8429 = vst [vmem:[#allocation6 + $0x28] sm:$0x1] %v8428_v22  ;;  %v8280_v23 = vor.u32 %v8278_v43, %v8277_v53  ;;  %v8422_v26 = vsel %vm16079_vm9, %v8277_v53, %v8421_v18  ;;  %v8231_v1 = vadd.f32 %v17484_v4, %v8195_v41  ;;  %v8130_v3 = vadd.f32 %v13493_v60, %v17465_v54 }
 0x5bb   : > { %v17519_v27 = vsel %vm16401_vm13, %v8287_v20, %v8424_v51  ;;  %8423 = vst [vmem:[#allocation6 + $0x18] sm:$0x1] %v8422_v26  ;;  %v8261_v52 = vpack.c.bf16 %v8233_v47, %v8232_v31  ;;  %v8164_v29 = vmax.f32 %v8132_v58, 0.0  ;;  %v13496_v10 = vadd.f32 %v17369_v35, %v13271_v55  ;;  %v8433_v58 = vld [vmem:[#allocation6 + $0x38] sm:$0x1] }
 0x5bc   : > { %8426 = vst [vmem:[#allocation6 + $0x20] sm:$0xff] %v17519_v27  ;;  %v17525_v13 = vsel %vm16401_vm13, %v8280_v23, %v8418_v50  ;;  %v8260_v45 = vpack.c.bf16 %v8231_v1, %v8230_v48  ;;  %v8162_v19 = vmax.f32 %v8130_v3, 0.0  ;;  %v13499_v24 = vadd.f32 %v17339_v62, %v7994_v44  ;;  %v8439_v48 = vld [vmem:[#allocation6 + $0x48] sm:$0x1] }
 0x5bd   : > { %8420 = vst [vmem:[#allocation6 + $0x10] sm:$0xff] %v17525_v13  ;;  %v8296_v32 = vshrl.u32 %v8261_v52, 16  ;;  %v8299_v43 = vshll.u32 %v8261_v52, 16  ;;  %v8200_v42 = vmul.f32 %v17474_v40, %v8164_v29  ;;  %v8133_v15 = vadd.f32 %v13496_v10, %v17465_v54  ;;  %v8430_v52 = vld [vmem:[#allocation6 + $0x30] sm:$0xff] }
 0x5be   : > { %v8289_v6 = vshrl.u32 %v8260_v45, 16  ;;  %v8292_v35 = vshll.u32 %v8260_v45, 16  ;;  %v8198_v7 = vmul.f32 %v17474_v40, %v8162_v19  ;;  %v8131_v31 = vadd.f32 %v13499_v24, %v17465_v54  ;;  %v13274_v0 = vpop.f32.mrb[116].mxu0 }
 0x5bf   : > { %v8298_v39 = vrot.slane %v8296_v32, 7  ;;  %v8236_v17 = vadd.f32 %v17484_v4, %v8200_v42  ;;  %v8165_v16 = vmax.f32 %v8133_v15, 0.0  ;;  %v13502_v62 = vadd.f32 %v17403_v14, %v13274_v0  ;;  %v8007_v53 = vpop.f32.mrb[117].mxu0  ;;  %v8436_v14 = vld [vmem:[#allocation6 + $0x40] sm:$0xff] }
 0x5c0   : > { %v8291_v41 = vrot.slane %v8289_v6, 7  ;;  %v8234_v60 = vadd.f32 %v17484_v4, %v8198_v7  ;;  %v8163_v55 = vmax.f32 %v8131_v31, 0.0  ;;  %v13505_v20 = vadd.f32 %v17384_v28, %v8007_v53  ;;  %v13275_v22 = vpop.f32.mrb[118].mxu0 }
 0x5c1   : > { %v8301_v18 = vor.u32 %v8299_v43, %v8298_v39  ;;  %v8440_v47 = vsel %vm16079_vm9, %v8298_v39, %v8439_v48  ;;  %v8201_v44 = vmul.f32 %v17474_v40, %v8165_v16  ;;  %v8136_v51 = vadd.f32 %v13502_v62, %v17465_v54  ;;  %v8010_v23 = vpop.f32.mrb[119].mxu0 }
 0x5c2   : > { %8441 = vst [vmem:[#allocation6 + $0x48] sm:$0x1] %v8440_v47  ;;  %v8294_v26 = vor.u32 %v8292_v35, %v8291_v41  ;;  %v8434_v1 = vsel %vm16079_vm9, %v8291_v41, %v8433_v58  ;;  %v8199_v3 = vmul.f32 %v17474_v40, %v8163_v55  ;;  %v8134_v28 = vadd.f32 %v13505_v20, %v17465_v54 }
 0x5c3   : > { %v17547_v50 = vsel %vm16401_vm13, %v8301_v18, %v8436_v14  ;;  %8435 = vst [vmem:[#allocation6 + $0x38] sm:$0x1] %v8434_v1  ;;  %v8237_v29 = vadd.f32 %v17484_v4, %v8201_v44  ;;  %v8168_v10 = vmax.f32 %v8136_v51, 0.0  ;;  %v13508_v45 = vadd.f32 %v17406_v63, %v13275_v22  ;;  %v8451_v51 = vld [vmem:[#allocation6 + $0x68] sm:$0x1] }
 0x5c4   : > { %8438 = vst [vmem:[#allocation6 + $0x40] sm:$0xff] %v17547_v50  ;;  %v17554_v19 = vsel %vm16401_vm13, %v8294_v26, %v8430_v52  ;;  %v8235_v24 = vadd.f32 %v17484_v4, %v8199_v3  ;;  %v8166_v32 = vmax.f32 %v8134_v28, 0.0  ;;  %v13511_v43 = vadd.f32 %v17387_v30, %v8010_v23  ;;  %v8445_v52 = vld [vmem:[#allocation6 + $0x58] sm:$0x1] }
 0x5c5   : > { %8432 = vst [vmem:[#allocation6 + $0x30] sm:$0xff] %v17554_v19  ;;  %v8263_v42 = vpack.c.bf16 %v8237_v29, %v8236_v17  ;;  %v8204_v15 = vmul.f32 %v17474_v40, %v8168_v10  ;;  %v8137_v6 = vadd.f32 %v13508_v45, %v17465_v54  ;;  %v8599_v63 = vshrl.u32 %v17525_v13, 16  ;;  %v8448_v10 = vld [vmem:[#allocation6 + $0x60] sm:$0xff] }
 0x5c6   : > { %v8262_v35 = vpack.c.bf16 %v8235_v24, %v8234_v60  ;;  %v8202_v7 = vmul.f32 %v17474_v40, %v8166_v32  ;;  %v8135_v31 = vadd.f32 %v13511_v43, %v17465_v54  ;;  %v13278_v0 = vpop.f32.mrb[120].mxu0  ;;  %v8601_v39 = vshll.u32 %v17525_v13, 16  ;;  %v8442_v32 = vld [vmem:[#allocation6 + $0x50] sm:$0xff] }
 0x5c7   : > { %v8310_v16 = vshrl.u32 %v8263_v42, 16  ;;  %v8313_v62 = vshll.u32 %v8263_v42, 16  ;;  %v8240_v30 = vadd.f32 %v17484_v4, %v8204_v15  ;;  %v8169_v53 = vmax.f32 %v8137_v6, 0.0  ;;  %v8023_v17 = vpop.f32.mrb[121].mxu0 }
 0x5c8   : > { %v8303_v48 = vshrl.u32 %v8262_v35, 16  ;;  %v8306_v41 = vshll.u32 %v8262_v35, 16  ;;  %v8238_v55 = vadd.f32 %v17484_v4, %v8202_v7  ;;  %v8167_v20 = vmax.f32 %v8135_v31, 0.0  ;;  %v13279_v22 = vpop.f32.mrb[122].mxu0 }
 0x5c9   : > { %v8312_v60 = vrot.slane %v8310_v16, 7  ;;  %v8205_v18 = vmul.f32 %v17474_v40, %v8169_v53  ;;  %v13514_v47 = vadd.f32 %v17421_v56, %v13278_v0  ;;  %v13517_v58 = vadd.f32 %v17415_v49, %v8023_v17  ;;  %v8026_v44 = vpop.f32.mrb[123].mxu0  ;;  %v8553_v17 = vld [vmem:[#allocation6 + $0x18] sm:$0x1] }
 0x5ca   : > { %v8305_v23 = vrot.slane %v8303_v48, 7  ;;  %v8203_v14 = vmul.f32 %v17474_v40, %v8167_v20  ;;  %v13520_v26 = vadd.f32 %v17424_v12, %v13279_v22  ;;  %v13523_v1 = vadd.f32 %v17418_v46, %v8026_v44 }
 0x5cb   : > { %v8315_v3 = vor.u32 %v8313_v62, %v8312_v60  ;;  %v8452_v28 = vsel %vm16079_vm9, %v8312_v60, %v8451_v51  ;;  %v8241_v29 = vadd.f32 %v17484_v4, %v8205_v18  ;;  %v8140_v56 = vadd.f32 %v13514_v47, %v17465_v54 }
 0x5cc   : > { %8453 = vst [vmem:[#allocation6 + $0x68] sm:$0x1] %v8452_v28  ;;  %v8308_v49 = vor.u32 %v8306_v41, %v8305_v23  ;;  %v8446_v45 = vsel %vm16079_vm9, %v8305_v23, %v8445_v52  ;;  %v8239_v24 = vadd.f32 %v17484_v4, %v8203_v14  ;;  %v8138_v12 = vadd.f32 %v13517_v58, %v17465_v54  ;;  %v8463_v23 = vld [vmem:[#allocation6 + $0x88] sm:$0x1] }
 0x5cd   : > { %v17583_v46 = vsel %vm16401_vm13, %v8315_v3, %v8448_v10  ;;  %8447 = vst [vmem:[#allocation6 + $0x58] sm:$0x1] %v8446_v45  ;;  %v8265_v43 = vpack.c.bf16 %v8241_v29, %v8240_v30  ;;  %v8172_v42 = vmax.f32 %v8140_v56, 0.0  ;;  %v8141_v15 = vadd.f32 %v13520_v26, %v17465_v54  ;;  %v8457_v29 = vld [vmem:[#allocation6 + $0x78] sm:$0x1] }
 0x5ce   : > { %8450 = vst [vmem:[#allocation6 + $0x60] sm:$0xff] %v17583_v46  ;;  %v17589_v6 = vsel %vm16401_vm13, %v8308_v49, %v8442_v32  ;;  %v8264_v35 = vpack.c.bf16 %v8239_v24, %v8238_v55  ;;  %v8170_v7 = vmax.f32 %v8138_v12, 0.0  ;;  %v8139_v31 = vadd.f32 %v13523_v1, %v17465_v54  ;;  %v13282_v0 = vpop.f32.mrb[124].mxu0  ;;  %v8460_v49 = vld [vmem:[#allocation6 + $0x80] sm:$0xff]  ;;  %v8555_v32 = vld [vmem:[#allocation6 + $0x28] sm:$0x1] }
 0x5cf   : > { %8444 = vst [vmem:[#allocation6 + $0x50] sm:$0xff] %v17589_v6  ;;  %v8324_v16 = vshrl.u32 %v8265_v43, 16  ;;  %v8327_v62 = vshll.u32 %v8265_v43, 16  ;;  %v8208_v30 = vmul.f32 %v17474_v40, %v8172_v42  ;;  %v8173_v53 = vmax.f32 %v8141_v15, 0.0  ;;  %v8039_v48 = vpop.f32.mrb[125].mxu0  ;;  %v8454_v42 = vld [vmem:[#allocation6 + $0x70] sm:$0xff] }
 0x5d0   : > { %v8317_v41 = vshrl.u32 %v8264_v35, 16  ;;  %v8320_v20 = vshll.u32 %v8264_v35, 16  ;;  %v8206_v22 = vmul.f32 %v17474_v40, %v8170_v7  ;;  %v8171_v60 = vmax.f32 %v8139_v31, 0.0  ;;  %v13283_v18 = vpop.f32.mrb[126].mxu0 }
 0x5d1   : > { %v8326_v55 = vrot.slane %v8324_v16, 7  ;;  %v8244_v47 = vadd.f32 %v17484_v4, %v8208_v30  ;;  %v8209_v58 = vmul.f32 %v17474_v40, %v8173_v53  ;;  %v8603_v44 = vrot.slane %v8601_v39, 1  ;;  %v8042_v51 = vpop.f32.mrb[127].mxu0  ;;  %v14180_v53 = vld [vmem:[%s18466_s6 + $0x148] sm:$0xff]  }
 0x5d2   : > { %v8319_v14 = vrot.slane %v8317_v41, 7  ;;  %v8242_v26 = vadd.f32 %v17484_v4, %v8206_v22  ;;  %v8207_v1 = vmul.f32 %v17474_v40, %v8171_v60  ;;  %v8606_v3 = vshll.u32 %v8553_v17, 16 }
 0x5d3   : > { %v8329_v28 = vor.u32 %v8327_v62, %v8326_v55  ;;  %v8464_v52 = vsel %vm16079_vm9, %v8326_v55, %v8463_v23  ;;  %v8245_v56 = vadd.f32 %v17484_v4, %v8209_v58  ;;  %v8604_v10 = vor.u32 %v8603_v44, %v8599_v63 }
 0x5d4   : > { %8465 = vst [vmem:[#allocation6 + $0x88] sm:$0x1] %v8464_v52  ;;  %v8322_v39 = vor.u32 %v8320_v20, %v8319_v14  ;;  %v8458_v45 = vsel %vm16079_vm9, %v8319_v14, %v8457_v29  ;;  %v8243_v24 = vadd.f32 %v17484_v4, %v8207_v1  ;;  %v8608_v12 = vrot.slane %v8606_v3, 1  ;;  %v8475_v3 = vld [vmem:[#allocation6 + $0xa8] sm:$0x1] }
 0x5d5   : > { %v17609_v43 = vsel %vm16401_vm13, %v8329_v28, %v8460_v49  ;;  %8459 = vst [vmem:[#allocation6 + $0x78] sm:$0x1] %v8458_v45  ;;  %v8267_v15 = vpack.c.bf16 %v8245_v56, %v8244_v47  ;;  %v13526_v35 = vadd.f32 %v17433_v36, %v13282_v0  ;;  %v8611_v63 = vshrl.u32 %v17519_v27, 16  ;;  %v8557_v45 = vld [vmem:[#allocation6 + $0x38] sm:$0x1] }
 0x5d6   : > { %8462 = vst [vmem:[#allocation6 + $0x80] sm:$0xff] %v17609_v43  ;;  %v17616_v7 = vsel %vm16401_vm13, %v8322_v39, %v8454_v42  ;;  %v8266_v31 = vpack.c.bf16 %v8243_v24, %v8242_v26  ;;  %v8609_v16 = vsel %vm1648_vm2, %v8604_v10, %v8608_v12  ;;  %v8613_v62 = vshll.u32 %v17519_v27, 16  ;;  %v13286_v30 = vpop.f32.mrb[128].mxu0  ;;  %v8466_v12 = vld [vmem:[#allocation6 + $0x90] sm:$0xff] }
 0x5d7   : > { %8456 = vst [vmem:[#allocation6 + $0x70] sm:$0xff] %v17616_v7  ;;  %v8338_v36 = vshrl.u32 %v8267_v15, 16  ;;  %v8341_v0 = vshll.u32 %v8267_v15, 16  ;;  %9369 = vmatprep.mubr.bf16.mxu1 %v8609_v16  ;;  %9843 = vmatprep.mubr.bf16.mxu0 %v8609_v16  ;;  %v8144_v17 = vadd.f32 %v13526_v35, %v17465_v54  ;;  %v8618_v41 = vshll.u32 %v8555_v32, 16  ;;  %v8055_v20 = vpop.f32.mrb[129].mxu0 }
 0x5d8   : > { %v8331_v22 = vshrl.u32 %v8266_v31, 16  ;;  %v8334_v60 = vshll.u32 %v8266_v31, 16  ;;  %9370 = vmatmul.mubr.bf16.vlgmr.msra.gmra.mrb[104].mxu1 %v17525_v13  ;;  %9844 = vmatmul.mubr.bf16.gmra.mrb[204].mxu0 %v17525_v13  ;;  %v8615_v55 = vrot.slane %v8613_v62, 1  ;;  %v13529_v47 = vadd.f32 %v17427_v37, %v8039_v48  ;;  %v13287_v58 = vpop.f32.mrb[130].mxu0  ;;  %v8469_v48 = vld [vmem:[#allocation6 + $0x98] sm:$0x1] }
 0x5d9   : > { %v8340_v44 = vrot.slane %v8338_v36, 7  ;;  %v8176_v23 = vmax.f32 %v8144_v17, 0.0  ;;  %v8620_v14 = vrot.slane %v8618_v41, 1  ;;  %13293 = vmatpush3.bf16.msra.mxu1 %v17399_v34  ;;  %v13532_v26 = vadd.f32 %v17436_v8, %v13283_v18  ;;  %v8058_v1 = vpop.f32.mrb[131].mxu0  ;;  %v14181_v8 = vld [vmem:[%s18466_s6 + $0x150] sm:$0xff]   ;;  %v8472_v18 = vld [vmem:[#allocation6 + $0xa0] sm:$0xff] }
 0x5da   : > { %v8333_v28 = vrot.slane %v8331_v22, 7  ;;  %v8616_v52 = vor.u32 %v8615_v55, %v8611_v63  ;;  %v8142_v29 = vadd.f32 %v13529_v47, %v17465_v54  ;;  %v13535_v56 = vadd.f32 %v17430_v59, %v8042_v51  ;;  %13294 = vmatprep.subr.bf16.mxu1 %v14180_v53  ;;  %v14182_v22 = vld [vmem:[%s18466_s6 + $0x158] sm:$0xff]  }
 0x5db   : > { %v8343_v13 = vor.u32 %v8341_v0, %v8340_v44  ;;  %v8476_v37 = vsel %vm16079_vm9, %v8340_v44, %v8475_v3  ;;  %v8212_v10 = vmul.f32 %v17474_v40, %v8176_v23  ;;  %v8145_v34 = vadd.f32 %v13532_v26, %v17465_v54 }
 0x5dc   : > { %8477 = vst [vmem:[#allocation6 + $0xa8] sm:$0x1] %v8476_v37  ;;  %v8336_v49 = vor.u32 %v8334_v60, %v8333_v28  ;;  %v8470_v59 = vsel %vm16079_vm9, %v8333_v28, %v8469_v48  ;;  %v17642_v51 = vsel %vm1648_vm2, %v8616_v52, %v8620_v14  ;;  %v8174_v39 = vmax.f32 %v8142_v29, 0.0 }
 0x5dd   : > { %v17646_v24 = vsel %vm16401_vm13, %v8343_v13, %v8472_v18  ;;  %8471 = vst [vmem:[#allocation6 + $0x98] sm:$0x1] %v8470_v59  ;;  %9377 = vmatprep.mubr.bf16.mxu1 %v17642_v51  ;;  %9851 = vmatprep.mubr.bf16.mxu0 %v17642_v51  ;;  %v8177_v32 = vmax.f32 %v8145_v34, 0.0  ;;  %v8143_v42 = vadd.f32 %v13535_v56, %v17465_v54  ;;  %v8625_v0 = vshll.u32 %v17554_v19, 16 }
 0x5de   : > { %8474 = vst [vmem:[#allocation6 + $0xa0] sm:$0xff] %v17646_v24  ;;  %v17654_v15 = vsel %vm16401_vm13, %v8336_v49, %v8466_v12  ;;  %v8248_v35 = vadd.f32 %v17484_v4, %v8212_v10  ;;  %v8210_v63 = vmul.f32 %v17474_v40, %v8174_v39  ;;  %v13538_v31 = vadd.f32 %v17445_v38, %v13286_v30  ;;  %v13290_v16 = vpop.f32.mrb[132].mxu0 }
 0x5df   : > { %13295 = vmatpush3.bf16.msra.mxu1 %v14180_v53  ;;  %8468 = vst [vmem:[#allocation6 + $0x90] sm:$0xff] %v17654_v15  ;;  %v8213_v62 = vmul.f32 %v17474_v40, %v8177_v32  ;;  %v8175_v36 = vmax.f32 %v8143_v42, 0.0  ;;  %v8630_v17 = vshll.u32 %v8557_v45, 16  ;;  %v17662_v41 = vpop.f32.mrb[133].mxu0  ;;  %v8623_v30 = vshrl.u32 %v17554_v19, 16 }
 0x5e0   : > { %13296 = vmatprep.subr.bf16.mxu1 %v14181_v8  ;;  %v8246_v60 = vadd.f32 %v17484_v4, %v8210_v63  ;;  %9378 = vmatmul.mubr.bf16.gmra.mrb[108].mxu1 %v17519_v27  ;;  %v8148_v38 = vadd.f32 %v13538_v31, %v17465_v54  ;;  %v13541_v53 = vadd.f32 %v17439_v11, %v8055_v20  ;;  %v17673_v55 = vpop.f32.mrb[134].mxu0  ;;  %v8627_v23 = vrot.slane %v8625_v0, 1  ;;  %v8559_v32 = vld [vmem:[#allocation6 + $0x48] sm:$0x1] }
 0x5e1   : > { %9852 = vmatmul.mubr.bf16.gmra.mrb[208].mxu0 %v17519_v27  ;;  %v8249_v47 = vadd.f32 %v17484_v4, %v8213_v62  ;;  %v8211_v44 = vmul.f32 %v17474_v40, %v8175_v36  ;;  %v8632_v14 = vrot.slane %v8630_v17, 1  ;;  %v17677_v26 = vpop.f32.mrb[135].mxu0  ;;  %v13544_v27 = vadd.f32 %v17448_v33, %v13287_v58  ;;  %v14183_v58 = vld [vmem:[%s18466_s6 + $0x160] sm:$0xff]   ;;  %v8487_v42 = vld [vmem:[#allocation6 + $0xc8] sm:$0x1] }
 0x5e2   : > { %v8180_v3 = vmax.f32 %v8148_v38, 0.0  ;;  %v8146_v28 = vadd.f32 %v13541_v53, %v17465_v54  ;;  %v13547_v52 = vadd.f32 %v17442_v2, %v8058_v1  ;;  %v8628_v20 = vor.u32 %v8627_v23, %v8623_v30  ;;  %v14184_v62 = vld [vmem:[%s18466_s6 + $0x168] sm:$0xff]   ;;  %v8481_v38 = vld [vmem:[#allocation6 + $0xb8] sm:$0x1] }
 0x5e3   : > { %13297 = vmatpush3.bf16.msra.mxu1 %v14181_v8  ;;  %v8269_v29 = vpack.c.bf16 %v8249_v47, %v8248_v35  ;;  %v8247_v11 = vadd.f32 %v17484_v4, %v8211_v44  ;;  %v13550_v56 = vadd.f32 %v17457_v61, %v13290_v16  ;;  %v8149_v48 = vadd.f32 %v13544_v27, %v17465_v54 }
 0x5e4   : > { %13298 = vmatprep.subr.bf16.mxu1 %v14182_v22  ;;  %v8216_v13 = vmul.f32 %v17474_v40, %v8180_v3  ;;  %v8178_v37 = vmax.f32 %v8146_v28, 0.0  ;;  %v8147_v10 = vadd.f32 %v13547_v52, %v17465_v54  ;;  %v17688_v2 = vsel %vm1648_vm2, %v8628_v20, %v8632_v14  ;;  %v8478_v28 = vld [vmem:[#allocation6 + $0xb0] sm:$0xff] }
 0x5e5   : > { %v8352_v34 = vshrl.u32 %v8269_v29, 16  ;;  %v8355_v18 = vshll.u32 %v8269_v29, 16  ;;  %v8268_v33 = vpack.c.bf16 %v8247_v11, %v8246_v60  ;;  %9385 = vmatprep.mubr.bf16.mxu1 %v17688_v2  ;;  %9859 = vmatprep.mubr.bf16.mxu0 %v17688_v2  ;;  %v8181_v8 = vmax.f32 %v8149_v48, 0.0  ;;  %v8484_v60 = vld [vmem:[#allocation6 + $0xc0] sm:$0xff]  ;;  %v14185_v48 = vld [vmem:[%s18466_s6 + $0x170] sm:$0xff]  }
 0x5e6   : > { %v8252_v61 = vadd.f32 %v17484_v4, %v8216_v13  ;;  %v8214_v1 = vmul.f32 %v17474_v40, %v8178_v37  ;;  %v8179_v49 = vmax.f32 %v8147_v10, 0.0  ;;  %v8152_v12 = vadd.f32 %v13550_v56, %v17465_v54 }
 0x5e7   : > { %v8354_v59 = vrot.slane %v8352_v34, 7  ;;  %v8345_v39 = vshrl.u32 %v8268_v33, 16  ;;  %v8348_v45 = vshll.u32 %v8268_v33, 16  ;;  %13299 = vmatpush3.bf16.msra.mxu1 %v14182_v22  ;;  %v8217_v63 = vmul.f32 %v17474_v40, %v8181_v8 }
 0x5e8   : > { %v8250_v35 = vadd.f32 %v17484_v4, %v8214_v1  ;;  %v8215_v31 = vmul.f32 %v17474_v40, %v8179_v49  ;;  %9386 = vmatmul.mubr.bf16.gmra.mrb[112].mxu1 %v17554_v19  ;;  %v8637_v16 = vshll.u32 %v17547_v50, 16  ;;  %v8184_v22 = vmax.f32 %v8152_v12, 0.0  ;;  %13300 = vmatprep.subr.bf16.mxu1 %v14183_v58 }
 0x5e9   : > { %9860 = vmatmul.mubr.bf16.gmra.mrb[212].mxu0 %v17554_v19  ;;  %v8357_v36 = vor.u32 %v8355_v18, %v8354_v59  ;;  %v8488_v0 = vsel %vm16079_vm9, %v8354_v59, %v8487_v42  ;;  %v8347_v17 = vrot.slane %v8345_v39, 7  ;;  %v8253_v30 = vadd.f32 %v17484_v4, %v8217_v63  ;;  %v14186_v39 = vld [vmem:[%s18466_s6 + $0x178] sm:$0xff]  }
 0x5ea   : > { %8489 = vst [vmem:[#allocation6 + $0xc8] sm:$0x1] %v8488_v0  ;;  %v8251_v19 = vadd.f32 %v17484_v4, %v8215_v31  ;;  %v8639_v53 = vrot.slane %v8637_v16, 1  ;;  %v8642_v47 = vshll.u32 %v8559_v32, 16  ;;  %v8635_v3 = vshrl.u32 %v17547_v50, 16  ;;  %v8496_v16 = vld [vmem:[#allocation6 + $0xe0] sm:$0xff] }
 0x5eb   : > { %v17713_v44 = vsel %vm16401_vm13, %v8357_v36, %v8484_v60  ;;  %v8350_v23 = vor.u32 %v8348_v45, %v8347_v17  ;;  %v8482_v14 = vsel %vm16079_vm9, %v8347_v17, %v8481_v38  ;;  %13301 = vmatpush3.bf16.msra.mxu1 %v14183_v58  ;;  %v8271_v27 = vpack.c.bf16 %v8253_v30, %v8252_v61  ;;  %v8561_v58 = vld [vmem:[#allocation6 + $0x58] sm:$0x1]  ;;  %v8499_v45 = vld [vmem:[#allocation6 + $0xe8] sm:$0x1] }
 0x5ec   : > { %8486 = vst [vmem:[#allocation6 + $0xc0] sm:$0xff] %v17713_v44  ;;  %8483 = vst [vmem:[#allocation6 + $0xb8] sm:$0x1] %v8482_v14  ;;  %v8270_v52 = vpack.c.bf16 %v8251_v19, %v8250_v35  ;;  %v8220_v29 = vmul.f32 %v17474_v40, %v8184_v22  ;;  %v8644_v11 = vrot.slane %v8642_v47, 1  ;;  %13302 = vmatprep.subr.bf16.mxu1 %v14184_v62  ;;  %v8493_v61 = vld [vmem:[#allocation6 + $0xd8] sm:$0x1] }
 0x5ed   : > { %v17722_v20 = vsel %vm16401_vm13, %v8350_v23, %v8478_v28  ;;  %v8640_v56 = vor.u32 %v8639_v53, %v8635_v3  ;;  %v13553_v13 = vadd.f32 %v17451_v25, %v17662_v41  ;;  %v13556_v37 = vadd.f32 %v17460_v21, %v17673_v55  ;;  %v8563_v17 = vld [vmem:[#allocation6 + $0x68] sm:$0x1]  ;;  %v8565_v23 = vld [vmem:[#allocation6 + $0x78] sm:$0x1] }
 0x5ee   : > { %8480 = vst [vmem:[#allocation6 + $0xb0] sm:$0xff] %v17722_v20  ;;  %v8366_v10 = vshrl.u32 %v8271_v27, 16  ;;  %v8369_v34 = vshll.u32 %v8271_v27, 16  ;;  %v8359_v18 = vshrl.u32 %v8270_v52, 16  ;;  %v8362_v33 = vshll.u32 %v8270_v52, 16  ;;  %v17773_v27 = vld [vmem:[%s18466_s6 + $0x80] sm:$0xff]  }
 0x5ef   : > { %v17733_v1 = vsel %vm1648_vm2, %v8640_v56, %v8644_v11  ;;  %v8150_v25 = vadd.f32 %v13553_v13, %v17465_v54  ;;  %v8153_v41 = vadd.f32 %v13556_v37, %v17465_v54  ;;  %v13559_v21 = vadd.f32 %v17454_v57, %v17677_v26  ;;  %13303 = vmatpush3.bf16.msra.mxu1 %v14184_v62  ;;  %v8490_v62 = vld [vmem:[#allocation6 + $0xd0] sm:$0xff] }
 0x5f0   : > { %v8368_v55 = vrot.slane %v8366_v10, 7  ;;  %v8361_v8 = vrot.slane %v8359_v18, 7  ;;  %9393 = vmatprep.mubr.bf16.mxu1 %v17733_v1  ;;  %9867 = vmatprep.mubr.bf16.mxu0 %v17733_v1  ;;  %v8647_v49 = vshrl.u32 %v17589_v6, 16  ;;  %v8649_v59 = vshll.u32 %v17589_v6, 16 }
 0x5f1   : > { %v8182_v12 = vmax.f32 %v8150_v25, 0.0  ;;  %v8185_v32 = vmax.f32 %v8153_v41, 0.0  ;;  %v8151_v57 = vadd.f32 %v13559_v21, %v17465_v54  ;;  %9394 = vmatmul.mubr.bf16.gmra.mrb[116].mxu1 %v17547_v50  ;;  %9868 = vmatmul.mubr.bf16.gmra.mrb[216].mxu0 %v17547_v50  ;;  %v8654_v26 = vshll.u32 %v8561_v58, 16  ;;  %v8511_v25 = vld [vmem:[#allocation6 + $0x108] sm:$0x1] }
 0x5f2   : > { %v8371_v42 = vor.u32 %v8369_v34, %v8368_v55  ;;  %v8500_v35 = vsel %vm16079_vm9, %v8368_v55, %v8499_v45  ;;  %v8364_v63 = vor.u32 %v8362_v33, %v8361_v8  ;;  %v8494_v31 = vsel %vm16079_vm9, %v8361_v8, %v8493_v61  ;;  %13304 = vmatprep.subr.bf16.mxu1 %v14185_v48  ;;  %v8505_v45 = vld [vmem:[#allocation6 + $0xf8] sm:$0x1] }
 0x5f3   : > { %8501 = vst [vmem:[#allocation6 + $0xe8] sm:$0x1] %v8500_v35  ;;  %8495 = vst [vmem:[#allocation6 + $0xd8] sm:$0x1] %v8494_v31  ;;  %v8218_v54 = vmul.f32 %v17474_v40, %v8182_v12  ;;  %v8221_v36 = vmul.f32 %v17474_v40, %v8185_v32  ;;  %v8183_v0 = vmax.f32 %v8151_v57, 0.0  ;;  %v8651_v50 = vrot.slane %v8649_v59, 1  ;;  %13305 = vmatpush3.bf16.msra.mxu1 %v14185_v48 }
 0x5f4   : > { %v17757_v22 = vsel %vm16401_vm13, %v8371_v42, %v8496_v16  ;;  %v17761_v60 = vsel %vm16401_vm13, %v8364_v63, %v8490_v62  ;;  %v8656_v38 = vrot.slane %v8654_v26, 1  ;;  %13306 = vmatprep.subr.bf16.mxu1 %v14186_v39  ;;  %v8256_v30 = vadd.f32 %v17484_v4, %v8220_v29  ;;  %v8567_v32 = vld [vmem:[#allocation6 + $0x88] sm:$0x1]  ;;  %v8502_v63 = vld [vmem:[#allocation6 + $0xf0] sm:$0xff] }
 0x5f5   : > { %8498 = vst [vmem:[#allocation6 + $0xe0] sm:$0xff] %v17757_v22  ;;  %8492 = vst [vmem:[#allocation6 + $0xd0] sm:$0xff] %v17761_v60  ;;  %v8257_v19 = vadd.f32 %v17484_v4, %v8221_v36  ;;  %v8219_v53 = vmul.f32 %v17474_v40, %v8183_v0  ;;  %v8652_v47 = vor.u32 %v8651_v50, %v8647_v49  ;;  %v8661_v14 = vshll.u32 %v17583_v46, 16  ;;  %v8569_v36 = vld [vmem:[#allocation6 + $0x98] sm:$0x1] }
 0x5f6   : > { %v8666_v3 = vshll.u32 %v8563_v17, 16  ;;  %v8673_v28 = vshll.u32 %v17616_v7, 16  ;;  %v8254_v52 = vadd.f32 %v17484_v4, %v8218_v54  ;;  %v8659_v40 = vshrl.u32 %v17583_v46, 16 }
 0x5f7   : > { %v8273_v11 = vpack.c.bf16 %v8257_v19, %v8256_v30  ;;  %v8255_v29 = vadd.f32 %v17484_v4, %v8219_v53  ;;  %v17778_v56 = vsel %vm1648_vm2, %v8652_v47, %v8656_v38  ;;  %13307 = vmatpush3.bf16.msra.mxu1 %v14186_v39  ;;  %v8663_v13 = vrot.slane %v8661_v14, 1  ;;  %v8508_v39 = vld [vmem:[#allocation6 + $0x100] sm:$0xff]  ;;  %v8571_v53 = vld [vmem:[#allocation6 + $0xa8] sm:$0x1] }
 0x5f8   : > { %9401 = vmatprep.mubr.bf16.mxu1 %v17778_v56  ;;  %9875 = vmatprep.mubr.bf16.mxu0 %v17778_v56  ;;  %v8668_v37 = vrot.slane %v8666_v3, 1  ;;  %v8678_v48 = vshll.u32 %v8565_v23, 16  ;;  %v8675_v18 = vrot.slane %v8673_v28, 1  ;;  %v8671_v21 = vshrl.u32 %v17616_v7, 16 }
 0x5f9   : > { %v8380_v10 = vshrl.u32 %v8273_v11, 16  ;;  %v8272_v34 = vpack.c.bf16 %v8255_v29, %v8254_v52  ;;  %9402 = vmatmul.mubr.bf16.gmra.mrb[120].mxu1 %v17589_v6  ;;  %9876 = vmatmul.mubr.bf16.gmra.mrb[220].mxu0 %v17589_v6  ;;  %v8664_v4 = vor.u32 %v8663_v13, %v8659_v40  ;;  %v8383_v58 = vshll.u32 %v8273_v11, 16  ;;  %v8573_v11 = vld [vmem:[#allocation6 + $0xb8] sm:$0x1] }
 0x5fa   : > { %13340 = vmatprep.subr.bf16.mxu1 %v17773_v27  ;;  %v8680_v55 = vrot.slane %v8678_v48, 1  ;;  %v8676_v12 = vor.u32 %v8675_v18, %v8671_v21  ;;  %v8685_v35 = vshll.u32 %v17609_v43, 16  ;;  %v8690_v62 = vshll.u32 %v8567_v32, 16  ;;  %v8577_v21 = vld [vmem:[#allocation6 + $0xd8] sm:$0x1] }
 0x5fb   : > { %v8382_v33 = vrot.slane %v8380_v10, 7  ;;  %v8373_v61 = vshrl.u32 %v8272_v34, 16  ;;  %v17787_v41 = vsel %vm1648_vm2, %v8664_v4, %v8668_v37  ;;  %v8376_v6 = vshll.u32 %v8272_v34, 16  ;;  %v8575_v34 = vld [vmem:[#allocation6 + $0xc8] sm:$0x1] }
 0x5fc   : > { %9409 = vmatprep.mubr.bf16.mxu1 %v17787_v41  ;;  %9883 = vmatprep.mubr.bf16.mxu0 %v17787_v41  ;;  %v17809_v16 = vsel %vm1648_vm2, %v8676_v12, %v8680_v55  ;;  %v8687_v9 = vrot.slane %v8685_v35, 1  ;;  %v8683_v54 = vshrl.u32 %v17609_v43, 16  ;;  %v8692_v5 = vrot.slane %v8690_v62, 1 }
 0x5fd   : > { %v8385_v8 = vor.u32 %v8383_v58, %v8382_v33  ;;  %v8512_v49 = vsel %vm16079_vm9, %v8382_v33, %v8511_v25  ;;  %v8375_v59 = vrot.slane %v8373_v61, 7  ;;  %v8697_v50 = vshll.u32 %v17654_v15, 16 }
 0x5fe   : > { %8513 = vst [vmem:[#allocation6 + $0x108] sm:$0x1] %v8512_v49  ;;  %v8688_v0 = vor.u32 %v8687_v9, %v8683_v54  ;;  %v8702_v17 = vshll.u32 %v8569_v36, 16  ;;  %v8695_v30 = vshrl.u32 %v17654_v15, 16  ;;  %v8709_v23 = vshll.u32 %v17646_v24, 16 }
 0x5ff   : > { %v17796_v57 = vsel %vm16401_vm13, %v8385_v8, %v8508_v39  ;;  %v8378_v26 = vor.u32 %v8376_v6, %v8375_v59  ;;  %v8506_v42 = vsel %vm16079_vm9, %v8375_v59, %v8505_v45  ;;  %v8699_v38 = vrot.slane %v8697_v50, 1  ;;  %v8579_v45 = vld [vmem:[#allocation6 + $0xe8] sm:$0x1] }
 0x600   : > { %8510 = vst [vmem:[#allocation6 + $0x100] sm:$0xff] %v17796_v57  ;;  %8507 = vst [vmem:[#allocation6 + $0xf8] sm:$0x1] %v8506_v42  ;;  %v8704_v19 = vrot.slane %v8702_v17, 1  ;;  %v8714_v14 = vshll.u32 %v8571_v53, 16  ;;  %v8711_v3 = vrot.slane %v8709_v23, 1 }
 0x601   : > { %v17804_v31 = vsel %vm16401_vm13, %v8378_v26, %v8502_v63  ;;  %9410 = vmatmul.mubr.bf16.gmra.mrb[124].mxu1 %v17583_v46  ;;  %9884 = vmatmul.mubr.bf16.gmra.mrb[224].mxu0 %v17583_v46  ;;  %v17819_v46 = vsel %vm1648_vm2, %v8688_v0, %v8692_v5  ;;  %v8700_v47 = vor.u32 %v8699_v38, %v8695_v30  ;;  %v8707_v28 = vshrl.u32 %v17646_v24, 16 }
 0x602   : > { %8504 = vst [vmem:[#allocation6 + $0xf0] sm:$0xff] %v17804_v31  ;;  %9417 = vmatprep.mubr.bf16.mxu1 %v17809_v16  ;;  %9891 = vmatprep.mubr.bf16.mxu0 %v17809_v16  ;;  %v8716_v52 = vrot.slane %v8714_v14, 1  ;;  %v8721_v40 = vshll.u32 %v17722_v20, 16  ;;  %v8726_v13 = vshll.u32 %v8573_v11, 16  ;;  %v8719_v48 = vshrl.u32 %v17722_v20, 16 }
 0x603   : > { %v8712_v29 = vor.u32 %v8711_v3, %v8707_v28  ;;  %v8733_v18 = vshll.u32 %v17713_v44, 16  ;;  %v8738_v33 = vshll.u32 %v8575_v34, 16  ;;  %v8731_v61 = vshrl.u32 %v17713_v44, 16 }
 0x604   : > { %v8723_v37 = vrot.slane %v8721_v40, 1  ;;  %v8728_v10 = vrot.slane %v8726_v13, 1  ;;  %v8745_v8 = vshll.u32 %v17761_v60, 16  ;;  %v8750_v49 = vshll.u32 %v8577_v21, 16 }
 0x605   : > { %v8735_v58 = vrot.slane %v8733_v18, 1  ;;  %v8740_v25 = vrot.slane %v8738_v33, 1  ;;  %v8743_v6 = vshrl.u32 %v17761_v60, 16  ;;  %v8757_v32 = vshll.u32 %v17757_v22, 16  ;;  %v8583_v23 = vld [vmem:[#allocation6 + $0x108] sm:$0x1] }
 0x606   : > { %v8724_v4 = vor.u32 %v8723_v37, %v8719_v48  ;;  %v8747_v59 = vrot.slane %v8745_v8, 1  ;;  %v8752_v39 = vrot.slane %v8750_v49, 1  ;;  %v8762_v26 = vshll.u32 %v8579_v45, 16  ;;  %v8841_v37 = vld [vmem:[#allocation6 + $0x18] sm:$0x1] }
 0x607   : > { %v8736_v55 = vor.u32 %v8735_v58, %v8731_v61  ;;  %v8759_v42 = vrot.slane %v8757_v32, 1  ;;  %v8755_v62 = vshrl.u32 %v17757_v22, 16  ;;  %v8581_v36 = vld [vmem:[#allocation6 + $0xf8] sm:$0x1]  ;;  %v8769_v50 = vshll.u32 %v17804_v31, 16 }
 0x608   : > { %v8748_v12 = vor.u32 %v8747_v59, %v8743_v6  ;;  %v8764_v9 = vrot.slane %v8762_v26, 1  ;;  %v8774_v30 = vshll.u32 %v8581_v36, 16  ;;  %v8767_v53 = vshrl.u32 %v17804_v31, 16  ;;  %v8844_v18 = vld [vmem:[#allocation6 + $0x30] sm:$0xfe]  ;;  %v14191_v36 = vld [vmem:[%s18466_s6 + $0xa0] sm:$0xff]  }
 0x609   : > { %9418 = vmatmul.mubr.bf16.gmra.mrb[128].mxu1 %v17616_v7  ;;  %9892 = vmatmul.mubr.bf16.gmra.mrb[228].mxu0 %v17616_v7  ;;  %v17828_v7 = vsel %vm1648_vm2, %v8700_v47, %v8704_v19  ;;  %v8771_v19 = vrot.slane %v8769_v50, 1  ;;  %v8781_v3 = vshll.u32 %v17796_v57, 16  ;;  %v8786_v28 = vshll.u32 %v8583_v23, 16  ;;  %v8843_v33 = vld [vmem:[#allocation6 + $0x28] sm:$0x1] }
 0x60a   : > { %9425 = vmatprep.mubr.bf16.mxu1 %v17819_v46  ;;  %9899 = vmatprep.mubr.bf16.mxu0 %v17819_v46  ;;  %v8776_v47 = vrot.slane %v8774_v30, 1  ;;  %v8779_v11 = vshrl.u32 %v17796_v57, 16  ;;  %v8845_v58 = vld [vmem:[#allocation6 + $0x38] sm:$0x1]  ;;  %v8919_v61 = vrot.slane %v8844_v18, 1 }
 0x60b   : > { %v8772_v14 = vor.u32 %v8771_v19, %v8767_v53  ;;  %v8920_v21 = vrot.slane %v8845_v58, 1  ;;  %v8846_v49 = vld [vmem:[#allocation6 + $0x40] sm:$0xfe]  ;;  %v8848_v59 = vld [vmem:[#allocation6 + $0x50] sm:$0xfe]  ;;  %v14192_v53 = vld [vmem:[%s18466_s6 + $0xa8] sm:$0xff]  }
 0x60c   : > { %v8847_v6 = vld [vmem:[#allocation6 + $0x48] sm:$0x1]  ;;  %v8922_v45 = vrot.slane %v8846_v49, 1  ;;  %v8925_v32 = vrot.slane %v8848_v59, 1  ;;  %v8858_v18 = vld [vmem:[#allocation6 + $0xa0] sm:$0xfe] }
 0x60d   : > { %v8923_v26 = vrot.slane %v8847_v6, 1  ;;  %v14195_v58 = vld [vmem:[%s18466_s6 + $0x1c0] sm:$0xff]  }
 0x611   : > { %9426 = vmatmul.mubr.bf16.gmra.mrb[132].mxu1 %v17609_v43  ;;  %9900 = vmatmul.mubr.bf16.gmra.mrb[232].mxu0 %v17609_v43  ;;  %v17837_v43 = vsel %vm1648_vm2, %v8712_v29, %v8716_v52  ;;  %v8783_v52 = vrot.slane %v8781_v3, 1  ;;  %v8788_v29 = vrot.slane %v8786_v28, 1  ;;  %v8856_v3 = vld [vmem:[#allocation6 + $0x90] sm:$0xfe]  ;;  %v8855_v28 = vld [vmem:[#allocation6 + $0x88] sm:$0x1] }
 0x612   : > { %9433 = vmatprep.mubr.bf16.mxu1 %v17828_v7  ;;  %9907 = vmatprep.mubr.bf16.mxu0 %v17828_v7 }
 0x613   : > { %v8784_v40 = vor.u32 %v8783_v52, %v8779_v11  ;;  %v14193_v52 = vld [vmem:[%s18466_s6 + $0xb0] sm:$0xff]  }
 0x615   : > { %v17894_v13 = vsel %vm1648_vm2, %v8784_v40, %v8788_v29  ;;  %v8857_v29 = vld [vmem:[#allocation6 + $0x98] sm:$0x1]  ;;  %v8937_v40 = vrot.slane %v8856_v3, 1 }
 0x619   : > { %9434 = vmatmul.mubr.bf16.gmra.mrb[136].mxu1 %v17654_v15  ;;  %9908 = vmatmul.mubr.bf16.gmra.mrb[236].mxu0 %v17654_v15  ;;  %v17846_v15 = vsel %vm1648_vm2, %v8724_v4, %v8728_v10  ;;  %v8914_v10 = vrot.slane %v8841_v37, 1  ;;  %v8842_v4 = vld [vmem:[#allocation6 + $0x20] sm:$0xfe]  ;;  %v8938_v37 = vrot.slane %v8857_v29, 1 }
 0x61a   : > { %9441 = vmatprep.mubr.bf16.mxu1 %v17837_v43  ;;  %9915 = vmatprep.mubr.bf16.mxu0 %v17837_v43  ;;  %v8870_v29 = vld [vmem:[#allocation6 + $0x100] sm:$0xfe] }
 0x621   : > { %9442 = vmatmul.mubr.bf16.gmra.mrb[140].mxu1 %v17646_v24  ;;  %9916 = vmatmul.mubr.bf16.gmra.mrb[240].mxu0 %v17646_v24  ;;  %v17855_v24 = vsel %vm1648_vm2, %v8736_v55, %v8740_v25  ;;  %v8917_v25 = vrot.slane %v8843_v33, 1  ;;  %v14188_v55 = vld [vmem:[%s18466_s6 + $0x88] sm:$0xff]   ;;  %v8860_v33 = vld [vmem:[#allocation6 + $0xb0] sm:$0xfe] }
 0x622   : > { %9449 = vmatprep.mubr.bf16.mxu1 %v17846_v15  ;;  %9923 = vmatprep.mubr.bf16.mxu0 %v17846_v15 }
 0x629   : > { %9450 = vmatmul.mubr.bf16.gmra.mrb[144].mxu1 %v17722_v20  ;;  %9924 = vmatmul.mubr.bf16.gmra.mrb[244].mxu0 %v17722_v20  ;;  %v17864_v20 = vsel %vm1648_vm2, %v8748_v12, %v8752_v39  ;;  %v14189_v39 = vld [vmem:[%s18466_s6 + $0x90] sm:$0xff]   ;;  %v8849_v12 = vld [vmem:[#allocation6 + $0x58] sm:$0x1] }
 0x62a   : > { %9457 = vmatprep.mubr.bf16.mxu1 %v17855_v24  ;;  %9931 = vmatprep.mubr.bf16.mxu0 %v17855_v24 }
 0x630   : > { %v12892_v35 = vpop.f32.mrb[200].mxu0 }
 0x631   : > { %9458 = vmatmul.mubr.bf16.gmra.mrb[148].mxu1 %v17713_v44  ;;  %9932 = vmatmul.mubr.bf16.gmra.mrb[248].mxu0 %v17713_v44  ;;  %v12893_v63 = vpop.f32.mrb[201].mxu0  ;;  %v8760_v44 = vor.u32 %v8759_v42, %v8755_v62  ;;  %v8926_v42 = vrot.slane %v8849_v12, 1  ;;  %v8850_v62 = vld [vmem:[#allocation6 + $0x60] sm:$0xfe]  ;;  %v8863_v12 = vld [vmem:[#allocation6 + $0xc8] sm:$0x1] }
 0x632   : > { %9465 = vmatprep.mubr.bf16.mxu1 %v17864_v20  ;;  %9939 = vmatprep.mubr.bf16.mxu0 %v17864_v20  ;;  %v17869_v54 = vadd.f32 %v12893_v63, %v12892_v35  ;;  %v12895_v5 = vpop.f32.mrb[202].mxu0  ;;  %v14190_v35 = vld [vmem:[%s18466_s6 + $0x98] sm:$0xff]  }
 0x633   : > { %v12896_v0 = vpop.f32.mrb[203].mxu0  ;;  %v17877_v38 = vsel %vm1648_vm2, %v8760_v44, %v8764_v9  ;;  %v17925_v63 = vsel %vm1970_vm1, %v8925_v32, %v8926_v42  ;;  %v8852_v9 = vld [vmem:[#allocation6 + $0x70] sm:$0xfe]  ;;  %v8853_v44 = vld [vmem:[#allocation6 + $0x78] sm:$0x1] }
 0x634   : > { %v17872_v17 = vadd.f32 %v12896_v0, %v12895_v5  ;;  %v8851_v5 = vld [vmem:[#allocation6 + $0x68] sm:$0x1]  ;;  %v8928_v0 = vrot.slane %v8850_v62, 1  ;;  %v8931_v50 = vrot.slane %v8852_v9, 1  ;;  %v8932_v19 = vrot.slane %v8853_v44, 1 }
 0x635   : > { %v8929_v30 = vrot.slane %v8851_v5, 1  ;;  %v8867_v44 = vld [vmem:[#allocation6 + $0xe8] sm:$0x1] }
 0x636   : > { %v17939_v23 = vsel %vm1970_vm1, %v8931_v50, %v8932_v19 }
 0x639   : > { %9466 = vmatmul.mubr.bf16.gmra.mrb[152].mxu1 %v17761_v60  ;;  %9940 = vmatmul.mubr.bf16.gmra.mrb[252].mxu0 %v17761_v60  ;;  %v17886_v60 = vsel %vm1648_vm2, %v8772_v14, %v8776_v47  ;;  %v17935_v47 = vsel %vm1970_vm1, %v8928_v0, %v8929_v30  ;;  %v8854_v14 = vld [vmem:[#allocation6 + $0x80] sm:$0xfe]  ;;  %v8868_v0 = vld [vmem:[#allocation6 + $0xf0] sm:$0xfe]  ;;  %v8869_v30 = vld [vmem:[#allocation6 + $0xf8] sm:$0x1] }
 0x63a   : > { %9473 = vmatprep.mubr.bf16.mxu1 %v17877_v38  ;;  %9947 = vmatprep.mubr.bf16.mxu0 %v17877_v38  ;;  %v8934_v11 = vrot.slane %v8854_v14, 1  ;;  %v8955_v19 = vrot.slane %v8868_v0, 1  ;;  %v8956_v14 = vrot.slane %v8869_v30, 1 }
 0x641   : > { %9474 = vmatmul.mubr.bf16.gmra.mrb[156].mxu1 %v17757_v22  ;;  %9948 = vmatmul.mubr.bf16.gmra.mrb[0].mxu0 %v17757_v22  ;;  %v8840_v22 = vld [vmem:[#allocation6 + $0x10] sm:$0xfe] }
 0x642   : > { %9481 = vmatprep.mubr.bf16.mxu1 %v17886_v60  ;;  %9955 = vmatprep.mubr.bf16.mxu0 %v17886_v60  ;;  %v8913_v48 = vrot.slane %v8840_v22, 1  ;;  %v8935_v22 = vrot.slane %v8855_v28, 1  ;;  %v8838_v28 = vld [vmem:[#allocation6] sm:$0xfe] }
 0x644   : > { %v17899_v34 = vsel %vm1970_vm1, %v8913_v48, %v8914_v10  ;;  %v14194_v48 = vld [vmem:[%s18466_s6 + $0xb8] sm:$0xff]   ;;  %v17949_v10 = vsel %vm1970_vm1, %v8934_v11, %v8935_v22  ;;  %v17980_v11 = vsel %vm1970_vm1, %v8955_v19, %v8956_v14  ;;  %v8910_v22 = vrot.slane %v8838_v28, 1  ;;  %v14208_v14 = vld [vmem:[%s18466_s6 + $0x1b0] sm:$0xff]  }
 0x649   : > { %9482 = vmatmul.mubr.bf16.gmra.mrb[160].mxu1 %v17804_v31  ;;  %9956 = vmatmul.mubr.bf16.gmra.mrb[4].mxu0 %v17804_v31  ;;  %v8916_v31 = vrot.slane %v8842_v4, 1  ;;  %v17953_v4 = vsel %vm1970_vm1, %v8937_v40, %v8938_v37  ;;  %v8871_v40 = vld [vmem:[#allocation6 + $0x108] sm:$0x1] }
 0x64a   : > { %9489 = vmatprep.mubr.bf16.mxu1 %v17894_v13 }
 0x64b   : > { %v17906_v8 = vsel %vm1970_vm1, %v8916_v31, %v8917_v25  ;;  %v8859_v31 = vld [vmem:[#allocation6 + $0xa8] sm:$0x1]  ;;  %v8861_v25 = vld [vmem:[#allocation6 + $0xb8] sm:$0x1] }
 0x64c   : > { %v8944_v49 = vrot.slane %v8861_v25, 1  ;;  %v14198_v25 = vld [vmem:[%s18466_s6 + $0x188] sm:$0xff]  }
 0x651   : > { %9490 = vmatmul.mubr.bf16.gmra.mrb[164].mxu1 %v17796_v57  ;;  %v17910_v57 = vsel %vm1970_vm1, %v8919_v61, %v8920_v21  ;;  %v8940_v61 = vrot.slane %v8858_v18, 1  ;;  %v8943_v21 = vrot.slane %v8860_v33, 1  ;;  %v8959_v18 = vrot.slane %v8871_v40, 1  ;;  %v14209_v40 = vld [vmem:[%s18466_s6 + $0x1f8] sm:$0xff]  }
 0x652   : > { %13308 = vmatprep.mubr.bf16.mxu1 %v17899_v34 }
 0x653   : > { %v17964_v6 = vsel %vm1970_vm1, %v8943_v21, %v8944_v49  ;;  %v14199_v21 = vld [vmem:[%s18466_s6 + $0x1d0] sm:$0xff]   ;;  %v14202_v49 = vld [vmem:[%s18466_s6 + $0x198] sm:$0xff]  }
 0x659   : > { %13309 = vmatmul.mubr.bf16.vlgmr.msra.gmra.mrb[168].mxu1 %v17906_v8 }
 0x65a   : > { %13312 = vmatprep.mubr.bf16.mxu1 %v17910_v57  ;;  %13341 = vmatpush3.bf16.msra.mxu1 %v17773_v27  ;;  %v17921_v27 = vsel %vm1970_vm1, %v8922_v45, %v8923_v26  ;;  %v8864_v45 = vld [vmem:[#allocation6 + $0xd0] sm:$0xfe]  ;;  %v8865_v26 = vld [vmem:[#allocation6 + $0xd8] sm:$0x1] }
 0x65b   : > { %13342 = vmatprep.subr.bf16.mxu1 %v14188_v55  ;;  %v8949_v42 = vrot.slane %v8864_v45, 1  ;;  %v8950_v62 = vrot.slane %v8865_v26, 1  ;;  %v14204_v45 = vld [vmem:[%s18466_s6 + $0x1a0] sm:$0xff]  }
 0x65d   : > { %v17972_v5 = vsel %vm1970_vm1, %v8949_v42, %v8950_v62 }
 0x65e   : > { %13343 = vmatpush3.bf16.msra.mxu1 %v14188_v55  ;;  %v8941_v55 = vrot.slane %v8859_v31, 1 }
 0x65f   : > { %13344 = vmatprep.subr.bf16.mxu1 %v14189_v39 }
 0x660   : > { %v17960_v59 = vsel %vm1970_vm1, %v8940_v61, %v8941_v55  ;;  %v14197_v61 = vld [vmem:[%s18466_s6 + $0x1c8] sm:$0xff]   ;;  %v14200_v55 = vld [vmem:[%s18466_s6 + $0x190] sm:$0xff]  }
 0x661   : > { %13313 = vmatmul.mubr.bf16.gmra.mrb[172].mxu1 %v17921_v27 }
 0x662   : > { %13316 = vmatprep.mubr.bf16.mxu1 %v17925_v63  ;;  %13345 = vmatpush3.bf16.msra.mxu1 %v14189_v39  ;;  %v8862_v39 = vld [vmem:[#allocation6 + $0xc0] sm:$0xfe] }
 0x663   : > { %13346 = vmatprep.subr.bf16.mxu1 %v14190_v35  ;;  %v8946_v32 = vrot.slane %v8862_v39, 1  ;;  %v14203_v39 = vld [vmem:[%s18466_s6 + $0x1e0] sm:$0xff]  }
 0x666   : > { %13347 = vmatpush3.bf16.msra.mxu1 %v14190_v35  ;;  %v8947_v35 = vrot.slane %v8863_v12, 1  ;;  %v14205_v12 = vld [vmem:[%s18466_s6 + $0x1e8] sm:$0xff]  }
 0x667   : > { %13348 = vmatprep.subr.bf16.mxu1 %v14191_v36 }
 0x668   : > { %v17968_v9 = vsel %vm1970_vm1, %v8946_v32, %v8947_v35  ;;  %v14206_v32 = vld [vmem:[%s18466_s6 + $0x1a8] sm:$0xff]   ;;  %v14207_v35 = vld [vmem:[%s18466_s6 + $0x1f0] sm:$0xff]  }
 0x669   : > { %13317 = vmatmul.mubr.bf16.gmra.mrb[176].mxu1 %v17935_v47 }
 0x66a   : > { %13320 = vmatprep.mubr.bf16.mxu1 %v17939_v23  ;;  %13349 = vmatpush3.bf16.msra.mxu1 %v14191_v36  ;;  %v8866_v36 = vld [vmem:[#allocation6 + $0xe0] sm:$0xfe] }
 0x66b   : > { %13350 = vmatprep.subr.bf16.mxu1 %v14192_v53  ;;  %v8952_v50 = vrot.slane %v8866_v36, 1 }
 0x66e   : > { %13351 = vmatpush3.bf16.msra.mxu1 %v14192_v53  ;;  %v8953_v53 = vrot.slane %v8867_v44, 1 }
 0x66f   : > { %13352 = vmatprep.subr.bf16.mxu1 %v14193_v52 }
 0x670   : > { %v17976_v3 = vsel %vm1970_vm1, %v8952_v50, %v8953_v53 }
 0x671   : > { %13321 = vmatmul.mubr.bf16.gmra.mrb[180].mxu1 %v17949_v10 }
 0x672   : > { %13324 = vmatprep.mubr.bf16.mxu1 %v17953_v4  ;;  %13353 = vmatpush3.bf16.msra.mxu1 %v14193_v52  ;;  %v8839_v52 = vld [vmem:[#allocation6 + $0x8] sm:$0x1] }
 0x673   : > { %13354 = vmatprep.subr.bf16.mxu1 %v14194_v48  ;;  %v8911_v37 = vrot.slane %v8839_v52, 1 }
 0x675   : > { %v8912_v33 = vsel %vm1970_vm1, %v8910_v22, %v8911_v37 }
 0x676   : > { %13355 = vmatpush3.bf16.msra.mxu1 %v14194_v48  ;;  %v8958_v48 = vrot.slane %v8870_v29, 1 }
 0x677   : > { %13012 = vmatprep.subr.bf16.mxu1 %v14195_v58  ;;  %v14196_v58 = vld [vmem:[%s18466_s6 + $0x180] sm:$0xff]  }
 0x678   : > { %v17985_v31 = vsel %vm1970_vm1, %v8958_v48, %v8959_v18  ;;  %v18050_v18 = vld [vmem:[%s18466_s6 + $0x200] sm:$0xff]  }
 0x679   : > { %13325 = vmatmul.mubr.bf16.gmra.mrb[184].mxu1 %v17960_v59 }
 0x67a   : > { %13328 = vmatprep.mubr.bf16.mxu1 %v17964_v6 }
 0x681   : > { %13329 = vmatmul.mubr.bf16.gmra.mrb[188].mxu1 %v17968_v9 }
 0x682   : > { %13332 = vmatprep.mubr.bf16.mxu1 %v17972_v5 }
 0x689   : > { %13333 = vmatmul.mubr.bf16.gmra.mrb[192].mxu1 %v17976_v3 }
 0x68a   : > { %13336 = vmatprep.mubr.bf16.mxu1 %v17980_v11 }
 0x691   : > { %13337 = vmatmul.mubr.bf16.gmra.mrb[196].mxu1 %v17985_v31 }
 0x692   : > { %13356 = vmatprep.mubr.bf16.mxu1 %v8912_v33 }
 0x699   : > { %13357 = vmatmul.mubr.bf16.vlgmr.msra.gmra.mrb[168].mxu1 %v17899_v34  ;;  %v14201_v34 = vld [vmem:[%s18466_s6 + $0x1d8] sm:$0xff]  }
 0x69a   : > { %13360 = vmatprep.mubr.bf16.mxu1 %v17906_v8  ;;  %13013 = vmatpush3.bf16.msra.mxu1 %v14196_v58 }
 0x69b   : > { %13014 = vmatprep.subr.bf16.mxu1 %v14197_v61 }
 0x69e   : > { %13015 = vmatpush3.bf16.msra.mxu1 %v14198_v25 }
 0x69f   : > { %13016 = vmatprep.subr.bf16.mxu1 %v14199_v21 }
 0x6a1   : > { %13361 = vmatmul.mubr.bf16.gmra.mrb[172].mxu1 %v17910_v57 }
 0x6a2   : > { %13364 = vmatprep.mubr.bf16.mxu1 %v17921_v27  ;;  %13017 = vmatpush3.bf16.msra.mxu1 %v14200_v55 }
 0x6a3   : > { %13018 = vmatprep.subr.bf16.mxu1 %v14201_v34 }
 0x6a6   : > { %13019 = vmatpush3.bf16.msra.mxu1 %v14202_v49 }
 0x6a7   : > { %13020 = vmatprep.subr.bf16.mxu1 %v14203_v39 }
 0x6a9   : > { %13365 = vmatmul.mubr.bf16.gmra.mrb[176].mxu1 %v17925_v63 }
 0x6aa   : > { %13368 = vmatprep.mubr.bf16.mxu1 %v17935_v47  ;;  %13021 = vmatpush3.bf16.msra.mxu1 %v14204_v45 }
 0x6ab   : > { %v12756_v26 = vpop.f32.mrb[104].mxu1  ;;  %v12898_v42 = vpop.f32.mrb[204].mxu0  ;;  %13022 = vmatprep.subr.bf16.mxu1 %v14205_v12 }
 0x6ac   : > { %v12757_v62 = vpop.f32.mrb[105].mxu1  ;;  %v12899_v36 = vpop.f32.mrb[205].mxu0 }
 0x6ad   : > { %v12758_v0 = vadd.f32 %v12757_v62, %v12756_v26  ;;  %v12900_v44 = vadd.f32 %v12899_v36, %v12898_v42  ;;  %v12759_v50 = vpop.f32.mrb[106].mxu1  ;;  %v12901_v30 = vpop.f32.mrb[206].mxu0 }
 0x6ae   : > { %v12760_v19 = vpop.f32.mrb[107].mxu1  ;;  %v12902_v53 = vpop.f32.mrb[207].mxu0  ;;  %13023 = vmatpush3.bf16.msra.mxu1 %v14206_v32 }
 0x6af   : > { %v18034_v28 = vadd.f32 %v17869_v54, %v12758_v0  ;;  %v12761_v52 = vadd.f32 %v12760_v19, %v12759_v50  ;;  %v12903_v29 = vadd.f32 %v12902_v53, %v12901_v30  ;;  %13024 = vmatprep.subr.bf16.mxu1 %v14207_v35  ;;  %v14210_v54 = vld [vmem:[%s18466_s6 + $0x1b8] sm:$0xff]  }
 0x6b1   : > { %v18040_v22 = vadd.f32 %v17872_v17, %v12761_v52  ;;  %13369 = vmatmul.mubr.bf16.gmra.mrb[180].mxu1 %v17939_v23 }
 0x6b2   : > { %13372 = vmatprep.mubr.bf16.mxu1 %v17949_v10  ;;  %13025 = vmatpush3.bf16.msra.mxu1 %v14208_v14 }
 0x6b3   : > { %v12762_v37 = vpop.f32.mrb[108].mxu1  ;;  %13026 = vmatprep.subr.bf16.mxu1 %v14209_v40 }
 0x6b4   : > { %v12904_v48 = vpop.f32.mrb[208].mxu0  ;;  %v12763_v33 = vpop.f32.mrb[109].mxu1 }
 0x6b5   : > { %v12905_v17 = vpop.f32.mrb[209].mxu0  ;;  %v12764_v58 = vadd.f32 %v12763_v33, %v12762_v37  ;;  %v12765_v25 = vpop.f32.mrb[110].mxu1 }
 0x6b6   : > { %v12906_v61 = vadd.f32 %v12905_v17, %v12904_v48  ;;  %v12907_v21 = vpop.f32.mrb[210].mxu0  ;;  %v12766_v55 = vpop.f32.mrb[111].mxu1  ;;  %13027 = vmatpush3.bf16.msra.mxu1 %v14210_v54 }
 0x6b7   : > { %v12908_v34 = vpop.f32.mrb[211].mxu0  ;;  %v18052_v49 = vadd.f32 %v12900_v44, %v12764_v58  ;;  %v12767_v39 = vadd.f32 %v12766_v55, %v12765_v25  ;;  %13388 = vmatprep.subr.bf16.mxu1 %v18050_v18 }
 0x6b8   : > { %v12909_v45 = vadd.f32 %v12908_v34, %v12907_v21 }
 0x6b9   : > { %v18055_v12 = vadd.f32 %v12903_v29, %v12767_v39  ;;  %13373 = vmatmul.mubr.bf16.gmra.mrb[184].mxu1 %v17953_v4 }
 0x6ba   : > { %13376 = vmatprep.mubr.bf16.mxu1 %v17960_v59 }
 0x6bb   : > { %v12768_v32 = vpop.f32.mrb[112].mxu1 }
 0x6bc   : > { %v12910_v26 = vpop.f32.mrb[212].mxu0  ;;  %v12769_v42 = vpop.f32.mrb[113].mxu1 }
 0x6bd   : > { %v12911_v35 = vpop.f32.mrb[213].mxu0  ;;  %v12770_v62 = vadd.f32 %v12769_v42, %v12768_v32  ;;  %v12771_v0 = vpop.f32.mrb[114].mxu1 }
 0x6be   : > { %v12912_v36 = vadd.f32 %v12911_v35, %v12910_v26  ;;  %v12913_v50 = vpop.f32.mrb[214].mxu0  ;;  %v12772_v44 = vpop.f32.mrb[115].mxu1 }
 0x6bf   : > { %v12914_v30 = vpop.f32.mrb[215].mxu0  ;;  %v18059_v19 = vadd.f32 %v12906_v61, %v12770_v62  ;;  %v12773_v53 = vadd.f32 %v12772_v44, %v12771_v0 }
 0x6c0   : > { %v12915_v14 = vadd.f32 %v12914_v30, %v12913_v50 }
 0x6c1   : > { %v18061_v52 = vadd.f32 %v12909_v45, %v12773_v53  ;;  %13377 = vmatmul.mubr.bf16.gmra.mrb[188].mxu1 %v17964_v6 }
 0x6c2   : > { %13380 = vmatprep.mubr.bf16.mxu1 %v17968_v9 }
 0x6c4   : > { %v12774_v29 = vpop.f32.mrb[116].mxu1  ;;  %v12916_v40 = vpop.f32.mrb[216].mxu0 }
 0x6c5   : > { %v12775_v54 = vpop.f32.mrb[117].mxu1  ;;  %v12917_v37 = vpop.f32.mrb[217].mxu0 }
 0x6c6   : > { %v12776_v48 = vadd.f32 %v12775_v54, %v12774_v29  ;;  %v12918_v33 = vadd.f32 %v12917_v37, %v12916_v40  ;;  %v12777_v17 = vpop.f32.mrb[118].mxu1  ;;  %v12919_v58 = vpop.f32.mrb[218].mxu0 }
 0x6c7   : > { %v12778_v25 = vpop.f32.mrb[119].mxu1  ;;  %v12920_v21 = vpop.f32.mrb[219].mxu0 }
 0x6c8   : > { %v18065_v61 = vadd.f32 %v12912_v36, %v12776_v48  ;;  %v12779_v55 = vadd.f32 %v12778_v25, %v12777_v17  ;;  %v12921_v34 = vadd.f32 %v12920_v21, %v12919_v58 }
 0x6c9   : > { %13381 = vmatmul.mubr.bf16.gmra.mrb[192].mxu1 %v17972_v5 }
 0x6ca   : > { %v18068_v39 = vadd.f32 %v12915_v14, %v12779_v55  ;;  %13384 = vmatprep.mubr.bf16.mxu1 %v17976_v3 }
 0x6cc   : > { %v12780_v45 = vpop.f32.mrb[120].mxu1  ;;  %v12922_v32 = vpop.f32.mrb[220].mxu0 }
 0x6cd   : > { %v12781_v26 = vpop.f32.mrb[121].mxu1  ;;  %v12923_v42 = vpop.f32.mrb[221].mxu0 }
 0x6ce   : > { %v12782_v35 = vadd.f32 %v12781_v26, %v12780_v45  ;;  %v12924_v62 = vadd.f32 %v12923_v42, %v12922_v32  ;;  %v12783_v0 = vpop.f32.mrb[122].mxu1  ;;  %v12925_v50 = vpop.f32.mrb[222].mxu0  ;;  %v14232_v42 = vld [vmem:[#allocation6 + $0x20] sm:$0xff] }
 0x6cf   : > { %v12784_v44 = vpop.f32.mrb[123].mxu1  ;;  %v12926_v30 = vpop.f32.mrb[223].mxu0 }
 0x6d0   : > { %v18071_v36 = vadd.f32 %v12918_v33, %v12782_v35  ;;  %v12785_v53 = vadd.f32 %v12784_v44, %v12783_v0  ;;  %v12927_v29 = vadd.f32 %v12926_v30, %v12925_v50  ;;  %v14212_v33 = vld [vmem:[%s18466_s6 + $0x208] sm:$0xff]   ;;  %v14213_v35 = vld [vmem:[%s18466_s6 + $0x210] sm:$0xff]  }
 0x6d1   : > { %13385 = vmatmul.mubr.bf16.gmra.mrb[196].mxu1 %v17980_v11 }
 0x6d2   : > { %v18074_v14 = vadd.f32 %v12921_v34, %v12785_v53  ;;  %10398 = vmatprep.mubr.bf16.mxu1 %v17642_v51 }
 0x6d4   : > { %v12786_v40 = vpop.f32.mrb[124].mxu1  ;;  %v12928_v54 = vpop.f32.mrb[224].mxu0 }
 0x6d5   : > { %v12787_v37 = vpop.f32.mrb[125].mxu1  ;;  %v12929_v48 = vpop.f32.mrb[225].mxu0 }
 0x6d6   : > { %v12788_v17 = vadd.f32 %v12787_v37, %v12786_v40  ;;  %v12930_v58 = vadd.f32 %v12929_v48, %v12928_v54  ;;  %v12789_v25 = vpop.f32.mrb[126].mxu1  ;;  %v12931_v21 = vpop.f32.mrb[226].mxu0 }
 0x6d7   : > { %v12790_v55 = vpop.f32.mrb[127].mxu1  ;;  %v12932_v45 = vpop.f32.mrb[227].mxu0 }
 0x6d8   : > { %v18080_v32 = vadd.f32 %v12924_v62, %v12788_v17  ;;  %v12791_v34 = vadd.f32 %v12790_v55, %v12789_v25  ;;  %v12933_v26 = vadd.f32 %v12932_v45, %v12931_v21  ;;  %v14233_v25 = vld [vmem:[#allocation6 + $0x30] sm:$0xff]  ;;  %v14215_v55 = vld [vmem:[%s18466_s6 + $0x220] sm:$0xff]  }
 0x6d9   : > { %10399 = vmatmul.mubr.bf16.vlgmr.msra.gmra.mrb[200].mxu1 %v14232_v42 }
 0x6da   : > { %v18082_v51 = vadd.f32 %v12927_v29, %v12791_v34  ;;  %10406 = vmatprep.mubr.bf16.mxu1 %v17688_v2  ;;  %13389 = vmatpush3.bf16.msra.mxu1 %v18050_v18  ;;  %v14214_v2 = vld [vmem:[%s18466_s6 + $0x218] sm:$0xff]  }
 0x6db   : > { %13390 = vmatprep.subr.bf16.mxu1 %v14212_v33 }
 0x6dc   : > { %v12792_v0 = vpop.f32.mrb[128].mxu1  ;;  %v12934_v50 = vpop.f32.mrb[228].mxu0 }
 0x6dd   : > { %v12793_v44 = vpop.f32.mrb[129].mxu1  ;;  %v12935_v62 = vpop.f32.mrb[229].mxu0 }
 0x6de   : > { %v12794_v30 = vadd.f32 %v12793_v44, %v12792_v0  ;;  %v12936_v53 = vadd.f32 %v12935_v62, %v12934_v50  ;;  %v12795_v40 = vpop.f32.mrb[130].mxu1  ;;  %v12937_v54 = vpop.f32.mrb[230].mxu0  ;;  %13391 = vmatpush3.bf16.msra.mxu1 %v14212_v33 }
 0x6df   : > { %v12796_v29 = vpop.f32.mrb[131].mxu1  ;;  %v12938_v37 = vpop.f32.mrb[231].mxu0  ;;  %13392 = vmatprep.subr.bf16.mxu1 %v14213_v35 }
 0x6e0   : > { %v18092_v18 = vadd.f32 %v12930_v58, %v12794_v30  ;;  %v12797_v48 = vadd.f32 %v12796_v29, %v12795_v40  ;;  %v12939_v17 = vadd.f32 %v12938_v37, %v12937_v54  ;;  %v14234_v54 = vld [vmem:[#allocation6 + $0x40] sm:$0xff]  ;;  %v14217_v37 = vld [vmem:[%s18466_s6 + $0x230] sm:$0xff]  }
 0x6e1   : > { %10407 = vmatmul.mubr.bf16.gmra.mrb[204].mxu1 %v14233_v25 }
 0x6e2   : > { %v18094_v21 = vadd.f32 %v12933_v26, %v12797_v48  ;;  %10414 = vmatprep.mubr.bf16.mxu1 %v17733_v1  ;;  %13393 = vmatpush3.bf16.msra.mxu1 %v14213_v35  ;;  %v14216_v1 = vld [vmem:[%s18466_s6 + $0x228] sm:$0xff]  }
 0x6e3   : > { %13394 = vmatprep.subr.bf16.mxu1 %v14214_v2 }
 0x6e4   : > { %v12798_v45 = vpop.f32.mrb[132].mxu1  ;;  %v12940_v33 = vpop.f32.mrb[232].mxu0 }
 0x6e5   : > { %v12799_v34 = vpop.f32.mrb[133].mxu1  ;;  %v12941_v42 = vpop.f32.mrb[233].mxu0 }
 0x6e6   : > { %v12800_v58 = vadd.f32 %v12799_v34, %v12798_v45  ;;  %v12942_v0 = vadd.f32 %v12941_v42, %v12940_v33  ;;  %v12801_v50 = vpop.f32.mrb[134].mxu1  ;;  %v12943_v44 = vpop.f32.mrb[234].mxu0  ;;  %13395 = vmatpush3.bf16.msra.mxu1 %v14214_v2 }
 0x6e7   : > { %v12802_v62 = vpop.f32.mrb[135].mxu1  ;;  %v12944_v26 = vpop.f32.mrb[235].mxu0  ;;  %13396 = vmatprep.subr.bf16.mxu1 %v14215_v55 }
 0x6e8   : > { %v18103_v35 = vadd.f32 %v12936_v53, %v12800_v58  ;;  %v12803_v30 = vadd.f32 %v12802_v62, %v12801_v50  ;;  %v12945_v40 = vadd.f32 %v12944_v26, %v12943_v44  ;;  %v14235_v62 = vld [vmem:[#allocation6 + $0x50] sm:$0xff] }
 0x6e9   : > { %10415 = vmatmul.mubr.bf16.gmra.mrb[208].mxu1 %v14234_v54 }
 0x6ea   : > { %v18105_v29 = vadd.f32 %v12939_v17, %v12803_v30  ;;  %10422 = vmatprep.mubr.bf16.mxu1 %v17778_v56  ;;  %13397 = vmatpush3.bf16.msra.mxu1 %v14215_v55  ;;  %v14218_v56 = vld [vmem:[%s18466_s6 + $0x238] sm:$0xff]  }
 0x6eb   : > { %13398 = vmatprep.subr.bf16.mxu1 %v14216_v1 }
 0x6ec   : > { %18574 = vst [vmem:[#allocation43_spill] sm:$0xff] %v18105_v29  ;;  %v12804_v2 = vpop.f32.mrb[136].mxu1  ;;  %v12946_v48 = vpop.f32.mrb[236].mxu0 }
 0x6ed   : > { %v12805_v25 = vpop.f32.mrb[137].mxu1  ;;  %v12947_v45 = vpop.f32.mrb[237].mxu0 }
 0x6ee   : > { %v12806_v53 = vadd.f32 %v12805_v25, %v12804_v2  ;;  %v12948_v33 = vadd.f32 %v12947_v45, %v12946_v48  ;;  %v12807_v34 = vpop.f32.mrb[138].mxu1  ;;  %v12949_v42 = vpop.f32.mrb[238].mxu0  ;;  %13399 = vmatpush3.bf16.msra.mxu1 %v14216_v1 }
 0x6ef   : > { %v12808_v58 = vpop.f32.mrb[139].mxu1  ;;  %v12950_v17 = vpop.f32.mrb[239].mxu0  ;;  %13400 = vmatprep.subr.bf16.mxu1 %v14217_v37 }
 0x6f0   : > { %v18114_v55 = vadd.f32 %v12942_v0, %v12806_v53  ;;  %v12809_v50 = vadd.f32 %v12808_v58, %v12807_v34  ;;  %v12951_v44 = vadd.f32 %v12950_v17, %v12949_v42  ;;  %v14236_v58 = vld [vmem:[#allocation6 + $0x60] sm:$0xff] }
 0x6f1   : > { %10423 = vmatmul.mubr.bf16.gmra.mrb[212].mxu1 %v14235_v62 }
 0x6f2   : > { %v18116_v26 = vadd.f32 %v12945_v40, %v12809_v50  ;;  %10430 = vmatprep.mubr.bf16.mxu1 %v17787_v41  ;;  %13401 = vmatpush3.bf16.msra.mxu1 %v14217_v37 }
 0x6f3   : > { %13402 = vmatprep.subr.bf16.mxu1 %v14218_v56 }
 0x6f4   : > { %18575 = vst [vmem:[#allocation15_spill] sm:$0xff] %v18116_v26  ;;  %v12810_v1 = vpop.f32.mrb[140].mxu1  ;;  %v12952_v30 = vpop.f32.mrb[240].mxu0 }
 0x6f5   : > { %v12811_v54 = vpop.f32.mrb[141].mxu1  ;;  %v12953_v2 = vpop.f32.mrb[241].mxu0 }
 0x6f6   : > { %v12812_v48 = vadd.f32 %v12811_v54, %v12810_v1  ;;  %v12954_v25 = vadd.f32 %v12953_v2, %v12952_v30  ;;  %v12813_v45 = vpop.f32.mrb[142].mxu1  ;;  %v12955_v29 = vpop.f32.mrb[242].mxu0  ;;  %13403 = vmatpush3.bf16.msra.mxu1 %v14218_v56 }
 0x6f7   : > { %v12814_v0 = vpop.f32.mrb[143].mxu1  ;;  %v12956_v53 = vpop.f32.mrb[243].mxu0 }
 0x6f8   : > { %v18119_v34 = vadd.f32 %v12948_v33, %v12812_v48  ;;  %v12815_v42 = vadd.f32 %v12814_v0, %v12813_v45  ;;  %v12957_v40 = vadd.f32 %v12956_v53, %v12955_v29  ;;  %v14237_v45 = vld [vmem:[#allocation6 + $0x70] sm:$0xff] }
 0x6f9   : > { %10431 = vmatmul.mubr.bf16.gmra.mrb[216].mxu1 %v14236_v58 }
 0x6fa   : > { %v18121_v41 = vadd.f32 %v12951_v44, %v12815_v42  ;;  %10438 = vmatprep.mubr.bf16.mxu1 %v17809_v16 }
 0x6fc   : > { %18576 = vst [vmem:[#allocation45_spill] sm:$0xff] %v18121_v41  ;;  %v12816_v37 = vpop.f32.mrb[144].mxu1  ;;  %v12958_v17 = vpop.f32.mrb[244].mxu0 }
 0x6fd   : > { %v12817_v50 = vpop.f32.mrb[145].mxu1  ;;  %v12959_v62 = vpop.f32.mrb[245].mxu0 }
 0x6fe   : > { %v12818_v1 = vadd.f32 %v12817_v50, %v12816_v37  ;;  %v12960_v30 = vadd.f32 %v12959_v62, %v12958_v17  ;;  %v12819_v54 = vpop.f32.mrb[146].mxu1  ;;  %v12961_v56 = vpop.f32.mrb[246].mxu0 }
 0x6ff   : > { %v12820_v2 = vpop.f32.mrb[147].mxu1  ;;  %v12962_v26 = vpop.f32.mrb[247].mxu0 }
 0x700   : > { %v18124_v33 = vadd.f32 %v12954_v25, %v12818_v1  ;;  %v12821_v48 = vadd.f32 %v12820_v2, %v12819_v54  ;;  %v12963_v29 = vadd.f32 %v12962_v26, %v12961_v56  ;;  %v14238_v54 = vld [vmem:[#allocation6 + $0x80] sm:$0xff] }
 0x701   : > { %10439 = vmatmul.mubr.bf16.gmra.mrb[220].mxu1 %v14237_v45 }
 0x702   : > { %v18126_v44 = vadd.f32 %v12957_v40, %v12821_v48  ;;  %10446 = vmatprep.mubr.bf16.mxu1 %v17819_v46 }
 0x704   : > { %18577 = vst [vmem:[#allocation46_spill] sm:$0xff] %v18126_v44  ;;  %v12822_v16 = vpop.f32.mrb[148].mxu1  ;;  %v12964_v0 = vpop.f32.mrb[248].mxu0 }
 0x705   : > { %v12823_v53 = vpop.f32.mrb[149].mxu1  ;;  %v12965_v42 = vpop.f32.mrb[249].mxu0 }
 0x706   : > { %v12824_v58 = vadd.f32 %v12823_v53, %v12822_v16  ;;  %v12966_v37 = vadd.f32 %v12965_v42, %v12964_v0  ;;  %v12825_v17 = vpop.f32.mrb[150].mxu1  ;;  %v12967_v50 = vpop.f32.mrb[250].mxu0 }
 0x707   : > { %v12826_v62 = vpop.f32.mrb[151].mxu1  ;;  %v12968_v41 = vpop.f32.mrb[251].mxu0 }
 0x708   : > { %v18129_v25 = vadd.f32 %v12960_v30, %v12824_v58  ;;  %v12827_v1 = vadd.f32 %v12826_v62, %v12825_v17  ;;  %v12969_v26 = vadd.f32 %v12968_v41, %v12967_v50  ;;  %v14239_v17 = vld [vmem:[#allocation6 + $0x90] sm:$0xff] }
 0x709   : > { %10447 = vmatmul.mubr.bf16.gmra.mrb[224].mxu1 %v14238_v54 }
 0x70a   : > { %v18131_v40 = vadd.f32 %v12963_v29, %v12827_v1  ;;  %10454 = vmatprep.mubr.bf16.mxu1 %v17828_v7 }
 0x70c   : > { %18578 = vst [vmem:[#allocation47_spill] sm:$0xff] %v18131_v40  ;;  %v12828_v46 = vpop.f32.mrb[152].mxu1  ;;  %v12970_v56 = vpop.f32.mrb[252].mxu0 }
 0x70d   : > { %v12829_v2 = vpop.f32.mrb[153].mxu1  ;;  %v12971_v48 = vpop.f32.mrb[253].mxu0 }
 0x70e   : > { %v12830_v45 = vadd.f32 %v12829_v2, %v12828_v46  ;;  %v12972_v16 = vadd.f32 %v12971_v48, %v12970_v56  ;;  %v12831_v0 = vpop.f32.mrb[154].mxu1  ;;  %v12973_v53 = vpop.f32.mrb[254].mxu0 }
 0x70f   : > { %v12832_v42 = vpop.f32.mrb[155].mxu1  ;;  %v12974_v44 = vpop.f32.mrb[255].mxu0 }
 0x710   : > { %v18134_v30 = vadd.f32 %v12966_v37, %v12830_v45  ;;  %v12833_v58 = vadd.f32 %v12832_v42, %v12831_v0  ;;  %v12975_v41 = vadd.f32 %v12974_v44, %v12973_v53  ;;  %v14240_v0 = vld [vmem:[#allocation6 + $0xa0] sm:$0xff] }
 0x711   : > { %10455 = vmatmul.mubr.bf16.gmra.mrb[228].mxu1 %v14239_v17 }
 0x712   : > { %v18136_v29 = vadd.f32 %v12969_v26, %v12833_v58  ;;  %10462 = vmatprep.mubr.bf16.mxu1 %v17837_v43 }
 0x714   : > { %18579 = vst [vmem:[#allocation48_spill] sm:$0xff] %v18136_v29  ;;  %v12834_v7 = vpop.f32.mrb[156].mxu1  ;;  %v12976_v50 = vpop.f32.mrb[0].mxu0 }
 0x715   : > { %v12835_v62 = vpop.f32.mrb[157].mxu1  ;;  %v12977_v1 = vpop.f32.mrb[1].mxu0 }
 0x716   : > { %v12836_v54 = vadd.f32 %v12835_v62, %v12834_v7  ;;  %v12978_v46 = vadd.f32 %v12977_v1, %v12976_v50  ;;  %v12837_v56 = vpop.f32.mrb[158].mxu1  ;;  %v12979_v2 = vpop.f32.mrb[2].mxu0 }
 0x717   : > { %v12838_v48 = vpop.f32.mrb[159].mxu1  ;;  %v12980_v40 = vpop.f32.mrb[3].mxu0 }
 0x718   : > { %v18139_v37 = vadd.f32 %v12972_v16, %v12836_v54  ;;  %v12839_v45 = vadd.f32 %v12838_v48, %v12837_v56  ;;  %v12981_v44 = vadd.f32 %v12980_v40, %v12979_v2  ;;  %v14241_v56 = vld [vmem:[#allocation6 + $0xb0] sm:$0xff] }
 0x719   : > { %10463 = vmatmul.mubr.bf16.gmra.mrb[232].mxu1 %v14240_v0 }
 0x71a   : > { %v18141_v26 = vadd.f32 %v12975_v41, %v12839_v45  ;;  %10470 = vmatprep.mubr.bf16.mxu1 %v17846_v15 }
 0x71c   : > { %v12840_v43 = vpop.f32.mrb[160].mxu1  ;;  %v12982_v53 = vpop.f32.mrb[4].mxu0 }
 0x71d   : > { %v12841_v42 = vpop.f32.mrb[161].mxu1  ;;  %v12983_v58 = vpop.f32.mrb[5].mxu0 }
 0x71e   : > { %v12842_v17 = vadd.f32 %v12841_v42, %v12840_v43  ;;  %v12984_v7 = vadd.f32 %v12983_v58, %v12982_v53  ;;  %v12843_v50 = vpop.f32.mrb[162].mxu1  ;;  %v12985_v62 = vpop.f32.mrb[6].mxu0  ;;  %v14242_v42 = vld [vmem:[#allocation6 + $0xc0] sm:$0xff] }
 0x71f   : > { %v12844_v1 = vpop.f32.mrb[163].mxu1  ;;  %v12986_v29 = vpop.f32.mrb[7].mxu0 }
 0x720   : > { %v18144_v16 = vadd.f32 %v12978_v46, %v12842_v17  ;;  %v12845_v54 = vadd.f32 %v12844_v1, %v12843_v50  ;;  %v12987_v40 = vadd.f32 %v12986_v29, %v12985_v62  ;;  %v14243_v29 = vld [vmem:[#allocation6 + $0xd0] sm:$0xff]  ;;  %v8585_v17 = vld [vmem:[#allocation6 + $0x118] sm:$0x1] }
 0x721   : > { %10471 = vmatmul.mubr.bf16.gmra.mrb[236].mxu1 %v14241_v56  ;;  %v8798_v62 = vshll.u32 %v8585_v17, 16  ;;  %v14245_v1 = vld [vmem:[#allocation6 + $0xf0] sm:$0xff]  ;;  %v14246_v56 = vld [vmem:[#allocation6 + $0x100] sm:$0xff] }
 0x722   : > { %v18146_v41 = vadd.f32 %v12981_v44, %v12845_v54  ;;  %10478 = vmatprep.mubr.bf16.mxu1 %v17855_v24  ;;  %v8584_v44 = vld [vmem:[#allocation6 + $0x110] sm:$0xff]  ;;  %v14244_v24 = vld [vmem:[#allocation6 + $0xe0] sm:$0xff] }
 0x723   : > { %v8793_v58 = vshll.u32 %v8584_v44, 16 }
 0x724   : > { %v12846_v15 = vpop.f32.mrb[164].mxu1 }
 0x725   : > { %v12847_v2 = vpop.f32.mrb[165].mxu1  ;;  %v8795_v50 = vrot.slane %v8793_v58, 1 }
 0x726   : > { %v12848_v48 = vadd.f32 %v12847_v2, %v12846_v15  ;;  %v12849_v45 = vpop.f32.mrb[166].mxu1 }
 0x727   : > { %v12850_v0 = vpop.f32.mrb[167].mxu1 }
 0x728   : > { %v18149_v43 = vadd.f32 %v12984_v7, %v12848_v48  ;;  %v12851_v53 = vadd.f32 %v12850_v0, %v12849_v45  ;;  %v8791_v7 = vshrl.u32 %v8584_v44, 16 }
 0x729   : > { %10479 = vmatmul.mubr.bf16.gmra.mrb[240].mxu1 %v14242_v42 }
 0x72a   : > { %v18151_v46 = vadd.f32 %v12987_v40, %v12851_v53  ;;  %10486 = vmatprep.mubr.bf16.mxu1 %v17864_v20  ;;  %v8796_v54 = vor.u32 %v8795_v50, %v8791_v7  ;;  %v8800_v20 = vrot.slane %v8798_v62, 1 }
 0x72c   : > { %v8801_v40 = vsel %vm1648_vm2, %v8796_v54, %v8800_v20 }
 0x731   : > { %10487 = vmatmul.mubr.bf16.gmra.mrb[244].mxu1 %v14243_v29 }
 0x732   : > { %10494 = vmatprep.mubr.bf16.mxu1 %v17877_v38  ;;  %v8872_v38 = vld [vmem:[#allocation6 + $0x110] sm:$0xfe] }
 0x739   : > { %10495 = vmatmul.mubr.bf16.gmra.mrb[248].mxu1 %v14244_v24 }
 0x73a   : > { %10502 = vmatprep.mubr.bf16.mxu1 %v17886_v60  ;;  %v8873_v60 = vld [vmem:[#allocation6 + $0x118] sm:$0x1] }
 0x741   : > { %10503 = vmatmul.mubr.bf16.gmra.mrb[252].mxu1 %v14245_v1 }
 0x742   : > { %10510 = vmatprep.mubr.bf16.mxu1 %v17894_v13  ;;  %v8961_v13 = vrot.slane %v8872_v38, 1 }
 0x749   : > { %10511 = vmatmul.mubr.bf16.gmra.mrb[0].mxu1 %v14246_v56 }
 0x74a   : > { %10518 = vmatprep.mubr.bf16.mxu1 %v8801_v40 }
 0x751   : > { %10519 = vmatmul.mubr.bf16.gmra.mrb[4].mxu1 %v8584_v44 }
 0x752   : > { %13404 = vmatprep.mubr.bf16.mxu1 %v17906_v8  ;;  %v8962_v8 = vrot.slane %v8873_v60, 1 }
 0x759   : > { %13405 = vmatmul.mubr.bf16.vlgmr.msra.gmra.mrb[168].mxu1 %v17910_v57  ;;  %v8963_v57 = vsel %vm1970_vm1, %v8961_v13, %v8962_v8 }
 0x75a   : > { %13408 = vmatprep.mubr.bf16.mxu1 %v17921_v27 }
 0x761   : > { %13409 = vmatmul.mubr.bf16.gmra.mrb[172].mxu1 %v17925_v63 }
 0x762   : > { %13412 = vmatprep.mubr.bf16.mxu1 %v17935_v47 }
 0x769   : > { %13413 = vmatmul.mubr.bf16.gmra.mrb[176].mxu1 %v17939_v23 }
 0x76a   : > { %13416 = vmatprep.mubr.bf16.mxu1 %v17949_v10 }
 0x771   : > { %13417 = vmatmul.mubr.bf16.gmra.mrb[180].mxu1 %v17953_v4 }
 0x772   : > { %13420 = vmatprep.mubr.bf16.mxu1 %v17960_v59 }
 0x779   : > { %13421 = vmatmul.mubr.bf16.gmra.mrb[184].mxu1 %v17964_v6 }
 0x77a   : > { %13424 = vmatprep.mubr.bf16.mxu1 %v17968_v9 }
 0x781   : > { %13425 = vmatmul.mubr.bf16.gmra.mrb[188].mxu1 %v17972_v5 }
 0x782   : > { %13428 = vmatprep.mubr.bf16.mxu1 %v17976_v3 }
 0x789   : > { %13429 = vmatmul.mubr.bf16.gmra.mrb[192].mxu1 %v17980_v11 }
 0x78a   : > { %13432 = vmatprep.mubr.bf16.mxu1 %v17985_v31 }
 0x791   : > { %13433 = vmatmul.mubr.bf16.gmra.mrb[196].mxu1 %v8963_v57 }
 0x7ac   : > { %v13028_v27 = vpop.f32.mrb[200].mxu1 }
 0x7ad   : > { %v13029_v63 = vpop.f32.mrb[201].mxu1 }
 0x7ae   : > { %v13030_v47 = vadd.f32 %v13029_v63, %v13028_v27  ;;  %v13031_v23 = vpop.f32.mrb[202].mxu1 }
 0x7af   : > { %v13032_v10 = vpop.f32.mrb[203].mxu1 }
 0x7b0   : > { %v13033_v4 = vadd.f32 %v13032_v10, %v13031_v23  ;;  %v18175_v59 = vadd.f32 %v18034_v28, %v13030_v47 }
 0x7b2   : > { %v18178_v6 = vadd.f32 %v18040_v22, %v13033_v4 }
 0x7b4   : > { %v13034_v9 = vpop.f32.mrb[204].mxu1 }
 0x7b5   : > { %v13035_v5 = vpop.f32.mrb[205].mxu1 }
 0x7b6   : > { %v13036_v3 = vadd.f32 %v13035_v5, %v13034_v9  ;;  %v13037_v11 = vpop.f32.mrb[206].mxu1 }
 0x7b7   : > { %v13038_v31 = vpop.f32.mrb[207].mxu1 }
 0x7b8   : > { %v13039_v15 = vadd.f32 %v13038_v31, %v13037_v11  ;;  %v18181_v2 = vadd.f32 %v18052_v49, %v13036_v3 }
 0x7ba   : > { %v18184_v48 = vadd.f32 %v18055_v12, %v13039_v15 }
 0x7bc   : > { %v13040_v45 = vpop.f32.mrb[208].mxu1 }
 0x7bd   : > { %v13041_v0 = vpop.f32.mrb[209].mxu1 }
 0x7be   : > { %v13042_v53 = vadd.f32 %v13041_v0, %v13040_v45  ;;  %v13043_v28 = vpop.f32.mrb[210].mxu1  ;;  %v18580_v0 = vld [vmem:[#allocation43_spill] sm:$0xff] }
 0x7bf   : > { %v13044_v42 = vpop.f32.mrb[211].mxu1 }
 0x7c0   : > { %v13045_v29 = vadd.f32 %v13044_v42, %v13043_v28  ;;  %v18187_v22 = vadd.f32 %v18059_v19, %v13042_v53 }
 0x7c2   : > { %v18190_v44 = vadd.f32 %v18061_v52, %v13045_v29 }
 0x7c4   : > { %v13046_v24 = vpop.f32.mrb[212].mxu1 }
 0x7c5   : > { %v13047_v58 = vpop.f32.mrb[213].mxu1 }
 0x7c6   : > { %v13048_v17 = vadd.f32 %v13047_v58, %v13046_v24  ;;  %v13049_v49 = vpop.f32.mrb[214].mxu1 }
 0x7c7   : > { %v13050_v7 = vpop.f32.mrb[215].mxu1 }
 0x7c8   : > { %v13051_v50 = vadd.f32 %v13050_v7, %v13049_v49  ;;  %v18193_v12 = vadd.f32 %v18065_v61, %v13048_v17  ;;  %v18581_v17 = vld [vmem:[#allocation15_spill] sm:$0xff] }
 0x7ca   : > { %v18196_v62 = vadd.f32 %v18068_v39, %v13051_v50 }
 0x7cc   : > { %v13052_v1 = vpop.f32.mrb[216].mxu1 }
 0x7cd   : > { %v13053_v54 = vpop.f32.mrb[217].mxu1 }
 0x7ce   : > { %v13054_v20 = vadd.f32 %v13053_v54, %v13052_v1  ;;  %v13055_v19 = vpop.f32.mrb[218].mxu1 }
 0x7cf   : > { %v13056_v40 = vpop.f32.mrb[219].mxu1 }
 0x7d0   : > { %v13057_v56 = vadd.f32 %v13056_v40, %v13055_v19  ;;  %v18199_v52 = vadd.f32 %v18071_v36, %v13054_v20  ;;  %v18582_v40 = vld [vmem:[#allocation45_spill] sm:$0xff] }
 0x7d2   : > { %v18202_v38 = vadd.f32 %v18074_v14, %v13057_v56 }
 0x7d4   : > { %v13058_v60 = vpop.f32.mrb[220].mxu1 }
 0x7d5   : > { %v13059_v13 = vpop.f32.mrb[221].mxu1 }
 0x7d6   : > { %v13060_v8 = vadd.f32 %v13059_v13, %v13058_v60  ;;  %v13061_v61 = vpop.f32.mrb[222].mxu1 }
 0x7d7   : > { %v13062_v57 = vpop.f32.mrb[223].mxu1 }
 0x7d8   : > { %v13063_v27 = vadd.f32 %v13062_v57, %v13061_v61  ;;  %v18205_v39 = vadd.f32 %v18080_v32, %v13060_v8 }
 0x7da   : > { %v18208_v63 = vadd.f32 %v18082_v51, %v13063_v27 }
 0x7dc   : > { %v13064_v47 = vpop.f32.mrb[224].mxu1 }
 0x7dd   : > { %v13065_v23 = vpop.f32.mrb[225].mxu1 }
 0x7de   : > { %v13066_v10 = vadd.f32 %v13065_v23, %v13064_v47  ;;  %v13067_v36 = vpop.f32.mrb[226].mxu1  ;;  %v18583_v47 = vld [vmem:[#allocation46_spill] sm:$0xff] }
 0x7df   : > { %v13068_v4 = vpop.f32.mrb[227].mxu1 }
 0x7e0   : > { %v13069_v9 = vadd.f32 %v13068_v4, %v13067_v36  ;;  %v18211_v14 = vadd.f32 %v18092_v18, %v13066_v10 }
 0x7e2   : > { %v18214_v5 = vadd.f32 %v18094_v21, %v13069_v9 }
 0x7e4   : > { %v13070_v3 = vpop.f32.mrb[228].mxu1 }
 0x7e5   : > { %v13071_v11 = vpop.f32.mrb[229].mxu1 }
 0x7e6   : > { %v13072_v31 = vadd.f32 %v13071_v11, %v13070_v3  ;;  %v13073_v32 = vpop.f32.mrb[230].mxu1 }
 0x7e7   : > { %v13074_v15 = vpop.f32.mrb[231].mxu1 }
 0x7e8   : > { %v13075_v45 = vadd.f32 %v13074_v15, %v13073_v32  ;;  %v18217_v51 = vadd.f32 %v18103_v35, %v13072_v31  ;;  %v18584_v31 = vld [vmem:[#allocation47_spill] sm:$0xff] }
 0x7ea   : > { %v18220_v53 = vadd.f32 %v18580_v0, %v13075_v45 }
 0x7ec   : > { %v13076_v28 = vpop.f32.mrb[232].mxu1 }
 0x7ed   : > { %v13077_v42 = vpop.f32.mrb[233].mxu1 }
 0x7ee   : > { %v13078_v29 = vadd.f32 %v13077_v42, %v13076_v28  ;;  %v13079_v18 = vpop.f32.mrb[234].mxu1 }
 0x7ef   : > { %v13080_v24 = vpop.f32.mrb[235].mxu1 }
 0x7f0   : > { %v13081_v58 = vadd.f32 %v13080_v24, %v13079_v18  ;;  %v18223_v21 = vadd.f32 %v18114_v55, %v13078_v29  ;;  %v18585_v18 = vld [vmem:[#allocation48_spill] sm:$0xff] }
 0x7f2   : > { %v18226_v49 = vadd.f32 %v18581_v17, %v13081_v58 }
 0x7f4   : > { %v13082_v7 = vpop.f32.mrb[236].mxu1 }
 0x7f5   : > { %v13083_v50 = vpop.f32.mrb[237].mxu1 }
 0x7f6   : > { %v13084_v1 = vadd.f32 %v13083_v50, %v13082_v7  ;;  %v13085_v35 = vpop.f32.mrb[238].mxu1 }
 0x7f7   : > { %v13086_v54 = vpop.f32.mrb[239].mxu1 }
 0x7f8   : > { %v13087_v20 = vadd.f32 %v13086_v54, %v13085_v35  ;;  %v18229_v19 = vadd.f32 %v18119_v34, %v13084_v1 }
 0x7fa   : > { %v18232_v56 = vadd.f32 %v18582_v40, %v13087_v20 }
 0x7fc   : > { %v13088_v60 = vpop.f32.mrb[240].mxu1 }
 0x7fd   : > { %v13089_v13 = vpop.f32.mrb[241].mxu1 }
 0x7fe   : > { %v13090_v8 = vadd.f32 %v13089_v13, %v13088_v60  ;;  %v13091_v55 = vpop.f32.mrb[242].mxu1 }
 0x7ff   : > { %v13092_v61 = vpop.f32.mrb[243].mxu1 }
 0x800   : > { %v13093_v57 = vadd.f32 %v13092_v61, %v13091_v55  ;;  %v18235_v27 = vadd.f32 %v18124_v33, %v13090_v8 }
 0x802   : > { %v18238_v23 = vadd.f32 %v18583_v47, %v13093_v57 }
 0x804   : > { %v13094_v10 = vpop.f32.mrb[244].mxu1 }
 0x805   : > { %v13095_v36 = vpop.f32.mrb[245].mxu1 }
 0x806   : > { %v13096_v4 = vadd.f32 %v13095_v36, %v13094_v10  ;;  %v13097_v34 = vpop.f32.mrb[246].mxu1 }
 0x807   : > { %v13098_v9 = vpop.f32.mrb[247].mxu1 }
 0x808   : > { %v13099_v3 = vadd.f32 %v13098_v9, %v13097_v34  ;;  %v18241_v11 = vadd.f32 %v18129_v25, %v13096_v4 }
 0x80a   : > { %v18244_v32 = vadd.f32 %v18584_v31, %v13099_v3 }
 0x80c   : > { %v13100_v15 = vpop.f32.mrb[248].mxu1 }
 0x80d   : > { %v13101_v45 = vpop.f32.mrb[249].mxu1 }
 0x80e   : > { %v13102_v0 = vadd.f32 %v13101_v45, %v13100_v15  ;;  %v13103_v33 = vpop.f32.mrb[250].mxu1 }
 0x80f   : > { %v13104_v28 = vpop.f32.mrb[251].mxu1 }
 0x810   : > { %v13105_v42 = vadd.f32 %v13104_v28, %v13103_v33  ;;  %v18247_v29 = vadd.f32 %v18134_v30, %v13102_v0  ;;  %v18586_v28 = vld [vmem:[#allocation13_spill] sm:$0xff] }
 0x812   : > { %v18250_v24 = vadd.f32 %v18585_v18, %v13105_v42 }
 0x814   : > { %v13106_v58 = vpop.f32.mrb[252].mxu1 }
 0x815   : > { %v13107_v17 = vpop.f32.mrb[253].mxu1 }
 0x816   : > { %v13108_v7 = vadd.f32 %v13107_v17, %v13106_v58  ;;  %v13109_v25 = vpop.f32.mrb[254].mxu1  ;;  %v18587_v58 = vld [vmem:[#allocation11_spill] sm:$0xff] }
 0x817   : > { %v13110_v50 = vpop.f32.mrb[255].mxu1 }
 0x818   : > { %v13111_v1 = vadd.f32 %v13110_v50, %v13109_v25  ;;  %v18253_v35 = vadd.f32 %v18139_v37, %v13108_v7  ;;  %v18589_v7 = vld [vmem:[#allocation12_spill] sm:$0xff] }
 0x81a   : > { %v18256_v54 = vadd.f32 %v18141_v26, %v13111_v1 }
 0x81c   : > { %v13112_v20 = vpop.f32.mrb[0].mxu1 }
 0x81d   : > { %v13113_v40 = vpop.f32.mrb[1].mxu1 }
 0x81e   : > { %v13114_v30 = vadd.f32 %v13113_v40, %v13112_v20  ;;  %v13115_v60 = vpop.f32.mrb[2].mxu1 }
 0x81f   : > { %v13116_v13 = vpop.f32.mrb[3].mxu1 }
 0x820   : > { %v13117_v8 = vadd.f32 %v13116_v13, %v13115_v60  ;;  %v18259_v55 = vadd.f32 %v18144_v16, %v13114_v30  ;;  %v18274_v16 = vld [vmem:[%s18467_s7 + $0x6] ss:$0 sm:$0xff] }
 0x822   : > { %v18262_v61 = vadd.f32 %v18146_v41, %v13117_v8 }
 0x824   : > { %v13118_v57 = vpop.f32.mrb[4].mxu1 }
 0x825   : > { %v13119_v37 = vpop.f32.mrb[5].mxu1 }
 0x826   : > { %v13120_v47 = vadd.f32 %v13119_v37, %v13118_v57  ;;  %v13121_v10 = vpop.f32.mrb[6].mxu1  ;;  %v18590_v37 = vld [vmem:[#allocation18_spill] sm:$0xff] }
 0x827   : > { %v13122_v26 = vpop.f32.mrb[7].mxu1 }
 0x828   : > { %v13123_v36 = vadd.f32 %v13122_v26, %v13121_v10  ;;  %v18265_v4 = vadd.f32 %v18149_v43, %v13120_v47  ;;  %v18591_v10 = vld [vmem:[#allocation16_spill] sm:$0xff] }
 0x82a   : > { %v18269_v34 = vadd.f32 %v18151_v46, %v13123_v36  ;;  %v18592_v36 = vld [vmem:[#allocation19_spill] sm:$0xff] }
 0x82c   : > { %v13406_v41 = vpop.f32.mrb[168].mxu1 }
 0x82d   : > { %v13562_v9 = vadd.f32 %v18181_v2, %v13406_v41  ;;  %v10561_v3 = vpop.f32.mrb[169].mxu1 }
 0x82e   : > { %v13565_v31 = vadd.f32 %v18175_v59, %v10561_v3  ;;  %v13407_v15 = vpop.f32.mrb[170].mxu1  ;;  %v18588_v59 = vld [vmem:[#allocation14_spill] sm:$0xff] }
 0x82f   : > { %v10726_v43 = vadd.f32 %v13562_v9, %v18274_v16  ;;  %v13568_v45 = vadd.f32 %v18184_v48, %v13407_v15  ;;  %v10564_v46 = vpop.f32.mrb[171].mxu1  ;;  %v18593_v9 = vld [vmem:[#allocation17_spill] sm:$0xff] }
 0x830   : > { %v10724_v0 = vadd.f32 %v13565_v31, %v18274_v16  ;;  %v13571_v33 = vadd.f32 %v18178_v6, %v10564_v46 }
 0x831   : > { %v10790_v42 = vadd.f32 %v10726_v43, %v18586_v28  ;;  %v10727_v18 = vadd.f32 %v13568_v45, %v18274_v16 }
 0x832   : > { %v10788_v17 = vadd.f32 %v10724_v0, %v18587_v58  ;;  %v10725_v2 = vadd.f32 %v13571_v33, %v18274_v16  ;;  %v18595_v58 = vld [vmem:[#allocation20_spill] sm:$0xff] }
 0x833   : > { %10822 = vst [vmem:[%s18288_s10 + $0x10] sm:$0xff] %v10790_v42  ;;  %v10791_v48 = vadd.f32 %v10727_v18, %v18588_v59  ;;  %v18594_v42 = vld [vmem:[#allocation22_spill] sm:$0xff] }
 0x834   : > { %10820 = vst [vmem:[%s18288_s10] sm:$0xff] %v10788_v17  ;;  %v10789_v6 = vadd.f32 %v10725_v2, %v18589_v7  ;;  %v13410_v25 = vpop.f32.mrb[172].mxu1  ;;  %v18596_v2 = vld [vmem:[#allocation23_spill] sm:$0xff] }
 0x835   : > { %10823 = vst [vmem:[%s18288_s10 + $0x18] sm:$0xff] %v10791_v48  ;;  %v13574_v50 = vadd.f32 %v18193_v12, %v13410_v25  ;;  %v10577_v1 = vpop.f32.mrb[173].mxu1  ;;  %v18597_v48 = vld [vmem:[#allocation21_spill] sm:$0xff] }
 0x836   : > { %10821 = vst [vmem:[%s18288_s10 + $0x8] sm:$0xff] %v10789_v6  ;;  %v13577_v20 = vadd.f32 %v18187_v22, %v10577_v1  ;;  %v13411_v40 = vpop.f32.mrb[174].mxu1 }
 0x837   : > { %v10730_v30 = vadd.f32 %v13574_v50, %v18274_v16  ;;  %v13580_v60 = vadd.f32 %v18196_v62, %v13411_v40  ;;  %v10580_v13 = vpop.f32.mrb[175].mxu1 }
 0x838   : > { %v10728_v8 = vadd.f32 %v13577_v20, %v18274_v16  ;;  %v13583_v57 = vadd.f32 %v18190_v44, %v10580_v13  ;;  %v18598_v13 = vld [vmem:[#allocation26_spill] sm:$0xff] }
 0x839   : > { %v10794_v47 = vadd.f32 %v10730_v30, %v18590_v37  ;;  %v10731_v12 = vadd.f32 %v13580_v60, %v18274_v16 }
 0x83a   : > { %v10792_v26 = vadd.f32 %v10728_v8, %v18591_v10  ;;  %v10729_v22 = vadd.f32 %v13583_v57, %v18274_v16  ;;  %v18599_v57 = vld [vmem:[#allocation24_spill] sm:$0xff]  ;;  %v18601_v10 = vld [vmem:[#allocation25_spill] sm:$0xff] }
 0x83b   : > { %10826 = vst [vmem:[%s18288_s10 + $0x30] sm:$0xff] %v10794_v47  ;;  %v10795_v41 = vadd.f32 %v10731_v12, %v18592_v36  ;;  %v18600_v47 = vld [vmem:[#allocation27_spill] sm:$0xff] }
 0x83c   : > { %10824 = vst [vmem:[%s18288_s10 + $0x20] sm:$0xff] %v10792_v26  ;;  %v10793_v62 = vadd.f32 %v10729_v22, %v18593_v9  ;;  %v13414_v3 = vpop.f32.mrb[176].mxu1 }
 0x83d   : > { %10827 = vst [vmem:[%s18288_s10 + $0x38] sm:$0xff] %v10795_v41  ;;  %v13586_v31 = vadd.f32 %v18205_v39, %v13414_v3  ;;  %v10593_v44 = vpop.f32.mrb[177].mxu1 }
 0x83e   : > { %10825 = vst [vmem:[%s18288_s10 + $0x28] sm:$0xff] %v10793_v62  ;;  %v13589_v15 = vadd.f32 %v18199_v52, %v10593_v44  ;;  %v13415_v43 = vpop.f32.mrb[178].mxu1 }
 0x83f   : > { %v10734_v45 = vadd.f32 %v13586_v31, %v18274_v16  ;;  %v13592_v46 = vadd.f32 %v18208_v63, %v13415_v43  ;;  %v10596_v0 = vpop.f32.mrb[179].mxu1 }
 0x840   : > { %v10732_v33 = vadd.f32 %v13589_v15, %v18274_v16  ;;  %v13595_v28 = vadd.f32 %v18202_v38, %v10596_v0  ;;  %v18602_v15 = vld [vmem:[#allocation30_spill] sm:$0xff]  ;;  %v18604_v0 = vld [vmem:[#allocation31_spill] sm:$0xff] }
 0x841   : > { %v10798_v18 = vadd.f32 %v10734_v45, %v18594_v42  ;;  %v10735_v39 = vadd.f32 %v13592_v46, %v18274_v16  ;;  %v18603_v45 = vld [vmem:[#allocation28_spill] sm:$0xff] }
 0x842   : > { %v10796_v17 = vadd.f32 %v10732_v33, %v18595_v58  ;;  %v10733_v52 = vadd.f32 %v13595_v28, %v18274_v16  ;;  %v18605_v28 = vld [vmem:[#allocation29_spill] sm:$0xff] }
 0x843   : > { %10830 = vst [vmem:[%s18288_s10 + $0x50] sm:$0xff] %v10798_v18  ;;  %v10799_v59 = vadd.f32 %v10735_v39, %v18596_v2 }
 0x844   : > { %10828 = vst [vmem:[%s18288_s10 + $0x40] sm:$0xff] %v10796_v17  ;;  %v10797_v63 = vadd.f32 %v10733_v52, %v18597_v48  ;;  %v13418_v7 = vpop.f32.mrb[180].mxu1 }
 0x845   : > { %10831 = vst [vmem:[%s18288_s10 + $0x58] sm:$0xff] %v10799_v59  ;;  %v13598_v6 = vadd.f32 %v18217_v51, %v13418_v7  ;;  %v10609_v38 = vpop.f32.mrb[181].mxu1 }
 0x846   : > { %10829 = vst [vmem:[%s18288_s10 + $0x48] sm:$0xff] %v10797_v63  ;;  %v13601_v25 = vadd.f32 %v18211_v14, %v10609_v38  ;;  %v13419_v50 = vpop.f32.mrb[182].mxu1  ;;  %v18606_v63 = vld [vmem:[#allocation34_spill] sm:$0xff] }
 0x847   : > { %v10738_v1 = vadd.f32 %v13598_v6, %v18274_v16  ;;  %v13604_v20 = vadd.f32 %v18220_v53, %v13419_v50  ;;  %v10612_v40 = vpop.f32.mrb[183].mxu1  ;;  %v18607_v6 = vld [vmem:[#allocation32_spill] sm:$0xff] }
 0x848   : > { %v10736_v30 = vadd.f32 %v13601_v25, %v18274_v16  ;;  %v13607_v60 = vadd.f32 %v18214_v5, %v10612_v40  ;;  %v18608_v25 = vld [vmem:[#allocation35_spill] sm:$0xff] }
 0x849   : > { %v10802_v8 = vadd.f32 %v10738_v1, %v18598_v13  ;;  %v10739_v51 = vadd.f32 %v13604_v20, %v18274_v16  ;;  %v18609_v1 = vld [vmem:[#allocation33_spill] sm:$0xff] }
 0x84a   : > { %v10800_v37 = vadd.f32 %v10736_v30, %v18599_v57  ;;  %v10737_v14 = vadd.f32 %v13607_v60, %v18274_v16 }
 0x84b   : > { %10834 = vst [vmem:[%s18288_s10 + $0x70] sm:$0xff] %v10802_v8  ;;  %v10803_v12 = vadd.f32 %v10739_v51, %v18600_v47 }
 0x84c   : > { %10832 = vst [vmem:[%s18288_s10 + $0x60] sm:$0xff] %v10800_v37  ;;  %v10801_v53 = vadd.f32 %v10737_v14, %v18601_v10  ;;  %v13422_v26 = vpop.f32.mrb[184].mxu1  ;;  %v18610_v14 = vld [vmem:[#allocation38_spill] sm:$0xff] }
 0x84d   : > { %10835 = vst [vmem:[%s18288_s10 + $0x78] sm:$0xff] %v10803_v12  ;;  %v13610_v22 = vadd.f32 %v18229_v19, %v13422_v26  ;;  %v10625_v5 = vpop.f32.mrb[185].mxu1  ;;  %v18611_v12 = vld [vmem:[#allocation36_spill] sm:$0xff] }
 0x84e   : > { %10833 = vst [vmem:[%s18288_s10 + $0x68] sm:$0xff] %v10801_v53  ;;  %v13613_v36 = vadd.f32 %v18223_v21, %v10625_v5  ;;  %v13423_v41 = vpop.f32.mrb[186].mxu1  ;;  %v18612_v53 = vld [vmem:[#allocation39_spill] sm:$0xff] }
 0x84f   : > { %v10742_v9 = vadd.f32 %v13610_v22, %v18274_v16  ;;  %v13616_v62 = vadd.f32 %v18232_v56, %v13423_v41  ;;  %v10628_v3 = vpop.f32.mrb[187].mxu1 }
 0x850   : > { %v10740_v31 = vadd.f32 %v13613_v36, %v18274_v16  ;;  %v13619_v44 = vadd.f32 %v18226_v49, %v10628_v3 }
 0x851   : > { %v10806_v43 = vadd.f32 %v10742_v9, %v18602_v15  ;;  %v10743_v19 = vadd.f32 %v13616_v62, %v18274_v16 }
 0x852   : > { %v10804_v46 = vadd.f32 %v10740_v31, %v18603_v45  ;;  %v10741_v21 = vadd.f32 %v13619_v44, %v18274_v16 }
 0x853   : > { %10838 = vst [vmem:[%s18288_s10 + $0x90] sm:$0xff] %v10806_v43  ;;  %v10807_v33 = vadd.f32 %v10743_v19, %v18604_v0  ;;  %v18615_v19 = vld [vmem:[#allocation40_spill] sm:$0xff] }
 0x854   : > { %10836 = vst [vmem:[%s18288_s10 + $0x80] sm:$0xff] %v10804_v46  ;;  %v10805_v56 = vadd.f32 %v10741_v21, %v18605_v28  ;;  %v13426_v42 = vpop.f32.mrb[188].mxu1 }
 0x855   : > { %10839 = vst [vmem:[%s18288_s10 + $0x98] sm:$0xff] %v10807_v33  ;;  %v13622_v18 = vadd.f32 %v18241_v11, %v13426_v42  ;;  %v10641_v49 = vpop.f32.mrb[189].mxu1 }
 0x856   : > { %10837 = vst [vmem:[%s18288_s10 + $0x88] sm:$0xff] %v10805_v56  ;;  %v13625_v39 = vadd.f32 %v18235_v27, %v10641_v49  ;;  %v13427_v58 = vpop.f32.mrb[190].mxu1 }
 0x857   : > { %v10746_v17 = vadd.f32 %v13622_v18, %v18274_v16  ;;  %v13628_v52 = vadd.f32 %v18244_v32, %v13427_v58  ;;  %v10644_v2 = vpop.f32.mrb[191].mxu1 }
 0x858   : > { %v10744_v59 = vadd.f32 %v13625_v39, %v18274_v16  ;;  %v13631_v48 = vadd.f32 %v18238_v23, %v10644_v2 }
 0x859   : > { %v10810_v7 = vadd.f32 %v10746_v17, %v18606_v63  ;;  %v10747_v11 = vadd.f32 %v13628_v52, %v18274_v16 }
 0x85a   : > { %v10808_v38 = vadd.f32 %v10744_v59, %v18607_v6  ;;  %v10745_v27 = vadd.f32 %v13631_v48, %v18274_v16 }
 0x85b   : > { %10842 = vst [vmem:[%s18288_s10 + $0xb0] sm:$0xff] %v10810_v7  ;;  %v10811_v50 = vadd.f32 %v10747_v11, %v18608_v25 }
 0x85c   : > { %10840 = vst [vmem:[%s18288_s10 + $0xa0] sm:$0xff] %v10808_v38  ;;  %v10809_v32 = vadd.f32 %v10745_v27, %v18609_v1  ;;  %v13430_v20 = vpop.f32.mrb[192].mxu1 }
 0x85d   : > { %10843 = vst [vmem:[%s18288_s10 + $0xb8] sm:$0xff] %v10811_v50  ;;  %v13634_v40 = vadd.f32 %v18253_v35, %v13430_v20  ;;  %v10657_v23 = vpop.f32.mrb[193].mxu1 }
 0x85e   : > { %10841 = vst [vmem:[%s18288_s10 + $0xa8] sm:$0xff] %v10809_v32  ;;  %v13637_v30 = vadd.f32 %v18247_v29, %v10657_v23  ;;  %v13431_v60 = vpop.f32.mrb[194].mxu1 }
 0x85f   : > { %v10750_v13 = vadd.f32 %v13634_v40, %v18274_v16  ;;  %v13640_v8 = vadd.f32 %v18256_v54, %v13431_v60  ;;  %v10660_v51 = vpop.f32.mrb[195].mxu1  ;;  %v18613_v54 = vld [vmem:[#allocation37_spill] sm:$0xff] }
 0x860   : > { %v10748_v57 = vadd.f32 %v13637_v30, %v18274_v16  ;;  %v13643_v37 = vadd.f32 %v18250_v24, %v10660_v51 }
 0x861   : > { %v10814_v47 = vadd.f32 %v10750_v13, %v18610_v14  ;;  %v10751_v35 = vadd.f32 %v13640_v8, %v18274_v16 }
 0x862   : > { %v10812_v10 = vadd.f32 %v10748_v57, %v18611_v12  ;;  %v10749_v29 = vadd.f32 %v13643_v37, %v18274_v16 }
 0x863   : > { %10846 = vst [vmem:[%s18288_s10 + $0xd0] sm:$0xff] %v10814_v47  ;;  %v10815_v26 = vadd.f32 %v10751_v35, %v18612_v53 }
 0x864   : > { %10844 = vst [vmem:[%s18288_s10 + $0xc0] sm:$0xff] %v10812_v10  ;;  %v10813_v22 = vadd.f32 %v10749_v29, %v18613_v54  ;;  %v13434_v5 = vpop.f32.mrb[196].mxu1 }
 0x865   : > { %10847 = vst [vmem:[%s18288_s10 + $0xd8] sm:$0xff] %v10815_v26  ;;  %v13646_v24 = vadd.f32 %v18265_v4, %v13434_v5  ;;  %v10673_v36 = vpop.f32.mrb[197].mxu1  ;;  %v18614_v4 = vld [vmem:[#allocation42_spill] sm:$0xff] }
 0x866   : > { %10845 = vst [vmem:[%s18288_s10 + $0xc8] sm:$0xff] %v10813_v22  ;;  %v13649_v41 = vadd.f32 %v18259_v55, %v10673_v36  ;;  %v13435_v9 = vpop.f32.mrb[198].mxu1 }
 0x867   : > { %v10754_v62 = vadd.f32 %v13646_v24, %v18274_v16  ;;  %v13652_v3 = vadd.f32 %v18269_v34, %v13435_v9  ;;  %v10676_v31 = vpop.f32.mrb[199].mxu1  ;;  %v18616_v34 = vld [vmem:[#allocation44_spill] sm:$0xff] }
 0x868   : > { %v10752_v44 = vadd.f32 %v13649_v41, %v18274_v16  ;;  %v13655_v15 = vadd.f32 %v18262_v61, %v10676_v31  ;;  %v18617_v61 = vld [vmem:[#allocation41_spill] sm:$0xff] }
 0x869   : > { %v10818_v43 = vadd.f32 %v10754_v62, %v18614_v4  ;;  %v10755_v55 = vadd.f32 %v13652_v3, %v18274_v16 }
 0x86a   : > { %v10816_v45 = vadd.f32 %v10752_v44, %v18615_v19  ;;  %v10753_v46 = vadd.f32 %v13655_v15, %v18274_v16 }
 0x86b   : > { %10850 = vst [vmem:[%s18288_s10 + $0xf0] sm:$0xff] %v10818_v43  ;;  %v10819_v21 = vadd.f32 %v10755_v55, %v18616_v34 }
 0x86c   : > { %10848 = vst [vmem:[%s18288_s10 + $0xe0] sm:$0xff] %v10816_v45  ;;  %v10817_v0 = vadd.f32 %v10753_v46, %v18617_v61 }
 0x86d   : > { %10851 = vst [vmem:[%s18288_s10 + $0xf8] sm:$0xff] %v10819_v21 }
 0x86e   : > { %10849 = vst [vmem:[%s18288_s10 + $0xe8] sm:$0xff] %v10817_v0 }
 0x86f   : > { %14260 = shalt.err (!%p14257_p3)
}
 0x870   : > { %s14261_s22 = scalar_lea.hbm %s18409_s18, 4096  ;;  %s14265_s10 = scalar_lea.hbm %s18468_s8, 8192 }
 0x871   : > { %p14262_p4 = scmp.ne.s32.totalorder %s18409_s18, %s14261_s22  ;;  %p14266_p9 = scmp.lt.u32.totalorder %s18409_s18, %s18468_s8 }
 0x872   : > { %p14267_p10 = scmp.lt.u32.totalorder %s14265_s10, %s14261_s22  ;;  %p14269_p12 = scmp.lt.u32.totalorder %s14261_s22, %s18409_s18 }
 0x873   : > { %p14263_p7 = pnand %p14262_p4, %p14398_p5 }
 0x874   : > { %p14268_p11 = por %p14267_p10, %p14266_p9 }
 0x875   : > { %p14264_p8 = pneg %p14263_p7 }
 0x876   : > { %p14270_p13 = por %p14269_p12, %p14268_p11 }
 0x878   : > { %p14271_p0 = pnand %p14270_p13, %p14264_p8 }
 0x87a   : > { %14274 = shalt.err (!%p14271_p0)
}
 0x87b   : > { %s14313_s17 = smov 128   ;;  %s14314_s19 = smov 8  }
 0x87c   : > { %13785 = dma.vmem_to_hbm [thread:$0]  (%p14398_p5), %s18411_s26, 4096, %s18409_s18, %s18419_s9, %s14313_s17, %s14313_s17, %s14314_s19  }
 0x87d PF: > { %p13791_p1 = scmp.ge.s32.totalorder %s14309_s30, 2  ;;  %s10881_s13 = sand.u32 1, %s14297_s27  }
 0x87e   : > { %s10882_s20 = scalar_lea.sflag [#allocation9], %s10881_s13 }
 0x87f   : > { %p13788_p2 = pnand %p13791_p1, %p14402_p6 }
 0x881   : > { %14292 = dma.done.wait (!%p13788_p2), %s10882_s20, 4096  }
 0x882   : > { %14294 = vsyncadd (!%p13788_p2), %s10882_s20, 4294963200  ;;  %p18_p3 = scmp.ge.s32.totalorder %s14385_s11, 4   ;;  %s18618_s27 = smov %s14301_s28 }
 0x883   : > { %s18619_s28 = smov %s14305_s29  ;;  %s18620_s29 = smov %s14396_s14 }
 0x884   : > { %s18621_s30 = smov %s14385_s11  ;;  %20 = sbr.rel (!%p18_p3) target bundleno = 3 (0x3), region = 107 }
 0x88b   :  { %10887 = vsyncpa [#allocation9], 1 }
 0x88c   :  { %10889 = vsyncpa [#allocation9 + $0x1], 1 }

</bundles_post_ra>
